<compile_context>
chip_gen: v7x
topology: tpu7x:2x2x1
jax: 0.10.0
libtpu: 0.0.40
codegen_flags: <defaults>
</compile_context>

<pallas_src>
import jax
import jax.numpy as jnp
from jax import lax
from jax.experimental import pallas as pl
from jax.experimental.pallas import tpu as pltpu
import numpy as np

EMB_DIM = 300
EMB_PAD = 384          # 300 padded up to a multiple of 128 lanes
NUM_CLASSES = 6


def bilstm_attention_kernel(
    emb_ref,                                   # (T*B, 384) bf16, time-major rows (t*B + b)
    wx0_ref, wh0_ref, b0_ref,                  # layer 0 fused weights (bf16, bf16, f32)
    wx1_hbm, wh1_hbm, b1_ref,                  # layer 1 weights (wx/wh stay in HBM)
    w_om_ref, u_om_ref, fc_w_ref, fc_b_ref,    # attention + fc params
    out_ref,                                   # (B, 6) f32
    gin_ref, gmg_ref, hraw_ref, out0_ref, out1_ref,   # VMEM scratch
    wx1_vmem, wh1_vmem, w_sem,                 # layer-1 weight prefetch buffers + DMA sems
):
    B = out_ref.shape[0]
    TB, H8 = gin_ref.shape
    T = TB // B
    H2 = hraw_ref.shape[1]                     # 2H (lane-dense hidden width)
    H = H2 // 2

    # Overlap the layer-1 weight DMA with the layer-0 recurrence (exposed-DMA win on v5e,
    # near-free elsewhere).  b1 (2 KB) is left as a normal VMEM input.
    cp_wx1 = pltpu.make_async_copy(wx1_hbm, wx1_vmem, w_sem.at[0])
    cp_wh1 = pltpu.make_async_copy(wh1_hbm, wh1_vmem, w_sem.at[1])
    cp_wx1.start()
    cp_wh1.start()

    # lanes [H, 2H) of each 2H gate block / of the hidden tile belong to the backward dir
    lane_g = lax.broadcasted_iota(jnp.int32, (B, H8), 1)
    is_bwd_g = (lane_g % H2) >= H
    lane_h = lax.broadcasted_iota(jnp.int32, (B, H2), 1)
    is_bwd_h = lane_h >= H

    def input_proj(x_bf16, wx_ref, b_ref):
        # one big bf16 matmul for every timestep & both directions; bias folded in (f32)
        gin_ref[...] = jnp.dot(x_bf16, wx_ref[...],
                               preferred_element_type=jnp.float32) + b_ref[...]

    def merge_directions():
        # gmg[t] = [fwd gate lanes of gin[t] | bwd gate lanes of gin[T-1-t]]
        # Hoisted out of the serial recurrence: no cross-step dependencies, pipelines freely.
        for t in range(T):
            fwd = gin_ref[t * B:(t + 1) * B, :]
            bwd = gin_ref[(T - 1 - t) * B:(T - t) * B, :]
            gmg_ref[t * B:(t + 1) * B, :] = jnp.where(is_bwd_g, bwd, fwd)

    def run_layer(wh_ref, out_h_ref):
        # Carried state stays f32; only matmul operands are cast to bf16.
        h = jnp.zeros((B, H2), jnp.float32)    # [h_fwd | h_bwd]
        c = jnp.zeros((B, H2), jnp.float32)    # [c_fwd | c_bwd]
        # T=12 static unroll: live set per step is small (h, c + a few transients);
        # switch to lax.fori_loop(..., unroll=...) only if a bundle dump shows spills.
        for t in range(T):
            gates = (gmg_ref[t * B:(t + 1) * B, :]
                     + jnp.dot(h.astype(jnp.bfloat16), wh_ref[...],
                               preferred_element_type=jnp.float32))
            # sigmoid(x) = 0.5*tanh(0.5*x) + 0.5 : one EUP push + FMA, no exp / divide
            s = 0.5 * jnp.tanh(0.5 * gates[:, :3 * H2]) + 0.5   # [i_f i_b | f_f f_b | o_f o_b]
            g_new = jnp.tanh(gates[:, 3 * H2:])                 # [g_f g_b]
            i_g = s[:, :H2]
            f_g = s[:, H2:2 * H2]
            o_g = s[:, 2 * H2:3 * H2]
            c = f_g * c + i_g * g_new
            h = o_g * jnp.tanh(c)
            # single unmasked 128-lane store per step (loop-ordered buffer)
            hraw_ref[t * B:(t + 1) * B, :] = h
        # bulk time-realignment: bwd half produced at loop step t belongs to time T-1-t
        for t in range(T):
            fwd = hraw_ref[t * B:(t + 1) * B, :]
            bwd = hraw_ref[(T - 1 - t) * B:(T - t) * B, :]
            out_h_ref[t * B:(t + 1) * B, :] = jnp.where(is_bwd_h, bwd, fwd)

    # ----- layer 0 : input = embeddings (384, zero-padded from 300) --------
    input_proj(emb_ref[...], wx0_ref, b0_ref)
    merge_directions()
    run_layer(wh0_ref, out0_ref)

    # ----- layer 1 : input = layer-0 bidirectional output (2H) -------------
    cp_wx1.wait()
    cp_wh1.wait()
    # TODO(synk): inter-layer LSTM dropout (p=0.5) is eval-mode identity here.
    input_proj(out0_ref[...].astype(jnp.bfloat16), wx1_vmem, b1_ref)
    merge_directions()
    run_layer(wh1_vmem, out1_ref)

    # ----- attention (fully vectorized) ------------------------------------
    x2d = out1_ref[...]                                          # (T*B, 2H) f32
    u2d = jnp.tanh(jnp.dot(x2d.astype(jnp.bfloat16), w_om_ref[...],
                           preferred_element_type=jnp.float32))  # (T*B, 2H)
    x3 = x2d.reshape(T, B, H2)
    u3 = u2d.reshape(T, B, H2)
    att = jnp.sum(u3 * u_om_ref[...], axis=-1, keepdims=True)    # (T, B, 1)
    att = att - jnp.max(att, axis=0, keepdims=True)
    e = jnp.exp(att)
    score = e * pl.reciprocal(jnp.sum(e, axis=0, keepdims=True), approx=True)
    context = jnp.sum(x3 * score, axis=0)                        # (B, 2H) f32
    out_ref[...] = (jnp.dot(context.astype(jnp.bfloat16), fc_w_ref[...],
                            preferred_element_type=jnp.float32) + fc_b_ref[...])


def bilstm_attention_pallas(emb_tbd, p):
    T, B, E = emb_tbd.shape
    H2, H8 = p["wh0"].shape                    # (2H, 8H)
    B_pad = max(8, -(-B // 8) * 8)             # pad batch to a full sublane tile
    if B_pad != B:
        emb_tbd = jnp.pad(emb_tbd, ((0, 0), (0, B_pad - B), (0, 0)))
    if E != EMB_PAD:
        emb_tbd = jnp.pad(emb_tbd, ((0, 0), (0, 0), (0, EMB_PAD - E)))
    emb_flat = emb_tbd.reshape(T * B_pad, EMB_PAD).astype(jnp.bfloat16)   # row = t*B_pad + b

    vmem = pl.BlockSpec(memory_space=pltpu.MemorySpace.VMEM)
    hbm = pl.BlockSpec(memory_space=pl.ANY)    # layer-1 weights: manual DMA inside kernel
    args = (emb_flat,
            p["wx0"], p["wh0"], p["b0"],
            p["wx1"], p["wh1"], p["b1"],
            p["w_omega_bf16"], p["u_omegaT"], p["fc_wT_bf16"], p["fc_b"])
    in_specs = [vmem,
                vmem, vmem, vmem,
                hbm, hbm, vmem,
                vmem, vmem, vmem, vmem]
    # TODO(synk): for large batches on v7x, add a parallel batch-tile grid axis so both
    # TensorCores are used; at B_pad=8 a grid-less single-core kernel is the right shape.
    out = pl.pallas_call(
        bilstm_attention_kernel,
        out_shape=jax.ShapeDtypeStruct((B_pad, NUM_CLASSES), jnp.float32),
        in_specs=in_specs,
        out_specs=vmem,
        scratch_shapes=[
            pltpu.VMEM((T * B_pad, H8), jnp.float32),   # raw gate inputs
            pltpu.VMEM((T * B_pad, H8), jnp.float32),   # direction-merged gate inputs
            pltpu.VMEM((T * B_pad, H2), jnp.float32),   # loop-ordered per-step hidden
            pltpu.VMEM((T * B_pad, H2), jnp.float32),   # layer-0 time-aligned outputs
            pltpu.VMEM((T * B_pad, H2), jnp.float32),   # layer-1 time-aligned outputs
            pltpu.VMEM(p["wx1"].shape, p["wx1"].dtype), # layer-1 wx prefetch buffer
            pltpu.VMEM(p["wh1"].shape, p["wh1"].dtype), # layer-1 wh prefetch buffer
            pltpu.SemaphoreType.DMA((2,)),              # layer-1 weight DMA semaphores
        ],
    )(*args)
    return out[:B]


def init_params(key, token_size, token_size_meta, hidden_dim=64):
    H = hidden_dim
    keys = jax.random.split(key, 32)

    def u(k, shape, scale=0.1):
        return jax.random.uniform(k, shape, jnp.float32, -scale, scale)

    params = {
        "emb": u(keys[0], (token_size, EMB_DIM)),
        "meta_emb": u(keys[1], (token_size_meta, EMB_DIM)),
    }

    # raw params in torch nn.LSTM convention (gate rows ordered i, f, g, o), kept f32
    raw = {}
    idx = 2
    for layer, in_size in ((0, EMB_DIM), (1, 2 * H)):
        for d in ("f", "b"):
            raw[f"wih_{d}{layer}"] = u(keys[idx], (4 * H, in_size)); idx += 1
            raw[f"whh_{d}{layer}"] = u(keys[idx], (4 * H, H)); idx += 1
            raw[f"bih_{d}{layer}"] = u(keys[idx], (4 * H,)); idx += 1
            raw[f"bhh_{d}{layer}"] = u(keys[idx], (4 * H,)); idx += 1
    params["raw"] = raw

    # ---- pack fused kernel weights (bf16 MXU operands, f32 biases) ---------
    def split4(w):  # split the 4H gate axis in torch order i, f, g, o
        return {"i": w[0:H], "f": w[H:2 * H], "g": w[2 * H:3 * H], "o": w[3 * H:4 * H]}

    GATE_ORDER = ("i", "f", "o", "g")   # sigmoid gates first, tanh gate last

    def pack_layer(layer):
        wif, wib = split4(raw[f"wih_f{layer}"]), split4(raw[f"wih_b{layer}"])
        whf, whb = split4(raw[f"whh_f{layer}"]), split4(raw[f"whh_b{layer}"])
        bf = split4(raw[f"bih_f{layer}"] + raw[f"bhh_f{layer}"])
        bb = split4(raw[f"bih_b{layer}"] + raw[f"bhh_b{layer}"])
        zero = jnp.zeros((H, H), jnp.float32)
        wx_cols, wh_cols, b_cols = [], [], []
        for g in GATE_ORDER:
            wx_cols.append(jnp.concatenate([wif[g].T, wib[g].T], axis=1))     # (in, 2H)
            top = jnp.concatenate([whf[g].T, zero], axis=1)                    # (H, 2H)
            bot = jnp.concatenate([zero, whb[g].T], axis=1)                    # (H, 2H)
            wh_cols.append(jnp.concatenate([top, bot], axis=0))                # (2H, 2H)
            b_cols.append(jnp.concatenate([bf[g], bb[g]], axis=0))             # (2H,)
        wx = jnp.concatenate(wx_cols, axis=1)                                  # (in, 8H)
        if layer == 0:
            # zero-pad the ragged 300-lane contraction up to 384 (3 full 128-lane tiles)
            wx = jnp.pad(wx, ((0, EMB_PAD - EMB_DIM), (0, 0)))
        wh = jnp.concatenate(wh_cols, axis=1)                                  # (2H, 8H)
        b = jnp.concatenate(b_cols, axis=0).reshape(1, 8 * H)                  # (1, 8H) f32
        return wx.astype(jnp.bfloat16), wh.astype(jnp.bfloat16), b

    params["wx0"], params["wh0"], params["b0"] = pack_layer(0)
    params["wx1"], params["wh1"], params["b1"] = pack_layer(1)

    params["w_omega"] = u(keys[idx], (2 * H, 2 * H)); idx += 1
    params["u_omegaT"] = u(keys[idx], (2 * H, 1)).T; idx += 1                  # (1, 2H) f32
    fc_w = u(keys[idx], (NUM_CLASSES, 2 * H)); idx += 1
    fc_b = u(keys[idx], (NUM_CLASSES,)); idx += 1
    params["fc_wT"] = fc_w.T                                                   # (2H, 6) f32
    params["fc_b"] = fc_b.reshape(1, NUM_CLASSES)
    # kernel-side bf16 copies of the remaining matmul operands (reference keeps f32)
    params["w_omega_bf16"] = params["w_omega"].astype(jnp.bfloat16)
    params["fc_wT_bf16"] = params["fc_wT"].astype(jnp.bfloat16)
    return params


def model_forward(params, x_tok, meta_tok):
    # Embedding gathers + concat + transpose are glue (plain JAX).
    # TODO(synk): nn.Dropout(0.5) on the embedding is eval-mode identity (no RNG mask).
    emb = params["emb"][x_tok]                 # (B, Sx, 300)
    memb = params["meta_emb"][meta_tok]        # (B, Sm, 300)
    cat = jnp.concatenate([emb, memb], axis=1)          # (B, T, 300)
    emb_tbd = jnp.transpose(cat, (1, 0, 2))             # (T, B, 300) time-major
    return bilstm_attention_pallas(emb_tbd, params)


def reference_forward(params, x_tok, meta_tok):
    """Pure-JAX f32 reference with torch LSTM semantics (uses the raw, un-packed weights)."""
    raw = params["raw"]
    emb = params["emb"][x_tok]
    memb = params["meta_emb"][meta_tok]
    x = jnp.transpose(jnp.concatenate([emb, memb], axis=1), (1, 0, 2))   # (T, B, E)
    T, B, _ = x.shape
    H = raw["whh_f0"].shape[1]

    def run_dir(inp, wih, whh, b, reverse):
        seq = inp[::-1] if reverse else inp

        def step(carry, x_t):
            h, c = carry
            g = x_t @ wih.T + h @ whh.T + b
            i = jax.nn.sigmoid(g[:, :H])
            f = jax.nn.sigmoid(g[:, H:2 * H])
            gg = jnp.tanh(g[:, 2 * H:3 * H])
            o = jax.nn.sigmoid(g[:, 3 * H:])
            c = f * c + i * gg
            h = o * jnp.tanh(c)
            return (h, c), h

        zero = jnp.zeros((B, H), jnp.float32)
        _, hs = lax.scan(step, (zero, zero), seq)
        return hs[::-1] if reverse else hs

    def layer(inp, l):
        hf = run_dir(inp, raw[f"wih_f{l}"], raw[f"whh_f{l}"],
                     raw[f"bih_f{l}"] + raw[f"bhh_f{l}"], False)
        hb = run_dir(inp, raw[f"wih_b{l}"], raw[f"whh_b{l}"],
                     raw[f"bih_b{l}"] + raw[f"bhh_b{l}"], True)
        return jnp.concatenate([hf, hb], axis=-1)

    h1 = layer(layer(x, 0), 1)                                   # (T, B, 2H)
    u = jnp.tanh(h1 @ params["w_omega"])
    att = jnp.sum(u * params["u_omegaT"], axis=-1, keepdims=True)  # (T, B, 1)
    score = jax.nn.softmax(att, axis=0)                            # softmax over T
    context = jnp.sum(h1 * score, axis=0)                          # (B, 2H)
    return context @ params["fc_wT"] + params["fc_b"]


if __name__ == "__main__":
    key = jax.random.PRNGKey(0)
    kp, kx, km = jax.random.split(key, 3)

    token_size, token_size_meta = 50, 30
    B, Sx, Sm, H = 2, 8, 4, 64          # T = Sx + Sm = 12, hidden_dim=64 (module default)

    params = init_params(kp, token_size, token_size_meta, hidden_dim=H)
    x_tok = jax.random.randint(kx, (B, Sx), 0, token_size)
    meta_tok = jax.random.randint(km, (B, Sm), 0, token_size_meta)

    out = jax.block_until_ready(model_forward(params, x_tok, meta_tok))
    assert out.shape == (B, NUM_CLASSES)

    ref = jax.block_until_ready(reference_forward(params, x_tok, meta_tok))
    np.testing.assert_allclose(np.asarray(out), np.asarray(ref), atol=1e-2, rtol=1e-2)

    print("KERNEL_OK")
</pallas_src>

<mosaic_0001>
module attributes {stable_mosaic.version = 11 : i64} {
  func.func @bilstm_attention_kernel(%arg0: memref<96x384xbf16, #tpu.memory_space<vmem>>, %arg1: memref<384x512xbf16, #tpu.memory_space<vmem>>, %arg2: memref<128x512xbf16, #tpu.memory_space<vmem>>, %arg3: memref<1x512xf32, #tpu.memory_space<vmem>>, %arg4: memref<128x512xbf16, #tpu.memory_space<any>>, %arg5: memref<128x512xbf16, #tpu.memory_space<any>>, %arg6: memref<1x512xf32, #tpu.memory_space<vmem>>, %arg7: memref<128x128xbf16, #tpu.memory_space<vmem>>, %arg8: memref<1x128xf32, #tpu.memory_space<vmem>>, %arg9: memref<128x6xbf16, #tpu.memory_space<vmem>>, %arg10: memref<1x6xf32, #tpu.memory_space<vmem>>, %arg11: memref<8x6xf32, #tpu.memory_space<vmem>>, %arg12: memref<96x512xf32, #tpu.memory_space<vmem>>, %arg13: memref<96x512xf32, #tpu.memory_space<vmem>>, %arg14: memref<96x128xf32, #tpu.memory_space<vmem>>, %arg15: memref<96x128xf32, #tpu.memory_space<vmem>>, %arg16: memref<96x128xf32, #tpu.memory_space<vmem>>, %arg17: memref<128x512xbf16, #tpu.memory_space<vmem>>, %arg18: memref<128x512xbf16, #tpu.memory_space<vmem>>, %arg19: memref<2x!tpu.dma_semaphore, #tpu.memory_space<semaphore_mem>>) attributes {dimension_semantics = [], scalar_prefetch = 0 : i64, scratch_operands = 8 : i64, tpu.core_type = #tpu.core_type<tc>} {
    %c0_i32 = arith.constant 0 : i32
    %0 = tpu.memref_slice %arg19[%c0_i32] : memref<2x!tpu.dma_semaphore, #tpu.memory_space<semaphore_mem>> -> memref<1x!tpu.dma_semaphore, #tpu.memory_space<semaphore_mem>>
    %1 = tpu.memref_squeeze %0 : memref<1x!tpu.dma_semaphore, #tpu.memory_space<semaphore_mem>> -> memref<!tpu.dma_semaphore, #tpu.memory_space<semaphore_mem>>
    tpu.enqueue_dma source(%arg4 : memref<128x512xbf16, #tpu.memory_space<any>>) target(%arg17 : memref<128x512xbf16, #tpu.memory_space<vmem>>) target_semaphore(%1 : memref<!tpu.dma_semaphore, #tpu.memory_space<semaphore_mem>>)
    %c1_i32 = arith.constant 1 : i32
    %2 = tpu.memref_slice %arg19[%c1_i32] : memref<2x!tpu.dma_semaphore, #tpu.memory_space<semaphore_mem>> -> memref<1x!tpu.dma_semaphore, #tpu.memory_space<semaphore_mem>>
    %3 = tpu.memref_squeeze %2 : memref<1x!tpu.dma_semaphore, #tpu.memory_space<semaphore_mem>> -> memref<!tpu.dma_semaphore, #tpu.memory_space<semaphore_mem>>
    tpu.enqueue_dma source(%arg5 : memref<128x512xbf16, #tpu.memory_space<any>>) target(%arg18 : memref<128x512xbf16, #tpu.memory_space<vmem>>) target_semaphore(%3 : memref<!tpu.dma_semaphore, #tpu.memory_space<semaphore_mem>>)
    %4 = tpu.iota {dimensions = array<i32: 1>} : vector<8x512xi32>
    %c128_i32 = arith.constant 128 : i32
    %c0_i32_0 = arith.constant 0 : i32
    %5 = arith.cmpi eq, %c128_i32, %c0_i32_0 : i32
    %c1_i32_1 = arith.constant 1 : i32
    %6 = arith.select %5, %c1_i32_1, %c128_i32 : i32
    %7 = vector.broadcast %6 : i32 to vector<8x512xi32>
    %8 = arith.remsi %4, %7 : vector<8x512xi32>
    %c0_i32_2 = arith.constant 0 : i32
    %9 = vector.broadcast %c0_i32_2 : i32 to vector<8x512xi32>
    %10 = arith.cmpi ne, %8, %9 : vector<8x512xi32>
    %c0_i32_3 = arith.constant 0 : i32
    %11 = vector.broadcast %c0_i32_3 : i32 to vector<8x512xi32>
    %12 = arith.cmpi slt, %8, %11 : vector<8x512xi32>
    %c0_i32_4 = arith.constant 0 : i32
    %13 = arith.cmpi slt, %6, %c0_i32_4 : i32
    %14 = vector.broadcast %13 : i1 to vector<8x512xi1>
    %15 = vector.broadcast %14 : vector<8x512xi1> to vector<8x512xi1>
    %16 = arith.xori %12, %15 : vector<8x512xi1>
    %17 = arith.andi %16, %10 : vector<8x512xi1>
    %18 = vector.broadcast %6 : i32 to vector<8x512xi32>
    %19 = arith.addi %8, %18 : vector<8x512xi32>
    %20 = arith.select %17, %19, %8 : vector<8x512xi1>, vector<8x512xi32>
    %c64_i32 = arith.constant 64 : i32
    %21 = vector.broadcast %c64_i32 : i32 to vector<8x512xi32>
    %22 = arith.cmpi sge, %20, %21 : vector<8x512xi32>
    %23 = tpu.iota {dimensions = array<i32: 1>} : vector<8x128xi32>
    %c64_i32_5 = arith.constant 64 : i32
    %24 = vector.broadcast %c64_i32_5 : i32 to vector<8x128xi32>
    %25 = arith.cmpi sge, %23, %24 : vector<8x128xi32>
    %c0 = arith.constant 0 : index
    %c0_6 = arith.constant 0 : index
    %26 = vector.load %arg0[%c0, %c0_6] : memref<96x384xbf16, #tpu.memory_space<vmem>>, vector<96x384xbf16>
    %c0_7 = arith.constant 0 : index
    %c0_8 = arith.constant 0 : index
    %27 = vector.load %arg1[%c0_7, %c0_8] : memref<384x512xbf16, #tpu.memory_space<vmem>>, vector<384x512xbf16>
    %cst = arith.constant dense<0.000000e+00> : vector<96x512xf32>
    %28 = tpu.matmul %26, %27, %cst {dimension_numbers = #tpu.dot_dimension_numbers<[1], [0], [0], [1], [0, 0, 1, 1], [], []>} : vector<96x384xbf16>, vector<384x512xbf16>, vector<96x512xf32> -> vector<96x512xf32>
    %c0_9 = arith.constant 0 : index
    %c0_10 = arith.constant 0 : index
    %29 = vector.load %arg3[%c0_9, %c0_10] : memref<1x512xf32, #tpu.memory_space<vmem>>, vector<1x512xf32>
    %30 = vector.broadcast %29 : vector<1x512xf32> to vector<96x512xf32>
    %31 = arith.addf %28, %30 : vector<96x512xf32>
    %c0_11 = arith.constant 0 : index
    %c0_12 = arith.constant 0 : index
    %32 = vector.load %arg12[%c0_11, %c0_12] : memref<96x512xf32, #tpu.memory_space<vmem>>, vector<96x512xf32>
    tpu.vector_store %arg12[%c0_11, %c0_12], %31 {strides = array<i32>} : memref<96x512xf32, #tpu.memory_space<vmem>>, vector<96x512xf32>,
    %c0_13 = arith.constant 0 : index
    %c0_14 = arith.constant 0 : index
    %33 = vector.load %arg12[%c0_13, %c0_14] : memref<96x512xf32, #tpu.memory_space<vmem>>, vector<8x512xf32>
    %c88 = arith.constant 88 : index
    %c0_15 = arith.constant 0 : index
    %34 = vector.load %arg12[%c88, %c0_15] : memref<96x512xf32, #tpu.memory_space<vmem>>, vector<8x512xf32>
    %35 = arith.select %22, %34, %33 : vector<8x512xi1>, vector<8x512xf32>
    %c0_16 = arith.constant 0 : index
    %c0_17 = arith.constant 0 : index
    %36 = vector.load %arg13[%c0_16, %c0_17] : memref<96x512xf32, #tpu.memory_space<vmem>>, vector<8x512xf32>
    tpu.vector_store %arg13[%c0_16, %c0_17], %35 {strides = array<i32>} : memref<96x512xf32, #tpu.memory_space<vmem>>, vector<8x512xf32>,
    %c8 = arith.constant 8 : index
    %c0_18 = arith.constant 0 : index
    %37 = vector.load %arg12[%c8, %c0_18] : memref<96x512xf32, #tpu.memory_space<vmem>>, vector<8x512xf32>
    %c80 = arith.constant 80 : index
    %c0_19 = arith.constant 0 : index
    %38 = vector.load %arg12[%c80, %c0_19] : memref<96x512xf32, #tpu.memory_space<vmem>>, vector<8x512xf32>
    %39 = arith.select %22, %38, %37 : vector<8x512xi1>, vector<8x512xf32>
    %c8_20 = arith.constant 8 : index
    %c0_21 = arith.constant 0 : index
    %40 = vector.load %arg13[%c8_20, %c0_21] : memref<96x512xf32, #tpu.memory_space<vmem>>, vector<8x512xf32>
    tpu.vector_store %arg13[%c8_20, %c0_21], %39 {strides = array<i32>} : memref<96x512xf32, #tpu.memory_space<vmem>>, vector<8x512xf32>,
    %c16 = arith.constant 16 : index
    %c0_22 = arith.constant 0 : index
    %41 = vector.load %arg12[%c16, %c0_22] : memref<96x512xf32, #tpu.memory_space<vmem>>, vector<8x512xf32>
    %c72 = arith.constant 72 : index
    %c0_23 = arith.constant 0 : index
    %42 = vector.load %arg12[%c72, %c0_23] : memref<96x512xf32, #tpu.memory_space<vmem>>, vector<8x512xf32>
    %43 = arith.select %22, %42, %41 : vector<8x512xi1>, vector<8x512xf32>
    %c16_24 = arith.constant 16 : index
    %c0_25 = arith.constant 0 : index
    %44 = vector.load %arg13[%c16_24, %c0_25] : memref<96x512xf32, #tpu.memory_space<vmem>>, vector<8x512xf32>
    tpu.vector_store %arg13[%c16_24, %c0_25], %43 {strides = array<i32>} : memref<96x512xf32, #tpu.memory_space<vmem>>, vector<8x512xf32>,
    %c24 = arith.constant 24 : index
    %c0_26 = arith.constant 0 : index
    %45 = vector.load %arg12[%c24, %c0_26] : memref<96x512xf32, #tpu.memory_space<vmem>>, vector<8x512xf32>
    %c64 = arith.constant 64 : index
    %c0_27 = arith.constant 0 : index
    %46 = vector.load %arg12[%c64, %c0_27] : memref<96x512xf32, #tpu.memory_space<vmem>>, vector<8x512xf32>
    %47 = arith.select %22, %46, %45 : vector<8x512xi1>, vector<8x512xf32>
    %c24_28 = arith.constant 24 : index
    %c0_29 = arith.constant 0 : index
    %48 = vector.load %arg13[%c24_28, %c0_29] : memref<96x512xf32, #tpu.memory_space<vmem>>, vector<8x512xf32>
    tpu.vector_store %arg13[%c24_28, %c0_29], %47 {strides = array<i32>} : memref<96x512xf32, #tpu.memory_space<vmem>>, vector<8x512xf32>,
    %c32 = arith.constant 32 : index
    %c0_30 = arith.constant 0 : index
    %49 = vector.load %arg12[%c32, %c0_30] : memref<96x512xf32, #tpu.memory_space<vmem>>, vector<8x512xf32>
    %c56 = arith.constant 56 : index
    %c0_31 = arith.constant 0 : index
    %50 = vector.load %arg12[%c56, %c0_31] : memref<96x512xf32, #tpu.memory_space<vmem>>, vector<8x512xf32>
    %51 = arith.select %22, %50, %49 : vector<8x512xi1>, vector<8x512xf32>
    %c32_32 = arith.constant 32 : index
    %c0_33 = arith.constant 0 : index
    %52 = vector.load %arg13[%c32_32, %c0_33] : memref<96x512xf32, #tpu.memory_space<vmem>>, vector<8x512xf32>
    tpu.vector_store %arg13[%c32_32, %c0_33], %51 {strides = array<i32>} : memref<96x512xf32, #tpu.memory_space<vmem>>, vector<8x512xf32>,
    %c40 = arith.constant 40 : index
    %c0_34 = arith.constant 0 : index
    %53 = vector.load %arg12[%c40, %c0_34] : memref<96x512xf32, #tpu.memory_space<vmem>>, vector<8x512xf32>
    %c48 = arith.constant 48 : index
    %c0_35 = arith.constant 0 : index
    %54 = vector.load %arg12[%c48, %c0_35] : memref<96x512xf32, #tpu.memory_space<vmem>>, vector<8x512xf32>
    %55 = arith.select %22, %54, %53 : vector<8x512xi1>, vector<8x512xf32>
    %c40_36 = arith.constant 40 : index
    %c0_37 = arith.constant 0 : index
    %56 = vector.load %arg13[%c40_36, %c0_37] : memref<96x512xf32, #tpu.memory_space<vmem>>, vector<8x512xf32>
    tpu.vector_store %arg13[%c40_36, %c0_37], %55 {strides = array<i32>} : memref<96x512xf32, #tpu.memory_space<vmem>>, vector<8x512xf32>,
    %c48_38 = arith.constant 48 : index
    %c0_39 = arith.constant 0 : index
    %57 = vector.load %arg12[%c48_38, %c0_39] : memref<96x512xf32, #tpu.memory_space<vmem>>, vector<8x512xf32>
    %c40_40 = arith.constant 40 : index
    %c0_41 = arith.constant 0 : index
    %58 = vector.load %arg12[%c40_40, %c0_41] : memref<96x512xf32, #tpu.memory_space<vmem>>, vector<8x512xf32>
    %59 = arith.select %22, %58, %57 : vector<8x512xi1>, vector<8x512xf32>
    %c48_42 = arith.constant 48 : index
    %c0_43 = arith.constant 0 : index
    %60 = vector.load %arg13[%c48_42, %c0_43] : memref<96x512xf32, #tpu.memory_space<vmem>>, vector<8x512xf32>
    tpu.vector_store %arg13[%c48_42, %c0_43], %59 {strides = array<i32>} : memref<96x512xf32, #tpu.memory_space<vmem>>, vector<8x512xf32>,
    %c56_44 = arith.constant 56 : index
    %c0_45 = arith.constant 0 : index
    %61 = vector.load %arg12[%c56_44, %c0_45] : memref<96x512xf32, #tpu.memory_space<vmem>>, vector<8x512xf32>
    %c32_46 = arith.constant 32 : index
    %c0_47 = arith.constant 0 : index
    %62 = vector.load %arg12[%c32_46, %c0_47] : memref<96x512xf32, #tpu.memory_space<vmem>>, vector<8x512xf32>
    %63 = arith.select %22, %62, %61 : vector<8x512xi1>, vector<8x512xf32>
    %c56_48 = arith.constant 56 : index
    %c0_49 = arith.constant 0 : index
    %64 = vector.load %arg13[%c56_48, %c0_49] : memref<96x512xf32, #tpu.memory_space<vmem>>, vector<8x512xf32>
    tpu.vector_store %arg13[%c56_48, %c0_49], %63 {strides = array<i32>} : memref<96x512xf32, #tpu.memory_space<vmem>>, vector<8x512xf32>,
    %c64_50 = arith.constant 64 : index
    %c0_51 = arith.constant 0 : index
    %65 = vector.load %arg12[%c64_50, %c0_51] : memref<96x512xf32, #tpu.memory_space<vmem>>, vector<8x512xf32>
    %c24_52 = arith.constant 24 : index
    %c0_53 = arith.constant 0 : index
    %66 = vector.load %arg12[%c24_52, %c0_53] : memref<96x512xf32, #tpu.memory_space<vmem>>, vector<8x512xf32>
    %67 = arith.select %22, %66, %65 : vector<8x512xi1>, vector<8x512xf32>
    %c64_54 = arith.constant 64 : index
    %c0_55 = arith.constant 0 : index
    %68 = vector.load %arg13[%c64_54, %c0_55] : memref<96x512xf32, #tpu.memory_space<vmem>>, vector<8x512xf32>
    tpu.vector_store %arg13[%c64_54, %c0_55], %67 {strides = array<i32>} : memref<96x512xf32, #tpu.memory_space<vmem>>, vector<8x512xf32>,
    %c72_56 = arith.constant 72 : index
    %c0_57 = arith.constant 0 : index
    %69 = vector.load %arg12[%c72_56, %c0_57] : memref<96x512xf32, #tpu.memory_space<vmem>>, vector<8x512xf32>
    %c16_58 = arith.constant 16 : index
    %c0_59 = arith.constant 0 : index
    %70 = vector.load %arg12[%c16_58, %c0_59] : memref<96x512xf32, #tpu.memory_space<vmem>>, vector<8x512xf32>
    %71 = arith.select %22, %70, %69 : vector<8x512xi1>, vector<8x512xf32>
    %c72_60 = arith.constant 72 : index
    %c0_61 = arith.constant 0 : index
    %72 = vector.load %arg13[%c72_60, %c0_61] : memref<96x512xf32, #tpu.memory_space<vmem>>, vector<8x512xf32>
    tpu.vector_store %arg13[%c72_60, %c0_61], %71 {strides = array<i32>} : memref<96x512xf32, #tpu.memory_space<vmem>>, vector<8x512xf32>,
    %c80_62 = arith.constant 80 : index
    %c0_63 = arith.constant 0 : index
    %73 = vector.load %arg12[%c80_62, %c0_63] : memref<96x512xf32, #tpu.memory_space<vmem>>, vector<8x512xf32>
    %c8_64 = arith.constant 8 : index
    %c0_65 = arith.constant 0 : index
    %74 = vector.load %arg12[%c8_64, %c0_65] : memref<96x512xf32, #tpu.memory_space<vmem>>, vector<8x512xf32>
    %75 = arith.select %22, %74, %73 : vector<8x512xi1>, vector<8x512xf32>
    %c80_66 = arith.constant 80 : index
    %c0_67 = arith.constant 0 : index
    %76 = vector.load %arg13[%c80_66, %c0_67] : memref<96x512xf32, #tpu.memory_space<vmem>>, vector<8x512xf32>
    tpu.vector_store %arg13[%c80_66, %c0_67], %75 {strides = array<i32>} : memref<96x512xf32, #tpu.memory_space<vmem>>, vector<8x512xf32>,
    %c88_68 = arith.constant 88 : index
    %c0_69 = arith.constant 0 : index
    %77 = vector.load %arg12[%c88_68, %c0_69] : memref<96x512xf32, #tpu.memory_space<vmem>>, vector<8x512xf32>
    %c0_70 = arith.constant 0 : index
    %c0_71 = arith.constant 0 : index
    %78 = vector.load %arg12[%c0_70, %c0_71] : memref<96x512xf32, #tpu.memory_space<vmem>>, vector<8x512xf32>
    %79 = arith.select %22, %78, %77 : vector<8x512xi1>, vector<8x512xf32>
    %c88_72 = arith.constant 88 : index
    %c0_73 = arith.constant 0 : index
    %80 = vector.load %arg13[%c88_72, %c0_73] : memref<96x512xf32, #tpu.memory_space<vmem>>, vector<8x512xf32>
    tpu.vector_store %arg13[%c88_72, %c0_73], %79 {strides = array<i32>} : memref<96x512xf32, #tpu.memory_space<vmem>>, vector<8x512xf32>,
    %cst_74 = arith.constant 0.000000e+00 : f32
    %81 = vector.broadcast %cst_74 : f32 to vector<8x128xf32>
    %cst_75 = arith.constant 0.000000e+00 : f32
    %82 = vector.broadcast %cst_75 : f32 to vector<8x128xf32>
    %c0_76 = arith.constant 0 : index
    %c0_77 = arith.constant 0 : index
    %83 = vector.load %arg13[%c0_76, %c0_77] : memref<96x512xf32, #tpu.memory_space<vmem>>, vector<8x512xf32>
    %84 = arith.truncf %81 : vector<8x128xf32> to vector<8x128xbf16>
    %c0_78 = arith.constant 0 : index
    %c0_79 = arith.constant 0 : index
    %85 = vector.load %arg2[%c0_78, %c0_79] : memref<128x512xbf16, #tpu.memory_space<vmem>>, vector<128x512xbf16>
    %cst_80 = arith.constant dense<0.000000e+00> : vector<8x512xf32>
    %86 = tpu.matmul %84, %85, %cst_80 {dimension_numbers = #tpu.dot_dimension_numbers<[1], [0], [0], [1], [0, 0, 1, 1], [], []>} : vector<8x128xbf16>, vector<128x512xbf16>, vector<8x512xf32> -> vector<8x512xf32>
    %87 = arith.addf %83, %86 : vector<8x512xf32>
    %88 = vector.extract_strided_slice %87 {offsets = [0, 0], sizes = [8, 384], strides = [1, 1]} : vector<8x512xf32> to vector<8x384xf32>
    %cst_81 = arith.constant 5.000000e-01 : f32
    %89 = vector.broadcast %cst_81 : f32 to vector<8x384xf32>
    %90 = arith.mulf %89, %88 : vector<8x384xf32>
    %91 = math.tanh %90 : vector<8x384xf32>
    %cst_82 = arith.constant 5.000000e-01 : f32
    %92 = vector.broadcast %cst_82 : f32 to vector<8x384xf32>
    %93 = arith.mulf %92, %91 : vector<8x384xf32>
    %cst_83 = arith.constant 5.000000e-01 : f32
    %94 = vector.broadcast %cst_83 : f32 to vector<8x384xf32>
    %95 = arith.addf %93, %94 : vector<8x384xf32>
    %96 = vector.extract_strided_slice %87 {offsets = [0, 384], sizes = [8, 128], strides = [1, 1]} : vector<8x512xf32> to vector<8x128xf32>
    %97 = math.tanh %96 : vector<8x128xf32>
    %98 = vector.extract_strided_slice %95 {offsets = [0, 0], sizes = [8, 128], strides = [1, 1]} : vector<8x384xf32> to vector<8x128xf32>
    %99 = vector.extract_strided_slice %95 {offsets = [0, 128], sizes = [8, 128], strides = [1, 1]} : vector<8x384xf32> to vector<8x128xf32>
    %100 = vector.extract_strided_slice %95 {offsets = [0, 256], sizes = [8, 128], strides = [1, 1]} : vector<8x384xf32> to vector<8x128xf32>
    %101 = arith.mulf %99, %82 : vector<8x128xf32>
    %102 = arith.mulf %98, %97 : vector<8x128xf32>
    %103 = arith.addf %101, %102 : vector<8x128xf32>
    %104 = math.tanh %103 : vector<8x128xf32>
    %105 = arith.mulf %100, %104 : vector<8x128xf32>
    %c0_84 = arith.constant 0 : index
    %c0_85 = arith.constant 0 : index
    %106 = vector.load %arg14[%c0_84, %c0_85] : memref<96x128xf32, #tpu.memory_space<vmem>>, vector<8x128xf32>
    tpu.vector_store %arg14[%c0_84, %c0_85], %105 {strides = array<i32>} : memref<96x128xf32, #tpu.memory_space<vmem>>, vector<8x128xf32>,
    %c8_86 = arith.constant 8 : index
    %c0_87 = arith.constant 0 : index
    %107 = vector.load %arg13[%c8_86, %c0_87] : memref<96x512xf32, #tpu.memory_space<vmem>>, vector<8x512xf32>
    %108 = arith.truncf %105 : vector<8x128xf32> to vector<8x128xbf16>
    %c0_88 = arith.constant 0 : index
    %c0_89 = arith.constant 0 : index
    %109 = vector.load %arg2[%c0_88, %c0_89] : memref<128x512xbf16, #tpu.memory_space<vmem>>, vector<128x512xbf16>
    %cst_90 = arith.constant dense<0.000000e+00> : vector<8x512xf32>
    %110 = tpu.matmul %108, %109, %cst_90 {dimension_numbers = #tpu.dot_dimension_numbers<[1], [0], [0], [1], [0, 0, 1, 1], [], []>} : vector<8x128xbf16>, vector<128x512xbf16>, vector<8x512xf32> -> vector<8x512xf32>
    %111 = arith.addf %107, %110 : vector<8x512xf32>
    %112 = vector.extract_strided_slice %111 {offsets = [0, 0], sizes = [8, 384], strides = [1, 1]} : vector<8x512xf32> to vector<8x384xf32>
    %cst_91 = arith.constant 5.000000e-01 : f32
    %113 = vector.broadcast %cst_91 : f32 to vector<8x384xf32>
    %114 = arith.mulf %113, %112 : vector<8x384xf32>
    %115 = math.tanh %114 : vector<8x384xf32>
    %cst_92 = arith.constant 5.000000e-01 : f32
    %116 = vector.broadcast %cst_92 : f32 to vector<8x384xf32>
    %117 = arith.mulf %116, %115 : vector<8x384xf32>
    %cst_93 = arith.constant 5.000000e-01 : f32
    %118 = vector.broadcast %cst_93 : f32 to vector<8x384xf32>
    %119 = arith.addf %117, %118 : vector<8x384xf32>
    %120 = vector.extract_strided_slice %111 {offsets = [0, 384], sizes = [8, 128], strides = [1, 1]} : vector<8x512xf32> to vector<8x128xf32>
    %121 = math.tanh %120 : vector<8x128xf32>
    %122 = vector.extract_strided_slice %119 {offsets = [0, 0], sizes = [8, 128], strides = [1, 1]} : vector<8x384xf32> to vector<8x128xf32>
    %123 = vector.extract_strided_slice %119 {offsets = [0, 128], sizes = [8, 128], strides = [1, 1]} : vector<8x384xf32> to vector<8x128xf32>
    %124 = vector.extract_strided_slice %119 {offsets = [0, 256], sizes = [8, 128], strides = [1, 1]} : vector<8x384xf32> to vector<8x128xf32>
    %125 = arith.mulf %123, %103 : vector<8x128xf32>
    %126 = arith.mulf %122, %121 : vector<8x128xf32>
    %127 = arith.addf %125, %126 : vector<8x128xf32>
    %128 = math.tanh %127 : vector<8x128xf32>
    %129 = arith.mulf %124, %128 : vector<8x128xf32>
    %c8_94 = arith.constant 8 : index
    %c0_95 = arith.constant 0 : index
    %130 = vector.load %arg14[%c8_94, %c0_95] : memref<96x128xf32, #tpu.memory_space<vmem>>, vector<8x128xf32>
    tpu.vector_store %arg14[%c8_94, %c0_95], %129 {strides = array<i32>} : memref<96x128xf32, #tpu.memory_space<vmem>>, vector<8x128xf32>,
    %c16_96 = arith.constant 16 : index
    %c0_97 = arith.constant 0 : index
    %131 = vector.load %arg13[%c16_96, %c0_97] : memref<96x512xf32, #tpu.memory_space<vmem>>, vector<8x512xf32>
    %132 = arith.truncf %129 : vector<8x128xf32> to vector<8x128xbf16>
    %c0_98 = arith.constant 0 : index
    %c0_99 = arith.constant 0 : index
    %133 = vector.load %arg2[%c0_98, %c0_99] : memref<128x512xbf16, #tpu.memory_space<vmem>>, vector<128x512xbf16>
    %cst_100 = arith.constant dense<0.000000e+00> : vector<8x512xf32>
    %134 = tpu.matmul %132, %133, %cst_100 {dimension_numbers = #tpu.dot_dimension_numbers<[1], [0], [0], [1], [0, 0, 1, 1], [], []>} : vector<8x128xbf16>, vector<128x512xbf16>, vector<8x512xf32> -> vector<8x512xf32>
    %135 = arith.addf %131, %134 : vector<8x512xf32>
    %136 = vector.extract_strided_slice %135 {offsets = [0, 0], sizes = [8, 384], strides = [1, 1]} : vector<8x512xf32> to vector<8x384xf32>
    %cst_101 = arith.constant 5.000000e-01 : f32
    %137 = vector.broadcast %cst_101 : f32 to vector<8x384xf32>
    %138 = arith.mulf %137, %136 : vector<8x384xf32>
    %139 = math.tanh %138 : vector<8x384xf32>
    %cst_102 = arith.constant 5.000000e-01 : f32
    %140 = vector.broadcast %cst_102 : f32 to vector<8x384xf32>
    %141 = arith.mulf %140, %139 : vector<8x384xf32>
    %cst_103 = arith.constant 5.000000e-01 : f32
    %142 = vector.broadcast %cst_103 : f32 to vector<8x384xf32>
    %143 = arith.addf %141, %142 : vector<8x384xf32>
    %144 = vector.extract_strided_slice %135 {offsets = [0, 384], sizes = [8, 128], strides = [1, 1]} : vector<8x512xf32> to vector<8x128xf32>
    %145 = math.tanh %144 : vector<8x128xf32>
    %146 = vector.extract_strided_slice %143 {offsets = [0, 0], sizes = [8, 128], strides = [1, 1]} : vector<8x384xf32> to vector<8x128xf32>
    %147 = vector.extract_strided_slice %143 {offsets = [0, 128], sizes = [8, 128], strides = [1, 1]} : vector<8x384xf32> to vector<8x128xf32>
    %148 = vector.extract_strided_slice %143 {offsets = [0, 256], sizes = [8, 128], strides = [1, 1]} : vector<8x384xf32> to vector<8x128xf32>
    %149 = arith.mulf %147, %127 : vector<8x128xf32>
    %150 = arith.mulf %146, %145 : vector<8x128xf32>
    %151 = arith.addf %149, %150 : vector<8x128xf32>
    %152 = math.tanh %151 : vector<8x128xf32>
    %153 = arith.mulf %148, %152 : vector<8x128xf32>
    %c16_104 = arith.constant 16 : index
    %c0_105 = arith.constant 0 : index
    %154 = vector.load %arg14[%c16_104, %c0_105] : memref<96x128xf32, #tpu.memory_space<vmem>>, vector<8x128xf32>
    tpu.vector_store %arg14[%c16_104, %c0_105], %153 {strides = array<i32>} : memref<96x128xf32, #tpu.memory_space<vmem>>, vector<8x128xf32>,
    %c24_106 = arith.constant 24 : index
    %c0_107 = arith.constant 0 : index
    %155 = vector.load %arg13[%c24_106, %c0_107] : memref<96x512xf32, #tpu.memory_space<vmem>>, vector<8x512xf32>
    %156 = arith.truncf %153 : vector<8x128xf32> to vector<8x128xbf16>
    %c0_108 = arith.constant 0 : index
    %c0_109 = arith.constant 0 : index
    %157 = vector.load %arg2[%c0_108, %c0_109] : memref<128x512xbf16, #tpu.memory_space<vmem>>, vector<128x512xbf16>
    %cst_110 = arith.constant dense<0.000000e+00> : vector<8x512xf32>
    %158 = tpu.matmul %156, %157, %cst_110 {dimension_numbers = #tpu.dot_dimension_numbers<[1], [0], [0], [1], [0, 0, 1, 1], [], []>} : vector<8x128xbf16>, vector<128x512xbf16>, vector<8x512xf32> -> vector<8x512xf32>
    %159 = arith.addf %155, %158 : vector<8x512xf32>
    %160 = vector.extract_strided_slice %159 {offsets = [0, 0], sizes = [8, 384], strides = [1, 1]} : vector<8x512xf32> to vector<8x384xf32>
    %cst_111 = arith.constant 5.000000e-01 : f32
    %161 = vector.broadcast %cst_111 : f32 to vector<8x384xf32>
    %162 = arith.mulf %161, %160 : vector<8x384xf32>
    %163 = math.tanh %162 : vector<8x384xf32>
    %cst_112 = arith.constant 5.000000e-01 : f32
    %164 = vector.broadcast %cst_112 : f32 to vector<8x384xf32>
    %165 = arith.mulf %164, %163 : vector<8x384xf32>
    %cst_113 = arith.constant 5.000000e-01 : f32
    %166 = vector.broadcast %cst_113 : f32 to vector<8x384xf32>
    %167 = arith.addf %165, %166 : vector<8x384xf32>
    %168 = vector.extract_strided_slice %159 {offsets = [0, 384], sizes = [8, 128], strides = [1, 1]} : vector<8x512xf32> to vector<8x128xf32>
    %169 = math.tanh %168 : vector<8x128xf32>
    %170 = vector.extract_strided_slice %167 {offsets = [0, 0], sizes = [8, 128], strides = [1, 1]} : vector<8x384xf32> to vector<8x128xf32>
    %171 = vector.extract_strided_slice %167 {offsets = [0, 128], sizes = [8, 128], strides = [1, 1]} : vector<8x384xf32> to vector<8x128xf32>
    %172 = vector.extract_strided_slice %167 {offsets = [0, 256], sizes = [8, 128], strides = [1, 1]} : vector<8x384xf32> to vector<8x128xf32>
    %173 = arith.mulf %171, %151 : vector<8x128xf32>
    %174 = arith.mulf %170, %169 : vector<8x128xf32>
    %175 = arith.addf %173, %174 : vector<8x128xf32>
    %176 = math.tanh %175 : vector<8x128xf32>
    %177 = arith.mulf %172, %176 : vector<8x128xf32>
    %c24_114 = arith.constant 24 : index
    %c0_115 = arith.constant 0 : index
    %178 = vector.load %arg14[%c24_114, %c0_115] : memref<96x128xf32, #tpu.memory_space<vmem>>, vector<8x128xf32>
    tpu.vector_store %arg14[%c24_114, %c0_115], %177 {strides = array<i32>} : memref<96x128xf32, #tpu.memory_space<vmem>>, vector<8x128xf32>,
    %c32_116 = arith.constant 32 : index
    %c0_117 = arith.constant 0 : index
    %179 = vector.load %arg13[%c32_116, %c0_117] : memref<96x512xf32, #tpu.memory_space<vmem>>, vector<8x512xf32>
    %180 = arith.truncf %177 : vector<8x128xf32> to vector<8x128xbf16>
    %c0_118 = arith.constant 0 : index
    %c0_119 = arith.constant 0 : index
    %181 = vector.load %arg2[%c0_118, %c0_119] : memref<128x512xbf16, #tpu.memory_space<vmem>>, vector<128x512xbf16>
    %cst_120 = arith.constant dense<0.000000e+00> : vector<8x512xf32>
    %182 = tpu.matmul %180, %181, %cst_120 {dimension_numbers = #tpu.dot_dimension_numbers<[1], [0], [0], [1], [0, 0, 1, 1], [], []>} : vector<8x128xbf16>, vector<128x512xbf16>, vector<8x512xf32> -> vector<8x512xf32>
    %183 = arith.addf %179, %182 : vector<8x512xf32>
    %184 = vector.extract_strided_slice %183 {offsets = [0, 0], sizes = [8, 384], strides = [1, 1]} : vector<8x512xf32> to vector<8x384xf32>
    %cst_121 = arith.constant 5.000000e-01 : f32
    %185 = vector.broadcast %cst_121 : f32 to vector<8x384xf32>
    %186 = arith.mulf %185, %184 : vector<8x384xf32>
    %187 = math.tanh %186 : vector<8x384xf32>
    %cst_122 = arith.constant 5.000000e-01 : f32
    %188 = vector.broadcast %cst_122 : f32 to vector<8x384xf32>
    %189 = arith.mulf %188, %187 : vector<8x384xf32>
    %cst_123 = arith.constant 5.000000e-01 : f32
    %190 = vector.broadcast %cst_123 : f32 to vector<8x384xf32>
    %191 = arith.addf %189, %190 : vector<8x384xf32>
    %192 = vector.extract_strided_slice %183 {offsets = [0, 384], sizes = [8, 128], strides = [1, 1]} : vector<8x512xf32> to vector<8x128xf32>
    %193 = math.tanh %192 : vector<8x128xf32>
    %194 = vector.extract_strided_slice %191 {offsets = [0, 0], sizes = [8, 128], strides = [1, 1]} : vector<8x384xf32> to vector<8x128xf32>
    %195 = vector.extract_strided_slice %191 {offsets = [0, 128], sizes = [8, 128], strides = [1, 1]} : vector<8x384xf32> to vector<8x128xf32>
    %196 = vector.extract_strided_slice %191 {offsets = [0, 256], sizes = [8, 128], strides = [1, 1]} : vector<8x384xf32> to vector<8x128xf32>
    %197 = arith.mulf %195, %175 : vector<8x128xf32>
    %198 = arith.mulf %194, %193 : vector<8x128xf32>
    %199 = arith.addf %197, %198 : vector<8x128xf32>
    %200 = math.tanh %199 : vector<8x128xf32>
    %201 = arith.mulf %196, %200 : vector<8x128xf32>
    %c32_124 = arith.constant 32 : index
    %c0_125 = arith.constant 0 : index
    %202 = vector.load %arg14[%c32_124, %c0_125] : memref<96x128xf32, #tpu.memory_space<vmem>>, vector<8x128xf32>
    tpu.vector_store %arg14[%c32_124, %c0_125], %201 {strides = array<i32>} : memref<96x128xf32, #tpu.memory_space<vmem>>, vector<8x128xf32>,
    %c40_126 = arith.constant 40 : index
    %c0_127 = arith.constant 0 : index
    %203 = vector.load %arg13[%c40_126, %c0_127] : memref<96x512xf32, #tpu.memory_space<vmem>>, vector<8x512xf32>
    %204 = arith.truncf %201 : vector<8x128xf32> to vector<8x128xbf16>
    %c0_128 = arith.constant 0 : index
    %c0_129 = arith.constant 0 : index
    %205 = vector.load %arg2[%c0_128, %c0_129] : memref<128x512xbf16, #tpu.memory_space<vmem>>, vector<128x512xbf16>
    %cst_130 = arith.constant dense<0.000000e+00> : vector<8x512xf32>
    %206 = tpu.matmul %204, %205, %cst_130 {dimension_numbers = #tpu.dot_dimension_numbers<[1], [0], [0], [1], [0, 0, 1, 1], [], []>} : vector<8x128xbf16>, vector<128x512xbf16>, vector<8x512xf32> -> vector<8x512xf32>
    %207 = arith.addf %203, %206 : vector<8x512xf32>
    %208 = vector.extract_strided_slice %207 {offsets = [0, 0], sizes = [8, 384], strides = [1, 1]} : vector<8x512xf32> to vector<8x384xf32>
    %cst_131 = arith.constant 5.000000e-01 : f32
    %209 = vector.broadcast %cst_131 : f32 to vector<8x384xf32>
    %210 = arith.mulf %209, %208 : vector<8x384xf32>
    %211 = math.tanh %210 : vector<8x384xf32>
    %cst_132 = arith.constant 5.000000e-01 : f32
    %212 = vector.broadcast %cst_132 : f32 to vector<8x384xf32>
    %213 = arith.mulf %212, %211 : vector<8x384xf32>
    %cst_133 = arith.constant 5.000000e-01 : f32
    %214 = vector.broadcast %cst_133 : f32 to vector<8x384xf32>
    %215 = arith.addf %213, %214 : vector<8x384xf32>
    %216 = vector.extract_strided_slice %207 {offsets = [0, 384], sizes = [8, 128], strides = [1, 1]} : vector<8x512xf32> to vector<8x128xf32>
    %217 = math.tanh %216 : vector<8x128xf32>
    %218 = vector.extract_strided_slice %215 {offsets = [0, 0], sizes = [8, 128], strides = [1, 1]} : vector<8x384xf32> to vector<8x128xf32>
    %219 = vector.extract_strided_slice %215 {offsets = [0, 128], sizes = [8, 128], strides = [1, 1]} : vector<8x384xf32> to vector<8x128xf32>
    %220 = vector.extract_strided_slice %215 {offsets = [0, 256], sizes = [8, 128], strides = [1, 1]} : vector<8x384xf32> to vector<8x128xf32>
    %221 = arith.mulf %219, %199 : vector<8x128xf32>
    %222 = arith.mulf %218, %217 : vector<8x128xf32>
    %223 = arith.addf %221, %222 : vector<8x128xf32>
    %224 = math.tanh %223 : vector<8x128xf32>
    %225 = arith.mulf %220, %224 : vector<8x128xf32>
    %c40_134 = arith.constant 40 : index
    %c0_135 = arith.constant 0 : index
    %226 = vector.load %arg14[%c40_134, %c0_135] : memref<96x128xf32, #tpu.memory_space<vmem>>, vector<8x128xf32>
    tpu.vector_store %arg14[%c40_134, %c0_135], %225 {strides = array<i32>} : memref<96x128xf32, #tpu.memory_space<vmem>>, vector<8x128xf32>,
    %c48_136 = arith.constant 48 : index
    %c0_137 = arith.constant 0 : index
    %227 = vector.load %arg13[%c48_136, %c0_137] : memref<96x512xf32, #tpu.memory_space<vmem>>, vector<8x512xf32>
    %228 = arith.truncf %225 : vector<8x128xf32> to vector<8x128xbf16>
    %c0_138 = arith.constant 0 : index
    %c0_139 = arith.constant 0 : index
    %229 = vector.load %arg2[%c0_138, %c0_139] : memref<128x512xbf16, #tpu.memory_space<vmem>>, vector<128x512xbf16>
    %cst_140 = arith.constant dense<0.000000e+00> : vector<8x512xf32>
    %230 = tpu.matmul %228, %229, %cst_140 {dimension_numbers = #tpu.dot_dimension_numbers<[1], [0], [0], [1], [0, 0, 1, 1], [], []>} : vector<8x128xbf16>, vector<128x512xbf16>, vector<8x512xf32> -> vector<8x512xf32>
    %231 = arith.addf %227, %230 : vector<8x512xf32>
    %232 = vector.extract_strided_slice %231 {offsets = [0, 0], sizes = [8, 384], strides = [1, 1]} : vector<8x512xf32> to vector<8x384xf32>
    %cst_141 = arith.constant 5.000000e-01 : f32
    %233 = vector.broadcast %cst_141 : f32 to vector<8x384xf32>
    %234 = arith.mulf %233, %232 : vector<8x384xf32>
    %235 = math.tanh %234 : vector<8x384xf32>
    %cst_142 = arith.constant 5.000000e-01 : f32
    %236 = vector.broadcast %cst_142 : f32 to vector<8x384xf32>
    %237 = arith.mulf %236, %235 : vector<8x384xf32>
    %cst_143 = arith.constant 5.000000e-01 : f32
    %238 = vector.broadcast %cst_143 : f32 to vector<8x384xf32>
    %239 = arith.addf %237, %238 : vector<8x384xf32>
    %240 = vector.extract_strided_slice %231 {offsets = [0, 384], sizes = [8, 128], strides = [1, 1]} : vector<8x512xf32> to vector<8x128xf32>
    %241 = math.tanh %240 : vector<8x128xf32>
    %242 = vector.extract_strided_slice %239 {offsets = [0, 0], sizes = [8, 128], strides = [1, 1]} : vector<8x384xf32> to vector<8x128xf32>
    %243 = vector.extract_strided_slice %239 {offsets = [0, 128], sizes = [8, 128], strides = [1, 1]} : vector<8x384xf32> to vector<8x128xf32>
    %244 = vector.extract_strided_slice %239 {offsets = [0, 256], sizes = [8, 128], strides = [1, 1]} : vector<8x384xf32> to vector<8x128xf32>
    %245 = arith.mulf %243, %223 : vector<8x128xf32>
    %246 = arith.mulf %242, %241 : vector<8x128xf32>
    %247 = arith.addf %245, %246 : vector<8x128xf32>
    %248 = math.tanh %247 : vector<8x128xf32>
    %249 = arith.mulf %244, %248 : vector<8x128xf32>
    %c48_144 = arith.constant 48 : index
    %c0_145 = arith.constant 0 : index
    %250 = vector.load %arg14[%c48_144, %c0_145] : memref<96x128xf32, #tpu.memory_space<vmem>>, vector<8x128xf32>
    tpu.vector_store %arg14[%c48_144, %c0_145], %249 {strides = array<i32>} : memref<96x128xf32, #tpu.memory_space<vmem>>, vector<8x128xf32>,
    %c56_146 = arith.constant 56 : index
    %c0_147 = arith.constant 0 : index
    %251 = vector.load %arg13[%c56_146, %c0_147] : memref<96x512xf32, #tpu.memory_space<vmem>>, vector<8x512xf32>
    %252 = arith.truncf %249 : vector<8x128xf32> to vector<8x128xbf16>
    %c0_148 = arith.constant 0 : index
    %c0_149 = arith.constant 0 : index
    %253 = vector.load %arg2[%c0_148, %c0_149] : memref<128x512xbf16, #tpu.memory_space<vmem>>, vector<128x512xbf16>
    %cst_150 = arith.constant dense<0.000000e+00> : vector<8x512xf32>
    %254 = tpu.matmul %252, %253, %cst_150 {dimension_numbers = #tpu.dot_dimension_numbers<[1], [0], [0], [1], [0, 0, 1, 1], [], []>} : vector<8x128xbf16>, vector<128x512xbf16>, vector<8x512xf32> -> vector<8x512xf32>
    %255 = arith.addf %251, %254 : vector<8x512xf32>
    %256 = vector.extract_strided_slice %255 {offsets = [0, 0], sizes = [8, 384], strides = [1, 1]} : vector<8x512xf32> to vector<8x384xf32>
    %cst_151 = arith.constant 5.000000e-01 : f32
    %257 = vector.broadcast %cst_151 : f32 to vector<8x384xf32>
    %258 = arith.mulf %257, %256 : vector<8x384xf32>
    %259 = math.tanh %258 : vector<8x384xf32>
    %cst_152 = arith.constant 5.000000e-01 : f32
    %260 = vector.broadcast %cst_152 : f32 to vector<8x384xf32>
    %261 = arith.mulf %260, %259 : vector<8x384xf32>
    %cst_153 = arith.constant 5.000000e-01 : f32
    %262 = vector.broadcast %cst_153 : f32 to vector<8x384xf32>
    %263 = arith.addf %261, %262 : vector<8x384xf32>
    %264 = vector.extract_strided_slice %255 {offsets = [0, 384], sizes = [8, 128], strides = [1, 1]} : vector<8x512xf32> to vector<8x128xf32>
    %265 = math.tanh %264 : vector<8x128xf32>
    %266 = vector.extract_strided_slice %263 {offsets = [0, 0], sizes = [8, 128], strides = [1, 1]} : vector<8x384xf32> to vector<8x128xf32>
    %267 = vector.extract_strided_slice %263 {offsets = [0, 128], sizes = [8, 128], strides = [1, 1]} : vector<8x384xf32> to vector<8x128xf32>
    %268 = vector.extract_strided_slice %263 {offsets = [0, 256], sizes = [8, 128], strides = [1, 1]} : vector<8x384xf32> to vector<8x128xf32>
    %269 = arith.mulf %267, %247 : vector<8x128xf32>
    %270 = arith.mulf %266, %265 : vector<8x128xf32>
    %271 = arith.addf %269, %270 : vector<8x128xf32>
    %272 = math.tanh %271 : vector<8x128xf32>
    %273 = arith.mulf %268, %272 : vector<8x128xf32>
    %c56_154 = arith.constant 56 : index
    %c0_155 = arith.constant 0 : index
    %274 = vector.load %arg14[%c56_154, %c0_155] : memref<96x128xf32, #tpu.memory_space<vmem>>, vector<8x128xf32>
    tpu.vector_store %arg14[%c56_154, %c0_155], %273 {strides = array<i32>} : memref<96x128xf32, #tpu.memory_space<vmem>>, vector<8x128xf32>,
    %c64_156 = arith.constant 64 : index
    %c0_157 = arith.constant 0 : index
    %275 = vector.load %arg13[%c64_156, %c0_157] : memref<96x512xf32, #tpu.memory_space<vmem>>, vector<8x512xf32>
    %276 = arith.truncf %273 : vector<8x128xf32> to vector<8x128xbf16>
    %c0_158 = arith.constant 0 : index
    %c0_159 = arith.constant 0 : index
    %277 = vector.load %arg2[%c0_158, %c0_159] : memref<128x512xbf16, #tpu.memory_space<vmem>>, vector<128x512xbf16>
    %cst_160 = arith.constant dense<0.000000e+00> : vector<8x512xf32>
    %278 = tpu.matmul %276, %277, %cst_160 {dimension_numbers = #tpu.dot_dimension_numbers<[1], [0], [0], [1], [0, 0, 1, 1], [], []>} : vector<8x128xbf16>, vector<128x512xbf16>, vector<8x512xf32> -> vector<8x512xf32>
    %279 = arith.addf %275, %278 : vector<8x512xf32>
    %280 = vector.extract_strided_slice %279 {offsets = [0, 0], sizes = [8, 384], strides = [1, 1]} : vector<8x512xf32> to vector<8x384xf32>
    %cst_161 = arith.constant 5.000000e-01 : f32
    %281 = vector.broadcast %cst_161 : f32 to vector<8x384xf32>
    %282 = arith.mulf %281, %280 : vector<8x384xf32>
    %283 = math.tanh %282 : vector<8x384xf32>
    %cst_162 = arith.constant 5.000000e-01 : f32
    %284 = vector.broadcast %cst_162 : f32 to vector<8x384xf32>
    %285 = arith.mulf %284, %283 : vector<8x384xf32>
    %cst_163 = arith.constant 5.000000e-01 : f32
    %286 = vector.broadcast %cst_163 : f32 to vector<8x384xf32>
    %287 = arith.addf %285, %286 : vector<8x384xf32>
    %288 = vector.extract_strided_slice %279 {offsets = [0, 384], sizes = [8, 128], strides = [1, 1]} : vector<8x512xf32> to vector<8x128xf32>
    %289 = math.tanh %288 : vector<8x128xf32>
    %290 = vector.extract_strided_slice %287 {offsets = [0, 0], sizes = [8, 128], strides = [1, 1]} : vector<8x384xf32> to vector<8x128xf32>
    %291 = vector.extract_strided_slice %287 {offsets = [0, 128], sizes = [8, 128], strides = [1, 1]} : vector<8x384xf32> to vector<8x128xf32>
    %292 = vector.extract_strided_slice %287 {offsets = [0, 256], sizes = [8, 128], strides = [1, 1]} : vector<8x384xf32> to vector<8x128xf32>
    %293 = arith.mulf %291, %271 : vector<8x128xf32>
    %294 = arith.mulf %290, %289 : vector<8x128xf32>
    %295 = arith.addf %293, %294 : vector<8x128xf32>
    %296 = math.tanh %295 : vector<8x128xf32>
    %297 = arith.mulf %292, %296 : vector<8x128xf32>
    %c64_164 = arith.constant 64 : index
    %c0_165 = arith.constant 0 : index
    %298 = vector.load %arg14[%c64_164, %c0_165] : memref<96x128xf32, #tpu.memory_space<vmem>>, vector<8x128xf32>
    tpu.vector_store %arg14[%c64_164, %c0_165], %297 {strides = array<i32>} : memref<96x128xf32, #tpu.memory_space<vmem>>, vector<8x128xf32>,
    %c72_166 = arith.constant 72 : index
    %c0_167 = arith.constant 0 : index
    %299 = vector.load %arg13[%c72_166, %c0_167] : memref<96x512xf32, #tpu.memory_space<vmem>>, vector<8x512xf32>
    %300 = arith.truncf %297 : vector<8x128xf32> to vector<8x128xbf16>
    %c0_168 = arith.constant 0 : index
    %c0_169 = arith.constant 0 : index
    %301 = vector.load %arg2[%c0_168, %c0_169] : memref<128x512xbf16, #tpu.memory_space<vmem>>, vector<128x512xbf16>
    %cst_170 = arith.constant dense<0.000000e+00> : vector<8x512xf32>
    %302 = tpu.matmul %300, %301, %cst_170 {dimension_numbers = #tpu.dot_dimension_numbers<[1], [0], [0], [1], [0, 0, 1, 1], [], []>} : vector<8x128xbf16>, vector<128x512xbf16>, vector<8x512xf32> -> vector<8x512xf32>
    %303 = arith.addf %299, %302 : vector<8x512xf32>
    %304 = vector.extract_strided_slice %303 {offsets = [0, 0], sizes = [8, 384], strides = [1, 1]} : vector<8x512xf32> to vector<8x384xf32>
    %cst_171 = arith.constant 5.000000e-01 : f32
    %305 = vector.broadcast %cst_171 : f32 to vector<8x384xf32>
    %306 = arith.mulf %305, %304 : vector<8x384xf32>
    %307 = math.tanh %306 : vector<8x384xf32>
    %cst_172 = arith.constant 5.000000e-01 : f32
    %308 = vector.broadcast %cst_172 : f32 to vector<8x384xf32>
    %309 = arith.mulf %308, %307 : vector<8x384xf32>
    %cst_173 = arith.constant 5.000000e-01 : f32
    %310 = vector.broadcast %cst_173 : f32 to vector<8x384xf32>
    %311 = arith.addf %309, %310 : vector<8x384xf32>
    %312 = vector.extract_strided_slice %303 {offsets = [0, 384], sizes = [8, 128], strides = [1, 1]} : vector<8x512xf32> to vector<8x128xf32>
    %313 = math.tanh %312 : vector<8x128xf32>
    %314 = vector.extract_strided_slice %311 {offsets = [0, 0], sizes = [8, 128], strides = [1, 1]} : vector<8x384xf32> to vector<8x128xf32>
    %315 = vector.extract_strided_slice %311 {offsets = [0, 128], sizes = [8, 128], strides = [1, 1]} : vector<8x384xf32> to vector<8x128xf32>
    %316 = vector.extract_strided_slice %311 {offsets = [0, 256], sizes = [8, 128], strides = [1, 1]} : vector<8x384xf32> to vector<8x128xf32>
    %317 = arith.mulf %315, %295 : vector<8x128xf32>
    %318 = arith.mulf %314, %313 : vector<8x128xf32>
    %319 = arith.addf %317, %318 : vector<8x128xf32>
    %320 = math.tanh %319 : vector<8x128xf32>
    %321 = arith.mulf %316, %320 : vector<8x128xf32>
    %c72_174 = arith.constant 72 : index
    %c0_175 = arith.constant 0 : index
    %322 = vector.load %arg14[%c72_174, %c0_175] : memref<96x128xf32, #tpu.memory_space<vmem>>, vector<8x128xf32>
    tpu.vector_store %arg14[%c72_174, %c0_175], %321 {strides = array<i32>} : memref<96x128xf32, #tpu.memory_space<vmem>>, vector<8x128xf32>,
    %c80_176 = arith.constant 80 : index
    %c0_177 = arith.constant 0 : index
    %323 = vector.load %arg13[%c80_176, %c0_177] : memref<96x512xf32, #tpu.memory_space<vmem>>, vector<8x512xf32>
    %324 = arith.truncf %321 : vector<8x128xf32> to vector<8x128xbf16>
    %c0_178 = arith.constant 0 : index
    %c0_179 = arith.constant 0 : index
    %325 = vector.load %arg2[%c0_178, %c0_179] : memref<128x512xbf16, #tpu.memory_space<vmem>>, vector<128x512xbf16>
    %cst_180 = arith.constant dense<0.000000e+00> : vector<8x512xf32>
    %326 = tpu.matmul %324, %325, %cst_180 {dimension_numbers = #tpu.dot_dimension_numbers<[1], [0], [0], [1], [0, 0, 1, 1], [], []>} : vector<8x128xbf16>, vector<128x512xbf16>, vector<8x512xf32> -> vector<8x512xf32>
    %327 = arith.addf %323, %326 : vector<8x512xf32>
    %328 = vector.extract_strided_slice %327 {offsets = [0, 0], sizes = [8, 384], strides = [1, 1]} : vector<8x512xf32> to vector<8x384xf32>
    %cst_181 = arith.constant 5.000000e-01 : f32
    %329 = vector.broadcast %cst_181 : f32 to vector<8x384xf32>
    %330 = arith.mulf %329, %328 : vector<8x384xf32>
    %331 = math.tanh %330 : vector<8x384xf32>
    %cst_182 = arith.constant 5.000000e-01 : f32
    %332 = vector.broadcast %cst_182 : f32 to vector<8x384xf32>
    %333 = arith.mulf %332, %331 : vector<8x384xf32>
    %cst_183 = arith.constant 5.000000e-01 : f32
    %334 = vector.broadcast %cst_183 : f32 to vector<8x384xf32>
    %335 = arith.addf %333, %334 : vector<8x384xf32>
    %336 = vector.extract_strided_slice %327 {offsets = [0, 384], sizes = [8, 128], strides = [1, 1]} : vector<8x512xf32> to vector<8x128xf32>
    %337 = math.tanh %336 : vector<8x128xf32>
    %338 = vector.extract_strided_slice %335 {offsets = [0, 0], sizes = [8, 128], strides = [1, 1]} : vector<8x384xf32> to vector<8x128xf32>
    %339 = vector.extract_strided_slice %335 {offsets = [0, 128], sizes = [8, 128], strides = [1, 1]} : vector<8x384xf32> to vector<8x128xf32>
    %340 = vector.extract_strided_slice %335 {offsets = [0, 256], sizes = [8, 128], strides = [1, 1]} : vector<8x384xf32> to vector<8x128xf32>
    %341 = arith.mulf %339, %319 : vector<8x128xf32>
    %342 = arith.mulf %338, %337 : vector<8x128xf32>
    %343 = arith.addf %341, %342 : vector<8x128xf32>
    %344 = math.tanh %343 : vector<8x128xf32>
    %345 = arith.mulf %340, %344 : vector<8x128xf32>
    %c80_184 = arith.constant 80 : index
    %c0_185 = arith.constant 0 : index
    %346 = vector.load %arg14[%c80_184, %c0_185] : memref<96x128xf32, #tpu.memory_space<vmem>>, vector<8x128xf32>
    tpu.vector_store %arg14[%c80_184, %c0_185], %345 {strides = array<i32>} : memref<96x128xf32, #tpu.memory_space<vmem>>, vector<8x128xf32>,
    %c88_186 = arith.constant 88 : index
    %c0_187 = arith.constant 0 : index
    %347 = vector.load %arg13[%c88_186, %c0_187] : memref<96x512xf32, #tpu.memory_space<vmem>>, vector<8x512xf32>
    %348 = arith.truncf %345 : vector<8x128xf32> to vector<8x128xbf16>
    %c0_188 = arith.constant 0 : index
    %c0_189 = arith.constant 0 : index
    %349 = vector.load %arg2[%c0_188, %c0_189] : memref<128x512xbf16, #tpu.memory_space<vmem>>, vector<128x512xbf16>
    %cst_190 = arith.constant dense<0.000000e+00> : vector<8x512xf32>
    %350 = tpu.matmul %348, %349, %cst_190 {dimension_numbers = #tpu.dot_dimension_numbers<[1], [0], [0], [1], [0, 0, 1, 1], [], []>} : vector<8x128xbf16>, vector<128x512xbf16>, vector<8x512xf32> -> vector<8x512xf32>
    %351 = arith.addf %347, %350 : vector<8x512xf32>
    %352 = vector.extract_strided_slice %351 {offsets = [0, 0], sizes = [8, 384], strides = [1, 1]} : vector<8x512xf32> to vector<8x384xf32>
    %cst_191 = arith.constant 5.000000e-01 : f32
    %353 = vector.broadcast %cst_191 : f32 to vector<8x384xf32>
    %354 = arith.mulf %353, %352 : vector<8x384xf32>
    %355 = math.tanh %354 : vector<8x384xf32>
    %cst_192 = arith.constant 5.000000e-01 : f32
    %356 = vector.broadcast %cst_192 : f32 to vector<8x384xf32>
    %357 = arith.mulf %356, %355 : vector<8x384xf32>
    %cst_193 = arith.constant 5.000000e-01 : f32
    %358 = vector.broadcast %cst_193 : f32 to vector<8x384xf32>
    %359 = arith.addf %357, %358 : vector<8x384xf32>
    %360 = vector.extract_strided_slice %351 {offsets = [0, 384], sizes = [8, 128], strides = [1, 1]} : vector<8x512xf32> to vector<8x128xf32>
    %361 = math.tanh %360 : vector<8x128xf32>
    %362 = vector.extract_strided_slice %359 {offsets = [0, 0], sizes = [8, 128], strides = [1, 1]} : vector<8x384xf32> to vector<8x128xf32>
    %363 = vector.extract_strided_slice %359 {offsets = [0, 128], sizes = [8, 128], strides = [1, 1]} : vector<8x384xf32> to vector<8x128xf32>
    %364 = vector.extract_strided_slice %359 {offsets = [0, 256], sizes = [8, 128], strides = [1, 1]} : vector<8x384xf32> to vector<8x128xf32>
    %365 = arith.mulf %363, %343 : vector<8x128xf32>
    %366 = arith.mulf %362, %361 : vector<8x128xf32>
    %367 = arith.addf %365, %366 : vector<8x128xf32>
    %368 = math.tanh %367 : vector<8x128xf32>
    %369 = arith.mulf %364, %368 : vector<8x128xf32>
    %c88_194 = arith.constant 88 : index
    %c0_195 = arith.constant 0 : index
    %370 = vector.load %arg14[%c88_194, %c0_195] : memref<96x128xf32, #tpu.memory_space<vmem>>, vector<8x128xf32>
    tpu.vector_store %arg14[%c88_194, %c0_195], %369 {strides = array<i32>} : memref<96x128xf32, #tpu.memory_space<vmem>>, vector<8x128xf32>,
    %c0_196 = arith.constant 0 : index
    %c0_197 = arith.constant 0 : index
    %371 = vector.load %arg14[%c0_196, %c0_197] : memref<96x128xf32, #tpu.memory_space<vmem>>, vector<8x128xf32>
    %c88_198 = arith.constant 88 : index
    %c0_199 = arith.constant 0 : index
    %372 = vector.load %arg14[%c88_198, %c0_199] : memref<96x128xf32, #tpu.memory_space<vmem>>, vector<8x128xf32>
    %373 = arith.select %25, %372, %371 : vector<8x128xi1>, vector<8x128xf32>
    %c0_200 = arith.constant 0 : index
    %c0_201 = arith.constant 0 : index
    %374 = vector.load %arg15[%c0_200, %c0_201] : memref<96x128xf32, #tpu.memory_space<vmem>>, vector<8x128xf32>
    tpu.vector_store %arg15[%c0_200, %c0_201], %373 {strides = array<i32>} : memref<96x128xf32, #tpu.memory_space<vmem>>, vector<8x128xf32>,
    %c8_202 = arith.constant 8 : index
    %c0_203 = arith.constant 0 : index
    %375 = vector.load %arg14[%c8_202, %c0_203] : memref<96x128xf32, #tpu.memory_space<vmem>>, vector<8x128xf32>
    %c80_204 = arith.constant 80 : index
    %c0_205 = arith.constant 0 : index
    %376 = vector.load %arg14[%c80_204, %c0_205] : memref<96x128xf32, #tpu.memory_space<vmem>>, vector<8x128xf32>
    %377 = arith.select %25, %376, %375 : vector<8x128xi1>, vector<8x128xf32>
    %c8_206 = arith.constant 8 : index
    %c0_207 = arith.constant 0 : index
    %378 = vector.load %arg15[%c8_206, %c0_207] : memref<96x128xf32, #tpu.memory_space<vmem>>, vector<8x128xf32>
    tpu.vector_store %arg15[%c8_206, %c0_207], %377 {strides = array<i32>} : memref<96x128xf32, #tpu.memory_space<vmem>>, vector<8x128xf32>,
    %c16_208 = arith.constant 16 : index
    %c0_209 = arith.constant 0 : index
    %379 = vector.load %arg14[%c16_208, %c0_209] : memref<96x128xf32, #tpu.memory_space<vmem>>, vector<8x128xf32>
    %c72_210 = arith.constant 72 : index
    %c0_211 = arith.constant 0 : index
    %380 = vector.load %arg14[%c72_210, %c0_211] : memref<96x128xf32, #tpu.memory_space<vmem>>, vector<8x128xf32>
    %381 = arith.select %25, %380, %379 : vector<8x128xi1>, vector<8x128xf32>
    %c16_212 = arith.constant 16 : index
    %c0_213 = arith.constant 0 : index
    %382 = vector.load %arg15[%c16_212, %c0_213] : memref<96x128xf32, #tpu.memory_space<vmem>>, vector<8x128xf32>
    tpu.vector_store %arg15[%c16_212, %c0_213], %381 {strides = array<i32>} : memref<96x128xf32, #tpu.memory_space<vmem>>, vector<8x128xf32>,
    %c24_214 = arith.constant 24 : index
    %c0_215 = arith.constant 0 : index
    %383 = vector.load %arg14[%c24_214, %c0_215] : memref<96x128xf32, #tpu.memory_space<vmem>>, vector<8x128xf32>
    %c64_216 = arith.constant 64 : index
    %c0_217 = arith.constant 0 : index
    %384 = vector.load %arg14[%c64_216, %c0_217] : memref<96x128xf32, #tpu.memory_space<vmem>>, vector<8x128xf32>
    %385 = arith.select %25, %384, %383 : vector<8x128xi1>, vector<8x128xf32>
    %c24_218 = arith.constant 24 : index
    %c0_219 = arith.constant 0 : index
    %386 = vector.load %arg15[%c24_218, %c0_219] : memref<96x128xf32, #tpu.memory_space<vmem>>, vector<8x128xf32>
    tpu.vector_store %arg15[%c24_218, %c0_219], %385 {strides = array<i32>} : memref<96x128xf32, #tpu.memory_space<vmem>>, vector<8x128xf32>,
    %c32_220 = arith.constant 32 : index
    %c0_221 = arith.constant 0 : index
    %387 = vector.load %arg14[%c32_220, %c0_221] : memref<96x128xf32, #tpu.memory_space<vmem>>, vector<8x128xf32>
    %c56_222 = arith.constant 56 : index
    %c0_223 = arith.constant 0 : index
    %388 = vector.load %arg14[%c56_222, %c0_223] : memref<96x128xf32, #tpu.memory_space<vmem>>, vector<8x128xf32>
    %389 = arith.select %25, %388, %387 : vector<8x128xi1>, vector<8x128xf32>
    %c32_224 = arith.constant 32 : index
    %c0_225 = arith.constant 0 : index
    %390 = vector.load %arg15[%c32_224, %c0_225] : memref<96x128xf32, #tpu.memory_space<vmem>>, vector<8x128xf32>
    tpu.vector_store %arg15[%c32_224, %c0_225], %389 {strides = array<i32>} : memref<96x128xf32, #tpu.memory_space<vmem>>, vector<8x128xf32>,
    %c40_226 = arith.constant 40 : index
    %c0_227 = arith.constant 0 : index
    %391 = vector.load %arg14[%c40_226, %c0_227] : memref<96x128xf32, #tpu.memory_space<vmem>>, vector<8x128xf32>
    %c48_228 = arith.constant 48 : index
    %c0_229 = arith.constant 0 : index
    %392 = vector.load %arg14[%c48_228, %c0_229] : memref<96x128xf32, #tpu.memory_space<vmem>>, vector<8x128xf32>
    %393 = arith.select %25, %392, %391 : vector<8x128xi1>, vector<8x128xf32>
    %c40_230 = arith.constant 40 : index
    %c0_231 = arith.constant 0 : index
    %394 = vector.load %arg15[%c40_230, %c0_231] : memref<96x128xf32, #tpu.memory_space<vmem>>, vector<8x128xf32>
    tpu.vector_store %arg15[%c40_230, %c0_231], %393 {strides = array<i32>} : memref<96x128xf32, #tpu.memory_space<vmem>>, vector<8x128xf32>,
    %c48_232 = arith.constant 48 : index
    %c0_233 = arith.constant 0 : index
    %395 = vector.load %arg14[%c48_232, %c0_233] : memref<96x128xf32, #tpu.memory_space<vmem>>, vector<8x128xf32>
    %c40_234 = arith.constant 40 : index
    %c0_235 = arith.constant 0 : index
    %396 = vector.load %arg14[%c40_234, %c0_235] : memref<96x128xf32, #tpu.memory_space<vmem>>, vector<8x128xf32>
    %397 = arith.select %25, %396, %395 : vector<8x128xi1>, vector<8x128xf32>
    %c48_236 = arith.constant 48 : index
    %c0_237 = arith.constant 0 : index
    %398 = vector.load %arg15[%c48_236, %c0_237] : memref<96x128xf32, #tpu.memory_space<vmem>>, vector<8x128xf32>
    tpu.vector_store %arg15[%c48_236, %c0_237], %397 {strides = array<i32>} : memref<96x128xf32, #tpu.memory_space<vmem>>, vector<8x128xf32>,
    %c56_238 = arith.constant 56 : index
    %c0_239 = arith.constant 0 : index
    %399 = vector.load %arg14[%c56_238, %c0_239] : memref<96x128xf32, #tpu.memory_space<vmem>>, vector<8x128xf32>
    %c32_240 = arith.constant 32 : index
    %c0_241 = arith.constant 0 : index
    %400 = vector.load %arg14[%c32_240, %c0_241] : memref<96x128xf32, #tpu.memory_space<vmem>>, vector<8x128xf32>
    %401 = arith.select %25, %400, %399 : vector<8x128xi1>, vector<8x128xf32>
    %c56_242 = arith.constant 56 : index
    %c0_243 = arith.constant 0 : index
    %402 = vector.load %arg15[%c56_242, %c0_243] : memref<96x128xf32, #tpu.memory_space<vmem>>, vector<8x128xf32>
    tpu.vector_store %arg15[%c56_242, %c0_243], %401 {strides = array<i32>} : memref<96x128xf32, #tpu.memory_space<vmem>>, vector<8x128xf32>,
    %c64_244 = arith.constant 64 : index
    %c0_245 = arith.constant 0 : index
    %403 = vector.load %arg14[%c64_244, %c0_245] : memref<96x128xf32, #tpu.memory_space<vmem>>, vector<8x128xf32>
    %c24_246 = arith.constant 24 : index
    %c0_247 = arith.constant 0 : index
    %404 = vector.load %arg14[%c24_246, %c0_247] : memref<96x128xf32, #tpu.memory_space<vmem>>, vector<8x128xf32>
    %405 = arith.select %25, %404, %403 : vector<8x128xi1>, vector<8x128xf32>
    %c64_248 = arith.constant 64 : index
    %c0_249 = arith.constant 0 : index
    %406 = vector.load %arg15[%c64_248, %c0_249] : memref<96x128xf32, #tpu.memory_space<vmem>>, vector<8x128xf32>
    tpu.vector_store %arg15[%c64_248, %c0_249], %405 {strides = array<i32>} : memref<96x128xf32, #tpu.memory_space<vmem>>, vector<8x128xf32>,
    %c72_250 = arith.constant 72 : index
    %c0_251 = arith.constant 0 : index
    %407 = vector.load %arg14[%c72_250, %c0_251] : memref<96x128xf32, #tpu.memory_space<vmem>>, vector<8x128xf32>
    %c16_252 = arith.constant 16 : index
    %c0_253 = arith.constant 0 : index
    %408 = vector.load %arg14[%c16_252, %c0_253] : memref<96x128xf32, #tpu.memory_space<vmem>>, vector<8x128xf32>
    %409 = arith.select %25, %408, %407 : vector<8x128xi1>, vector<8x128xf32>
    %c72_254 = arith.constant 72 : index
    %c0_255 = arith.constant 0 : index
    %410 = vector.load %arg15[%c72_254, %c0_255] : memref<96x128xf32, #tpu.memory_space<vmem>>, vector<8x128xf32>
    tpu.vector_store %arg15[%c72_254, %c0_255], %409 {strides = array<i32>} : memref<96x128xf32, #tpu.memory_space<vmem>>, vector<8x128xf32>,
    %c80_256 = arith.constant 80 : index
    %c0_257 = arith.constant 0 : index
    %411 = vector.load %arg14[%c80_256, %c0_257] : memref<96x128xf32, #tpu.memory_space<vmem>>, vector<8x128xf32>
    %c8_258 = arith.constant 8 : index
    %c0_259 = arith.constant 0 : index
    %412 = vector.load %arg14[%c8_258, %c0_259] : memref<96x128xf32, #tpu.memory_space<vmem>>, vector<8x128xf32>
    %413 = arith.select %25, %412, %411 : vector<8x128xi1>, vector<8x128xf32>
    %c80_260 = arith.constant 80 : index
    %c0_261 = arith.constant 0 : index
    %414 = vector.load %arg15[%c80_260, %c0_261] : memref<96x128xf32, #tpu.memory_space<vmem>>, vector<8x128xf32>
    tpu.vector_store %arg15[%c80_260, %c0_261], %413 {strides = array<i32>} : memref<96x128xf32, #tpu.memory_space<vmem>>, vector<8x128xf32>,
    %c88_262 = arith.constant 88 : index
    %c0_263 = arith.constant 0 : index
    %415 = vector.load %arg14[%c88_262, %c0_263] : memref<96x128xf32, #tpu.memory_space<vmem>>, vector<8x128xf32>
    %c0_264 = arith.constant 0 : index
    %c0_265 = arith.constant 0 : index
    %416 = vector.load %arg14[%c0_264, %c0_265] : memref<96x128xf32, #tpu.memory_space<vmem>>, vector<8x128xf32>
    %417 = arith.select %25, %416, %415 : vector<8x128xi1>, vector<8x128xf32>
    %c88_266 = arith.constant 88 : index
    %c0_267 = arith.constant 0 : index
    %418 = vector.load %arg15[%c88_266, %c0_267] : memref<96x128xf32, #tpu.memory_space<vmem>>, vector<8x128xf32>
    tpu.vector_store %arg15[%c88_266, %c0_267], %417 {strides = array<i32>} : memref<96x128xf32, #tpu.memory_space<vmem>>, vector<8x128xf32>,
    %c0_i32_268 = arith.constant 0 : i32
    %419 = tpu.memref_slice %arg19[%c0_i32_268] : memref<2x!tpu.dma_semaphore, #tpu.memory_space<semaphore_mem>> -> memref<1x!tpu.dma_semaphore, #tpu.memory_space<semaphore_mem>>
    %420 = tpu.memref_squeeze %419 : memref<1x!tpu.dma_semaphore, #tpu.memory_space<semaphore_mem>> -> memref<!tpu.dma_semaphore, #tpu.memory_space<semaphore_mem>>
    tpu.wait_dma2 semaphore(%420 : memref<!tpu.dma_semaphore, #tpu.memory_space<semaphore_mem>>) src(%arg4 : memref<128x512xbf16, #tpu.memory_space<any>>) dst(%arg17 : memref<128x512xbf16, #tpu.memory_space<vmem>>)
    %c1_i32_269 = arith.constant 1 : i32
    %421 = tpu.memref_slice %arg19[%c1_i32_269] : memref<2x!tpu.dma_semaphore, #tpu.memory_space<semaphore_mem>> -> memref<1x!tpu.dma_semaphore, #tpu.memory_space<semaphore_mem>>
    %422 = tpu.memref_squeeze %421 : memref<1x!tpu.dma_semaphore, #tpu.memory_space<semaphore_mem>> -> memref<!tpu.dma_semaphore, #tpu.memory_space<semaphore_mem>>
    tpu.wait_dma2 semaphore(%422 : memref<!tpu.dma_semaphore, #tpu.memory_space<semaphore_mem>>) src(%arg5 : memref<128x512xbf16, #tpu.memory_space<any>>) dst(%arg18 : memref<128x512xbf16, #tpu.memory_space<vmem>>)
    %c0_270 = arith.constant 0 : index
    %c0_271 = arith.constant 0 : index
    %423 = vector.load %arg15[%c0_270, %c0_271] : memref<96x128xf32, #tpu.memory_space<vmem>>, vector<96x128xf32>
    %424 = arith.truncf %423 : vector<96x128xf32> to vector<96x128xbf16>
    %c0_272 = arith.constant 0 : index
    %c0_273 = arith.constant 0 : index
    %425 = vector.load %arg17[%c0_272, %c0_273] : memref<128x512xbf16, #tpu.memory_space<vmem>>, vector<128x512xbf16>
    %cst_274 = arith.constant dense<0.000000e+00> : vector<96x512xf32>
    %426 = tpu.matmul %424, %425, %cst_274 {dimension_numbers = #tpu.dot_dimension_numbers<[1], [0], [0], [1], [0, 0, 1, 1], [], []>} : vector<96x128xbf16>, vector<128x512xbf16>, vector<96x512xf32> -> vector<96x512xf32>
    %c0_275 = arith.constant 0 : index
    %c0_276 = arith.constant 0 : index
    %427 = vector.load %arg6[%c0_275, %c0_276] : memref<1x512xf32, #tpu.memory_space<vmem>>, vector<1x512xf32>
    %428 = vector.broadcast %427 : vector<1x512xf32> to vector<96x512xf32>
    %429 = arith.addf %426, %428 : vector<96x512xf32>
    %c0_277 = arith.constant 0 : index
    %c0_278 = arith.constant 0 : index
    %430 = vector.load %arg12[%c0_277, %c0_278] : memref<96x512xf32, #tpu.memory_space<vmem>>, vector<96x512xf32>
    tpu.vector_store %arg12[%c0_277, %c0_278], %429 {strides = array<i32>} : memref<96x512xf32, #tpu.memory_space<vmem>>, vector<96x512xf32>,
    %c0_279 = arith.constant 0 : index
    %c0_280 = arith.constant 0 : index
    %431 = vector.load %arg12[%c0_279, %c0_280] : memref<96x512xf32, #tpu.memory_space<vmem>>, vector<8x512xf32>
    %c88_281 = arith.constant 88 : index
    %c0_282 = arith.constant 0 : index
    %432 = vector.load %arg12[%c88_281, %c0_282] : memref<96x512xf32, #tpu.memory_space<vmem>>, vector<8x512xf32>
    %433 = arith.select %22, %432, %431 : vector<8x512xi1>, vector<8x512xf32>
    %c0_283 = arith.constant 0 : index
    %c0_284 = arith.constant 0 : index
    %434 = vector.load %arg13[%c0_283, %c0_284] : memref<96x512xf32, #tpu.memory_space<vmem>>, vector<8x512xf32>
    tpu.vector_store %arg13[%c0_283, %c0_284], %433 {strides = array<i32>} : memref<96x512xf32, #tpu.memory_space<vmem>>, vector<8x512xf32>,
    %c8_285 = arith.constant 8 : index
    %c0_286 = arith.constant 0 : index
    %435 = vector.load %arg12[%c8_285, %c0_286] : memref<96x512xf32, #tpu.memory_space<vmem>>, vector<8x512xf32>
    %c80_287 = arith.constant 80 : index
    %c0_288 = arith.constant 0 : index
    %436 = vector.load %arg12[%c80_287, %c0_288] : memref<96x512xf32, #tpu.memory_space<vmem>>, vector<8x512xf32>
    %437 = arith.select %22, %436, %435 : vector<8x512xi1>, vector<8x512xf32>
    %c8_289 = arith.constant 8 : index
    %c0_290 = arith.constant 0 : index
    %438 = vector.load %arg13[%c8_289, %c0_290] : memref<96x512xf32, #tpu.memory_space<vmem>>, vector<8x512xf32>
    tpu.vector_store %arg13[%c8_289, %c0_290], %437 {strides = array<i32>} : memref<96x512xf32, #tpu.memory_space<vmem>>, vector<8x512xf32>,
    %c16_291 = arith.constant 16 : index
    %c0_292 = arith.constant 0 : index
    %439 = vector.load %arg12[%c16_291, %c0_292] : memref<96x512xf32, #tpu.memory_space<vmem>>, vector<8x512xf32>
    %c72_293 = arith.constant 72 : index
    %c0_294 = arith.constant 0 : index
    %440 = vector.load %arg12[%c72_293, %c0_294] : memref<96x512xf32, #tpu.memory_space<vmem>>, vector<8x512xf32>
    %441 = arith.select %22, %440, %439 : vector<8x512xi1>, vector<8x512xf32>
    %c16_295 = arith.constant 16 : index
    %c0_296 = arith.constant 0 : index
    %442 = vector.load %arg13[%c16_295, %c0_296] : memref<96x512xf32, #tpu.memory_space<vmem>>, vector<8x512xf32>
    tpu.vector_store %arg13[%c16_295, %c0_296], %441 {strides = array<i32>} : memref<96x512xf32, #tpu.memory_space<vmem>>, vector<8x512xf32>,
    %c24_297 = arith.constant 24 : index
    %c0_298 = arith.constant 0 : index
    %443 = vector.load %arg12[%c24_297, %c0_298] : memref<96x512xf32, #tpu.memory_space<vmem>>, vector<8x512xf32>
    %c64_299 = arith.constant 64 : index
    %c0_300 = arith.constant 0 : index
    %444 = vector.load %arg12[%c64_299, %c0_300] : memref<96x512xf32, #tpu.memory_space<vmem>>, vector<8x512xf32>
    %445 = arith.select %22, %444, %443 : vector<8x512xi1>, vector<8x512xf32>
    %c24_301 = arith.constant 24 : index
    %c0_302 = arith.constant 0 : index
    %446 = vector.load %arg13[%c24_301, %c0_302] : memref<96x512xf32, #tpu.memory_space<vmem>>, vector<8x512xf32>
    tpu.vector_store %arg13[%c24_301, %c0_302], %445 {strides = array<i32>} : memref<96x512xf32, #tpu.memory_space<vmem>>, vector<8x512xf32>,
    %c32_303 = arith.constant 32 : index
    %c0_304 = arith.constant 0 : index
    %447 = vector.load %arg12[%c32_303, %c0_304] : memref<96x512xf32, #tpu.memory_space<vmem>>, vector<8x512xf32>
    %c56_305 = arith.constant 56 : index
    %c0_306 = arith.constant 0 : index
    %448 = vector.load %arg12[%c56_305, %c0_306] : memref<96x512xf32, #tpu.memory_space<vmem>>, vector<8x512xf32>
    %449 = arith.select %22, %448, %447 : vector<8x512xi1>, vector<8x512xf32>
    %c32_307 = arith.constant 32 : index
    %c0_308 = arith.constant 0 : index
    %450 = vector.load %arg13[%c32_307, %c0_308] : memref<96x512xf32, #tpu.memory_space<vmem>>, vector<8x512xf32>
    tpu.vector_store %arg13[%c32_307, %c0_308], %449 {strides = array<i32>} : memref<96x512xf32, #tpu.memory_space<vmem>>, vector<8x512xf32>,
    %c40_309 = arith.constant 40 : index
    %c0_310 = arith.constant 0 : index
    %451 = vector.load %arg12[%c40_309, %c0_310] : memref<96x512xf32, #tpu.memory_space<vmem>>, vector<8x512xf32>
    %c48_311 = arith.constant 48 : index
    %c0_312 = arith.constant 0 : index
    %452 = vector.load %arg12[%c48_311, %c0_312] : memref<96x512xf32, #tpu.memory_space<vmem>>, vector<8x512xf32>
    %453 = arith.select %22, %452, %451 : vector<8x512xi1>, vector<8x512xf32>
    %c40_313 = arith.constant 40 : index
    %c0_314 = arith.constant 0 : index
    %454 = vector.load %arg13[%c40_313, %c0_314] : memref<96x512xf32, #tpu.memory_space<vmem>>, vector<8x512xf32>
    tpu.vector_store %arg13[%c40_313, %c0_314], %453 {strides = array<i32>} : memref<96x512xf32, #tpu.memory_space<vmem>>, vector<8x512xf32>,
    %c48_315 = arith.constant 48 : index
    %c0_316 = arith.constant 0 : index
    %455 = vector.load %arg12[%c48_315, %c0_316] : memref<96x512xf32, #tpu.memory_space<vmem>>, vector<8x512xf32>
    %c40_317 = arith.constant 40 : index
    %c0_318 = arith.constant 0 : index
    %456 = vector.load %arg12[%c40_317, %c0_318] : memref<96x512xf32, #tpu.memory_space<vmem>>, vector<8x512xf32>
    %457 = arith.select %22, %456, %455 : vector<8x512xi1>, vector<8x512xf32>
    %c48_319 = arith.constant 48 : index
    %c0_320 = arith.constant 0 : index
    %458 = vector.load %arg13[%c48_319, %c0_320] : memref<96x512xf32, #tpu.memory_space<vmem>>, vector<8x512xf32>
    tpu.vector_store %arg13[%c48_319, %c0_320], %457 {strides = array<i32>} : memref<96x512xf32, #tpu.memory_space<vmem>>, vector<8x512xf32>,
    %c56_321 = arith.constant 56 : index
    %c0_322 = arith.constant 0 : index
    %459 = vector.load %arg12[%c56_321, %c0_322] : memref<96x512xf32, #tpu.memory_space<vmem>>, vector<8x512xf32>
    %c32_323 = arith.constant 32 : index
    %c0_324 = arith.constant 0 : index
    %460 = vector.load %arg12[%c32_323, %c0_324] : memref<96x512xf32, #tpu.memory_space<vmem>>, vector<8x512xf32>
    %461 = arith.select %22, %460, %459 : vector<8x512xi1>, vector<8x512xf32>
    %c56_325 = arith.constant 56 : index
    %c0_326 = arith.constant 0 : index
    %462 = vector.load %arg13[%c56_325, %c0_326] : memref<96x512xf32, #tpu.memory_space<vmem>>, vector<8x512xf32>
    tpu.vector_store %arg13[%c56_325, %c0_326], %461 {strides = array<i32>} : memref<96x512xf32, #tpu.memory_space<vmem>>, vector<8x512xf32>,
    %c64_327 = arith.constant 64 : index
    %c0_328 = arith.constant 0 : index
    %463 = vector.load %arg12[%c64_327, %c0_328] : memref<96x512xf32, #tpu.memory_space<vmem>>, vector<8x512xf32>
    %c24_329 = arith.constant 24 : index
    %c0_330 = arith.constant 0 : index
    %464 = vector.load %arg12[%c24_329, %c0_330] : memref<96x512xf32, #tpu.memory_space<vmem>>, vector<8x512xf32>
    %465 = arith.select %22, %464, %463 : vector<8x512xi1>, vector<8x512xf32>
    %c64_331 = arith.constant 64 : index
    %c0_332 = arith.constant 0 : index
    %466 = vector.load %arg13[%c64_331, %c0_332] : memref<96x512xf32, #tpu.memory_space<vmem>>, vector<8x512xf32>
    tpu.vector_store %arg13[%c64_331, %c0_332], %465 {strides = array<i32>} : memref<96x512xf32, #tpu.memory_space<vmem>>, vector<8x512xf32>,
    %c72_333 = arith.constant 72 : index
    %c0_334 = arith.constant 0 : index
    %467 = vector.load %arg12[%c72_333, %c0_334] : memref<96x512xf32, #tpu.memory_space<vmem>>, vector<8x512xf32>
    %c16_335 = arith.constant 16 : index
    %c0_336 = arith.constant 0 : index
    %468 = vector.load %arg12[%c16_335, %c0_336] : memref<96x512xf32, #tpu.memory_space<vmem>>, vector<8x512xf32>
    %469 = arith.select %22, %468, %467 : vector<8x512xi1>, vector<8x512xf32>
    %c72_337 = arith.constant 72 : index
    %c0_338 = arith.constant 0 : index
    %470 = vector.load %arg13[%c72_337, %c0_338] : memref<96x512xf32, #tpu.memory_space<vmem>>, vector<8x512xf32>
    tpu.vector_store %arg13[%c72_337, %c0_338], %469 {strides = array<i32>} : memref<96x512xf32, #tpu.memory_space<vmem>>, vector<8x512xf32>,
    %c80_339 = arith.constant 80 : index
    %c0_340 = arith.constant 0 : index
    %471 = vector.load %arg12[%c80_339, %c0_340] : memref<96x512xf32, #tpu.memory_space<vmem>>, vector<8x512xf32>
    %c8_341 = arith.constant 8 : index
    %c0_342 = arith.constant 0 : index
    %472 = vector.load %arg12[%c8_341, %c0_342] : memref<96x512xf32, #tpu.memory_space<vmem>>, vector<8x512xf32>
    %473 = arith.select %22, %472, %471 : vector<8x512xi1>, vector<8x512xf32>
    %c80_343 = arith.constant 80 : index
    %c0_344 = arith.constant 0 : index
    %474 = vector.load %arg13[%c80_343, %c0_344] : memref<96x512xf32, #tpu.memory_space<vmem>>, vector<8x512xf32>
    tpu.vector_store %arg13[%c80_343, %c0_344], %473 {strides = array<i32>} : memref<96x512xf32, #tpu.memory_space<vmem>>, vector<8x512xf32>,
    %c88_345 = arith.constant 88 : index
    %c0_346 = arith.constant 0 : index
    %475 = vector.load %arg12[%c88_345, %c0_346] : memref<96x512xf32, #tpu.memory_space<vmem>>, vector<8x512xf32>
    %c0_347 = arith.constant 0 : index
    %c0_348 = arith.constant 0 : index
    %476 = vector.load %arg12[%c0_347, %c0_348] : memref<96x512xf32, #tpu.memory_space<vmem>>, vector<8x512xf32>
    %477 = arith.select %22, %476, %475 : vector<8x512xi1>, vector<8x512xf32>
    %c88_349 = arith.constant 88 : index
    %c0_350 = arith.constant 0 : index
    %478 = vector.load %arg13[%c88_349, %c0_350] : memref<96x512xf32, #tpu.memory_space<vmem>>, vector<8x512xf32>
    tpu.vector_store %arg13[%c88_349, %c0_350], %477 {strides = array<i32>} : memref<96x512xf32, #tpu.memory_space<vmem>>, vector<8x512xf32>,
    %cst_351 = arith.constant 0.000000e+00 : f32
    %479 = vector.broadcast %cst_351 : f32 to vector<8x128xf32>
    %cst_352 = arith.constant 0.000000e+00 : f32
    %480 = vector.broadcast %cst_352 : f32 to vector<8x128xf32>
    %c0_353 = arith.constant 0 : index
    %c0_354 = arith.constant 0 : index
    %481 = vector.load %arg13[%c0_353, %c0_354] : memref<96x512xf32, #tpu.memory_space<vmem>>, vector<8x512xf32>
    %482 = arith.truncf %479 : vector<8x128xf32> to vector<8x128xbf16>
    %c0_355 = arith.constant 0 : index
    %c0_356 = arith.constant 0 : index
    %483 = vector.load %arg18[%c0_355, %c0_356] : memref<128x512xbf16, #tpu.memory_space<vmem>>, vector<128x512xbf16>
    %cst_357 = arith.constant dense<0.000000e+00> : vector<8x512xf32>
    %484 = tpu.matmul %482, %483, %cst_357 {dimension_numbers = #tpu.dot_dimension_numbers<[1], [0], [0], [1], [0, 0, 1, 1], [], []>} : vector<8x128xbf16>, vector<128x512xbf16>, vector<8x512xf32> -> vector<8x512xf32>
    %485 = arith.addf %481, %484 : vector<8x512xf32>
    %486 = vector.extract_strided_slice %485 {offsets = [0, 0], sizes = [8, 384], strides = [1, 1]} : vector<8x512xf32> to vector<8x384xf32>
    %cst_358 = arith.constant 5.000000e-01 : f32
    %487 = vector.broadcast %cst_358 : f32 to vector<8x384xf32>
    %488 = arith.mulf %487, %486 : vector<8x384xf32>
    %489 = math.tanh %488 : vector<8x384xf32>
    %cst_359 = arith.constant 5.000000e-01 : f32
    %490 = vector.broadcast %cst_359 : f32 to vector<8x384xf32>
    %491 = arith.mulf %490, %489 : vector<8x384xf32>
    %cst_360 = arith.constant 5.000000e-01 : f32
    %492 = vector.broadcast %cst_360 : f32 to vector<8x384xf32>
    %493 = arith.addf %491, %492 : vector<8x384xf32>
    %494 = vector.extract_strided_slice %485 {offsets = [0, 384], sizes = [8, 128], strides = [1, 1]} : vector<8x512xf32> to vector<8x128xf32>
    %495 = math.tanh %494 : vector<8x128xf32>
    %496 = vector.extract_strided_slice %493 {offsets = [0, 0], sizes = [8, 128], strides = [1, 1]} : vector<8x384xf32> to vector<8x128xf32>
    %497 = vector.extract_strided_slice %493 {offsets = [0, 128], sizes = [8, 128], strides = [1, 1]} : vector<8x384xf32> to vector<8x128xf32>
    %498 = vector.extract_strided_slice %493 {offsets = [0, 256], sizes = [8, 128], strides = [1, 1]} : vector<8x384xf32> to vector<8x128xf32>
    %499 = arith.mulf %497, %480 : vector<8x128xf32>
    %500 = arith.mulf %496, %495 : vector<8x128xf32>
    %501 = arith.addf %499, %500 : vector<8x128xf32>
    %502 = math.tanh %501 : vector<8x128xf32>
    %503 = arith.mulf %498, %502 : vector<8x128xf32>
    %c0_361 = arith.constant 0 : index
    %c0_362 = arith.constant 0 : index
    %504 = vector.load %arg14[%c0_361, %c0_362] : memref<96x128xf32, #tpu.memory_space<vmem>>, vector<8x128xf32>
    tpu.vector_store %arg14[%c0_361, %c0_362], %503 {strides = array<i32>} : memref<96x128xf32, #tpu.memory_space<vmem>>, vector<8x128xf32>,
    %c8_363 = arith.constant 8 : index
    %c0_364 = arith.constant 0 : index
    %505 = vector.load %arg13[%c8_363, %c0_364] : memref<96x512xf32, #tpu.memory_space<vmem>>, vector<8x512xf32>
    %506 = arith.truncf %503 : vector<8x128xf32> to vector<8x128xbf16>
    %c0_365 = arith.constant 0 : index
    %c0_366 = arith.constant 0 : index
    %507 = vector.load %arg18[%c0_365, %c0_366] : memref<128x512xbf16, #tpu.memory_space<vmem>>, vector<128x512xbf16>
    %cst_367 = arith.constant dense<0.000000e+00> : vector<8x512xf32>
    %508 = tpu.matmul %506, %507, %cst_367 {dimension_numbers = #tpu.dot_dimension_numbers<[1], [0], [0], [1], [0, 0, 1, 1], [], []>} : vector<8x128xbf16>, vector<128x512xbf16>, vector<8x512xf32> -> vector<8x512xf32>
    %509 = arith.addf %505, %508 : vector<8x512xf32>
    %510 = vector.extract_strided_slice %509 {offsets = [0, 0], sizes = [8, 384], strides = [1, 1]} : vector<8x512xf32> to vector<8x384xf32>
    %cst_368 = arith.constant 5.000000e-01 : f32
    %511 = vector.broadcast %cst_368 : f32 to vector<8x384xf32>
    %512 = arith.mulf %511, %510 : vector<8x384xf32>
    %513 = math.tanh %512 : vector<8x384xf32>
    %cst_369 = arith.constant 5.000000e-01 : f32
    %514 = vector.broadcast %cst_369 : f32 to vector<8x384xf32>
    %515 = arith.mulf %514, %513 : vector<8x384xf32>
    %cst_370 = arith.constant 5.000000e-01 : f32
    %516 = vector.broadcast %cst_370 : f32 to vector<8x384xf32>
    %517 = arith.addf %515, %516 : vector<8x384xf32>
    %518 = vector.extract_strided_slice %509 {offsets = [0, 384], sizes = [8, 128], strides = [1, 1]} : vector<8x512xf32> to vector<8x128xf32>
    %519 = math.tanh %518 : vector<8x128xf32>
    %520 = vector.extract_strided_slice %517 {offsets = [0, 0], sizes = [8, 128], strides = [1, 1]} : vector<8x384xf32> to vector<8x128xf32>
    %521 = vector.extract_strided_slice %517 {offsets = [0, 128], sizes = [8, 128], strides = [1, 1]} : vector<8x384xf32> to vector<8x128xf32>
    %522 = vector.extract_strided_slice %517 {offsets = [0, 256], sizes = [8, 128], strides = [1, 1]} : vector<8x384xf32> to vector<8x128xf32>
    %523 = arith.mulf %521, %501 : vector<8x128xf32>
    %524 = arith.mulf %520, %519 : vector<8x128xf32>
    %525 = arith.addf %523, %524 : vector<8x128xf32>
    %526 = math.tanh %525 : vector<8x128xf32>
    %527 = arith.mulf %522, %526 : vector<8x128xf32>
    %c8_371 = arith.constant 8 : index
    %c0_372 = arith.constant 0 : index
    %528 = vector.load %arg14[%c8_371, %c0_372] : memref<96x128xf32, #tpu.memory_space<vmem>>, vector<8x128xf32>
    tpu.vector_store %arg14[%c8_371, %c0_372], %527 {strides = array<i32>} : memref<96x128xf32, #tpu.memory_space<vmem>>, vector<8x128xf32>,
    %c16_373 = arith.constant 16 : index
    %c0_374 = arith.constant 0 : index
    %529 = vector.load %arg13[%c16_373, %c0_374] : memref<96x512xf32, #tpu.memory_space<vmem>>, vector<8x512xf32>
    %530 = arith.truncf %527 : vector<8x128xf32> to vector<8x128xbf16>
    %c0_375 = arith.constant 0 : index
    %c0_376 = arith.constant 0 : index
    %531 = vector.load %arg18[%c0_375, %c0_376] : memref<128x512xbf16, #tpu.memory_space<vmem>>, vector<128x512xbf16>
    %cst_377 = arith.constant dense<0.000000e+00> : vector<8x512xf32>
    %532 = tpu.matmul %530, %531, %cst_377 {dimension_numbers = #tpu.dot_dimension_numbers<[1], [0], [0], [1], [0, 0, 1, 1], [], []>} : vector<8x128xbf16>, vector<128x512xbf16>, vector<8x512xf32> -> vector<8x512xf32>
    %533 = arith.addf %529, %532 : vector<8x512xf32>
    %534 = vector.extract_strided_slice %533 {offsets = [0, 0], sizes = [8, 384], strides = [1, 1]} : vector<8x512xf32> to vector<8x384xf32>
    %cst_378 = arith.constant 5.000000e-01 : f32
    %535 = vector.broadcast %cst_378 : f32 to vector<8x384xf32>
    %536 = arith.mulf %535, %534 : vector<8x384xf32>
    %537 = math.tanh %536 : vector<8x384xf32>
    %cst_379 = arith.constant 5.000000e-01 : f32
    %538 = vector.broadcast %cst_379 : f32 to vector<8x384xf32>
    %539 = arith.mulf %538, %537 : vector<8x384xf32>
    %cst_380 = arith.constant 5.000000e-01 : f32
    %540 = vector.broadcast %cst_380 : f32 to vector<8x384xf32>
    %541 = arith.addf %539, %540 : vector<8x384xf32>
    %542 = vector.extract_strided_slice %533 {offsets = [0, 384], sizes = [8, 128], strides = [1, 1]} : vector<8x512xf32> to vector<8x128xf32>
    %543 = math.tanh %542 : vector<8x128xf32>
    %544 = vector.extract_strided_slice %541 {offsets = [0, 0], sizes = [8, 128], strides = [1, 1]} : vector<8x384xf32> to vector<8x128xf32>
    %545 = vector.extract_strided_slice %541 {offsets = [0, 128], sizes = [8, 128], strides = [1, 1]} : vector<8x384xf32> to vector<8x128xf32>
    %546 = vector.extract_strided_slice %541 {offsets = [0, 256], sizes = [8, 128], strides = [1, 1]} : vector<8x384xf32> to vector<8x128xf32>
    %547 = arith.mulf %545, %525 : vector<8x128xf32>
    %548 = arith.mulf %544, %543 : vector<8x128xf32>
    %549 = arith.addf %547, %548 : vector<8x128xf32>
    %550 = math.tanh %549 : vector<8x128xf32>
    %551 = arith.mulf %546, %550 : vector<8x128xf32>
    %c16_381 = arith.constant 16 : index
    %c0_382 = arith.constant 0 : index
    %552 = vector.load %arg14[%c16_381, %c0_382] : memref<96x128xf32, #tpu.memory_space<vmem>>, vector<8x128xf32>
    tpu.vector_store %arg14[%c16_381, %c0_382], %551 {strides = array<i32>} : memref<96x128xf32, #tpu.memory_space<vmem>>, vector<8x128xf32>,
    %c24_383 = arith.constant 24 : index
    %c0_384 = arith.constant 0 : index
    %553 = vector.load %arg13[%c24_383, %c0_384] : memref<96x512xf32, #tpu.memory_space<vmem>>, vector<8x512xf32>
    %554 = arith.truncf %551 : vector<8x128xf32> to vector<8x128xbf16>
    %c0_385 = arith.constant 0 : index
    %c0_386 = arith.constant 0 : index
    %555 = vector.load %arg18[%c0_385, %c0_386] : memref<128x512xbf16, #tpu.memory_space<vmem>>, vector<128x512xbf16>
    %cst_387 = arith.constant dense<0.000000e+00> : vector<8x512xf32>
    %556 = tpu.matmul %554, %555, %cst_387 {dimension_numbers = #tpu.dot_dimension_numbers<[1], [0], [0], [1], [0, 0, 1, 1], [], []>} : vector<8x128xbf16>, vector<128x512xbf16>, vector<8x512xf32> -> vector<8x512xf32>
    %557 = arith.addf %553, %556 : vector<8x512xf32>
    %558 = vector.extract_strided_slice %557 {offsets = [0, 0], sizes = [8, 384], strides = [1, 1]} : vector<8x512xf32> to vector<8x384xf32>
    %cst_388 = arith.constant 5.000000e-01 : f32
    %559 = vector.broadcast %cst_388 : f32 to vector<8x384xf32>
    %560 = arith.mulf %559, %558 : vector<8x384xf32>
    %561 = math.tanh %560 : vector<8x384xf32>
    %cst_389 = arith.constant 5.000000e-01 : f32
    %562 = vector.broadcast %cst_389 : f32 to vector<8x384xf32>
    %563 = arith.mulf %562, %561 : vector<8x384xf32>
    %cst_390 = arith.constant 5.000000e-01 : f32
    %564 = vector.broadcast %cst_390 : f32 to vector<8x384xf32>
    %565 = arith.addf %563, %564 : vector<8x384xf32>
    %566 = vector.extract_strided_slice %557 {offsets = [0, 384], sizes = [8, 128], strides = [1, 1]} : vector<8x512xf32> to vector<8x128xf32>
    %567 = math.tanh %566 : vector<8x128xf32>
    %568 = vector.extract_strided_slice %565 {offsets = [0, 0], sizes = [8, 128], strides = [1, 1]} : vector<8x384xf32> to vector<8x128xf32>
    %569 = vector.extract_strided_slice %565 {offsets = [0, 128], sizes = [8, 128], strides = [1, 1]} : vector<8x384xf32> to vector<8x128xf32>
    %570 = vector.extract_strided_slice %565 {offsets = [0, 256], sizes = [8, 128], strides = [1, 1]} : vector<8x384xf32> to vector<8x128xf32>
    %571 = arith.mulf %569, %549 : vector<8x128xf32>
    %572 = arith.mulf %568, %567 : vector<8x128xf32>
    %573 = arith.addf %571, %572 : vector<8x128xf32>
    %574 = math.tanh %573 : vector<8x128xf32>
    %575 = arith.mulf %570, %574 : vector<8x128xf32>
    %c24_391 = arith.constant 24 : index
    %c0_392 = arith.constant 0 : index
    %576 = vector.load %arg14[%c24_391, %c0_392] : memref<96x128xf32, #tpu.memory_space<vmem>>, vector<8x128xf32>
    tpu.vector_store %arg14[%c24_391, %c0_392], %575 {strides = array<i32>} : memref<96x128xf32, #tpu.memory_space<vmem>>, vector<8x128xf32>,
    %c32_393 = arith.constant 32 : index
    %c0_394 = arith.constant 0 : index
    %577 = vector.load %arg13[%c32_393, %c0_394] : memref<96x512xf32, #tpu.memory_space<vmem>>, vector<8x512xf32>
    %578 = arith.truncf %575 : vector<8x128xf32> to vector<8x128xbf16>
    %c0_395 = arith.constant 0 : index
    %c0_396 = arith.constant 0 : index
    %579 = vector.load %arg18[%c0_395, %c0_396] : memref<128x512xbf16, #tpu.memory_space<vmem>>, vector<128x512xbf16>
    %cst_397 = arith.constant dense<0.000000e+00> : vector<8x512xf32>
    %580 = tpu.matmul %578, %579, %cst_397 {dimension_numbers = #tpu.dot_dimension_numbers<[1], [0], [0], [1], [0, 0, 1, 1], [], []>} : vector<8x128xbf16>, vector<128x512xbf16>, vector<8x512xf32> -> vector<8x512xf32>
    %581 = arith.addf %577, %580 : vector<8x512xf32>
    %582 = vector.extract_strided_slice %581 {offsets = [0, 0], sizes = [8, 384], strides = [1, 1]} : vector<8x512xf32> to vector<8x384xf32>
    %cst_398 = arith.constant 5.000000e-01 : f32
    %583 = vector.broadcast %cst_398 : f32 to vector<8x384xf32>
    %584 = arith.mulf %583, %582 : vector<8x384xf32>
    %585 = math.tanh %584 : vector<8x384xf32>
    %cst_399 = arith.constant 5.000000e-01 : f32
    %586 = vector.broadcast %cst_399 : f32 to vector<8x384xf32>
    %587 = arith.mulf %586, %585 : vector<8x384xf32>
    %cst_400 = arith.constant 5.000000e-01 : f32
    %588 = vector.broadcast %cst_400 : f32 to vector<8x384xf32>
    %589 = arith.addf %587, %588 : vector<8x384xf32>
    %590 = vector.extract_strided_slice %581 {offsets = [0, 384], sizes = [8, 128], strides = [1, 1]} : vector<8x512xf32> to vector<8x128xf32>
    %591 = math.tanh %590 : vector<8x128xf32>
    %592 = vector.extract_strided_slice %589 {offsets = [0, 0], sizes = [8, 128], strides = [1, 1]} : vector<8x384xf32> to vector<8x128xf32>
    %593 = vector.extract_strided_slice %589 {offsets = [0, 128], sizes = [8, 128], strides = [1, 1]} : vector<8x384xf32> to vector<8x128xf32>
    %594 = vector.extract_strided_slice %589 {offsets = [0, 256], sizes = [8, 128], strides = [1, 1]} : vector<8x384xf32> to vector<8x128xf32>
    %595 = arith.mulf %593, %573 : vector<8x128xf32>
    %596 = arith.mulf %592, %591 : vector<8x128xf32>
    %597 = arith.addf %595, %596 : vector<8x128xf32>
    %598 = math.tanh %597 : vector<8x128xf32>
    %599 = arith.mulf %594, %598 : vector<8x128xf32>
    %c32_401 = arith.constant 32 : index
    %c0_402 = arith.constant 0 : index
    %600 = vector.load %arg14[%c32_401, %c0_402] : memref<96x128xf32, #tpu.memory_space<vmem>>, vector<8x128xf32>
    tpu.vector_store %arg14[%c32_401, %c0_402], %599 {strides = array<i32>} : memref<96x128xf32, #tpu.memory_space<vmem>>, vector<8x128xf32>,
    %c40_403 = arith.constant 40 : index
    %c0_404 = arith.constant 0 : index
    %601 = vector.load %arg13[%c40_403, %c0_404] : memref<96x512xf32, #tpu.memory_space<vmem>>, vector<8x512xf32>
    %602 = arith.truncf %599 : vector<8x128xf32> to vector<8x128xbf16>
    %c0_405 = arith.constant 0 : index
    %c0_406 = arith.constant 0 : index
    %603 = vector.load %arg18[%c0_405, %c0_406] : memref<128x512xbf16, #tpu.memory_space<vmem>>, vector<128x512xbf16>
    %cst_407 = arith.constant dense<0.000000e+00> : vector<8x512xf32>
    %604 = tpu.matmul %602, %603, %cst_407 {dimension_numbers = #tpu.dot_dimension_numbers<[1], [0], [0], [1], [0, 0, 1, 1], [], []>} : vector<8x128xbf16>, vector<128x512xbf16>, vector<8x512xf32> -> vector<8x512xf32>
    %605 = arith.addf %601, %604 : vector<8x512xf32>
    %606 = vector.extract_strided_slice %605 {offsets = [0, 0], sizes = [8, 384], strides = [1, 1]} : vector<8x512xf32> to vector<8x384xf32>
    %cst_408 = arith.constant 5.000000e-01 : f32
    %607 = vector.broadcast %cst_408 : f32 to vector<8x384xf32>
    %608 = arith.mulf %607, %606 : vector<8x384xf32>
    %609 = math.tanh %608 : vector<8x384xf32>
    %cst_409 = arith.constant 5.000000e-01 : f32
    %610 = vector.broadcast %cst_409 : f32 to vector<8x384xf32>
    %611 = arith.mulf %610, %609 : vector<8x384xf32>
    %cst_410 = arith.constant 5.000000e-01 : f32
    %612 = vector.broadcast %cst_410 : f32 to vector<8x384xf32>
    %613 = arith.addf %611, %612 : vector<8x384xf32>
    %614 = vector.extract_strided_slice %605 {offsets = [0, 384], sizes = [8, 128], strides = [1, 1]} : vector<8x512xf32> to vector<8x128xf32>
    %615 = math.tanh %614 : vector<8x128xf32>
    %616 = vector.extract_strided_slice %613 {offsets = [0, 0], sizes = [8, 128], strides = [1, 1]} : vector<8x384xf32> to vector<8x128xf32>
    %617 = vector.extract_strided_slice %613 {offsets = [0, 128], sizes = [8, 128], strides = [1, 1]} : vector<8x384xf32> to vector<8x128xf32>
    %618 = vector.extract_strided_slice %613 {offsets = [0, 256], sizes = [8, 128], strides = [1, 1]} : vector<8x384xf32> to vector<8x128xf32>
    %619 = arith.mulf %617, %597 : vector<8x128xf32>
    %620 = arith.mulf %616, %615 : vector<8x128xf32>
    %621 = arith.addf %619, %620 : vector<8x128xf32>
    %622 = math.tanh %621 : vector<8x128xf32>
    %623 = arith.mulf %618, %622 : vector<8x128xf32>
    %c40_411 = arith.constant 40 : index
    %c0_412 = arith.constant 0 : index
    %624 = vector.load %arg14[%c40_411, %c0_412] : memref<96x128xf32, #tpu.memory_space<vmem>>, vector<8x128xf32>
    tpu.vector_store %arg14[%c40_411, %c0_412], %623 {strides = array<i32>} : memref<96x128xf32, #tpu.memory_space<vmem>>, vector<8x128xf32>,
    %c48_413 = arith.constant 48 : index
    %c0_414 = arith.constant 0 : index
    %625 = vector.load %arg13[%c48_413, %c0_414] : memref<96x512xf32, #tpu.memory_space<vmem>>, vector<8x512xf32>
    %626 = arith.truncf %623 : vector<8x128xf32> to vector<8x128xbf16>
    %c0_415 = arith.constant 0 : index
    %c0_416 = arith.constant 0 : index
    %627 = vector.load %arg18[%c0_415, %c0_416] : memref<128x512xbf16, #tpu.memory_space<vmem>>, vector<128x512xbf16>
    %cst_417 = arith.constant dense<0.000000e+00> : vector<8x512xf32>
    %628 = tpu.matmul %626, %627, %cst_417 {dimension_numbers = #tpu.dot_dimension_numbers<[1], [0], [0], [1], [0, 0, 1, 1], [], []>} : vector<8x128xbf16>, vector<128x512xbf16>, vector<8x512xf32> -> vector<8x512xf32>
    %629 = arith.addf %625, %628 : vector<8x512xf32>
    %630 = vector.extract_strided_slice %629 {offsets = [0, 0], sizes = [8, 384], strides = [1, 1]} : vector<8x512xf32> to vector<8x384xf32>
    %cst_418 = arith.constant 5.000000e-01 : f32
    %631 = vector.broadcast %cst_418 : f32 to vector<8x384xf32>
    %632 = arith.mulf %631, %630 : vector<8x384xf32>
    %633 = math.tanh %632 : vector<8x384xf32>
    %cst_419 = arith.constant 5.000000e-01 : f32
    %634 = vector.broadcast %cst_419 : f32 to vector<8x384xf32>
    %635 = arith.mulf %634, %633 : vector<8x384xf32>
    %cst_420 = arith.constant 5.000000e-01 : f32
    %636 = vector.broadcast %cst_420 : f32 to vector<8x384xf32>
    %637 = arith.addf %635, %636 : vector<8x384xf32>
    %638 = vector.extract_strided_slice %629 {offsets = [0, 384], sizes = [8, 128], strides = [1, 1]} : vector<8x512xf32> to vector<8x128xf32>
    %639 = math.tanh %638 : vector<8x128xf32>
    %640 = vector.extract_strided_slice %637 {offsets = [0, 0], sizes = [8, 128], strides = [1, 1]} : vector<8x384xf32> to vector<8x128xf32>
    %641 = vector.extract_strided_slice %637 {offsets = [0, 128], sizes = [8, 128], strides = [1, 1]} : vector<8x384xf32> to vector<8x128xf32>
    %642 = vector.extract_strided_slice %637 {offsets = [0, 256], sizes = [8, 128], strides = [1, 1]} : vector<8x384xf32> to vector<8x128xf32>
    %643 = arith.mulf %641, %621 : vector<8x128xf32>
    %644 = arith.mulf %640, %639 : vector<8x128xf32>
    %645 = arith.addf %643, %644 : vector<8x128xf32>
    %646 = math.tanh %645 : vector<8x128xf32>
    %647 = arith.mulf %642, %646 : vector<8x128xf32>
    %c48_421 = arith.constant 48 : index
    %c0_422 = arith.constant 0 : index
    %648 = vector.load %arg14[%c48_421, %c0_422] : memref<96x128xf32, #tpu.memory_space<vmem>>, vector<8x128xf32>
    tpu.vector_store %arg14[%c48_421, %c0_422], %647 {strides = array<i32>} : memref<96x128xf32, #tpu.memory_space<vmem>>, vector<8x128xf32>,
    %c56_423 = arith.constant 56 : index
    %c0_424 = arith.constant 0 : index
    %649 = vector.load %arg13[%c56_423, %c0_424] : memref<96x512xf32, #tpu.memory_space<vmem>>, vector<8x512xf32>
    %650 = arith.truncf %647 : vector<8x128xf32> to vector<8x128xbf16>
    %c0_425 = arith.constant 0 : index
    %c0_426 = arith.constant 0 : index
    %651 = vector.load %arg18[%c0_425, %c0_426] : memref<128x512xbf16, #tpu.memory_space<vmem>>, vector<128x512xbf16>
    %cst_427 = arith.constant dense<0.000000e+00> : vector<8x512xf32>
    %652 = tpu.matmul %650, %651, %cst_427 {dimension_numbers = #tpu.dot_dimension_numbers<[1], [0], [0], [1], [0, 0, 1, 1], [], []>} : vector<8x128xbf16>, vector<128x512xbf16>, vector<8x512xf32> -> vector<8x512xf32>
    %653 = arith.addf %649, %652 : vector<8x512xf32>
    %654 = vector.extract_strided_slice %653 {offsets = [0, 0], sizes = [8, 384], strides = [1, 1]} : vector<8x512xf32> to vector<8x384xf32>
    %cst_428 = arith.constant 5.000000e-01 : f32
    %655 = vector.broadcast %cst_428 : f32 to vector<8x384xf32>
    %656 = arith.mulf %655, %654 : vector<8x384xf32>
    %657 = math.tanh %656 : vector<8x384xf32>
    %cst_429 = arith.constant 5.000000e-01 : f32
    %658 = vector.broadcast %cst_429 : f32 to vector<8x384xf32>
    %659 = arith.mulf %658, %657 : vector<8x384xf32>
    %cst_430 = arith.constant 5.000000e-01 : f32
    %660 = vector.broadcast %cst_430 : f32 to vector<8x384xf32>
    %661 = arith.addf %659, %660 : vector<8x384xf32>
    %662 = vector.extract_strided_slice %653 {offsets = [0, 384], sizes = [8, 128], strides = [1, 1]} : vector<8x512xf32> to vector<8x128xf32>
    %663 = math.tanh %662 : vector<8x128xf32>
    %664 = vector.extract_strided_slice %661 {offsets = [0, 0], sizes = [8, 128], strides = [1, 1]} : vector<8x384xf32> to vector<8x128xf32>
    %665 = vector.extract_strided_slice %661 {offsets = [0, 128], sizes = [8, 128], strides = [1, 1]} : vector<8x384xf32> to vector<8x128xf32>
    %666 = vector.extract_strided_slice %661 {offsets = [0, 256], sizes = [8, 128], strides = [1, 1]} : vector<8x384xf32> to vector<8x128xf32>
    %667 = arith.mulf %665, %645 : vector<8x128xf32>
    %668 = arith.mulf %664, %663 : vector<8x128xf32>
    %669 = arith.addf %667, %668 : vector<8x128xf32>
    %670 = math.tanh %669 : vector<8x128xf32>
    %671 = arith.mulf %666, %670 : vector<8x128xf32>
    %c56_431 = arith.constant 56 : index
    %c0_432 = arith.constant 0 : index
    %672 = vector.load %arg14[%c56_431, %c0_432] : memref<96x128xf32, #tpu.memory_space<vmem>>, vector<8x128xf32>
    tpu.vector_store %arg14[%c56_431, %c0_432], %671 {strides = array<i32>} : memref<96x128xf32, #tpu.memory_space<vmem>>, vector<8x128xf32>,
    %c64_433 = arith.constant 64 : index
    %c0_434 = arith.constant 0 : index
    %673 = vector.load %arg13[%c64_433, %c0_434] : memref<96x512xf32, #tpu.memory_space<vmem>>, vector<8x512xf32>
    %674 = arith.truncf %671 : vector<8x128xf32> to vector<8x128xbf16>
    %c0_435 = arith.constant 0 : index
    %c0_436 = arith.constant 0 : index
    %675 = vector.load %arg18[%c0_435, %c0_436] : memref<128x512xbf16, #tpu.memory_space<vmem>>, vector<128x512xbf16>
    %cst_437 = arith.constant dense<0.000000e+00> : vector<8x512xf32>
    %676 = tpu.matmul %674, %675, %cst_437 {dimension_numbers = #tpu.dot_dimension_numbers<[1], [0], [0], [1], [0, 0, 1, 1], [], []>} : vector<8x128xbf16>, vector<128x512xbf16>, vector<8x512xf32> -> vector<8x512xf32>
    %677 = arith.addf %673, %676 : vector<8x512xf32>
    %678 = vector.extract_strided_slice %677 {offsets = [0, 0], sizes = [8, 384], strides = [1, 1]} : vector<8x512xf32> to vector<8x384xf32>
    %cst_438 = arith.constant 5.000000e-01 : f32
    %679 = vector.broadcast %cst_438 : f32 to vector<8x384xf32>
    %680 = arith.mulf %679, %678 : vector<8x384xf32>
    %681 = math.tanh %680 : vector<8x384xf32>
    %cst_439 = arith.constant 5.000000e-01 : f32
    %682 = vector.broadcast %cst_439 : f32 to vector<8x384xf32>
    %683 = arith.mulf %682, %681 : vector<8x384xf32>
    %cst_440 = arith.constant 5.000000e-01 : f32
    %684 = vector.broadcast %cst_440 : f32 to vector<8x384xf32>
    %685 = arith.addf %683, %684 : vector<8x384xf32>
    %686 = vector.extract_strided_slice %677 {offsets = [0, 384], sizes = [8, 128], strides = [1, 1]} : vector<8x512xf32> to vector<8x128xf32>
    %687 = math.tanh %686 : vector<8x128xf32>
    %688 = vector.extract_strided_slice %685 {offsets = [0, 0], sizes = [8, 128], strides = [1, 1]} : vector<8x384xf32> to vector<8x128xf32>
    %689 = vector.extract_strided_slice %685 {offsets = [0, 128], sizes = [8, 128], strides = [1, 1]} : vector<8x384xf32> to vector<8x128xf32>
    %690 = vector.extract_strided_slice %685 {offsets = [0, 256], sizes = [8, 128], strides = [1, 1]} : vector<8x384xf32> to vector<8x128xf32>
    %691 = arith.mulf %689, %669 : vector<8x128xf32>
    %692 = arith.mulf %688, %687 : vector<8x128xf32>
    %693 = arith.addf %691, %692 : vector<8x128xf32>
    %694 = math.tanh %693 : vector<8x128xf32>
    %695 = arith.mulf %690, %694 : vector<8x128xf32>
    %c64_441 = arith.constant 64 : index
    %c0_442 = arith.constant 0 : index
    %696 = vector.load %arg14[%c64_441, %c0_442] : memref<96x128xf32, #tpu.memory_space<vmem>>, vector<8x128xf32>
    tpu.vector_store %arg14[%c64_441, %c0_442], %695 {strides = array<i32>} : memref<96x128xf32, #tpu.memory_space<vmem>>, vector<8x128xf32>,
    %c72_443 = arith.constant 72 : index
    %c0_444 = arith.constant 0 : index
    %697 = vector.load %arg13[%c72_443, %c0_444] : memref<96x512xf32, #tpu.memory_space<vmem>>, vector<8x512xf32>
    %698 = arith.truncf %695 : vector<8x128xf32> to vector<8x128xbf16>
    %c0_445 = arith.constant 0 : index
    %c0_446 = arith.constant 0 : index
    %699 = vector.load %arg18[%c0_445, %c0_446] : memref<128x512xbf16, #tpu.memory_space<vmem>>, vector<128x512xbf16>
    %cst_447 = arith.constant dense<0.000000e+00> : vector<8x512xf32>
    %700 = tpu.matmul %698, %699, %cst_447 {dimension_numbers = #tpu.dot_dimension_numbers<[1], [0], [0], [1], [0, 0, 1, 1], [], []>} : vector<8x128xbf16>, vector<128x512xbf16>, vector<8x512xf32> -> vector<8x512xf32>
    %701 = arith.addf %697, %700 : vector<8x512xf32>
    %702 = vector.extract_strided_slice %701 {offsets = [0, 0], sizes = [8, 384], strides = [1, 1]} : vector<8x512xf32> to vector<8x384xf32>
    %cst_448 = arith.constant 5.000000e-01 : f32
    %703 = vector.broadcast %cst_448 : f32 to vector<8x384xf32>
    %704 = arith.mulf %703, %702 : vector<8x384xf32>
    %705 = math.tanh %704 : vector<8x384xf32>
    %cst_449 = arith.constant 5.000000e-01 : f32
    %706 = vector.broadcast %cst_449 : f32 to vector<8x384xf32>
    %707 = arith.mulf %706, %705 : vector<8x384xf32>
    %cst_450 = arith.constant 5.000000e-01 : f32
    %708 = vector.broadcast %cst_450 : f32 to vector<8x384xf32>
    %709 = arith.addf %707, %708 : vector<8x384xf32>
    %710 = vector.extract_strided_slice %701 {offsets = [0, 384], sizes = [8, 128], strides = [1, 1]} : vector<8x512xf32> to vector<8x128xf32>
    %711 = math.tanh %710 : vector<8x128xf32>
    %712 = vector.extract_strided_slice %709 {offsets = [0, 0], sizes = [8, 128], strides = [1, 1]} : vector<8x384xf32> to vector<8x128xf32>
    %713 = vector.extract_strided_slice %709 {offsets = [0, 128], sizes = [8, 128], strides = [1, 1]} : vector<8x384xf32> to vector<8x128xf32>
    %714 = vector.extract_strided_slice %709 {offsets = [0, 256], sizes = [8, 128], strides = [1, 1]} : vector<8x384xf32> to vector<8x128xf32>
    %715 = arith.mulf %713, %693 : vector<8x128xf32>
    %716 = arith.mulf %712, %711 : vector<8x128xf32>
    %717 = arith.addf %715, %716 : vector<8x128xf32>
    %718 = math.tanh %717 : vector<8x128xf32>
    %719 = arith.mulf %714, %718 : vector<8x128xf32>
    %c72_451 = arith.constant 72 : index
    %c0_452 = arith.constant 0 : index
    %720 = vector.load %arg14[%c72_451, %c0_452] : memref<96x128xf32, #tpu.memory_space<vmem>>, vector<8x128xf32>
    tpu.vector_store %arg14[%c72_451, %c0_452], %719 {strides = array<i32>} : memref<96x128xf32, #tpu.memory_space<vmem>>, vector<8x128xf32>,
    %c80_453 = arith.constant 80 : index
    %c0_454 = arith.constant 0 : index
    %721 = vector.load %arg13[%c80_453, %c0_454] : memref<96x512xf32, #tpu.memory_space<vmem>>, vector<8x512xf32>
    %722 = arith.truncf %719 : vector<8x128xf32> to vector<8x128xbf16>
    %c0_455 = arith.constant 0 : index
    %c0_456 = arith.constant 0 : index
    %723 = vector.load %arg18[%c0_455, %c0_456] : memref<128x512xbf16, #tpu.memory_space<vmem>>, vector<128x512xbf16>
    %cst_457 = arith.constant dense<0.000000e+00> : vector<8x512xf32>
    %724 = tpu.matmul %722, %723, %cst_457 {dimension_numbers = #tpu.dot_dimension_numbers<[1], [0], [0], [1], [0, 0, 1, 1], [], []>} : vector<8x128xbf16>, vector<128x512xbf16>, vector<8x512xf32> -> vector<8x512xf32>
    %725 = arith.addf %721, %724 : vector<8x512xf32>
    %726 = vector.extract_strided_slice %725 {offsets = [0, 0], sizes = [8, 384], strides = [1, 1]} : vector<8x512xf32> to vector<8x384xf32>
    %cst_458 = arith.constant 5.000000e-01 : f32
    %727 = vector.broadcast %cst_458 : f32 to vector<8x384xf32>
    %728 = arith.mulf %727, %726 : vector<8x384xf32>
    %729 = math.tanh %728 : vector<8x384xf32>
    %cst_459 = arith.constant 5.000000e-01 : f32
    %730 = vector.broadcast %cst_459 : f32 to vector<8x384xf32>
    %731 = arith.mulf %730, %729 : vector<8x384xf32>
    %cst_460 = arith.constant 5.000000e-01 : f32
    %732 = vector.broadcast %cst_460 : f32 to vector<8x384xf32>
    %733 = arith.addf %731, %732 : vector<8x384xf32>
    %734 = vector.extract_strided_slice %725 {offsets = [0, 384], sizes = [8, 128], strides = [1, 1]} : vector<8x512xf32> to vector<8x128xf32>
    %735 = math.tanh %734 : vector<8x128xf32>
    %736 = vector.extract_strided_slice %733 {offsets = [0, 0], sizes = [8, 128], strides = [1, 1]} : vector<8x384xf32> to vector<8x128xf32>
    %737 = vector.extract_strided_slice %733 {offsets = [0, 128], sizes = [8, 128], strides = [1, 1]} : vector<8x384xf32> to vector<8x128xf32>
    %738 = vector.extract_strided_slice %733 {offsets = [0, 256], sizes = [8, 128], strides = [1, 1]} : vector<8x384xf32> to vector<8x128xf32>
    %739 = arith.mulf %737, %717 : vector<8x128xf32>
    %740 = arith.mulf %736, %735 : vector<8x128xf32>
    %741 = arith.addf %739, %740 : vector<8x128xf32>
    %742 = math.tanh %741 : vector<8x128xf32>
    %743 = arith.mulf %738, %742 : vector<8x128xf32>
    %c80_461 = arith.constant 80 : index
    %c0_462 = arith.constant 0 : index
    %744 = vector.load %arg14[%c80_461, %c0_462] : memref<96x128xf32, #tpu.memory_space<vmem>>, vector<8x128xf32>
    tpu.vector_store %arg14[%c80_461, %c0_462], %743 {strides = array<i32>} : memref<96x128xf32, #tpu.memory_space<vmem>>, vector<8x128xf32>,
    %c88_463 = arith.constant 88 : index
    %c0_464 = arith.constant 0 : index
    %745 = vector.load %arg13[%c88_463, %c0_464] : memref<96x512xf32, #tpu.memory_space<vmem>>, vector<8x512xf32>
    %746 = arith.truncf %743 : vector<8x128xf32> to vector<8x128xbf16>
    %c0_465 = arith.constant 0 : index
    %c0_466 = arith.constant 0 : index
    %747 = vector.load %arg18[%c0_465, %c0_466] : memref<128x512xbf16, #tpu.memory_space<vmem>>, vector<128x512xbf16>
    %cst_467 = arith.constant dense<0.000000e+00> : vector<8x512xf32>
    %748 = tpu.matmul %746, %747, %cst_467 {dimension_numbers = #tpu.dot_dimension_numbers<[1], [0], [0], [1], [0, 0, 1, 1], [], []>} : vector<8x128xbf16>, vector<128x512xbf16>, vector<8x512xf32> -> vector<8x512xf32>
    %749 = arith.addf %745, %748 : vector<8x512xf32>
    %750 = vector.extract_strided_slice %749 {offsets = [0, 0], sizes = [8, 384], strides = [1, 1]} : vector<8x512xf32> to vector<8x384xf32>
    %cst_468 = arith.constant 5.000000e-01 : f32
    %751 = vector.broadcast %cst_468 : f32 to vector<8x384xf32>
    %752 = arith.mulf %751, %750 : vector<8x384xf32>
    %753 = math.tanh %752 : vector<8x384xf32>
    %cst_469 = arith.constant 5.000000e-01 : f32
    %754 = vector.broadcast %cst_469 : f32 to vector<8x384xf32>
    %755 = arith.mulf %754, %753 : vector<8x384xf32>
    %cst_470 = arith.constant 5.000000e-01 : f32
    %756 = vector.broadcast %cst_470 : f32 to vector<8x384xf32>
    %757 = arith.addf %755, %756 : vector<8x384xf32>
    %758 = vector.extract_strided_slice %749 {offsets = [0, 384], sizes = [8, 128], strides = [1, 1]} : vector<8x512xf32> to vector<8x128xf32>
    %759 = math.tanh %758 : vector<8x128xf32>
    %760 = vector.extract_strided_slice %757 {offsets = [0, 0], sizes = [8, 128], strides = [1, 1]} : vector<8x384xf32> to vector<8x128xf32>
    %761 = vector.extract_strided_slice %757 {offsets = [0, 128], sizes = [8, 128], strides = [1, 1]} : vector<8x384xf32> to vector<8x128xf32>
    %762 = vector.extract_strided_slice %757 {offsets = [0, 256], sizes = [8, 128], strides = [1, 1]} : vector<8x384xf32> to vector<8x128xf32>
    %763 = arith.mulf %761, %741 : vector<8x128xf32>
    %764 = arith.mulf %760, %759 : vector<8x128xf32>
    %765 = arith.addf %763, %764 : vector<8x128xf32>
    %766 = math.tanh %765 : vector<8x128xf32>
    %767 = arith.mulf %762, %766 : vector<8x128xf32>
    %c88_471 = arith.constant 88 : index
    %c0_472 = arith.constant 0 : index
    %768 = vector.load %arg14[%c88_471, %c0_472] : memref<96x128xf32, #tpu.memory_space<vmem>>, vector<8x128xf32>
    tpu.vector_store %arg14[%c88_471, %c0_472], %767 {strides = array<i32>} : memref<96x128xf32, #tpu.memory_space<vmem>>, vector<8x128xf32>,
    %c0_473 = arith.constant 0 : index
    %c0_474 = arith.constant 0 : index
    %769 = vector.load %arg14[%c0_473, %c0_474] : memref<96x128xf32, #tpu.memory_space<vmem>>, vector<8x128xf32>
    %c88_475 = arith.constant 88 : index
    %c0_476 = arith.constant 0 : index
    %770 = vector.load %arg14[%c88_475, %c0_476] : memref<96x128xf32, #tpu.memory_space<vmem>>, vector<8x128xf32>
    %771 = arith.select %25, %770, %769 : vector<8x128xi1>, vector<8x128xf32>
    %c0_477 = arith.constant 0 : index
    %c0_478 = arith.constant 0 : index
    %772 = vector.load %arg16[%c0_477, %c0_478] : memref<96x128xf32, #tpu.memory_space<vmem>>, vector<8x128xf32>
    tpu.vector_store %arg16[%c0_477, %c0_478], %771 {strides = array<i32>} : memref<96x128xf32, #tpu.memory_space<vmem>>, vector<8x128xf32>,
    %c8_479 = arith.constant 8 : index
    %c0_480 = arith.constant 0 : index
    %773 = vector.load %arg14[%c8_479, %c0_480] : memref<96x128xf32, #tpu.memory_space<vmem>>, vector<8x128xf32>
    %c80_481 = arith.constant 80 : index
    %c0_482 = arith.constant 0 : index
    %774 = vector.load %arg14[%c80_481, %c0_482] : memref<96x128xf32, #tpu.memory_space<vmem>>, vector<8x128xf32>
    %775 = arith.select %25, %774, %773 : vector<8x128xi1>, vector<8x128xf32>
    %c8_483 = arith.constant 8 : index
    %c0_484 = arith.constant 0 : index
    %776 = vector.load %arg16[%c8_483, %c0_484] : memref<96x128xf32, #tpu.memory_space<vmem>>, vector<8x128xf32>
    tpu.vector_store %arg16[%c8_483, %c0_484], %775 {strides = array<i32>} : memref<96x128xf32, #tpu.memory_space<vmem>>, vector<8x128xf32>,
    %c16_485 = arith.constant 16 : index
    %c0_486 = arith.constant 0 : index
    %777 = vector.load %arg14[%c16_485, %c0_486] : memref<96x128xf32, #tpu.memory_space<vmem>>, vector<8x128xf32>
    %c72_487 = arith.constant 72 : index
    %c0_488 = arith.constant 0 : index
    %778 = vector.load %arg14[%c72_487, %c0_488] : memref<96x128xf32, #tpu.memory_space<vmem>>, vector<8x128xf32>
    %779 = arith.select %25, %778, %777 : vector<8x128xi1>, vector<8x128xf32>
    %c16_489 = arith.constant 16 : index
    %c0_490 = arith.constant 0 : index
    %780 = vector.load %arg16[%c16_489, %c0_490] : memref<96x128xf32, #tpu.memory_space<vmem>>, vector<8x128xf32>
    tpu.vector_store %arg16[%c16_489, %c0_490], %779 {strides = array<i32>} : memref<96x128xf32, #tpu.memory_space<vmem>>, vector<8x128xf32>,
    %c24_491 = arith.constant 24 : index
    %c0_492 = arith.constant 0 : index
    %781 = vector.load %arg14[%c24_491, %c0_492] : memref<96x128xf32, #tpu.memory_space<vmem>>, vector<8x128xf32>
    %c64_493 = arith.constant 64 : index
    %c0_494 = arith.constant 0 : index
    %782 = vector.load %arg14[%c64_493, %c0_494] : memref<96x128xf32, #tpu.memory_space<vmem>>, vector<8x128xf32>
    %783 = arith.select %25, %782, %781 : vector<8x128xi1>, vector<8x128xf32>
    %c24_495 = arith.constant 24 : index
    %c0_496 = arith.constant 0 : index
    %784 = vector.load %arg16[%c24_495, %c0_496] : memref<96x128xf32, #tpu.memory_space<vmem>>, vector<8x128xf32>
    tpu.vector_store %arg16[%c24_495, %c0_496], %783 {strides = array<i32>} : memref<96x128xf32, #tpu.memory_space<vmem>>, vector<8x128xf32>,
    %c32_497 = arith.constant 32 : index
    %c0_498 = arith.constant 0 : index
    %785 = vector.load %arg14[%c32_497, %c0_498] : memref<96x128xf32, #tpu.memory_space<vmem>>, vector<8x128xf32>
    %c56_499 = arith.constant 56 : index
    %c0_500 = arith.constant 0 : index
    %786 = vector.load %arg14[%c56_499, %c0_500] : memref<96x128xf32, #tpu.memory_space<vmem>>, vector<8x128xf32>
    %787 = arith.select %25, %786, %785 : vector<8x128xi1>, vector<8x128xf32>
    %c32_501 = arith.constant 32 : index
    %c0_502 = arith.constant 0 : index
    %788 = vector.load %arg16[%c32_501, %c0_502] : memref<96x128xf32, #tpu.memory_space<vmem>>, vector<8x128xf32>
    tpu.vector_store %arg16[%c32_501, %c0_502], %787 {strides = array<i32>} : memref<96x128xf32, #tpu.memory_space<vmem>>, vector<8x128xf32>,
    %c40_503 = arith.constant 40 : index
    %c0_504 = arith.constant 0 : index
    %789 = vector.load %arg14[%c40_503, %c0_504] : memref<96x128xf32, #tpu.memory_space<vmem>>, vector<8x128xf32>
    %c48_505 = arith.constant 48 : index
    %c0_506 = arith.constant 0 : index
    %790 = vector.load %arg14[%c48_505, %c0_506] : memref<96x128xf32, #tpu.memory_space<vmem>>, vector<8x128xf32>
    %791 = arith.select %25, %790, %789 : vector<8x128xi1>, vector<8x128xf32>
    %c40_507 = arith.constant 40 : index
    %c0_508 = arith.constant 0 : index
    %792 = vector.load %arg16[%c40_507, %c0_508] : memref<96x128xf32, #tpu.memory_space<vmem>>, vector<8x128xf32>
    tpu.vector_store %arg16[%c40_507, %c0_508], %791 {strides = array<i32>} : memref<96x128xf32, #tpu.memory_space<vmem>>, vector<8x128xf32>,
    %c48_509 = arith.constant 48 : index
    %c0_510 = arith.constant 0 : index
    %793 = vector.load %arg14[%c48_509, %c0_510] : memref<96x128xf32, #tpu.memory_space<vmem>>, vector<8x128xf32>
    %c40_511 = arith.constant 40 : index
    %c0_512 = arith.constant 0 : index
    %794 = vector.load %arg14[%c40_511, %c0_512] : memref<96x128xf32, #tpu.memory_space<vmem>>, vector<8x128xf32>
    %795 = arith.select %25, %794, %793 : vector<8x128xi1>, vector<8x128xf32>
    %c48_513 = arith.constant 48 : index
    %c0_514 = arith.constant 0 : index
    %796 = vector.load %arg16[%c48_513, %c0_514] : memref<96x128xf32, #tpu.memory_space<vmem>>, vector<8x128xf32>
    tpu.vector_store %arg16[%c48_513, %c0_514], %795 {strides = array<i32>} : memref<96x128xf32, #tpu.memory_space<vmem>>, vector<8x128xf32>,
    %c56_515 = arith.constant 56 : index
    %c0_516 = arith.constant 0 : index
    %797 = vector.load %arg14[%c56_515, %c0_516] : memref<96x128xf32, #tpu.memory_space<vmem>>, vector<8x128xf32>
    %c32_517 = arith.constant 32 : index
    %c0_518 = arith.constant 0 : index
    %798 = vector.load %arg14[%c32_517, %c0_518] : memref<96x128xf32, #tpu.memory_space<vmem>>, vector<8x128xf32>
    %799 = arith.select %25, %798, %797 : vector<8x128xi1>, vector<8x128xf32>
    %c56_519 = arith.constant 56 : index
    %c0_520 = arith.constant 0 : index
    %800 = vector.load %arg16[%c56_519, %c0_520] : memref<96x128xf32, #tpu.memory_space<vmem>>, vector<8x128xf32>
    tpu.vector_store %arg16[%c56_519, %c0_520], %799 {strides = array<i32>} : memref<96x128xf32, #tpu.memory_space<vmem>>, vector<8x128xf32>,
    %c64_521 = arith.constant 64 : index
    %c0_522 = arith.constant 0 : index
    %801 = vector.load %arg14[%c64_521, %c0_522] : memref<96x128xf32, #tpu.memory_space<vmem>>, vector<8x128xf32>
    %c24_523 = arith.constant 24 : index
    %c0_524 = arith.constant 0 : index
    %802 = vector.load %arg14[%c24_523, %c0_524] : memref<96x128xf32, #tpu.memory_space<vmem>>, vector<8x128xf32>
    %803 = arith.select %25, %802, %801 : vector<8x128xi1>, vector<8x128xf32>
    %c64_525 = arith.constant 64 : index
    %c0_526 = arith.constant 0 : index
    %804 = vector.load %arg16[%c64_525, %c0_526] : memref<96x128xf32, #tpu.memory_space<vmem>>, vector<8x128xf32>
    tpu.vector_store %arg16[%c64_525, %c0_526], %803 {strides = array<i32>} : memref<96x128xf32, #tpu.memory_space<vmem>>, vector<8x128xf32>,
    %c72_527 = arith.constant 72 : index
    %c0_528 = arith.constant 0 : index
    %805 = vector.load %arg14[%c72_527, %c0_528] : memref<96x128xf32, #tpu.memory_space<vmem>>, vector<8x128xf32>
    %c16_529 = arith.constant 16 : index
    %c0_530 = arith.constant 0 : index
    %806 = vector.load %arg14[%c16_529, %c0_530] : memref<96x128xf32, #tpu.memory_space<vmem>>, vector<8x128xf32>
    %807 = arith.select %25, %806, %805 : vector<8x128xi1>, vector<8x128xf32>
    %c72_531 = arith.constant 72 : index
    %c0_532 = arith.constant 0 : index
    %808 = vector.load %arg16[%c72_531, %c0_532] : memref<96x128xf32, #tpu.memory_space<vmem>>, vector<8x128xf32>
    tpu.vector_store %arg16[%c72_531, %c0_532], %807 {strides = array<i32>} : memref<96x128xf32, #tpu.memory_space<vmem>>, vector<8x128xf32>,
    %c80_533 = arith.constant 80 : index
    %c0_534 = arith.constant 0 : index
    %809 = vector.load %arg14[%c80_533, %c0_534] : memref<96x128xf32, #tpu.memory_space<vmem>>, vector<8x128xf32>
    %c8_535 = arith.constant 8 : index
    %c0_536 = arith.constant 0 : index
    %810 = vector.load %arg14[%c8_535, %c0_536] : memref<96x128xf32, #tpu.memory_space<vmem>>, vector<8x128xf32>
    %811 = arith.select %25, %810, %809 : vector<8x128xi1>, vector<8x128xf32>
    %c80_537 = arith.constant 80 : index
    %c0_538 = arith.constant 0 : index
    %812 = vector.load %arg16[%c80_537, %c0_538] : memref<96x128xf32, #tpu.memory_space<vmem>>, vector<8x128xf32>
    tpu.vector_store %arg16[%c80_537, %c0_538], %811 {strides = array<i32>} : memref<96x128xf32, #tpu.memory_space<vmem>>, vector<8x128xf32>,
    %c88_539 = arith.constant 88 : index
    %c0_540 = arith.constant 0 : index
    %813 = vector.load %arg14[%c88_539, %c0_540] : memref<96x128xf32, #tpu.memory_space<vmem>>, vector<8x128xf32>
    %c0_541 = arith.constant 0 : index
    %c0_542 = arith.constant 0 : index
    %814 = vector.load %arg14[%c0_541, %c0_542] : memref<96x128xf32, #tpu.memory_space<vmem>>, vector<8x128xf32>
    %815 = arith.select %25, %814, %813 : vector<8x128xi1>, vector<8x128xf32>
    %c88_543 = arith.constant 88 : index
    %c0_544 = arith.constant 0 : index
    %816 = vector.load %arg16[%c88_543, %c0_544] : memref<96x128xf32, #tpu.memory_space<vmem>>, vector<8x128xf32>
    tpu.vector_store %arg16[%c88_543, %c0_544], %815 {strides = array<i32>} : memref<96x128xf32, #tpu.memory_space<vmem>>, vector<8x128xf32>,
    %c0_545 = arith.constant 0 : index
    %c0_546 = arith.constant 0 : index
    %817 = vector.load %arg16[%c0_545, %c0_546] : memref<96x128xf32, #tpu.memory_space<vmem>>, vector<96x128xf32>
    %818 = arith.truncf %817 : vector<96x128xf32> to vector<96x128xbf16>
    %c0_547 = arith.constant 0 : index
    %c0_548 = arith.constant 0 : index
    %819 = vector.load %arg7[%c0_547, %c0_548] : memref<128x128xbf16, #tpu.memory_space<vmem>>, vector<128x128xbf16>
    %cst_549 = arith.constant dense<0.000000e+00> : vector<96x128xf32>
    %820 = tpu.matmul %818, %819, %cst_549 {dimension_numbers = #tpu.dot_dimension_numbers<[1], [0], [0], [1], [0, 0, 1, 1], [], []>} : vector<96x128xbf16>, vector<128x128xbf16>, vector<96x128xf32> -> vector<96x128xf32>
    %821 = math.tanh %820 : vector<96x128xf32>
    %822 = vector.shape_cast %817 : vector<96x128xf32> to vector<12x8x128xf32>
    %823 = vector.shape_cast %821 : vector<96x128xf32> to vector<12x8x128xf32>
    %c0_550 = arith.constant 0 : index
    %c0_551 = arith.constant 0 : index
    %824 = vector.load %arg8[%c0_550, %c0_551] : memref<1x128xf32, #tpu.memory_space<vmem>>, vector<1x128xf32>
    %825 = vector.shape_cast %824 : vector<1x128xf32> to vector<1x1x128xf32>
    %826 = vector.broadcast %825 : vector<1x1x128xf32> to vector<12x8x128xf32>
    %827 = arith.mulf %823, %826 : vector<12x8x128xf32>
    %cst_552 = arith.constant dense<0.000000e+00> : vector<12x8xf32>
    %828 = vector.multi_reduction <add>, %827, %cst_552 [2] : vector<12x8x128xf32> to vector<12x8xf32>
    %829 = vector.shape_cast %828 : vector<12x8xf32> to vector<12x8x1xf32>
    %cst_553 = arith.constant dense<0xFF800000> : vector<8x1xf32>
    %830 = vector.multi_reduction <maximumf>, %829, %cst_553 [0] : vector<12x8x1xf32> to vector<8x1xf32>
    %831 = vector.shape_cast %830 : vector<8x1xf32> to vector<1x8x1xf32>
    %832 = vector.broadcast %831 : vector<1x8x1xf32> to vector<12x8x1xf32>
    %833 = arith.subf %829, %832 : vector<12x8x1xf32>
    %834 = math.exp %833 : vector<12x8x1xf32>
    %cst_554 = arith.constant dense<0.000000e+00> : vector<8x1xf32>
    %835 = vector.multi_reduction <add>, %834, %cst_554 [0] : vector<12x8x1xf32> to vector<8x1xf32>
    %836 = vector.shape_cast %835 : vector<8x1xf32> to vector<1x8x1xf32>
    %837 = tpu.reciprocal %836 {approx = true} : vector<1x8x1xf32> -> vector<1x8x1xf32>
    %838 = vector.broadcast %837 : vector<1x8x1xf32> to vector<12x8x1xf32>
    %839 = arith.mulf %834, %838 : vector<12x8x1xf32>
    %840 = vector.broadcast %839 : vector<12x8x1xf32> to vector<12x8x128xf32>
    %841 = arith.mulf %822, %840 : vector<12x8x128xf32>
    %cst_555 = arith.constant dense<0.000000e+00> : vector<8x128xf32>
    %842 = vector.multi_reduction <add>, %841, %cst_555 [0] : vector<12x8x128xf32> to vector<8x128xf32>
    %843 = arith.truncf %842 : vector<8x128xf32> to vector<8x128xbf16>
    %c0_556 = arith.constant 0 : index
    %c0_557 = arith.constant 0 : index
    %844 = vector.load %arg9[%c0_556, %c0_557] : memref<128x6xbf16, #tpu.memory_space<vmem>>, vector<128x6xbf16>
    %cst_558 = arith.constant dense<0.000000e+00> : vector<8x6xf32>
    %845 = tpu.matmul %843, %844, %cst_558 {dimension_numbers = #tpu.dot_dimension_numbers<[1], [0], [0], [1], [0, 0, 1, 1], [], []>} : vector<8x128xbf16>, vector<128x6xbf16>, vector<8x6xf32> -> vector<8x6xf32>
    %c0_559 = arith.constant 0 : index
    %c0_560 = arith.constant 0 : index
    %846 = vector.load %arg10[%c0_559, %c0_560] : memref<1x6xf32, #tpu.memory_space<vmem>>, vector<1x6xf32>
    %847 = vector.broadcast %846 : vector<1x6xf32> to vector<8x6xf32>
    %848 = arith.addf %845, %847 : vector<8x6xf32>
    %c0_561 = arith.constant 0 : index
    %c0_562 = arith.constant 0 : index
    %849 = vector.load %arg11[%c0_561, %c0_562] : memref<8x6xf32, #tpu.memory_space<vmem>>, vector<8x6xf32>
    tpu.vector_store %arg11[%c0_561, %c0_562], %848 {strides = array<i32>} : memref<8x6xf32, #tpu.memory_space<vmem>>, vector<8x6xf32>,
    return
  }
}

</mosaic_0001>

<bundles_post_ra>
// kernel: tpu_custom_call.1
= control target key start
LH: loop header
LB: loop body
LE: loop exit
PB: predicated region body
PF: predicated region fallthrough
CT: control target
= control target key end

     0   :  { %16 = vsyncpa [#allocation11], 0  ;;  %s12181_s0 = inlined_call_operand.hbm [shape: bf16[96,384], index: 0, kind: input, shape index: {}]   ;;  %s12182_s1 = inlined_call_operand.hbm [shape: bf16[384,512], index: 1, kind: input, shape index: {}]   ;;  %s12183_s2 = inlined_call_operand.hbm [shape: bf16[128,512], index: 2, kind: input, shape index: {}]   ;;  %s12184_s3 = inlined_call_operand.vmem [shape: f32[1,512], index: 3, kind: input, shape index: {}]   ;;  %s12185_s4 = inlined_call_operand.hbm [shape: bf16[128,512], index: 4, kind: input, shape index: {}]   ;;  %s12186_s5 = inlined_call_operand.hbm [shape: bf16[128,512], index: 5, kind: input, shape index: {}]   ;;  %s12187_s6 = inlined_call_operand.vmem [shape: f32[1,512], index: 6, kind: input, shape index: {}]   ;;  %s12188_s7 = inlined_call_operand.vmem [shape: bf16[128,128], index: 7, kind: input, shape index: {}]   ;;  %s12189_s8 = inlined_call_operand.vmem [shape: f32[1,128], index: 8, kind: input, shape index: {}]   ;;  %s12190_s9 = inlined_call_operand.vmem [shape: bf16[128,6], index: 9, kind: input, shape index: {}]   ;;  %s12191_s10 = inlined_call_operand.vmem [shape: f32[1,6], index: 10, kind: input, shape index: {}]   ;;  %s12192_s11 = inlined_call_operand.hbm [shape: f32[8,6], index: 11, kind: output, shape index: {}]  }
   0x1   :  { %17 = vsyncpa [#allocation14], 0 }
   0x2   :  { %18 = vsyncpa [#allocation12], 0  ;;  %s9391_s17 = smov [#allocation13]   ;;  %s9293_s21 = scalar_lea.hbm %s12182_s1, 12288 }
   0x3   :  { %s36_s18 = sshll.u32 %s9391_s17, 4  ;;  %p9294_p0 = scmp.ne.s32.totalorder %s12182_s1, %s9293_s21  ;;  %s37_s18 = int_to_ptr.vmem [resolvable:$true] %s36_s18 }
   0x4   :  { %p9297_p1 = scmp.lt.u32.totalorder %s9293_s21, %s12182_s1 }
   0x6   :  { %p9299_p2 = pnand %p9297_p1, %p9294_p0 }
   0x8   :  { %9302 = shalt.err (!%p9299_p2)
}
   0x9   :  { %s9303_s26 = scalar_lea.vmem %s37_s18, 12288  ;;  %p9308_p4 = scmp.lt.s32.totalorder %s37_s18, %s37_s18 }
   0xa   :  { %p9304_p3 = scmp.ne.s32.totalorder %s37_s18, %s9303_s26  ;;  %p9309_p5 = scmp.lt.s32.totalorder %s9303_s26, %s9303_s26 }
   0xc   :  { %p9310_p6 = por %p9309_p5, %p9308_p4 }
   0xe   :  { %p9311_p7 = pnand %p9310_p6, %p9304_p3 }
  0x10   :  { %9314 = shalt.err (!%p9311_p7)
}
  0x11   :  { %s9392_s27 = smov 256   ;;  %s9393_s28 = smov 16  }
  0x12   :  { %42 = dma.hbm_to_vmem [thread:$0]  %s12182_s1, 12288, %s37_s18, [#allocation14], %s9392_s27, %s9392_s27, %s9393_s28  }
  0x13   :  { %s9394_s12 = smov [#allocation10]   ;;  %s9315_s16 = scalar_lea.hbm %s12181_s0, 2304 }
  0x14   :  { %s24_s13 = sshll.u32 %s9394_s12, 4  ;;  %p9316_p8 = scmp.ne.s32.totalorder %s12181_s0, %s9315_s16  ;;  %s25_s13 = int_to_ptr.vmem [resolvable:$true] %s24_s13 }
  0x15   :  { %p9319_p9 = scmp.lt.u32.totalorder %s9315_s16, %s12181_s0 }
  0x17   :  { %p9321_p10 = pnand %p9319_p9, %p9316_p8 }
  0x19   :  { %9324 = shalt.err (!%p9321_p10)
}
  0x1a   :  { %s9325_s22 = scalar_lea.vmem %s25_s13, 2304  ;;  %p9330_p12 = scmp.lt.s32.totalorder %s25_s13, %s25_s13 }
  0x1b   :  { %p9326_p11 = scmp.ne.s32.totalorder %s25_s13, %s9325_s22  ;;  %p9331_p13 = scmp.lt.s32.totalorder %s9325_s22, %s9325_s22 }
  0x1d   :  { %p9332_p0 = por %p9331_p13, %p9330_p12 }
  0x1f   :  { %p9333_p1 = pnand %p9332_p0, %p9326_p11 }
  0x21   :  { %9336 = shalt.err (!%p9333_p1)
}
  0x22   :  { %s9395_s1 = smov 192   ;;  %s9396_s18 = smov 12  }
  0x23   :  { %30 = dma.hbm_to_vmem [thread:$0]  %s12181_s0, 2304, %s25_s13, [#allocation11], %s9395_s1, %s9395_s1, %s9396_s18  }
  0x24   :  { %s9397_s25 = smov [#allocation15]   ;;  %s9337_s12 = scalar_lea.hbm %s12183_s2, 4096 }
  0x25   :  { %s48_s26 = sshll.u32 %s9397_s25, 4  ;;  %p9338_p2 = scmp.ne.s32.totalorder %s12183_s2, %s9337_s12  ;;  %s49_s26 = int_to_ptr.vmem [resolvable:$true] %s48_s26 }
  0x26   :  { %p9341_p3 = scmp.lt.u32.totalorder %s9337_s12, %s12183_s2 }
  0x28   :  { %p9343_p4 = pnand %p9341_p3, %p9338_p2 }
  0x2a   :  { %9346 = shalt.err (!%p9343_p4)
}
  0x2b   :  { %s9347_s19 = scalar_lea.vmem %s49_s26, 4096  ;;  %p9352_p6 = scmp.lt.s32.totalorder %s49_s26, %s49_s26 }
  0x2c   :  { %p9348_p5 = scmp.ne.s32.totalorder %s49_s26, %s9347_s19  ;;  %p9353_p7 = scmp.lt.s32.totalorder %s9347_s19, %s9347_s19 }
  0x2e   :  { %p9354_p8 = por %p9353_p7, %p9352_p6 }
  0x30   :  { %p9355_p9 = pnand %p9354_p8, %p9348_p5 }
  0x32   :  { %9358 = shalt.err (!%p9355_p9)
}
  0x33   :  { %54 = dma.hbm_to_vmem [thread:$0]  %s12183_s2, 4096, %s49_s26, [#allocation14], %s9392_s27, %s9392_s27, %s9393_s28  }
  0x34   :  { %9381 = dma.done.wait [#allocation11], 2304  }
  0x35   :  { %9382 = vsyncadd [#allocation11], 4294964992 }
  0x36   :  { %9383 = dma.done.wait [#allocation14], 16384  }
  0x37   :  { %9384 = vsyncadd [#allocation14], 4294950912  ;;  %s81_s20 = sld [smem:[#allocation0]]   ;;  %105 = sst [smem:[#allocation18 + $0x6]] %s9392_s27 }
  0x38   :  { %s9398_s21 = smov [#allocation7]   ;;  %s9399_s1 = smov 512  }
  0x39   :  { %s89_s22 = sshll.u32 %s9398_s21, 4  ;;  %93 = sst [smem:[#allocation18]] %s9399_s1  ;;  %s90_s22 = int_to_ptr.vmem [resolvable:$true] %s89_s22 }
  0x3a   :  { %95 = sst [smem:[#allocation18 + $0x1]] %s9399_s1  ;;  %s9400_s18 = smov 4  }
  0x3b   :  { %97 = sst [smem:[#allocation18 + $0x2]] %s9400_s18  ;;  %s9401_s23 = smov 64  }
  0x3c   :  { %99 = sst [smem:[#allocation18 + $0x3]] %s9401_s23  ;;  %s9402_s25 = smov 128  }
  0x3d   :  { %s7916_s24 = sshll.u32 %s81_s20, 26  ;;  %101 = sst [smem:[#allocation18 + $0x4]] %s9402_s25 }
  0x3e   :  { %s7917_s2 = sadd.s32 134217728, %s7916_s24  ;;  %s9403_s28 = smov 2  }
  0x3f   :  { %103 = sst [smem:[#allocation18 + $0x5]] %s9403_s28  ;;  %s9404_s26 = smov [#allocation9]  }
  0x40   :  { %107 = sst [smem:[#allocation18 + $0x7]] %s9401_s23  ;;  %s9405_s29 = smov [#allocation17]  }
  0x41   :  { %109 = sst [smem:[#allocation18 + $0x8]] %s9400_s18  ;;  %s9406_s14 = smov [#allocation8]  }
  0x42   :  { %111 = dma.general %s12185_s4, 4096, %s90_s22, %s9404_s26, %s9405_s29, [#allocation18], %s7917_s2, 0  }
  0x43   :  { %128 = sst [smem:[#allocation20]] %s9399_s1  ;;  %s124_s15 = sshll.u32 %s9406_s14, 4  ;;  %s125_s15 = int_to_ptr.vmem [resolvable:$true] %s124_s15 }
  0x44   :  { %130 = sst [smem:[#allocation20 + $0x1]] %s9399_s1  ;;  %s9407_s16 = smov [#allocation9 + $0x1]  }
  0x45   :  { %132 = sst [smem:[#allocation20 + $0x2]] %s9400_s18  ;;  %s9408_s17 = smov [#allocation19]  }
  0x46   :  { %134 = sst [smem:[#allocation20 + $0x3]] %s9401_s23 }
  0x47   :  { %136 = sst [smem:[#allocation20 + $0x4]] %s9402_s25 }
  0x48   :  { %138 = sst [smem:[#allocation20 + $0x5]] %s9403_s28 }
  0x49   :  { %140 = sst [smem:[#allocation20 + $0x6]] %s9392_s27 }
  0x4a   :  { %142 = sst [smem:[#allocation20 + $0x7]] %s9401_s23 }
  0x4b   :  { %144 = sst [smem:[#allocation20 + $0x8]] %s9400_s18 }
  0x4c   :  { %146 = dma.general %s12186_s5, 4096, %s125_s15, %s9407_s16, %s9408_s17, [#allocation20], %s7917_s2, 0  }
  0x4d   :  { %v8627_v0 = vld [vmem:[#allocation13 + $0x4] ss:$16 sps:$4 sm:$0xff]   ;;  %v8629_v1 = vld [vmem:[#allocation13 + $0xc] ss:$16 sps:$4 sm:$0xff]   ;;  %v8631_v2 = vld [vmem:[#allocation13] ss:$16 sps:$4 sm:$0xff]  }
  0x4e   :  { %923 = vmatprep.subr.bf16.mxu0 %v8627_v0  ;;  %v8632_v3 = vld [vmem:[#allocation13 + $0x8] ss:$16 sps:$4 sm:$0xff]   ;;  %1109 = vmatprep.subr.bf16.mxu1 %v8629_v1  ;;  %v8633_v4 = vld [vmem:[#allocation13 + $0x24] ss:$16 sps:$4 sm:$0xff]   ;;  %v8635_v5 = vld [vmem:[#allocation13 + $0x2c] ss:$16 sps:$4 sm:$0xff]  }
  0x4f   :  { %924 = vmatpush1.bf16.msra.mxu0 %v8631_v2  ;;  %1110 = vmatpush1.bf16.msra.mxu1 %v8632_v3  ;;  %v8637_v6 = vld [vmem:[#allocation13 + $0x20] ss:$16 sps:$4 sm:$0xff]   ;;  %v8638_v7 = vld [vmem:[#allocation13 + $0x28] ss:$16 sps:$4 sm:$0xff]   ;;  %v8639_v8 = vld [vmem:[#allocation13 + $0x44] ss:$16 sps:$4 sm:$0xff]  }
  0x50   :  { %925 = vmatprep.subr.bf16.mxu0 %v8633_v4  ;;  %1111 = vmatprep.subr.bf16.mxu1 %v8635_v5  ;;  %v8641_v9 = vld [vmem:[#allocation13 + $0x4c] ss:$16 sps:$4 sm:$0xff]   ;;  %v8643_v10 = vld [vmem:[#allocation13 + $0x40] ss:$16 sps:$4 sm:$0xff]   ;;  %v8644_v11 = vld [vmem:[#allocation13 + $0x48] ss:$16 sps:$4 sm:$0xff]  }
  0x51   :  { %v8645_v12 = vld [vmem:[#allocation13 + $0x64] ss:$16 sps:$4 sm:$0xff]   ;;  %v8647_v13 = vld [vmem:[#allocation13 + $0x6c] ss:$16 sps:$4 sm:$0xff]   ;;  %v8649_v14 = vld [vmem:[#allocation13 + $0x60] ss:$16 sps:$4 sm:$0xff]  }
  0x52   :  { %v8650_v15 = vld [vmem:[#allocation13 + $0x68] ss:$16 sps:$4 sm:$0xff]   ;;  %v8651_v16 = vld [vmem:[#allocation13 + $0x84] ss:$16 sps:$4 sm:$0xff]   ;;  %v8653_v17 = vld [vmem:[#allocation13 + $0x8c] ss:$16 sps:$4 sm:$0xff]  }
  0x53   :  { %926 = vmatpush1.bf16.msra.mxu0 %v8637_v6  ;;  %1112 = vmatpush1.bf16.msra.mxu1 %v8638_v7  ;;  %v8655_v18 = vld [vmem:[#allocation13 + $0x80] ss:$16 sps:$4 sm:$0xff]   ;;  %v8656_v19 = vld [vmem:[#allocation13 + $0x88] ss:$16 sps:$4 sm:$0xff]   ;;  %v8657_v20 = vld [vmem:[#allocation13 + $0xa4] ss:$16 sps:$4 sm:$0xff]  }
  0x54   :  { %927 = vmatprep.subr.bf16.mxu0 %v8639_v8  ;;  %1113 = vmatprep.subr.bf16.mxu1 %v8641_v9  ;;  %v8659_v21 = vld [vmem:[#allocation13 + $0xac] ss:$16 sps:$4 sm:$0xff]   ;;  %v8661_v22 = vld [vmem:[#allocation13 + $0xa0] ss:$16 sps:$4 sm:$0xff]   ;;  %v8662_v23 = vld [vmem:[#allocation13 + $0xa8] ss:$16 sps:$4 sm:$0xff]  }
  0x55   :  { %v8663_v24 = vld [vmem:[#allocation13 + $0xc4] ss:$16 sps:$4 sm:$0xff]   ;;  %v8665_v25 = vld [vmem:[#allocation13 + $0xcc] ss:$16 sps:$4 sm:$0xff]   ;;  %v8667_v26 = vld [vmem:[#allocation13 + $0xc0] ss:$16 sps:$4 sm:$0xff]  }
  0x56   :  { %v8668_v27 = vld [vmem:[#allocation13 + $0xc8] ss:$16 sps:$4 sm:$0xff]   ;;  %v8669_v28 = vld [vmem:[#allocation13 + $0xe4] ss:$16 sps:$4 sm:$0xff]   ;;  %v8671_v29 = vld [vmem:[#allocation13 + $0xec] ss:$16 sps:$4 sm:$0xff]  }
  0x57   :  { %928 = vmatpush1.bf16.msra.mxu0 %v8643_v10  ;;  %1114 = vmatpush1.bf16.msra.mxu1 %v8644_v11  ;;  %v8673_v30 = vld [vmem:[#allocation13 + $0xe0] ss:$16 sps:$4 sm:$0xff]   ;;  %v8674_v31 = vld [vmem:[#allocation13 + $0xe8] ss:$16 sps:$4 sm:$0xff]   ;;  %v8675_v32 = vld [vmem:[#allocation13 + $0x104] ss:$16 sps:$4 sm:$0xff]  }
  0x58   :  { %929 = vmatprep.subr.bf16.mxu0 %v8645_v12  ;;  %1115 = vmatprep.subr.bf16.mxu1 %v8647_v13  ;;  %v8677_v33 = vld [vmem:[#allocation13 + $0x10c] ss:$16 sps:$4 sm:$0xff]   ;;  %v8679_v34 = vld [vmem:[#allocation13 + $0x100] ss:$16 sps:$4 sm:$0xff]   ;;  %v8680_v35 = vld [vmem:[#allocation13 + $0x108] ss:$16 sps:$4 sm:$0xff]  }
  0x59   :  { %v8681_v36 = vld [vmem:[#allocation13 + $0x124] ss:$16 sps:$4 sm:$0xff]   ;;  %v8683_v37 = vld [vmem:[#allocation13 + $0x12c] ss:$16 sps:$4 sm:$0xff]   ;;  %v8685_v38 = vld [vmem:[#allocation13 + $0x120] ss:$16 sps:$4 sm:$0xff]  }
  0x5a   :  { %v8686_v39 = vld [vmem:[#allocation13 + $0x128] ss:$16 sps:$4 sm:$0xff]   ;;  %v8687_v40 = vld [vmem:[#allocation13 + $0x144] ss:$16 sps:$4 sm:$0xff]   ;;  %v8689_v41 = vld [vmem:[#allocation13 + $0x14c] ss:$16 sps:$4 sm:$0xff]  }
  0x5b   :  { %930 = vmatpush1.bf16.msra.mxu0 %v8649_v14  ;;  %1116 = vmatpush1.bf16.msra.mxu1 %v8650_v15  ;;  %v8691_v42 = vld [vmem:[#allocation13 + $0x140] ss:$16 sps:$4 sm:$0xff]   ;;  %v8692_v43 = vld [vmem:[#allocation13 + $0x148] ss:$16 sps:$4 sm:$0xff]   ;;  %v8693_v44 = vld [vmem:[#allocation13 + $0x164] ss:$16 sps:$4 sm:$0xff]  }
  0x5c   :  { %931 = vmatprep.subr.bf16.mxu0 %v8651_v16  ;;  %1117 = vmatprep.subr.bf16.mxu1 %v8653_v17  ;;  %v8695_v45 = vld [vmem:[#allocation13 + $0x16c] ss:$16 sps:$4 sm:$0xff]   ;;  %v8697_v46 = vld [vmem:[#allocation13 + $0x160] ss:$16 sps:$4 sm:$0xff]   ;;  %v8698_v47 = vld [vmem:[#allocation13 + $0x168] ss:$16 sps:$4 sm:$0xff]  }
  0x5d   :  { %v8725_v48 = vld [vmem:[#allocation10 + $0x4] ss:$12 sps:$4 sm:$0xff]   ;;  %v8701_v50 = vld [vmem:[#allocation13 + $0x18c] ss:$16 sps:$4 sm:$0xff]   ;;  %v8704_v52 = vld [vmem:[#allocation13 + $0x188] ss:$16 sps:$4 sm:$0xff]  }
  0x5e   :  { %v8699_v49 = vld [vmem:[#allocation13 + $0x184] ss:$16 sps:$4 sm:$0xff]   ;;  %955 = vmatprep.mubr.bf16.mxu0 %v8725_v48  ;;  %1141 = vmatprep.mubr.bf16.mxu1 %v8725_v48  ;;  %v8703_v51 = vld [vmem:[#allocation13 + $0x180] ss:$16 sps:$4 sm:$0xff]   ;;  %v8707_v54 = vld [vmem:[#allocation13 + $0x1ac] ss:$16 sps:$4 sm:$0xff]  }
  0x5f   :  { %932 = vmatpush1.bf16.msra.mxu0 %v8655_v18  ;;  %1118 = vmatpush1.bf16.msra.mxu1 %v8656_v19  ;;  %v8705_v53 = vld [vmem:[#allocation13 + $0x1a4] ss:$16 sps:$4 sm:$0xff]   ;;  %v8709_v55 = vld [vmem:[#allocation13 + $0x1a0] ss:$16 sps:$4 sm:$0xff]   ;;  %v8710_v56 = vld [vmem:[#allocation13 + $0x1a8] ss:$16 sps:$4 sm:$0xff]  }
  0x60   :  { %933 = vmatprep.subr.bf16.mxu0 %v8657_v20  ;;  %1119 = vmatprep.subr.bf16.mxu1 %v8659_v21  ;;  %v8711_v57 = vld [vmem:[#allocation13 + $0x1c4] ss:$16 sps:$4 sm:$0xff]   ;;  %v8713_v58 = vld [vmem:[#allocation13 + $0x1cc] ss:$16 sps:$4 sm:$0xff]   ;;  %v8715_v59 = vld [vmem:[#allocation13 + $0x1c0] ss:$16 sps:$4 sm:$0xff]  }
  0x61   :  { %v8716_v60 = vld [vmem:[#allocation13 + $0x1c8] ss:$16 sps:$4 sm:$0xff]   ;;  %v8717_v61 = vld [vmem:[#allocation13 + $0x1e4] ss:$16 sps:$4 sm:$0xff]   ;;  %v8719_v62 = vld [vmem:[#allocation13 + $0x1ec] ss:$16 sps:$4 sm:$0xff]  }
  0x62   :  { %v8721_v63 = vld [vmem:[#allocation13 + $0x1e0] ss:$16 sps:$4 sm:$0xff]   ;;  %v8722_v0 = vld [vmem:[#allocation13 + $0x1e8] ss:$16 sps:$4 sm:$0xff]   ;;  %v8728_v1 = vld [vmem:[#allocation13 + $0x204] ss:$16 sps:$4 sm:$0xff]  }
  0x63   :  { %934 = vmatpush1.bf16.msra.mxu0 %v8661_v22  ;;  %1120 = vmatpush1.bf16.msra.mxu1 %v8662_v23  ;;  %v8734_v2 = vld [vmem:[#allocation13 + $0x20c] ss:$16 sps:$4 sm:$0xff]   ;;  %v8726_v4 = vld [vmem:[#allocation13 + $0x200] ss:$16 sps:$4 sm:$0xff]   ;;  %v8731_v6 = vld [vmem:[#allocation13 + $0x224] ss:$16 sps:$4 sm:$0xff]  }
  0x64   :  { %935 = vmatprep.subr.bf16.mxu0 %v8663_v24  ;;  %1121 = vmatprep.subr.bf16.mxu1 %v8665_v25  ;;  %v8723_v3 = vld [vmem:[#allocation10] ss:$12 sps:$4 sm:$0xff]   ;;  %v8735_v5 = vld [vmem:[#allocation10 + $0x1c] ss:$12 sps:$4 sm:$0xff]   ;;  %v8740_v10 = vld [vmem:[#allocation13 + $0x244] ss:$16 sps:$4 sm:$0xff]  }
  0x65   :  { %v8732_v7 = vld [vmem:[#allocation13 + $0x208] ss:$16 sps:$4 sm:$0xff]   ;;  %v8743_v8 = vld [vmem:[#allocation13 + $0x22c] ss:$16 sps:$4 sm:$0xff]   ;;  %v8729_v9 = vld [vmem:[#allocation13 + $0x220] ss:$16 sps:$4 sm:$0xff]  }
  0x66   :  { %v8741_v11 = vld [vmem:[#allocation13 + $0x228] ss:$16 sps:$4 sm:$0xff]   ;;  %v8738_v13 = vld [vmem:[#allocation13 + $0x240] ss:$16 sps:$4 sm:$0xff]   ;;  %v8749_v15 = vld [vmem:[#allocation13 + $0x264] ss:$16 sps:$4 sm:$0xff]  }
  0x67   :  { %936 = vmatpush1.bf16.msra.mxu0 %v8667_v26  ;;  %1122 = vmatpush1.bf16.msra.mxu1 %v8668_v27  ;;  %v8737_v12 = vld [vmem:[#allocation10 + $0x18] ss:$12 sps:$4 sm:$0xff]   ;;  %v8744_v14 = vld [vmem:[#allocation10 + $0x34] ss:$12 sps:$4 sm:$0xff]   ;;  %v8752_v16 = vld [vmem:[#allocation13 + $0x24c] ss:$16 sps:$4 sm:$0xff]  }
  0x68   :  { %937 = vmatprep.subr.bf16.mxu0 %v8669_v28  ;;  %1123 = vmatprep.subr.bf16.mxu1 %v8671_v29  ;;  %v8750_v17 = vld [vmem:[#allocation13 + $0x248] ss:$16 sps:$4 sm:$0xff]   ;;  %v8747_v18 = vld [vmem:[#allocation13 + $0x260] ss:$16 sps:$4 sm:$0xff]   ;;  %v8761_v19 = vld [vmem:[#allocation13 + $0x26c] ss:$16 sps:$4 sm:$0xff]  }
  0x69   :  { %v8758_v20 = vld [vmem:[#allocation13 + $0x284] ss:$16 sps:$4 sm:$0xff]   ;;  %v8746_v21 = vld [vmem:[#allocation10 + $0x30] ss:$12 sps:$4 sm:$0xff]   ;;  %v8753_v22 = vld [vmem:[#allocation10 + $0x4c] ss:$12 sps:$4 sm:$0xff]  }
  0x6a   :  { %v8756_v23 = vld [vmem:[#allocation13 + $0x280] ss:$16 sps:$4 sm:$0xff]   ;;  %v8759_v24 = vld [vmem:[#allocation13 + $0x268] ss:$16 sps:$4 sm:$0xff]   ;;  %v8764_v25 = vld [vmem:[#allocation13 + $0x2a4] ss:$16 sps:$4 sm:$0xff]  }
  0x6b   :  { %938 = vmatpush1.bf16.msra.mxu0 %v8673_v30  ;;  %1124 = vmatpush1.bf16.msra.mxu1 %v8674_v31  ;;  %v8767_v26 = vld [vmem:[#allocation13 + $0x28c] ss:$16 sps:$4 sm:$0xff]   ;;  %v8762_v27 = vld [vmem:[#allocation13 + $0x2a0] ss:$16 sps:$4 sm:$0xff]   ;;  %v8765_v28 = vld [vmem:[#allocation13 + $0x288] ss:$16 sps:$4 sm:$0xff]  }
  0x6c   :  { %939 = vmatprep.subr.bf16.mxu0 %v8675_v32  ;;  %1125 = vmatprep.subr.bf16.mxu1 %v8677_v33  ;;  %v8773_v29 = vld [vmem:[#allocation13 + $0x2c4] ss:$16 sps:$4 sm:$0xff]   ;;  %v8776_v30 = vld [vmem:[#allocation13 + $0x2ac] ss:$16 sps:$4 sm:$0xff]   ;;  %v8771_v33 = vld [vmem:[#allocation13 + $0x2c0] ss:$16 sps:$4 sm:$0xff]  }
  0x6d   :  { %v8755_v31 = vld [vmem:[#allocation10 + $0x48] ss:$12 sps:$4 sm:$0xff]   ;;  %v8768_v32 = vld [vmem:[#allocation10 + $0x64] ss:$12 sps:$4 sm:$0xff]  }
  0x6e   :  { %v9531_v48 = vld [vmem:[#allocation15] ss:$16 sps:$4 sm:$0xff]  }
  0x6f   :  { %940 = vmatpush1.bf16.msra.mxu0 %v8679_v34  ;;  %1126 = vmatpush1.bf16.msra.mxu1 %v8680_v35  ;;  %v8774_v34 = vld [vmem:[#allocation13 + $0x2a8] ss:$16 sps:$4 sm:$0xff]   ;;  %v8782_v35 = vld [vmem:[#allocation13 + $0x2cc] ss:$16 sps:$4 sm:$0xff]  }
  0x70   :  { %941 = vmatprep.subr.bf16.mxu0 %v8681_v36  ;;  %1127 = vmatprep.subr.bf16.mxu1 %v8683_v37  ;;  %v8785_v36 = vld [vmem:[#allocation13 + $0x2e4] ss:$16 sps:$4 sm:$0xff]   ;;  %v8780_v37 = vld [vmem:[#allocation13 + $0x2c8] ss:$16 sps:$4 sm:$0xff]  }
  0x73   :  { %942 = vmatpush1.bf16.msra.mxu0 %v8685_v38  ;;  %1128 = vmatpush1.bf16.msra.mxu1 %v8686_v39  ;;  %v8783_v38 = vld [vmem:[#allocation13 + $0x2e0] ss:$16 sps:$4 sm:$0xff]   ;;  %v8788_v39 = vld [vmem:[#allocation13 + $0x2ec] ss:$16 sps:$4 sm:$0xff]  }
  0x74   :  { %943 = vmatprep.subr.bf16.mxu0 %v8687_v40  ;;  %1129 = vmatprep.subr.bf16.mxu1 %v8689_v41  ;;  %v9523_v40 = vld [vmem:[#allocation15 + $0x4] ss:$16 sps:$4 sm:$0xff]   ;;  %v8770_v41 = vld [vmem:[#allocation10 + $0x60] ss:$12 sps:$4 sm:$0xff]  }
  0x77   :  { %944 = vmatpush1.bf16.msra.mxu0 %v8691_v42  ;;  %1130 = vmatpush1.bf16.msra.mxu1 %v8692_v43  ;;  %v8777_v42 = vld [vmem:[#allocation10 + $0x7c] ss:$12 sps:$4 sm:$0xff]  }
  0x78   :  { %945 = vmatprep.subr.bf16.mxu0 %v8693_v44  ;;  %1131 = vmatprep.subr.bf16.mxu1 %v8695_v45  ;;  %v8786_v43 = vld [vmem:[#allocation13 + $0x2e8] ss:$16 sps:$4 sm:$0xff]   ;;  %v9526_v44 = vld [vmem:[#allocation15 + $0xc] ss:$16 sps:$4 sm:$0xff]  }
  0x79   :  { %v8779_v45 = vld [vmem:[#allocation10 + $0x78] ss:$12 sps:$4 sm:$0xff]  }
  0x7b   :  { %946 = vmatpush1.bf16.msra.mxu0 %v8697_v46  ;;  %1132 = vmatpush1.bf16.msra.mxu1 %v8698_v47  ;;  %v12197_v46 = vmov 0   ;;  %v8789_v47 = vld [vmem:[#allocation10 + $0x8] ss:$12 sps:$4 sm:$0xff]  }
  0x7c   :  { %947 = vmatprep.subr.bf16.mxu0 %v8699_v49  ;;  %1133 = vmatprep.subr.bf16.mxu1 %v8701_v50  ;;  %v9533_v49 = vld [vmem:[#allocation15 + $0x24] ss:$16 sps:$4 sm:$0xff]   ;;  %v9535_v50 = vld [vmem:[#allocation15 + $0x8] ss:$16 sps:$4 sm:$0xff]  }
  0x7f   :  { %948 = vmatpush1.bf16.msra.mxu0 %v8703_v51  ;;  %1134 = vmatpush1.bf16.msra.mxu1 %v8704_v52  ;;  %v9537_v51 = vld [vmem:[#allocation15 + $0x2c] ss:$16 sps:$4 sm:$0xff]   ;;  %v9539_v52 = vld [vmem:[#allocation15 + $0x20] ss:$16 sps:$4 sm:$0xff]  }
  0x80   :  { %949 = vmatprep.subr.bf16.mxu0 %v8705_v53  ;;  %1135 = vmatprep.subr.bf16.mxu1 %v8707_v54  ;;  %v9541_v53 = vld [vmem:[#allocation15 + $0x44] ss:$16 sps:$4 sm:$0xff]   ;;  %v9545_v54 = vld [vmem:[#allocation15 + $0x28] ss:$16 sps:$4 sm:$0xff]  }
  0x83   :  { %950 = vmatpush1.bf16.msra.mxu0 %v8709_v55  ;;  %1136 = vmatpush1.bf16.msra.mxu1 %v8710_v56  ;;  %v8799_v55 = vld [vmem:[#allocation10 + $0x20] ss:$12 sps:$4 sm:$0xff]  }
  0x84   :  { %951 = vmatprep.subr.bf16.mxu0 %v8711_v57  ;;  %1137 = vmatprep.subr.bf16.mxu1 %v8713_v58  ;;  %v9550_v56 = vld [vmem:[#allocation15 + $0x40] ss:$16 sps:$4 sm:$0xff]   ;;  %v9553_v57 = vld [vmem:[#allocation15 + $0x64] ss:$16 sps:$4 sm:$0xff]   ;;  %v9556_v58 = vld [vmem:[#allocation15 + $0x4c] ss:$16 sps:$4 sm:$0xff]  }
  0x87   :  { %952 = vmatpush1.bf16.msra.mxu0 %v8715_v59  ;;  %1138 = vmatpush1.bf16.msra.mxu1 %v8716_v60  ;;  %v9559_v59 = vld [vmem:[#allocation15 + $0x48] ss:$16 sps:$4 sm:$0xff]   ;;  %v9562_v60 = vld [vmem:[#allocation15 + $0x60] ss:$16 sps:$4 sm:$0xff]  }
  0x88   :  { %953 = vmatprep.subr.bf16.mxu0 %v8717_v61  ;;  %1139 = vmatprep.subr.bf16.mxu1 %v8719_v62  ;;  %v9564_v61 = vld [vmem:[#allocation15 + $0x6c] ss:$16 sps:$4 sm:$0xff]   ;;  %v9566_v62 = vld [vmem:[#allocation15 + $0x84] ss:$16 sps:$4 sm:$0xff]  }
  0x8b   :  { %954 = vmatpush1.bf16.msra.mxu0 %v8721_v63  ;;  %1140 = vmatpush1.bf16.msra.mxu1 %v8722_v0  ;;  %v8806_v63 = vld [vmem:[#allocation10 + $0x38] ss:$12 sps:$4 sm:$0xff]   ;;  %v9574_v0 = vld [vmem:[#allocation15 + $0x80] ss:$16 sps:$4 sm:$0xff]  }
  0x8c   :  { %1016 = vmatprep.subr.bf16.mxu0 %v8728_v1  ;;  %1202 = vmatprep.subr.bf16.mxu1 %v8734_v2  ;;  %v9576_v1 = vld [vmem:[#allocation15 + $0x68] ss:$16 sps:$4 sm:$0xff]   ;;  %v9580_v2 = vld [vmem:[#allocation15 + $0xa4] ss:$16 sps:$4 sm:$0xff]  }
  0x8d   :  { %12368 = vst [vmem:[#allocation26_spill] sm:$0xff] %v9580_v2 }
  0x8e   :  { %956 = vmatmul.mubr.bf16.vlgmr.msra.gmra.mrb[0].mxu0 %v8723_v3  ;;  %1142 = vmatmul.mubr.bf16.vlgmr.msra.gmra.mrb[0].mxu1 %v8723_v3  ;;  %v9582_v3 = vld [vmem:[#allocation15 + $0x8c] ss:$16 sps:$4 sm:$0xff]  }
  0x8f   :  { %1017 = vmatpush1.bf16.msra.mxu0 %v8726_v4  ;;  %965 = vmatprep.mubr.bf16.mxu0 %v8735_v5  ;;  %v9589_v4 = vld [vmem:[#allocation15 + $0xa0] ss:$16 sps:$4 sm:$0xff]  }
  0x90   :  { %1018 = vmatprep.subr.bf16.mxu0 %v8731_v6  ;;  %1151 = vmatprep.mubr.bf16.mxu1 %v8735_v5  ;;  %12369 = vst [vmem:[#allocation27_spill] sm:$0xff] %v9589_v4  ;;  %v9591_v5 = vld [vmem:[#allocation15 + $0x88] ss:$16 sps:$4 sm:$0xff]   ;;  %v9595_v6 = vld [vmem:[#allocation15 + $0xc4] ss:$16 sps:$4 sm:$0xff]  }
  0x91   :  { %1203 = vmatpush1.bf16.msra.mxu1 %v8732_v7  ;;  %12370 = vst [vmem:[#allocation28_spill] sm:$0xff] %v9595_v6  ;;  %v9597_v7 = vld [vmem:[#allocation15 + $0xac] ss:$16 sps:$4 sm:$0xff]  }
  0x92   :  { %1204 = vmatprep.subr.bf16.mxu1 %v8743_v8  ;;  %12371 = vst [vmem:[#allocation29_spill] sm:$0xff] %v9597_v7  ;;  %v8813_v8 = vld [vmem:[#allocation10 + $0x50] ss:$12 sps:$4 sm:$0xff]  }
  0x93   :  { %1019 = vmatpush1.bf16.msra.mxu0 %v8729_v9  ;;  %v9601_v9 = vld [vmem:[#allocation15 + $0xc0] ss:$16 sps:$4 sm:$0xff]  }
  0x94   :  { %1020 = vmatprep.subr.bf16.mxu0 %v8740_v10  ;;  %12372 = vst [vmem:[#allocation30_spill] sm:$0xff] %v9601_v9  ;;  %v9603_v10 = vld [vmem:[#allocation15 + $0xa8] ss:$16 sps:$4 sm:$0xff]  }
  0x95   :  { %1205 = vmatpush1.bf16.msra.mxu1 %v8741_v11  ;;  %12373 = vst [vmem:[#allocation31_spill] sm:$0xff] %v9603_v10  ;;  %v9607_v11 = vld [vmem:[#allocation15 + $0xcc] ss:$16 sps:$4 sm:$0xff]  }
  0x96   :  { %966 = vmatmul.mubr.bf16.gmra.mrb[4].mxu0 %v8737_v12  ;;  %1152 = vmatmul.mubr.bf16.gmra.mrb[4].mxu1 %v8737_v12  ;;  %12374 = vst [vmem:[#allocation32_spill] sm:$0xff] %v9607_v11  ;;  %v9609_v12 = vld [vmem:[#allocation15 + $0xe4] ss:$16 sps:$4 sm:$0xff]  }
  0x97   :  { %1021 = vmatpush1.bf16.msra.mxu0 %v8738_v13  ;;  %975 = vmatprep.mubr.bf16.mxu0 %v8744_v14  ;;  %12375 = vst [vmem:[#allocation33_spill] sm:$0xff] %v9609_v12  ;;  %v9615_v13 = vld [vmem:[#allocation15 + $0xc8] ss:$16 sps:$4 sm:$0xff]  }
  0x98   :  { %1161 = vmatprep.mubr.bf16.mxu1 %v8744_v14  ;;  %1022 = vmatprep.subr.bf16.mxu0 %v8749_v15  ;;  %12376 = vst [vmem:[#allocation34_spill] sm:$0xff] %v9615_v13  ;;  %v9617_v14 = vld [vmem:[#allocation15 + $0xe0] ss:$16 sps:$4 sm:$0xff]   ;;  %v9621_v15 = vld [vmem:[#allocation15 + $0xec] ss:$16 sps:$4 sm:$0xff]  }
  0x99   :  { %1206 = vmatprep.subr.bf16.mxu1 %v8752_v16  ;;  %12377 = vst [vmem:[#allocation35_spill] sm:$0xff] %v9617_v14  ;;  %12378 = vst [vmem:[#allocation36_spill] sm:$0xff] %v9621_v15  ;;  %v8826_v16 = vld [vmem:[#allocation10 + $0x68] ss:$12 sps:$4 sm:$0xff]  }
  0x9a   :  { %1207 = vmatpush1.bf16.msra.mxu1 %v8750_v17  ;;  %v9625_v17 = vld [vmem:[#allocation15 + $0xe8] ss:$16 sps:$4 sm:$0xff]  }
  0x9b   :  { %1023 = vmatpush1.bf16.msra.mxu0 %v8747_v18  ;;  %1208 = vmatprep.subr.bf16.mxu1 %v8761_v19  ;;  %12379 = vst [vmem:[#allocation37_spill] sm:$0xff] %v9625_v17  ;;  %v8833_v18 = vld [vmem:[#allocation10 + $0x80] ss:$12 sps:$4 sm:$0xff]   ;;  %v147_v19 = vlaneseq }
  0x9c   :  { %1024 = vmatprep.subr.bf16.mxu0 %v8758_v20 }
  0x9d   :  { %v9671_v20 = vshrl.u32 %v147_v19, 7 }
  0x9e   :  { %976 = vmatmul.mubr.bf16.gmra.mrb[8].mxu0 %v8746_v21  ;;  %1162 = vmatmul.mubr.bf16.gmra.mrb[8].mxu1 %v8746_v21 }
  0x9f   :  { %985 = vmatprep.mubr.bf16.mxu0 %v8753_v22  ;;  %1171 = vmatprep.mubr.bf16.mxu1 %v8753_v22  ;;  %12380 = vst [vmem:[#allocation38_spill] sm:$0xff] %v9671_v20  ;;  %v12194_v21 = vsub.s32 0, %v9671_v20  ;;  %v12196_v22 = vsub.s32 2, %v9671_v20 }
  0xa0   :  { %1025 = vmatpush1.bf16.msra.mxu0 %v8756_v23  ;;  %1209 = vmatpush1.bf16.msra.mxu1 %v8759_v24  ;;  %v325_v23 = vld [vmem:[%s12184_s3] sm:$0xf]  ;;  %v12193_v24 = vsub.s32 1, %v9671_v20 }
  0xa1   :  { %1026 = vmatprep.subr.bf16.mxu0 %v8764_v25  ;;  %1210 = vmatprep.subr.bf16.mxu1 %v8767_v26  ;;  %v12195_v25 = vsub.s32 3, %v9671_v20 }
  0xa4   :  { %1027 = vmatpush1.bf16.msra.mxu0 %v8762_v27  ;;  %1211 = vmatpush1.bf16.msra.mxu1 %v8765_v28  ;;  %v9686_v28 = vrot.slane %v325_v23, %v12194_v21 }
  0xa5   :  { %1028 = vmatprep.subr.bf16.mxu0 %v8773_v29  ;;  %1212 = vmatprep.subr.bf16.mxu1 %v8776_v30  ;;  %v9690_v29 = vrot.slane %v325_v23, %v12196_v22 }
  0xa6   :  { %986 = vmatmul.mubr.bf16.gmra.mrb[12].mxu0 %v8755_v31  ;;  %1172 = vmatmul.mubr.bf16.gmra.mrb[12].mxu1 %v8755_v31 }
  0xa7   :  { %995 = vmatprep.mubr.bf16.mxu0 %v8768_v32  ;;  %1181 = vmatprep.mubr.bf16.mxu1 %v8768_v32  ;;  %v9698_v32 = vrot.slane %v325_v23, %v12193_v24 }
  0xa8   :  { %1029 = vmatpush1.bf16.msra.mxu0 %v8771_v33  ;;  %1213 = vmatpush1.bf16.msra.mxu1 %v8774_v34  ;;  %v9702_v33 = vrot.slane %v325_v23, %v12195_v25 }
  0xa9   :  { %1214 = vmatprep.subr.bf16.mxu1 %v8782_v35  ;;  %1030 = vmatprep.subr.bf16.mxu0 %v8785_v36 }
  0xac   :  { %1215 = vmatpush1.bf16.msra.mxu1 %v8780_v37  ;;  %1031 = vmatpush1.bf16.msra.mxu0 %v8783_v38 }
  0xad   :  { %1216 = vmatprep.subr.bf16.mxu1 %v8788_v39  ;;  %1731 = vmatprep.subr.bf16.mxu0 %v9523_v40 }
  0xae   :  { %996 = vmatmul.mubr.bf16.gmra.mrb[16].mxu0 %v8770_v41  ;;  %1182 = vmatmul.mubr.bf16.gmra.mrb[16].mxu1 %v8770_v41 }
  0xaf   :  { %1005 = vmatprep.mubr.bf16.mxu0 %v8777_v42  ;;  %1191 = vmatprep.mubr.bf16.mxu1 %v8777_v42 }
  0xb0   :  { %1217 = vmatpush1.bf16.msra.mxu1 %v8786_v43 }
  0xb1   :  { %1772 = vmatprep.subr.bf16.mxu1 %v9526_v44 }
  0xb6   :  { %1006 = vmatmul.mubr.bf16.gmra.mrb[20].mxu0 %v8779_v45  ;;  %1192 = vmatmul.mubr.bf16.gmra.mrb[20].mxu1 %v8779_v45 }
  0xb7   :  { %1048 = vmatprep.mubr.bf16.mxu0 %v12197_v46  ;;  %1234 = vmatprep.mubr.bf16.mxu1 %v12197_v46 }
  0xbe   :  { %1049 = vmatmul.mubr.bf16.vlgmr.msra.gmra.mrb[0].mxu0 %v8789_v47  ;;  %1235 = vmatmul.mubr.bf16.vlgmr.msra.gmra.mrb[0].mxu1 %v8789_v47 }
  0xbf   :  { %1732 = vmatpush1.bf16.msra.mxu0 %v9531_v48  ;;  %1058 = vmatprep.mubr.bf16.mxu0 %v12197_v46 }
  0xc0   :  { %1733 = vmatprep.subr.bf16.mxu0 %v9533_v49  ;;  %1244 = vmatprep.mubr.bf16.mxu1 %v12197_v46 }
  0xc1   :  { %1773 = vmatpush1.bf16.msra.mxu1 %v9535_v50 }
  0xc2   :  { %1774 = vmatprep.subr.bf16.mxu1 %v9537_v51 }
  0xc3   :  { %1734 = vmatpush1.bf16.msra.mxu0 %v9539_v52 }
  0xc4   :  { %1735 = vmatprep.subr.bf16.mxu0 %v9541_v53 }
  0xc5   :  { %1775 = vmatpush1.bf16.msra.mxu1 %v9545_v54 }
  0xc6   :  { %1059 = vmatmul.mubr.bf16.gmra.mrb[4].mxu0 %v8799_v55  ;;  %1245 = vmatmul.mubr.bf16.gmra.mrb[4].mxu1 %v8799_v55 }
  0xc7   :  { %1736 = vmatpush1.bf16.msra.mxu0 %v9550_v56  ;;  %1068 = vmatprep.mubr.bf16.mxu0 %v12197_v46 }
  0xc8   :  { %1254 = vmatprep.mubr.bf16.mxu1 %v12197_v46  ;;  %1737 = vmatprep.subr.bf16.mxu0 %v9553_v57 }
  0xc9   :  { %1776 = vmatprep.subr.bf16.mxu1 %v9556_v58 }
  0xca   :  { %1777 = vmatpush1.bf16.msra.mxu1 %v9559_v59 }
  0xcb   :  { %1738 = vmatpush1.bf16.msra.mxu0 %v9562_v60  ;;  %1778 = vmatprep.subr.bf16.mxu1 %v9564_v61 }
  0xcc   :  { %1739 = vmatprep.subr.bf16.mxu0 %v9566_v62 }
  0xce   :  { %1069 = vmatmul.mubr.bf16.gmra.mrb[8].mxu0 %v8806_v63  ;;  %1255 = vmatmul.mubr.bf16.gmra.mrb[8].mxu1 %v8806_v63 }
  0xcf   :  { %1078 = vmatprep.mubr.bf16.mxu0 %v12197_v46  ;;  %1264 = vmatprep.mubr.bf16.mxu1 %v12197_v46 }
  0xd0   :  { %1740 = vmatpush1.bf16.msra.mxu0 %v9574_v0  ;;  %1779 = vmatpush1.bf16.msra.mxu1 %v9576_v1 }
  0xd1   :  { %1741 = vmatprep.subr.bf16.mxu0 %v9580_v2  ;;  %1780 = vmatprep.subr.bf16.mxu1 %v9582_v3 }
  0xd4   :  { %1742 = vmatpush1.bf16.msra.mxu0 %v9589_v4  ;;  %1781 = vmatpush1.bf16.msra.mxu1 %v9591_v5 }
  0xd5   :  { %1743 = vmatprep.subr.bf16.mxu0 %v9595_v6  ;;  %1782 = vmatprep.subr.bf16.mxu1 %v9597_v7 }
  0xd6   :  { %1079 = vmatmul.mubr.bf16.gmra.mrb[12].mxu0 %v8813_v8  ;;  %1265 = vmatmul.mubr.bf16.gmra.mrb[12].mxu1 %v8813_v8 }
  0xd7   :  { %1088 = vmatprep.mubr.bf16.mxu0 %v12197_v46  ;;  %1274 = vmatprep.mubr.bf16.mxu1 %v12197_v46 }
  0xd8   :  { %1744 = vmatpush1.bf16.msra.mxu0 %v9601_v9  ;;  %1783 = vmatpush1.bf16.msra.mxu1 %v9603_v10 }
  0xd9   :  { %1784 = vmatprep.subr.bf16.mxu1 %v9607_v11  ;;  %1745 = vmatprep.subr.bf16.mxu0 %v9609_v12 }
  0xdc   :  { %1785 = vmatpush1.bf16.msra.mxu1 %v9615_v13  ;;  %1746 = vmatpush1.bf16.msra.mxu0 %v9617_v14 }
  0xdd   :  { %1786 = vmatprep.subr.bf16.mxu1 %v9621_v15  ;;  %2033 = vmatprep.subr.bf16.mxu0 %v9523_v40 }
  0xde   :  { %1089 = vmatmul.mubr.bf16.gmra.mrb[16].mxu0 %v8826_v16  ;;  %1275 = vmatmul.mubr.bf16.gmra.mrb[16].mxu1 %v8826_v16 }
  0xdf   :  { %1098 = vmatprep.mubr.bf16.mxu0 %v12197_v46  ;;  %1284 = vmatprep.mubr.bf16.mxu1 %v12197_v46 }
  0xe0   :  { %1787 = vmatpush1.bf16.msra.mxu1 %v9625_v17 }
  0xe1   :  { %2074 = vmatprep.subr.bf16.mxu1 %v9526_v44 }
  0xe6   :  { %1099 = vmatmul.mubr.bf16.gmra.mrb[20].mxu0 %v8833_v18  ;;  %1285 = vmatmul.mubr.bf16.gmra.mrb[20].mxu1 %v8833_v18 }
  0xe7   :  { %1763 = vmatprep.mubr.bf16.mxu0 %v12197_v46  ;;  %1804 = vmatprep.mubr.bf16.mxu1 %v12197_v46 }
  0xee   :  { %1764 = vmatmul.mubr.bf16.vlgmr.msra.gmra.mrb[24].mxu0 %v12197_v46  ;;  %1805 = vmatmul.mubr.bf16.vlgmr.msra.gmra.mrb[24].mxu1 %v12197_v46 }
  0xef   :  { %2034 = vmatpush1.bf16.msra.mxu0 %v9531_v48  ;;  %2075 = vmatpush1.bf16.msra.mxu1 %v9535_v50 }
  0xf0   :  { %2035 = vmatprep.subr.bf16.mxu0 %v9533_v49  ;;  %2076 = vmatprep.subr.bf16.mxu1 %v9537_v51 }
  0xf1   :  { %2065 = vmatprep.mubr.bf16.mxu0 %v12197_v46  ;;  %2106 = vmatprep.mubr.bf16.mxu1 %v12197_v46 }
  0xf3   :  { %2036 = vmatpush1.bf16.msra.mxu0 %v9539_v52  ;;  %2077 = vmatpush1.bf16.msra.mxu1 %v9545_v54 }
  0xf4   :  { %2037 = vmatprep.subr.bf16.mxu0 %v9541_v53  ;;  %2078 = vmatprep.subr.bf16.mxu1 %v9556_v58 }
  0xf7   :  { %2038 = vmatpush1.bf16.msra.mxu0 %v9550_v56  ;;  %2079 = vmatpush1.bf16.msra.mxu1 %v9559_v59 }
  0xf8   :  { %2039 = vmatprep.subr.bf16.mxu0 %v9553_v57  ;;  %2080 = vmatprep.subr.bf16.mxu1 %v9564_v61 }
  0xfb   :  { %2040 = vmatpush1.bf16.msra.mxu0 %v9562_v60  ;;  %2081 = vmatpush1.bf16.msra.mxu1 %v9576_v1 }
  0xfc   :  { %2041 = vmatprep.subr.bf16.mxu0 %v9566_v62  ;;  %2082 = vmatprep.subr.bf16.mxu1 %v9582_v3 }
  0xff   :  { %2042 = vmatpush1.bf16.msra.mxu0 %v9574_v0  ;;  %2083 = vmatpush1.bf16.msra.mxu1 %v9591_v5 }
 0x100   :  { %2043 = vmatprep.subr.bf16.mxu0 %v9580_v2  ;;  %2084 = vmatprep.subr.bf16.mxu1 %v9597_v7 }
 0x103   :  { %2044 = vmatpush1.bf16.msra.mxu0 %v9589_v4  ;;  %2085 = vmatpush1.bf16.msra.mxu1 %v9603_v10 }
 0x104   :  { %2045 = vmatprep.subr.bf16.mxu0 %v9595_v6  ;;  %2086 = vmatprep.subr.bf16.mxu1 %v9607_v11 }
 0x107   :  { %2046 = vmatpush1.bf16.msra.mxu0 %v9601_v9  ;;  %2087 = vmatpush1.bf16.msra.mxu1 %v9615_v13 }
 0x108   :  { %2047 = vmatprep.subr.bf16.mxu0 %v9609_v12  ;;  %2088 = vmatprep.subr.bf16.mxu1 %v9621_v15 }
 0x10b   :  { %2048 = vmatpush1.bf16.msra.mxu0 %v9617_v14  ;;  %2089 = vmatpush1.bf16.msra.mxu1 %v9625_v17 }
 0x10c   :  { %2335 = vmatprep.subr.bf16.mxu0 %v9523_v40  ;;  %2376 = vmatprep.subr.bf16.mxu1 %v9526_v44 }
 0x191   :  { %v9680_v26 = vpop.f32.mrb[0].mxu0  ;;  %v9682_v27 = vpop.f32.mrb[0].mxu1 }
 0x192   :  { %v9692_v30 = vpop.f32.mrb[1].mxu0  ;;  %v9694_v31 = vpop.f32.mrb[1].mxu1 }
 0x193   :  { %v1054_v34 = vpop.f32.mrb[2].mxu0  ;;  %v1240_v35 = vpop.f32.mrb[2].mxu1 }
 0x194   :  { %v9705_v36 = vadd.f32 %v1054_v34, %v9686_v28  ;;  %v9708_v37 = vadd.f32 %v1240_v35, %v9690_v29  ;;  %v1056_v38 = vpop.f32.mrb[3].mxu0  ;;  %v1242_v39 = vpop.f32.mrb[3].mxu1 }
 0x195   :  { %v9711_v40 = vadd.f32 %v1056_v38, %v9698_v32  ;;  %v9714_v41 = vadd.f32 %v1242_v39, %v9702_v33 }
 0x196   :  { %12381 = vst [vmem:[#allocation39_spill] sm:$0xff] %v9708_v37 }
 0x197   :  { %12382 = vst [vmem:[#allocation40_spill] sm:$0xff] %v9711_v40  ;;  %12383 = vst [vmem:[#allocation41_spill] sm:$0xff] %v9714_v41 }
 0x199   :  { %v1060_v42 = vpop.f32.mrb[4].mxu0  ;;  %v1246_v43 = vpop.f32.mrb[4].mxu1 }
 0x19a   :  { %v9717_v44 = vadd.f32 %v1060_v42, %v9686_v28  ;;  %v9720_v45 = vadd.f32 %v1246_v43, %v9690_v29  ;;  %v1062_v47 = vpop.f32.mrb[5].mxu0  ;;  %v1248_v55 = vpop.f32.mrb[5].mxu1  ;;  %v9740_v43 = vand.u32 127, %v147_v19 }
 0x19b   :  { %v9723_v63 = vadd.f32 %v1062_v47, %v9698_v32  ;;  %v9726_v8 = vadd.f32 %v1248_v55, %v9702_v33  ;;  %v1064_v16 = vpop.f32.mrb[6].mxu0  ;;  %v1250_v18 = vpop.f32.mrb[6].mxu1 }
 0x19c   :  { %12384 = vst [vmem:[#allocation42_spill] sm:$0xff] %v9720_v45  ;;  %v9729_v23 = vadd.f32 %v1064_v16, %v9686_v28  ;;  %v9732_v34 = vadd.f32 %v1250_v18, %v9690_v29  ;;  %v1066_v35 = vpop.f32.mrb[7].mxu0  ;;  %v1252_v38 = vpop.f32.mrb[7].mxu1  ;;  %12390 = vst [vmem:[#allocation48_spill] sm:$0xff] %v9740_v43  ;;  %v150_v24 = vadd.s32 256, %v9740_v43  ;;  %v149_v22 = vadd.s32 128, %v9740_v43 }
 0x19d   :  { %12385 = vst [vmem:[#allocation43_spill] sm:$0xff] %v9723_v63  ;;  %12386 = vst [vmem:[#allocation44_spill] sm:$0xff] %v9726_v8  ;;  %v9735_v39 = vadd.f32 %v1066_v35, %v9698_v32  ;;  %v9738_v42 = vadd.f32 %v1252_v38, %v9702_v33  ;;  %v151_v35 = vadd.s32 384, %v9740_v43  ;;  %vm200_vm0 = vcmp.ge.s32.totalorder %v9740_v43, 64 }
 0x19e   :  { %12387 = vst [vmem:[#allocation45_spill] sm:$0xff] %v9732_v34  ;;  %v163_v13 = vand.u32 127, %v149_v22 }
 0x19f   :  { %12388 = vst [vmem:[#allocation46_spill] sm:$0xff] %v9735_v39  ;;  %12389 = vst [vmem:[#allocation47_spill] sm:$0xff] %v9738_v42  ;;  %v177_v9 = vand.u32 127, %v151_v35 }
 0x1a0   :  { %vm9774_vm2 = vcmp.ge.s32.totalorder %v163_v13, 64 }
 0x1a1   :  { %v1070_v47 = vpop.f32.mrb[8].mxu0  ;;  %v1256_v55 = vpop.f32.mrb[8].mxu1  ;;  %vm9778_vm3 = vcmp.ge.s32.totalorder %v177_v9, 64 }
 0x1a2   :  { %v8517_v16 = vadd.f32 %v1070_v47, %v9686_v28  ;;  %v9745_v21 = vadd.f32 %v1256_v55, %v9690_v29  ;;  %v1072_v18 = vpop.f32.mrb[9].mxu0  ;;  %v1258_v25 = vpop.f32.mrb[9].mxu1 }
 0x1a3   :  { %v9750_v38 = vadd.f32 %v1072_v18, %v9698_v32  ;;  %v9753_v19 = vadd.f32 %v1258_v25, %v9702_v33  ;;  %v1074_v46 = vpop.f32.mrb[10].mxu0  ;;  %v1260_v20 = vpop.f32.mrb[10].mxu1  ;;  %v170_v18 = vand.u32 127, %v150_v24 }
 0x1a4   :  { %12391 = vst [vmem:[#allocation49_spill] sm:$0xff] %v9745_v21  ;;  %v8519_v17 = vadd.f32 %v1074_v46, %v9686_v28  ;;  %v9757_v47 = vadd.f32 %v1260_v20, %v9690_v29  ;;  %v1076_v55 = vpop.f32.mrb[11].mxu0  ;;  %v1262_v14 = vpop.f32.mrb[11].mxu1 }
 0x1a5   :  { %12392 = vst [vmem:[#allocation50_spill] sm:$0xff] %v9750_v38  ;;  %12393 = vst [vmem:[#allocation51_spill] sm:$0xff] %v9753_v19  ;;  %v9760_v15 = vadd.f32 %v1076_v55, %v9698_v32  ;;  %v9763_v12 = vadd.f32 %v1262_v14, %v9702_v33  ;;  %vm9766_vm1 = vcmp.ge.s32.totalorder %v170_v18, 64  ;;  %v9962_v19 = vadd.f32 %v9692_v30, %v9698_v32 }
 0x1a6   :  { %12394 = vst [vmem:[#allocation52_spill] sm:$0xff] %v9757_v47 }
 0x1a7   :  { %12395 = vst [vmem:[#allocation53_spill] sm:$0xff] %v9760_v15  ;;  %12396 = vst [vmem:[#allocation54_spill] sm:$0xff] %v9763_v12 }
 0x1a8   :  { %12423 = vst [vmem:[#allocation75_spill] sm:$0xff] %v9962_v19 }
 0x1a9   :  { %v1080_v25 = vpop.f32.mrb[12].mxu0  ;;  %v1266_v11 = vpop.f32.mrb[12].mxu1 }
 0x1aa   :  { %v8521_v20 = vadd.f32 %v1080_v25, %v9686_v28  ;;  %v9772_v6 = vadd.f32 %v1266_v11, %v9690_v29  ;;  %v1082_v55 = vpop.f32.mrb[13].mxu0  ;;  %v1268_v10 = vpop.f32.mrb[13].mxu1 }
 0x1ab   :  { %v9783_v24 = vadd.f32 %v1082_v55, %v9698_v32  ;;  %v9786_v35 = vadd.f32 %v1268_v10, %v9702_v33  ;;  %v1084_v18 = vpop.f32.mrb[14].mxu0  ;;  %v1270_v25 = vpop.f32.mrb[14].mxu1 }
 0x1ac   :  { %12399 = vst [vmem:[#allocation55_spill] sm:$0xff] %v9772_v6  ;;  %v8523_v11 = vadd.f32 %v1084_v18, %v9686_v28  ;;  %v9790_v4 = vadd.f32 %v1270_v25, %v9690_v29  ;;  %v1086_v13 = vpop.f32.mrb[15].mxu0  ;;  %v1272_v7 = vpop.f32.mrb[15].mxu1  ;;  %v9794_v9 = vsel %vm200_vm0, %v8521_v20, %v8519_v17 }
 0x1ad   :  { %12404 = vst [vmem:[#allocation56_spill] sm:$0xff] %v9783_v24  ;;  %12405 = vst [vmem:[#allocation57_spill] sm:$0xff] %v9786_v35  ;;  %v9801_v10 = vadd.f32 %v1086_v13, %v9698_v32  ;;  %v9804_v2 = vadd.f32 %v1272_v7, %v9702_v33  ;;  %v9824_v13 = vsel %vm200_vm0, %v8519_v17, %v8521_v20 }
 0x1ae   :  { %12406 = vst [vmem:[#allocation58_spill] sm:$0xff] %v9790_v4  ;;  %12407 = vst [vmem:[#allocation59_spill] sm:$0xff] %v9794_v9  ;;  %v9816_v9 = vsel %vm200_vm0, %v8523_v11, %v8517_v16  ;;  %v9848_v18 = vsel %vm200_vm0, %v8517_v16, %v8523_v11 }
 0x1af   :  { %12408 = vst [vmem:[#allocation60_spill] sm:$0xff] %v9801_v10  ;;  %12409 = vst [vmem:[#allocation61_spill] sm:$0xff] %v9804_v2 }
 0x1b0   :  { %12410 = vst [vmem:[#allocation62_spill] sm:$0xff] %v9816_v9  ;;  %12411 = vst [vmem:[#allocation63_spill] sm:$0xff] %v9824_v13 }
 0x1b1   :  { %12412 = vst [vmem:[#allocation64_spill] sm:$0xff] %v9848_v18  ;;  %v1090_v20 = vpop.f32.mrb[16].mxu0  ;;  %v1276_v7 = vpop.f32.mrb[16].mxu1 }
 0x1b2   :  { %v8525_v16 = vadd.f32 %v1090_v20, %v9686_v28  ;;  %v9864_v11 = vadd.f32 %v1276_v7, %v9690_v29  ;;  %v1092_v18 = vpop.f32.mrb[17].mxu0  ;;  %v1278_v13 = vpop.f32.mrb[17].mxu1 }
 0x1b3   :  { %v9867_v25 = vadd.f32 %v1092_v18, %v9698_v32  ;;  %v9870_v12 = vadd.f32 %v1278_v13, %v9702_v33  ;;  %v1094_v55 = vpop.f32.mrb[18].mxu0  ;;  %v1280_v35 = vpop.f32.mrb[18].mxu1 }
 0x1b4   :  { %12413 = vst [vmem:[#allocation65_spill] sm:$0xff] %v9864_v11  ;;  %v8527_v15 = vadd.f32 %v1094_v55, %v9686_v28  ;;  %v9874_v17 = vadd.f32 %v1280_v35, %v9690_v29  ;;  %v1096_v24 = vpop.f32.mrb[19].mxu0  ;;  %v1282_v20 = vpop.f32.mrb[19].mxu1  ;;  %v9879_v7 = vsel %vm200_vm0, %v8525_v16, %v9729_v23 }
 0x1b5   :  { %12414 = vst [vmem:[#allocation66_spill] sm:$0xff] %v9867_v25  ;;  %12415 = vst [vmem:[#allocation67_spill] sm:$0xff] %v9870_v12  ;;  %v9886_v13 = vadd.f32 %v1096_v24, %v9698_v32  ;;  %v9889_v55 = vadd.f32 %v1282_v20, %v9702_v33  ;;  %v9911_v20 = vsel %vm200_vm0, %v9729_v23, %v8525_v16 }
 0x1b6   :  { %12416 = vst [vmem:[#allocation68_spill] sm:$0xff] %v9874_v17  ;;  %v9902_v18 = vsel %vm200_vm0, %v8527_v15, %v9717_v44  ;;  %12419 = vst [vmem:[#allocation71_spill] sm:$0xff] %v9911_v20  ;;  %v9936_v47 = vsel %vm200_vm0, %v9717_v44, %v8527_v15  ;;  %v8509_v15 = vadd.f32 %v9680_v26, %v9686_v28 }
 0x1b7   :  { %12417 = vst [vmem:[#allocation69_spill] sm:$0xff] %v9886_v13  ;;  %12418 = vst [vmem:[#allocation70_spill] sm:$0xff] %v9889_v55  ;;  %v9954_v44 = vadd.f32 %v9682_v27, %v9690_v29  ;;  %v9966_v16 = vadd.f32 %v9694_v31, %v9702_v33 }
 0x1b8   :  { %12420 = vst [vmem:[#allocation72_spill] sm:$0xff] %v9936_v47 }
 0x1b9   :  { %v1100_v35 = vpop.f32.mrb[20].mxu0  ;;  %v1286_v20 = vpop.f32.mrb[20].mxu1  ;;  %12421 = vst [vmem:[#allocation73_spill] sm:$0xff] %v9954_v44  ;;  %12424 = vst [vmem:[#allocation76_spill] sm:$0xff] %v9966_v16 }
 0x1ba   :  { %v8529_v24 = vadd.f32 %v1100_v35, %v9686_v28  ;;  %v9958_v47 = vadd.f32 %v1286_v20, %v9690_v29  ;;  %v1102_v23 = vpop.f32.mrb[21].mxu0  ;;  %v1288_v6 = vpop.f32.mrb[21].mxu1 }
 0x1bb   :  { %v9969_v26 = vadd.f32 %v1102_v23, %v9698_v32  ;;  %v9972_v27 = vadd.f32 %v1288_v6, %v9702_v33  ;;  %v1104_v35 = vpop.f32.mrb[22].mxu0  ;;  %v1290_v2 = vpop.f32.mrb[22].mxu1 }
 0x1bc   :  { %12422 = vst [vmem:[#allocation74_spill] sm:$0xff] %v9958_v47  ;;  %v8531_v20 = vadd.f32 %v1104_v35, %v9686_v28  ;;  %v9976_v38 = vadd.f32 %v1290_v2, %v9690_v29  ;;  %v1106_v10 = vpop.f32.mrb[23].mxu0  ;;  %v1292_v30 = vpop.f32.mrb[23].mxu1  ;;  %v9981_v31 = vsel %vm200_vm0, %v8529_v24, %v9705_v36 }
 0x1bd   :  { %12425 = vst [vmem:[#allocation77_spill] sm:$0xff] %v9969_v26  ;;  %12426 = vst [vmem:[#allocation78_spill] sm:$0xff] %v9972_v27  ;;  %v9988_v23 = vadd.f32 %v1106_v10, %v9698_v32  ;;  %v9991_v28 = vadd.f32 %v1292_v30, %v9702_v33  ;;  %v10010_v33 = vsel %vm200_vm0, %v9705_v36, %v8529_v24 }
 0x1be   :  { %12427 = vst [vmem:[#allocation79_spill] sm:$0xff] %v9976_v38  ;;  %v1351_v35 = vsel %vm200_vm0, %v8531_v20, %v8509_v15  ;;  %v1353_v32 = vsel %vm9766_vm1, %v9976_v38, %v9954_v44  ;;  %12430 = vst [vmem:[#allocation82_spill] sm:$0xff] %v10010_v33  ;;  %v10034_v10 = vsel %vm200_vm0, %v8509_v15, %v8531_v20 }
 0x1bf   :  { %12428 = vst [vmem:[#allocation80_spill] sm:$0xff] %v9988_v23  ;;  %12429 = vst [vmem:[#allocation81_spill] sm:$0xff] %v9991_v28  ;;  %v1352_v30 = vsel %vm9774_vm2, %v9988_v23, %v9962_v19  ;;  %v1354_v29 = vsel %vm9778_vm3, %v9991_v28, %v9966_v16  ;;  %v12451_v19 = vsel %vm9774_vm2, %v9886_v13, %v9723_v63 }
 0x1c0   :  { %12431 = vst [vmem:[#allocation83_spill] sm:$0xff] %v10034_v10 }
 0x1c1   :  { %v1765_v24 = vpop.f32.mrb[24].mxu0  ;;  %v1806_v33 = vpop.f32.mrb[24].mxu1 }
 0x1c2   :  { %v1813_v43 = vadd.f32 %v1765_v24, %v1351_v35  ;;  %v1815_v15 = vadd.f32 %v1806_v33, %v1353_v32  ;;  %v1767_v20 = vpop.f32.mrb[25].mxu0  ;;  %v1808_v10 = vpop.f32.mrb[25].mxu1 }
 0x1c3   :  { %v1814_v21 = vadd.f32 %v1767_v20, %v1352_v30  ;;  %v1816_v4 = vadd.f32 %v1808_v10, %v1354_v29  ;;  %v1769_v9 = vpop.f32.mrb[26].mxu0  ;;  %v1810_v2 = vpop.f32.mrb[26].mxu1 }
 0x1c4   :  { %v1817_v38 = vmul.f32 0.5, %v1813_v43  ;;  %v1770_v44 = vpop.f32.mrb[27].mxu0  ;;  %v1811_v42 = vpop.f32.mrb[27].mxu1  ;;  %v1819_v6 = vmul.f32 0.5, %v1815_v15 }
 0x1c5   :  { %v1818_v12 = vmul.f32 0.5, %v1814_v21 }
 0x1c6   :  { %8987 = vtanh.f32 %v1817_v38 }
 0x1c7   :  { %8989 = vtanh.f32 %v1818_v12 }
 0x1c8   :  { %8991 = vtanh.f32 %v1816_v4 }
 0x1c9   :  { %8993 = vtanh.f32 %v1819_v6  ;;  %v12447_v6 = vsel %vm9774_vm2, %v9969_v26, %v9711_v40 }
 0x1d0   :  { %v8988_v23 = vpop.eup %8987 }
 0x1d1   :  { %v1823_v36 = vmul.f32 0.5, %v8988_v23  ;;  %v8990_v28 = vpop.eup %8989 }
 0x1d2   :  { %v1824_v35 = vmul.f32 0.5, %v8990_v28  ;;  %v8992_v32 = vpop.eup %8991  ;;  %v12448_v28 = vsel %vm9778_vm3, %v9972_v27, %v9714_v41  ;;  %v12452_v27 = vsel %vm9778_vm3, %v9889_v55, %v9726_v8 }
 0x1d3   :  { %v1826_v16 = vadd.f32 0.5, %v1823_v36  ;;  %v8994_v42 = vpop.eup %8993 }
 0x1d4   :  { %v1827_v33 = vadd.f32 0.5, %v1824_v35  ;;  %v1825_v21 = vmul.f32 0.5, %v8994_v42 }
 0x1d5   :  { %v1831_v30 = vmul.f32 %v8992_v32, %v1826_v16  ;;  %v12433_v16 = vmov 0  }
 0x1d6   :  { %v1830_v29 = vmul.f32 0.0, %v1827_v33  ;;  %v1828_v43 = vadd.f32 0.5, %v1825_v21 }
 0x1d8   :  { %v10048_v9 = vadd.f32 %v1831_v30, %v1830_v29 }
 0x1da   :  { %8995 = vtanh.f32 %v10048_v9 }
 0x1e4   :  { %v8996_v12 = vpop.eup %8995 }
 0x1e5   :  { %v10051_v4 = vmul.f32 %v8996_v12, %v1828_v43 }
 0x1e7   :  { %12432 = vst [vmem:[#allocation84_spill] sm:$0xff] %v10051_v4  ;;  %v1840_v38 = vpack.c.bf16 %v10051_v4, %v10051_v4 }
 0x1e9   :  { %2066 = vmatmul.mubr.bf16.vlgmr.msra.gmra.mrb[28].mxu0 %v1840_v38  ;;  %2107 = vmatmul.mubr.bf16.vlgmr.msra.gmra.mrb[28].mxu1 %v1840_v38 }
 0x1ea   :  { %2336 = vmatpush1.bf16.msra.mxu0 %v9531_v48  ;;  %2377 = vmatpush1.bf16.msra.mxu1 %v9535_v50  ;;  %v12434_v48 = vld [vmem:[#allocation26_spill] sm:$0xff]  ;;  %v12436_v50 = vld [vmem:[#allocation27_spill] sm:$0xff] }
 0x1eb   :  { %2337 = vmatprep.subr.bf16.mxu0 %v9533_v49  ;;  %2378 = vmatprep.subr.bf16.mxu1 %v9537_v51  ;;  %v12435_v49 = vld [vmem:[#allocation29_spill] sm:$0xff]  ;;  %v12437_v51 = vld [vmem:[#allocation31_spill] sm:$0xff] }
 0x1ec   :  { %2367 = vmatprep.mubr.bf16.mxu0 %v12433_v16  ;;  %2408 = vmatprep.mubr.bf16.mxu1 %v12433_v16 }
 0x1ee   :  { %2338 = vmatpush1.bf16.msra.mxu0 %v9539_v52  ;;  %2379 = vmatpush1.bf16.msra.mxu1 %v9545_v54  ;;  %v12438_v52 = vld [vmem:[#allocation28_spill] sm:$0xff]  ;;  %v12440_v54 = vld [vmem:[#allocation30_spill] sm:$0xff] }
 0x1ef   :  { %2339 = vmatprep.subr.bf16.mxu0 %v9541_v53  ;;  %2380 = vmatprep.subr.bf16.mxu1 %v9556_v58  ;;  %v12439_v53 = vld [vmem:[#allocation32_spill] sm:$0xff] }
 0x1f0   :  { %v12443_v58 = vld [vmem:[#allocation36_spill] sm:$0xff] }
 0x1f2   :  { %2340 = vmatpush1.bf16.msra.mxu0 %v9550_v56  ;;  %2381 = vmatpush1.bf16.msra.mxu1 %v9559_v59  ;;  %v12441_v56 = vld [vmem:[#allocation34_spill] sm:$0xff]  ;;  %v12444_v59 = vld [vmem:[#allocation35_spill] sm:$0xff] }
 0x1f3   :  { %2341 = vmatprep.subr.bf16.mxu0 %v9553_v57  ;;  %2382 = vmatprep.subr.bf16.mxu1 %v9564_v61  ;;  %v12442_v57 = vld [vmem:[#allocation33_spill] sm:$0xff] }
 0x1f6   :  { %2342 = vmatpush1.bf16.msra.mxu0 %v9562_v60  ;;  %2383 = vmatpush1.bf16.msra.mxu1 %v9576_v1  ;;  %v12445_v60 = vld [vmem:[#allocation37_spill] sm:$0xff]  ;;  %v12446_v1 = vsel %vm9766_vm1, %v9958_v47, %v9708_v37 }
 0x1f7   :  { %2343 = vmatprep.subr.bf16.mxu0 %v9566_v62  ;;  %2384 = vmatprep.subr.bf16.mxu1 %v9582_v3 }
 0x1fa   :  { %2344 = vmatpush1.bf16.msra.mxu0 %v9574_v0  ;;  %2385 = vmatpush1.bf16.msra.mxu1 %v9591_v5 }
 0x1fb   :  { %2345 = vmatprep.subr.bf16.mxu0 %v12434_v48  ;;  %2386 = vmatprep.subr.bf16.mxu1 %v12435_v49 }
 0x1fe   :  { %2346 = vmatpush1.bf16.msra.mxu0 %v12436_v50  ;;  %2387 = vmatpush1.bf16.msra.mxu1 %v12437_v51 }
 0x1ff   :  { %2347 = vmatprep.subr.bf16.mxu0 %v12438_v52  ;;  %2388 = vmatprep.subr.bf16.mxu1 %v12439_v53 }
 0x202   :  { %2348 = vmatpush1.bf16.msra.mxu0 %v12440_v54  ;;  %2389 = vmatpush1.bf16.msra.mxu1 %v12441_v56  ;;  %v10115_v56 = vld [vmem:[#allocation15 + $0xc] ss:$16 sps:$4 sm:$0xff]  }
 0x203   :  { %2349 = vmatprep.subr.bf16.mxu0 %v12442_v57  ;;  %2390 = vmatprep.subr.bf16.mxu1 %v12443_v58  ;;  %v10117_v57 = vld [vmem:[#allocation15] ss:$16 sps:$4 sm:$0xff]   ;;  %v10119_v58 = vld [vmem:[#allocation15 + $0x8] ss:$16 sps:$4 sm:$0xff]  }
 0x206   :  { %2350 = vmatpush1.bf16.msra.mxu0 %v12444_v59  ;;  %2391 = vmatpush1.bf16.msra.mxu1 %v12445_v60  ;;  %v10125_v59 = vld [vmem:[#allocation15 + $0x24] ss:$16 sps:$4 sm:$0xff]   ;;  %v10127_v60 = vld [vmem:[#allocation15 + $0x2c] ss:$16 sps:$4 sm:$0xff]  }
 0x207   :  { %2678 = vmatprep.subr.bf16.mxu1 %v10115_v56 }
 0x2bc   :  { %v2067_v61 = vpop.f32.mrb[28].mxu0  ;;  %v2108_v62 = vpop.f32.mrb[28].mxu1 }
 0x2bd   :  { %v2115_v0 = vadd.f32 %v2067_v61, %v9981_v31  ;;  %v2117_v3 = vadd.f32 %v2108_v62, %v12446_v1  ;;  %v2069_v5 = vpop.f32.mrb[29].mxu0  ;;  %v2110_v44 = vpop.f32.mrb[29].mxu1  ;;  %v10129_v61 = vld [vmem:[#allocation15 + $0x20] ss:$16 sps:$4 sm:$0xff]   ;;  %v10131_v62 = vld [vmem:[#allocation15 + $0x28] ss:$16 sps:$4 sm:$0xff]  }
 0x2be   :  { %v2116_v23 = vadd.f32 %v2069_v5, %v12447_v6  ;;  %v2118_v31 = vadd.f32 %v2110_v44, %v12448_v28  ;;  %v2071_v2 = vpop.f32.mrb[30].mxu0  ;;  %v2112_v10 = vpop.f32.mrb[30].mxu1  ;;  %v10139_v1 = vld [vmem:[#allocation15 + $0x4c] ss:$16 sps:$4 sm:$0xff]   ;;  %v10143_v5 = vld [vmem:[#allocation15 + $0x48] ss:$16 sps:$4 sm:$0xff]  }
 0x2bf   :  { %v2119_v36 = vmul.f32 0.5, %v2115_v0  ;;  %v2072_v24 = vpop.f32.mrb[31].mxu0  ;;  %v2113_v15 = vpop.f32.mrb[31].mxu1  ;;  %v2121_v35 = vmul.f32 0.5, %v2117_v3  ;;  %v10137_v0 = vld [vmem:[#allocation15 + $0x44] ss:$16 sps:$4 sm:$0xff]  }
 0x2c0   :  { %v2120_v20 = vmul.f32 0.5, %v2116_v23  ;;  %v10141_v3 = vld [vmem:[#allocation15 + $0x40] ss:$16 sps:$4 sm:$0xff]   ;;  %v10149_v44 = vld [vmem:[#allocation15 + $0x64] ss:$16 sps:$4 sm:$0xff]  }
 0x2c1   :  { %8997 = vtanh.f32 %v2119_v36  ;;  %v10151_v6 = vld [vmem:[#allocation15 + $0x6c] ss:$16 sps:$4 sm:$0xff]   ;;  %v10153_v23 = vld [vmem:[#allocation15 + $0x60] ss:$16 sps:$4 sm:$0xff]   ;;  %v10155_v28 = vld [vmem:[#allocation15 + $0x68] ss:$16 sps:$4 sm:$0xff]  }
 0x2c2   :  { %8999 = vtanh.f32 %v2120_v20  ;;  %v10163_v2 = vld [vmem:[#allocation15 + $0x8c] ss:$16 sps:$4 sm:$0xff]   ;;  %v10165_v10 = vld [vmem:[#allocation15 + $0x80] ss:$16 sps:$4 sm:$0xff]   ;;  %v10167_v36 = vld [vmem:[#allocation15 + $0x88] ss:$16 sps:$4 sm:$0xff]  }
 0x2c3   :  { %9001 = vtanh.f32 %v2118_v31  ;;  %v10161_v31 = vld [vmem:[#allocation15 + $0x84] ss:$16 sps:$4 sm:$0xff]   ;;  %v10173_v24 = vld [vmem:[#allocation15 + $0xa0] ss:$16 sps:$4 sm:$0xff]   ;;  %v10177_v20 = vld [vmem:[#allocation15 + $0xa8] ss:$16 sps:$4 sm:$0xff]  }
 0x2c4   :  { %9003 = vtanh.f32 %v2121_v35  ;;  %v10175_v15 = vld [vmem:[#allocation15 + $0xa4] ss:$16 sps:$4 sm:$0xff]   ;;  %v10179_v35 = vld [vmem:[#allocation15 + $0xac] ss:$16 sps:$4 sm:$0xff]  }
 0x2cb   :  { %v8998_v32 = vpop.eup %8997 }
 0x2cc   :  { %v2125_v33 = vmul.f32 0.5, %v8998_v32  ;;  %v9000_v30 = vpop.eup %8999  ;;  %v10181_v32 = vld [vmem:[#allocation15 + $0xc4] ss:$16 sps:$4 sm:$0xff]  }
 0x2cd   :  { %v2126_v42 = vmul.f32 0.5, %v9000_v30  ;;  %v9002_v21 = vpop.eup %9001  ;;  %v10189_v30 = vld [vmem:[#allocation15 + $0xc0] ss:$16 sps:$4 sm:$0xff]  }
 0x2ce   :  { %v2128_v29 = vadd.f32 0.5, %v2125_v33  ;;  %v9004_v49 = vpop.eup %9003  ;;  %v10184_v33 = vld [vmem:[#allocation15 + $0xcc] ss:$16 sps:$4 sm:$0xff]  }
 0x2cf   :  { %v2129_v43 = vadd.f32 0.5, %v2126_v42  ;;  %v2127_v50 = vmul.f32 0.5, %v9004_v49  ;;  %v10195_v42 = vld [vmem:[#allocation15 + $0xe4] ss:$16 sps:$4 sm:$0xff]  }
 0x2d0   :  { %v2133_v12 = vmul.f32 %v9002_v21, %v2128_v29  ;;  %v10191_v29 = vld [vmem:[#allocation15 + $0xc8] ss:$16 sps:$4 sm:$0xff]   ;;  %v10197_v21 = vld [vmem:[#allocation15 + $0xec] ss:$16 sps:$4 sm:$0xff]  }
 0x2d1   :  { %v2132_v38 = vmul.f32 %v2129_v43, %v10048_v9  ;;  %v2130_v51 = vadd.f32 0.5, %v2127_v50  ;;  %v10113_v9 = vld [vmem:[#allocation15 + $0x4] ss:$16 sps:$4 sm:$0xff]   ;;  %v10201_v43 = vld [vmem:[#allocation15 + $0xe0] ss:$16 sps:$4 sm:$0xff]  }
 0x2d2   :  { %2637 = vmatprep.subr.bf16.mxu0 %v10113_v9 }
 0x2d3   :  { %v10104_v48 = vadd.f32 %v2133_v12, %v2132_v38  ;;  %v10203_v12 = vld [vmem:[#allocation15 + $0xe8] ss:$16 sps:$4 sm:$0xff]  }
 0x2d5   :  { %9005 = vtanh.f32 %v10104_v48 }
 0x2df   :  { %v9006_v52 = vpop.eup %9005 }
 0x2e0   :  { %v10107_v53 = vmul.f32 %v9006_v52, %v2130_v51  ;;  %v12450_v51 = vsel %vm9766_vm1, %v9874_v17, %v9720_v45 }
 0x2e2   :  { %12449 = vst [vmem:[#allocation26_spill] sm:$0xff] %v10107_v53  ;;  %v2142_v54 = vpack.c.bf16 %v10107_v53, %v10107_v53 }
 0x2e4   :  { %2368 = vmatmul.mubr.bf16.vlgmr.msra.gmra.mrb[32].mxu0 %v2142_v54  ;;  %2409 = vmatmul.mubr.bf16.vlgmr.msra.gmra.mrb[32].mxu1 %v2142_v54 }
 0x2e5   :  { %2669 = vmatprep.mubr.bf16.mxu0 %v12433_v16  ;;  %2710 = vmatprep.mubr.bf16.mxu1 %v12433_v16 }
 0x2e6   :  { %2638 = vmatpush1.bf16.msra.mxu0 %v10117_v57  ;;  %2679 = vmatpush1.bf16.msra.mxu1 %v10119_v58 }
 0x2e7   :  { %2639 = vmatprep.subr.bf16.mxu0 %v10125_v59  ;;  %2680 = vmatprep.subr.bf16.mxu1 %v10127_v60 }
 0x2ea   :  { %2640 = vmatpush1.bf16.msra.mxu0 %v10129_v61  ;;  %2681 = vmatpush1.bf16.msra.mxu1 %v10131_v62 }
 0x2eb   :  { %2641 = vmatprep.subr.bf16.mxu0 %v10137_v0  ;;  %2682 = vmatprep.subr.bf16.mxu1 %v10139_v1 }
 0x2ee   :  { %2642 = vmatpush1.bf16.msra.mxu0 %v10141_v3  ;;  %2683 = vmatpush1.bf16.msra.mxu1 %v10143_v5 }
 0x2ef   :  { %2643 = vmatprep.subr.bf16.mxu0 %v10149_v44  ;;  %2684 = vmatprep.subr.bf16.mxu1 %v10151_v6 }
 0x2f2   :  { %2644 = vmatpush1.bf16.msra.mxu0 %v10153_v23  ;;  %2685 = vmatpush1.bf16.msra.mxu1 %v10155_v28 }
 0x2f3   :  { %2645 = vmatprep.subr.bf16.mxu0 %v10161_v31  ;;  %2686 = vmatprep.subr.bf16.mxu1 %v10163_v2 }
 0x2f6   :  { %2646 = vmatpush1.bf16.msra.mxu0 %v10165_v10  ;;  %2687 = vmatpush1.bf16.msra.mxu1 %v10167_v36 }
 0x2f7   :  { %2647 = vmatprep.subr.bf16.mxu0 %v10175_v15  ;;  %2688 = vmatprep.subr.bf16.mxu1 %v10179_v35 }
 0x2fa   :  { %2648 = vmatpush1.bf16.msra.mxu0 %v10173_v24  ;;  %2689 = vmatpush1.bf16.msra.mxu1 %v10177_v20 }
 0x2fb   :  { %2649 = vmatprep.subr.bf16.mxu0 %v10181_v32  ;;  %2690 = vmatprep.subr.bf16.mxu1 %v10184_v33 }
 0x2fe   :  { %2650 = vmatpush1.bf16.msra.mxu0 %v10189_v30  ;;  %2691 = vmatpush1.bf16.msra.mxu1 %v10191_v29 }
 0x2ff   :  { %2651 = vmatprep.subr.bf16.mxu0 %v10195_v42  ;;  %2692 = vmatprep.subr.bf16.mxu1 %v10197_v21 }
 0x302   :  { %2652 = vmatpush1.bf16.msra.mxu0 %v10201_v43  ;;  %2693 = vmatpush1.bf16.msra.mxu1 %v10203_v12 }
 0x303   :  { %2939 = vmatprep.subr.bf16.mxu0 %v10113_v9  ;;  %2980 = vmatprep.subr.bf16.mxu1 %v10115_v56 }
 0x3b7   :  { %v2369_v38 = vpop.f32.mrb[32].mxu0  ;;  %v2410_v49 = vpop.f32.mrb[32].mxu1 }
 0x3b8   :  { %v2417_v50 = vadd.f32 %v2369_v38, %v9902_v18  ;;  %v2419_v52 = vadd.f32 %v2410_v49, %v12450_v51  ;;  %v2371_v54 = vpop.f32.mrb[33].mxu0  ;;  %v2412_v4 = vpop.f32.mrb[33].mxu1 }
 0x3b9   :  { %v2418_v53 = vadd.f32 %v2371_v54, %v12451_v19  ;;  %v2420_v18 = vadd.f32 %v2412_v4, %v12452_v27  ;;  %v2373_v38 = vpop.f32.mrb[34].mxu0  ;;  %v2414_v41 = vpop.f32.mrb[34].mxu1 }
 0x3ba   :  { %v2421_v26 = vmul.f32 0.5, %v2417_v50  ;;  %v2374_v40 = vpop.f32.mrb[35].mxu0  ;;  %v2415_v47 = vpop.f32.mrb[35].mxu1  ;;  %v2423_v51 = vmul.f32 0.5, %v2419_v52  ;;  %v12455_v52 = vsel %vm9774_vm2, %v9867_v25, %v9735_v39  ;;  %v12456_v38 = vld [vmem:[#allocation67_spill] sm:$0xff] }
 0x3bb   :  { %v2422_v49 = vmul.f32 0.5, %v2418_v53 }
 0x3bc   :  { %9007 = vtanh.f32 %v2421_v26 }
 0x3bd   :  { %9009 = vtanh.f32 %v2422_v49  ;;  %v12457_v49 = vld [vmem:[#allocation47_spill] sm:$0xff] }
 0x3be   :  { %9011 = vtanh.f32 %v2420_v18 }
 0x3bf   :  { %9013 = vtanh.f32 %v2423_v51  ;;  %v12458_v51 = vsel %vm9778_vm3, %v12456_v38, %v12457_v49 }
 0x3c6   :  { %v9008_v37 = vpop.eup %9007 }
 0x3c7   :  { %v2427_v17 = vmul.f32 0.5, %v9008_v37  ;;  %v9010_v13 = vpop.eup %9009 }
 0x3c8   :  { %v2428_v54 = vmul.f32 0.5, %v9010_v13  ;;  %v9012_v63 = vpop.eup %9011  ;;  %v12454_v13 = vsel %vm9766_vm1, %v9864_v11, %v9732_v34 }
 0x3c9   :  { %v2430_v19 = vadd.f32 0.5, %v2427_v17  ;;  %v9014_v40 = vpop.eup %9013 }
 0x3ca   :  { %v2431_v45 = vadd.f32 0.5, %v2428_v54  ;;  %v2429_v47 = vmul.f32 0.5, %v9014_v40 }
 0x3cb   :  { %v2435_v55 = vmul.f32 %v9012_v63, %v2430_v19 }
 0x3cc   :  { %v2434_v27 = vmul.f32 %v2431_v45, %v10104_v48  ;;  %v2432_v26 = vadd.f32 0.5, %v2429_v47 }
 0x3ce   :  { %v10228_v41 = vadd.f32 %v2435_v55, %v2434_v27 }
 0x3d0   :  { %9015 = vtanh.f32 %v10228_v41 }
 0x3da   :  { %v9016_v4 = vpop.eup %9015 }
 0x3db   :  { %v10231_v53 = vmul.f32 %v9016_v4, %v2432_v26 }
 0x3dd   :  { %12453 = vst [vmem:[#allocation29_spill] sm:$0xff] %v10231_v53  ;;  %v2444_v37 = vpack.c.bf16 %v10231_v53, %v10231_v53 }
 0x3df   :  { %2670 = vmatmul.mubr.bf16.vlgmr.msra.gmra.mrb[36].mxu0 %v2444_v37  ;;  %2711 = vmatmul.mubr.bf16.vlgmr.msra.gmra.mrb[36].mxu1 %v2444_v37 }
 0x3e0   :  { %2940 = vmatpush1.bf16.msra.mxu0 %v10117_v57  ;;  %2981 = vmatpush1.bf16.msra.mxu1 %v10119_v58 }
 0x3e1   :  { %2941 = vmatprep.subr.bf16.mxu0 %v10125_v59  ;;  %2982 = vmatprep.subr.bf16.mxu1 %v10127_v60 }
 0x3e2   :  { %2971 = vmatprep.mubr.bf16.mxu0 %v12433_v16  ;;  %3012 = vmatprep.mubr.bf16.mxu1 %v12433_v16 }
 0x3e4   :  { %2942 = vmatpush1.bf16.msra.mxu0 %v10129_v61  ;;  %2983 = vmatpush1.bf16.msra.mxu1 %v10131_v62 }
 0x3e5   :  { %2943 = vmatprep.subr.bf16.mxu0 %v10137_v0  ;;  %2984 = vmatprep.subr.bf16.mxu1 %v10139_v1 }
 0x3e8   :  { %2944 = vmatpush1.bf16.msra.mxu0 %v10141_v3  ;;  %2985 = vmatpush1.bf16.msra.mxu1 %v10143_v5 }
 0x3e9   :  { %2945 = vmatprep.subr.bf16.mxu0 %v10149_v44  ;;  %2986 = vmatprep.subr.bf16.mxu1 %v10151_v6 }
 0x3ec   :  { %2946 = vmatpush1.bf16.msra.mxu0 %v10153_v23  ;;  %2987 = vmatpush1.bf16.msra.mxu1 %v10155_v28 }
 0x3ed   :  { %2947 = vmatprep.subr.bf16.mxu0 %v10161_v31  ;;  %2988 = vmatprep.subr.bf16.mxu1 %v10163_v2 }
 0x3f0   :  { %2948 = vmatpush1.bf16.msra.mxu0 %v10165_v10  ;;  %2989 = vmatpush1.bf16.msra.mxu1 %v10167_v36 }
 0x3f1   :  { %2949 = vmatprep.subr.bf16.mxu0 %v10175_v15  ;;  %2990 = vmatprep.subr.bf16.mxu1 %v10179_v35 }
 0x3f4   :  { %2950 = vmatpush1.bf16.msra.mxu0 %v10173_v24  ;;  %2991 = vmatpush1.bf16.msra.mxu1 %v10177_v20 }
 0x3f5   :  { %2951 = vmatprep.subr.bf16.mxu0 %v10181_v32  ;;  %2992 = vmatprep.subr.bf16.mxu1 %v10184_v33 }
 0x3f8   :  { %2952 = vmatpush1.bf16.msra.mxu0 %v10189_v30  ;;  %2993 = vmatpush1.bf16.msra.mxu1 %v10191_v29 }
 0x3f9   :  { %2953 = vmatprep.subr.bf16.mxu0 %v10195_v42  ;;  %2994 = vmatprep.subr.bf16.mxu1 %v10197_v21 }
 0x3fc   :  { %2954 = vmatpush1.bf16.msra.mxu0 %v10201_v43  ;;  %2995 = vmatpush1.bf16.msra.mxu1 %v10203_v12 }
 0x3fd   :  { %3241 = vmatprep.subr.bf16.mxu0 %v10113_v9  ;;  %3282 = vmatprep.subr.bf16.mxu1 %v10115_v56 }
 0x4b2   :  { %v2671_v45 = vpop.f32.mrb[36].mxu0  ;;  %v2712_v63 = vpop.f32.mrb[36].mxu1 }
 0x4b3   :  { %v2719_v17 = vadd.f32 %v2671_v45, %v9879_v7  ;;  %v2721_v55 = vadd.f32 %v2712_v63, %v12454_v13  ;;  %v2673_v48 = vpop.f32.mrb[37].mxu0  ;;  %v2714_v50 = vpop.f32.mrb[37].mxu1 }
 0x4b4   :  { %v2720_v18 = vadd.f32 %v2673_v48, %v12455_v52  ;;  %v2722_v7 = vadd.f32 %v2714_v50, %v12458_v51  ;;  %v2675_v19 = vpop.f32.mrb[38].mxu0  ;;  %v2716_v54 = vpop.f32.mrb[38].mxu1 }
 0x4b5   :  { %v2723_v27 = vmul.f32 0.5, %v2719_v17  ;;  %v2676_v40 = vpop.f32.mrb[39].mxu0  ;;  %v2717_v47 = vpop.f32.mrb[39].mxu1  ;;  %v2725_v4 = vmul.f32 0.5, %v2721_v55 }
 0x4b6   :  { %v2724_v26 = vmul.f32 0.5, %v2720_v18  ;;  %v12461_v40 = vld [vmem:[#allocation58_spill] sm:$0xff]  ;;  %v12462_v47 = vld [vmem:[#allocation49_spill] sm:$0xff] }
 0x4b7   :  { %9017 = vtanh.f32 %v2723_v27 }
 0x4b8   :  { %9019 = vtanh.f32 %v2724_v26  ;;  %v12463_v26 = vsel %vm9766_vm1, %v12461_v40, %v12462_v47 }
 0x4b9   :  { %9021 = vtanh.f32 %v2722_v7 }
 0x4ba   :  { %9023 = vtanh.f32 %v2725_v4 }
 0x4c1   :  { %v9018_v37 = vpop.eup %9017 }
 0x4c2   :  { %v2729_v45 = vmul.f32 0.5, %v9018_v37  ;;  %v9020_v63 = vpop.eup %9019 }
 0x4c3   :  { %v2730_v48 = vmul.f32 0.5, %v9020_v63  ;;  %v9022_v52 = vpop.eup %9021  ;;  %v12464_v63 = vld [vmem:[#allocation60_spill] sm:$0xff] }
 0x4c4   :  { %v2732_v13 = vadd.f32 0.5, %v2729_v45  ;;  %v9024_v17 = vpop.eup %9023 }
 0x4c5   :  { %v2733_v53 = vadd.f32 0.5, %v2730_v48  ;;  %v2731_v18 = vmul.f32 0.5, %v9024_v17 }
 0x4c6   :  { %v2737_v8 = vmul.f32 %v9022_v52, %v2732_v13  ;;  %v12465_v13 = vld [vmem:[#allocation50_spill] sm:$0xff]  ;;  %v12468_v52 = vld [vmem:[#allocation51_spill] sm:$0xff] }
 0x4c7   :  { %v2736_v50 = vmul.f32 %v2733_v53, %v10228_v41  ;;  %v2734_v19 = vadd.f32 0.5, %v2731_v18  ;;  %v12460_v53 = vld [vmem:[#allocation62_spill] sm:$0xff]  ;;  %v12466_v48 = vsel %vm9774_vm2, %v12464_v63, %v12465_v13 }
 0x4c9   :  { %v10286_v51 = vadd.f32 %v2737_v8, %v2736_v50 }
 0x4cb   :  { %9025 = vtanh.f32 %v10286_v51 }
 0x4d5   :  { %v9026_v7 = vpop.eup %9025 }
 0x4d6   :  { %v10289_v55 = vmul.f32 %v9026_v7, %v2734_v19 }
 0x4d8   :  { %12459 = vst [vmem:[#allocation27_spill] sm:$0xff] %v10289_v55  ;;  %v2746_v54 = vpack.c.bf16 %v10289_v55, %v10289_v55 }
 0x4da   :  { %2972 = vmatmul.mubr.bf16.vlgmr.msra.gmra.mrb[40].mxu0 %v2746_v54  ;;  %3013 = vmatmul.mubr.bf16.vlgmr.msra.gmra.mrb[40].mxu1 %v2746_v54 }
 0x4db   :  { %3242 = vmatpush1.bf16.msra.mxu0 %v10117_v57  ;;  %3283 = vmatpush1.bf16.msra.mxu1 %v10119_v58 }
 0x4dc   :  { %3243 = vmatprep.subr.bf16.mxu0 %v10125_v59  ;;  %3284 = vmatprep.subr.bf16.mxu1 %v10127_v60 }
 0x4dd   :  { %3273 = vmatprep.mubr.bf16.mxu0 %v12433_v16  ;;  %3314 = vmatprep.mubr.bf16.mxu1 %v12433_v16 }
 0x4df   :  { %3244 = vmatpush1.bf16.msra.mxu0 %v10129_v61  ;;  %3285 = vmatpush1.bf16.msra.mxu1 %v10131_v62 }
 0x4e0   :  { %3245 = vmatprep.subr.bf16.mxu0 %v10137_v0  ;;  %3286 = vmatprep.subr.bf16.mxu1 %v10139_v1 }
 0x4e3   :  { %3246 = vmatpush1.bf16.msra.mxu0 %v10141_v3  ;;  %3287 = vmatpush1.bf16.msra.mxu1 %v10143_v5 }
 0x4e4   :  { %3247 = vmatprep.subr.bf16.mxu0 %v10149_v44  ;;  %3288 = vmatprep.subr.bf16.mxu1 %v10151_v6 }
 0x4e7   :  { %3248 = vmatpush1.bf16.msra.mxu0 %v10153_v23  ;;  %3289 = vmatpush1.bf16.msra.mxu1 %v10155_v28 }
 0x4e8   :  { %3249 = vmatprep.subr.bf16.mxu0 %v10161_v31  ;;  %3290 = vmatprep.subr.bf16.mxu1 %v10163_v2 }
 0x4eb   :  { %3250 = vmatpush1.bf16.msra.mxu0 %v10165_v10  ;;  %3291 = vmatpush1.bf16.msra.mxu1 %v10167_v36 }
 0x4ec   :  { %3251 = vmatprep.subr.bf16.mxu0 %v10175_v15  ;;  %3292 = vmatprep.subr.bf16.mxu1 %v10179_v35 }
 0x4ef   :  { %3252 = vmatpush1.bf16.msra.mxu0 %v10173_v24  ;;  %3293 = vmatpush1.bf16.msra.mxu1 %v10177_v20 }
 0x4f0   :  { %3253 = vmatprep.subr.bf16.mxu0 %v10181_v32  ;;  %3294 = vmatprep.subr.bf16.mxu1 %v10184_v33 }
 0x4f3   :  { %3254 = vmatpush1.bf16.msra.mxu0 %v10189_v30  ;;  %3295 = vmatpush1.bf16.msra.mxu1 %v10191_v29 }
 0x4f4   :  { %3255 = vmatprep.subr.bf16.mxu0 %v10195_v42  ;;  %3296 = vmatprep.subr.bf16.mxu1 %v10197_v21 }
 0x4f7   :  { %3256 = vmatpush1.bf16.msra.mxu0 %v10201_v43  ;;  %3297 = vmatpush1.bf16.msra.mxu1 %v10203_v12 }
 0x4f8   :  { %3543 = vmatprep.subr.bf16.mxu0 %v10113_v9  ;;  %3584 = vmatprep.subr.bf16.mxu1 %v10115_v56  ;;  %v12467_v56 = vld [vmem:[#allocation61_spill] sm:$0xff] }
 0x4f9   :  { %v12469_v50 = vsel %vm9778_vm3, %v12467_v56, %v12468_v52 }
 0x5ad   :  { %v2973_v8 = vpop.f32.mrb[40].mxu0  ;;  %v3014_v41 = vpop.f32.mrb[40].mxu1 }
 0x5ae   :  { %v3021_v27 = vadd.f32 %v2973_v8, %v12460_v53  ;;  %v3023_v4 = vadd.f32 %v3014_v41, %v12463_v26  ;;  %v2975_v37 = vpop.f32.mrb[41].mxu0  ;;  %v3016_v45 = vpop.f32.mrb[41].mxu1 }
 0x5af   :  { %v3022_v9 = vadd.f32 %v2975_v37, %v12466_v48  ;;  %v3024_v17 = vadd.f32 %v3016_v45, %v12469_v50  ;;  %v2977_v18 = vpop.f32.mrb[42].mxu0  ;;  %v3018_v19 = vpop.f32.mrb[42].mxu1 }
 0x5b0   :  { %v3025_v7 = vmul.f32 0.5, %v3021_v27  ;;  %v2978_v54 = vpop.f32.mrb[43].mxu0  ;;  %v3019_v8 = vpop.f32.mrb[43].mxu1  ;;  %v3027_v53 = vmul.f32 0.5, %v3023_v4 }
 0x5b1   :  { %v3026_v41 = vmul.f32 0.5, %v3022_v9 }
 0x5b2   :  { %9027 = vtanh.f32 %v3025_v7 }
 0x5b3   :  { %9029 = vtanh.f32 %v3026_v41 }
 0x5b4   :  { %9031 = vtanh.f32 %v3024_v17 }
 0x5b5   :  { %9033 = vtanh.f32 %v3027_v53 }
 0x5bc   :  { %v9028_v26 = vpop.eup %9027 }
 0x5bd   :  { %v3031_v55 = vmul.f32 0.5, %v9028_v26  ;;  %v9030_v38 = vpop.eup %9029  ;;  %v10409_v26 = vld [vmem:[#allocation15 + $0x4] ss:$16 sps:$4 sm:$0xff]  }
 0x5be   :  { %v3032_v48 = vmul.f32 0.5, %v9030_v38  ;;  %v9032_v49 = vpop.eup %9031 }
 0x5bf   :  { %v3034_v37 = vadd.f32 0.5, %v3031_v55  ;;  %v9034_v27 = vpop.eup %9033 }
 0x5c0   :  { %v3035_v25 = vadd.f32 0.5, %v3032_v48  ;;  %v3033_v9 = vmul.f32 0.5, %v9034_v27  ;;  %v10413_v48 = vld [vmem:[#allocation15] ss:$16 sps:$4 sm:$0xff]   ;;  %v10423_v27 = vld [vmem:[#allocation15 + $0x2c] ss:$16 sps:$4 sm:$0xff]  }
 0x5c1   :  { %v3039_v39 = vmul.f32 %v9032_v49, %v3034_v37  ;;  %v10411_v37 = vld [vmem:[#allocation15 + $0xc] ss:$16 sps:$4 sm:$0xff]  }
 0x5c2   :  { %v3038_v45 = vmul.f32 %v3035_v25, %v10286_v51  ;;  %v3036_v18 = vadd.f32 0.5, %v3033_v9  ;;  %v10425_v9 = vld [vmem:[#allocation15 + $0x20] ss:$16 sps:$4 sm:$0xff]  }
 0x5c4   :  { %v10344_v50 = vadd.f32 %v3039_v39, %v3038_v45  ;;  %v10415_v45 = vld [vmem:[#allocation15 + $0x8] ss:$16 sps:$4 sm:$0xff]  }
 0x5c6   :  { %9035 = vtanh.f32 %v10344_v50 }
 0x5d0   :  { %v9036_v17 = vpop.eup %9035 }
 0x5d1   :  { %v10347_v4 = vmul.f32 %v9036_v17, %v3036_v18  ;;  %v10427_v18 = vld [vmem:[#allocation15 + $0x28] ss:$16 sps:$4 sm:$0xff]   ;;  %v10433_v17 = vld [vmem:[#allocation15 + $0x44] ss:$16 sps:$4 sm:$0xff]  }
 0x5d3   :  { %12470 = vst [vmem:[#allocation31_spill] sm:$0xff] %v10347_v4  ;;  %v3048_v55 = vpack.c.bf16 %v10347_v4, %v10347_v4 }
 0x5d5   :  { %3274 = vmatmul.mubr.bf16.vlgmr.msra.gmra.mrb[44].mxu0 %v3048_v55  ;;  %3315 = vmatmul.mubr.bf16.vlgmr.msra.gmra.mrb[44].mxu1 %v3048_v55  ;;  %v10435_v55 = vld [vmem:[#allocation15 + $0x4c] ss:$16 sps:$4 sm:$0xff]  }
 0x5d6   :  { %3544 = vmatpush1.bf16.msra.mxu0 %v10117_v57  ;;  %3585 = vmatpush1.bf16.msra.mxu1 %v10119_v58  ;;  %v12471_v57 = vld [vmem:[#allocation59_spill] sm:$0xff] }
 0x5d7   :  { %3545 = vmatprep.subr.bf16.mxu0 %v10125_v59  ;;  %3586 = vmatprep.subr.bf16.mxu1 %v10127_v60  ;;  %v12472_v59 = vld [vmem:[#allocation55_spill] sm:$0xff]  ;;  %v12473_v60 = vld [vmem:[#allocation52_spill] sm:$0xff] }
 0x5d8   :  { %3575 = vmatprep.mubr.bf16.mxu0 %v12433_v16  ;;  %3616 = vmatprep.mubr.bf16.mxu1 %v12433_v16 }
 0x5da   :  { %3546 = vmatpush1.bf16.msra.mxu0 %v10129_v61  ;;  %3587 = vmatpush1.bf16.msra.mxu1 %v10131_v62  ;;  %v12474_v61 = vsel %vm9766_vm1, %v12472_v59, %v12473_v60 }
 0x5db   :  { %3547 = vmatprep.subr.bf16.mxu0 %v10137_v0  ;;  %3588 = vmatprep.subr.bf16.mxu1 %v10139_v1 }
 0x5de   :  { %3548 = vmatpush1.bf16.msra.mxu0 %v10141_v3  ;;  %3589 = vmatpush1.bf16.msra.mxu1 %v10143_v5  ;;  %v12475_v3 = vld [vmem:[#allocation56_spill] sm:$0xff]  ;;  %v12476_v5 = vld [vmem:[#allocation53_spill] sm:$0xff] }
 0x5df   :  { %3549 = vmatprep.subr.bf16.mxu0 %v10149_v44  ;;  %3590 = vmatprep.subr.bf16.mxu1 %v10151_v6  ;;  %v12477_v44 = vsel %vm9774_vm2, %v12475_v3, %v12476_v5 }
 0x5e2   :  { %3550 = vmatpush1.bf16.msra.mxu0 %v10153_v23  ;;  %3591 = vmatpush1.bf16.msra.mxu1 %v10155_v28  ;;  %v12478_v23 = vld [vmem:[#allocation57_spill] sm:$0xff]  ;;  %v12479_v28 = vld [vmem:[#allocation54_spill] sm:$0xff] }
 0x5e3   :  { %3551 = vmatprep.subr.bf16.mxu0 %v10161_v31  ;;  %3592 = vmatprep.subr.bf16.mxu1 %v10163_v2  ;;  %v12480_v31 = vsel %vm9778_vm3, %v12478_v23, %v12479_v28 }
 0x5e6   :  { %3552 = vmatpush1.bf16.msra.mxu0 %v10165_v10  ;;  %3593 = vmatpush1.bf16.msra.mxu1 %v10167_v36 }
 0x5e7   :  { %3553 = vmatprep.subr.bf16.mxu0 %v10175_v15  ;;  %3594 = vmatprep.subr.bf16.mxu1 %v10179_v35 }
 0x5ea   :  { %3554 = vmatpush1.bf16.msra.mxu0 %v10173_v24  ;;  %3595 = vmatpush1.bf16.msra.mxu1 %v10177_v20 }
 0x5eb   :  { %3555 = vmatprep.subr.bf16.mxu0 %v10181_v32  ;;  %3596 = vmatprep.subr.bf16.mxu1 %v10184_v33 }
 0x5ee   :  { %3556 = vmatpush1.bf16.msra.mxu0 %v10189_v30  ;;  %3597 = vmatpush1.bf16.msra.mxu1 %v10191_v29 }
 0x5ef   :  { %3557 = vmatprep.subr.bf16.mxu0 %v10195_v42  ;;  %3598 = vmatprep.subr.bf16.mxu1 %v10197_v21 }
 0x5f2   :  { %3558 = vmatpush1.bf16.msra.mxu0 %v10201_v43  ;;  %3599 = vmatpush1.bf16.msra.mxu1 %v10203_v12 }
 0x5f3   :  { %3845 = vmatprep.subr.bf16.mxu0 %v10409_v26  ;;  %3886 = vmatprep.subr.bf16.mxu1 %v10411_v37 }
 0x6a8   :  { %v3275_v39 = vpop.f32.mrb[44].mxu0  ;;  %v3316_v25 = vpop.f32.mrb[44].mxu1 }
 0x6a9   :  { %v3323_v58 = vadd.f32 %v3275_v39, %v12471_v57  ;;  %v3325_v62 = vadd.f32 %v3316_v25, %v12474_v61  ;;  %v3277_v0 = vpop.f32.mrb[45].mxu0  ;;  %v3318_v1 = vpop.f32.mrb[45].mxu1  ;;  %v10437_v39 = vld [vmem:[#allocation15 + $0x40] ss:$16 sps:$4 sm:$0xff]   ;;  %v10439_v25 = vld [vmem:[#allocation15 + $0x48] ss:$16 sps:$4 sm:$0xff]  }
 0x6aa   :  { %v3324_v6 = vadd.f32 %v3277_v0, %v12477_v44  ;;  %v3326_v2 = vadd.f32 %v3318_v1, %v12480_v31  ;;  %v3279_v10 = vpop.f32.mrb[46].mxu0  ;;  %v3320_v36 = vpop.f32.mrb[46].mxu1  ;;  %v10445_v57 = vld [vmem:[#allocation15 + $0x64] ss:$16 sps:$4 sm:$0xff]   ;;  %v10449_v61 = vld [vmem:[#allocation15 + $0x60] ss:$16 sps:$4 sm:$0xff]  }
 0x6ab   :  { %v3327_v24 = vmul.f32 0.5, %v3323_v58  ;;  %v3280_v15 = vpop.f32.mrb[47].mxu0  ;;  %v3321_v20 = vpop.f32.mrb[47].mxu1  ;;  %v3329_v32 = vmul.f32 0.5, %v3325_v62  ;;  %v10447_v58 = vld [vmem:[#allocation15 + $0x6c] ss:$16 sps:$4 sm:$0xff]  }
 0x6ac   :  { %v3328_v35 = vmul.f32 0.5, %v3324_v6  ;;  %v10451_v62 = vld [vmem:[#allocation15 + $0x68] ss:$16 sps:$4 sm:$0xff]   ;;  %v10457_v0 = vld [vmem:[#allocation15 + $0x84] ss:$16 sps:$4 sm:$0xff]  }
 0x6ad   :  { %9037 = vtanh.f32 %v3327_v24  ;;  %v10459_v1 = vld [vmem:[#allocation15 + $0x8c] ss:$16 sps:$4 sm:$0xff]   ;;  %v10461_v44 = vld [vmem:[#allocation15 + $0x80] ss:$16 sps:$4 sm:$0xff]   ;;  %v10463_v6 = vld [vmem:[#allocation15 + $0x88] ss:$16 sps:$4 sm:$0xff]  }
 0x6ae   :  { %9039 = vtanh.f32 %v3328_v35  ;;  %v10469_v31 = vld [vmem:[#allocation15 + $0xa0] ss:$16 sps:$4 sm:$0xff]   ;;  %v10473_v10 = vld [vmem:[#allocation15 + $0xa8] ss:$16 sps:$4 sm:$0xff]   ;;  %v10475_v36 = vld [vmem:[#allocation15 + $0xac] ss:$16 sps:$4 sm:$0xff]  }
 0x6af   :  { %9041 = vtanh.f32 %v3326_v2  ;;  %v10471_v2 = vld [vmem:[#allocation15 + $0xa4] ss:$16 sps:$4 sm:$0xff]   ;;  %v10480_v15 = vld [vmem:[#allocation15 + $0xcc] ss:$16 sps:$4 sm:$0xff]   ;;  %v10485_v20 = vld [vmem:[#allocation15 + $0xc0] ss:$16 sps:$4 sm:$0xff]  }
 0x6b0   :  { %9043 = vtanh.f32 %v3329_v32  ;;  %v10477_v24 = vld [vmem:[#allocation15 + $0xc4] ss:$16 sps:$4 sm:$0xff]   ;;  %v10487_v35 = vld [vmem:[#allocation15 + $0xc8] ss:$16 sps:$4 sm:$0xff]  }
 0x6b1   :  { %v10491_v32 = vld [vmem:[#allocation15 + $0xe4] ss:$16 sps:$4 sm:$0xff]  }
 0x6b7   :  { %v9038_v33 = vpop.eup %9037 }
 0x6b8   :  { %v3333_v30 = vmul.f32 0.5, %v9038_v33  ;;  %v9040_v29 = vpop.eup %9039  ;;  %v10493_v33 = vld [vmem:[#allocation15 + $0xec] ss:$16 sps:$4 sm:$0xff]  }
 0x6b9   :  { %v3334_v21 = vmul.f32 0.5, %v9040_v29  ;;  %v9042_v43 = vpop.eup %9041  ;;  %v10499_v29 = vld [vmem:[#allocation15 + $0xe8] ss:$16 sps:$4 sm:$0xff]  }
 0x6ba   :  { %v3336_v42 = vadd.f32 0.5, %v3333_v30  ;;  %v9044_v19 = vpop.eup %9043  ;;  %v10497_v30 = vld [vmem:[#allocation15 + $0xe0] ss:$16 sps:$4 sm:$0xff]  }
 0x6bb   :  { %v3337_v12 = vadd.f32 0.5, %v3334_v21  ;;  %v3335_v7 = vmul.f32 0.5, %v9044_v19 }
 0x6bc   :  { %v3341_v38 = vmul.f32 %v9042_v43, %v3336_v42  ;;  %v12481_v43 = vld [vmem:[#allocation63_spill] sm:$0xff] }
 0x6bd   :  { %v3340_v49 = vmul.f32 %v3337_v12, %v10344_v50  ;;  %v3338_v54 = vadd.f32 0.5, %v3335_v7  ;;  %v10421_v50 = vld [vmem:[#allocation15 + $0x24] ss:$16 sps:$4 sm:$0xff]  }
 0x6bf   :  { %v10400_v51 = vadd.f32 %v3341_v38, %v3340_v49  ;;  %v12482_v38 = vsel %vm9766_vm1, %v12473_v60, %v12472_v59 }
 0x6c1   :  { %9045 = vtanh.f32 %v10400_v51 }
 0x6cb   :  { %v9046_v8 = vpop.eup %9045 }
 0x6cc   :  { %v10403_v41 = vmul.f32 %v9046_v8, %v3338_v54  ;;  %v12483_v54 = vsel %vm9774_vm2, %v12476_v5, %v12475_v3 }
 0x6ce   :  { %v3350_v53 = vpack.c.bf16 %v10403_v41, %v10403_v41 }
 0x6d0   :  { %3576 = vmatmul.mubr.bf16.vlgmr.msra.gmra.mrb[48].mxu0 %v3350_v53  ;;  %3617 = vmatmul.mubr.bf16.vlgmr.msra.gmra.mrb[48].mxu1 %v3350_v53  ;;  %v12484_v53 = vsel %vm9778_vm3, %v12479_v28, %v12478_v23 }
 0x6d1   :  { %3877 = vmatprep.mubr.bf16.mxu0 %v12433_v16  ;;  %3918 = vmatprep.mubr.bf16.mxu1 %v12433_v16 }
 0x6d2   :  { %3846 = vmatpush1.bf16.msra.mxu0 %v10413_v48  ;;  %3887 = vmatpush1.bf16.msra.mxu1 %v10415_v45 }
 0x6d3   :  { %3847 = vmatprep.subr.bf16.mxu0 %v10421_v50  ;;  %3888 = vmatprep.subr.bf16.mxu1 %v10423_v27 }
 0x6d6   :  { %3848 = vmatpush1.bf16.msra.mxu0 %v10425_v9  ;;  %3889 = vmatpush1.bf16.msra.mxu1 %v10427_v18 }
 0x6d7   :  { %3849 = vmatprep.subr.bf16.mxu0 %v10433_v17  ;;  %3890 = vmatprep.subr.bf16.mxu1 %v10435_v55 }
 0x6da   :  { %3850 = vmatpush1.bf16.msra.mxu0 %v10437_v39  ;;  %3891 = vmatpush1.bf16.msra.mxu1 %v10439_v25 }
 0x6db   :  { %3851 = vmatprep.subr.bf16.mxu0 %v10445_v57  ;;  %3892 = vmatprep.subr.bf16.mxu1 %v10447_v58 }
 0x6de   :  { %3852 = vmatpush1.bf16.msra.mxu0 %v10449_v61  ;;  %3893 = vmatpush1.bf16.msra.mxu1 %v10451_v62 }
 0x6df   :  { %3853 = vmatprep.subr.bf16.mxu0 %v10457_v0  ;;  %3894 = vmatprep.subr.bf16.mxu1 %v10459_v1 }
 0x6e2   :  { %3854 = vmatpush1.bf16.msra.mxu0 %v10461_v44  ;;  %3895 = vmatpush1.bf16.msra.mxu1 %v10463_v6 }
 0x6e3   :  { %3855 = vmatprep.subr.bf16.mxu0 %v10471_v2  ;;  %3896 = vmatprep.subr.bf16.mxu1 %v10475_v36 }
 0x6e6   :  { %3856 = vmatpush1.bf16.msra.mxu0 %v10469_v31  ;;  %3897 = vmatpush1.bf16.msra.mxu1 %v10473_v10 }
 0x6e7   :  { %3857 = vmatprep.subr.bf16.mxu0 %v10477_v24  ;;  %3898 = vmatprep.subr.bf16.mxu1 %v10480_v15 }
 0x6ea   :  { %3858 = vmatpush1.bf16.msra.mxu0 %v10485_v20  ;;  %3899 = vmatpush1.bf16.msra.mxu1 %v10487_v35 }
 0x6eb   :  { %3859 = vmatprep.subr.bf16.mxu0 %v10491_v32  ;;  %3900 = vmatprep.subr.bf16.mxu1 %v10493_v33 }
 0x6ee   :  { %3860 = vmatpush1.bf16.msra.mxu0 %v10497_v30  ;;  %3901 = vmatpush1.bf16.msra.mxu1 %v10499_v29 }
 0x6ef   :  { %4147 = vmatprep.subr.bf16.mxu0 %v10409_v26  ;;  %4188 = vmatprep.subr.bf16.mxu1 %v10411_v37 }
 0x7a3   :  { %v3577_v42 = vpop.f32.mrb[48].mxu0  ;;  %v3618_v21 = vpop.f32.mrb[48].mxu1 }
 0x7a4   :  { %v3625_v12 = vadd.f32 %v3577_v42, %v12481_v43  ;;  %v3627_v49 = vadd.f32 %v3618_v21, %v12482_v38  ;;  %v3579_v19 = vpop.f32.mrb[49].mxu0  ;;  %v3620_v7 = vpop.f32.mrb[49].mxu1 }
 0x7a5   :  { %v3626_v8 = vadd.f32 %v3579_v19, %v12483_v54  ;;  %v3628_v42 = vadd.f32 %v3620_v7, %v12484_v53  ;;  %v3581_v43 = vpop.f32.mrb[50].mxu0  ;;  %v3622_v11 = vpop.f32.mrb[50].mxu1 }
 0x7a6   :  { %v3629_v34 = vmul.f32 0.5, %v3625_v12  ;;  %v3582_v4 = vpop.f32.mrb[51].mxu0  ;;  %v3623_v59 = vpop.f32.mrb[51].mxu1  ;;  %v3631_v21 = vmul.f32 0.5, %v3627_v49 }
 0x7a7   :  { %v3630_v60 = vmul.f32 0.5, %v3626_v8  ;;  %v12487_v59 = vsel %vm9766_vm1, %v12462_v47, %v12461_v40 }
 0x7a8   :  { %9047 = vtanh.f32 %v3629_v34 }
 0x7a9   :  { %9049 = vtanh.f32 %v3630_v60 }
 0x7aa   :  { %9051 = vtanh.f32 %v3628_v42 }
 0x7ab   :  { %9053 = vtanh.f32 %v3631_v21 }
 0x7b2   :  { %v9048_v38 = vpop.eup %9047 }
 0x7b3   :  { %v3635_v56 = vmul.f32 0.5, %v9048_v38  ;;  %v9050_v3 = vpop.eup %9049 }
 0x7b4   :  { %v3636_v19 = vmul.f32 0.5, %v9050_v3  ;;  %v9052_v54 = vpop.eup %9051  ;;  %v12488_v3 = vsel %vm9774_vm2, %v12465_v13, %v12464_v63 }
 0x7b5   :  { %v3638_v5 = vadd.f32 0.5, %v3635_v56  ;;  %v9054_v4 = vpop.eup %9053 }
 0x7b6   :  { %v3639_v52 = vadd.f32 0.5, %v3636_v19  ;;  %v3637_v34 = vmul.f32 0.5, %v9054_v4  ;;  %v12489_v19 = vld [vmem:[#allocation51_spill] sm:$0xff] }
 0x7b7   :  { %v3643_v23 = vmul.f32 %v9052_v54, %v3638_v5  ;;  %v12490_v54 = vld [vmem:[#allocation61_spill] sm:$0xff] }
 0x7b8   :  { %v3642_v28 = vmul.f32 %v3639_v52, %v10400_v51  ;;  %v3640_v12 = vadd.f32 0.5, %v3637_v34 }
 0x7ba   :  { %v10524_v11 = vadd.f32 %v3643_v23, %v3642_v28  ;;  %v12491_v23 = vsel %vm9778_vm3, %v12489_v19, %v12490_v54 }
 0x7bc   :  { %9055 = vtanh.f32 %v10524_v11 }
 0x7c6   :  { %v9056_v7 = vpop.eup %9055 }
 0x7c7   :  { %v3646_v49 = vmul.f32 %v9056_v7, %v3640_v12 }
 0x7c9   :  { %v3652_v8 = vpack.c.bf16 %v3646_v49, %v3646_v49  ;;  %v10530_v56 = vsel %vm200_vm0, %v3646_v49, %v10403_v41  ;;  %v10535_v42 = vsel %vm200_vm0, %v10403_v41, %v3646_v49  ;;  %v12486_v41 = vld [vmem:[#allocation64_spill] sm:$0xff] }
 0x7cb   :  { %3878 = vmatmul.mubr.bf16.vlgmr.msra.gmra.mrb[52].mxu0 %v3652_v8  ;;  %3919 = vmatmul.mubr.bf16.vlgmr.msra.gmra.mrb[52].mxu1 %v3652_v8 }
 0x7cc   :  { %4148 = vmatpush1.bf16.msra.mxu0 %v10413_v48  ;;  %4189 = vmatpush1.bf16.msra.mxu1 %v10415_v45 }
 0x7cd   :  { %4149 = vmatprep.subr.bf16.mxu0 %v10421_v50  ;;  %4190 = vmatprep.subr.bf16.mxu1 %v10423_v27 }
 0x7ce   :  { %4179 = vmatprep.mubr.bf16.mxu0 %v12433_v16  ;;  %4220 = vmatprep.mubr.bf16.mxu1 %v12433_v16 }
 0x7d0   :  { %4150 = vmatpush1.bf16.msra.mxu0 %v10425_v9  ;;  %4191 = vmatpush1.bf16.msra.mxu1 %v10427_v18 }
 0x7d1   :  { %4151 = vmatprep.subr.bf16.mxu0 %v10433_v17  ;;  %4192 = vmatprep.subr.bf16.mxu1 %v10435_v55 }
 0x7d4   :  { %4152 = vmatpush1.bf16.msra.mxu0 %v10437_v39  ;;  %4193 = vmatpush1.bf16.msra.mxu1 %v10439_v25 }
 0x7d5   :  { %4153 = vmatprep.subr.bf16.mxu0 %v10445_v57  ;;  %4194 = vmatprep.subr.bf16.mxu1 %v10447_v58 }
 0x7d8   :  { %4154 = vmatpush1.bf16.msra.mxu0 %v10449_v61  ;;  %4195 = vmatpush1.bf16.msra.mxu1 %v10451_v62 }
 0x7d9   :  { %4155 = vmatprep.subr.bf16.mxu0 %v10457_v0  ;;  %4196 = vmatprep.subr.bf16.mxu1 %v10459_v1 }
 0x7dc   :  { %4156 = vmatpush1.bf16.msra.mxu0 %v10461_v44  ;;  %4197 = vmatpush1.bf16.msra.mxu1 %v10463_v6 }
 0x7dd   :  { %4157 = vmatprep.subr.bf16.mxu0 %v10471_v2  ;;  %4198 = vmatprep.subr.bf16.mxu1 %v10475_v36 }
 0x7e0   :  { %4158 = vmatpush1.bf16.msra.mxu0 %v10469_v31  ;;  %4199 = vmatpush1.bf16.msra.mxu1 %v10473_v10 }
 0x7e1   :  { %4159 = vmatprep.subr.bf16.mxu0 %v10477_v24  ;;  %4200 = vmatprep.subr.bf16.mxu1 %v10480_v15 }
 0x7e4   :  { %4160 = vmatpush1.bf16.msra.mxu0 %v10485_v20  ;;  %4201 = vmatpush1.bf16.msra.mxu1 %v10487_v35 }
 0x7e5   :  { %4161 = vmatprep.subr.bf16.mxu0 %v10491_v32  ;;  %4202 = vmatprep.subr.bf16.mxu1 %v10493_v33 }
 0x7e8   :  { %4162 = vmatpush1.bf16.msra.mxu0 %v10497_v30  ;;  %4203 = vmatpush1.bf16.msra.mxu1 %v10499_v29 }
 0x7e9   :  { %4449 = vmatprep.subr.bf16.mxu0 %v10409_v26  ;;  %4490 = vmatprep.subr.bf16.mxu1 %v10411_v37 }
 0x89e   :  { %v3879_v52 = vpop.f32.mrb[52].mxu0  ;;  %v3920_v51 = vpop.f32.mrb[52].mxu1 }
 0x89f   :  { %v3927_v43 = vadd.f32 %v3879_v52, %v12486_v41  ;;  %v3929_v60 = vadd.f32 %v3920_v51, %v12487_v59  ;;  %v3881_v21 = vpop.f32.mrb[53].mxu0  ;;  %v3922_v38 = vpop.f32.mrb[53].mxu1 }
 0x8a0   :  { %v3928_v5 = vadd.f32 %v3881_v21, %v12488_v3  ;;  %v3930_v28 = vadd.f32 %v3922_v38, %v12491_v23  ;;  %v3883_v4 = vpop.f32.mrb[54].mxu0  ;;  %v3924_v34 = vpop.f32.mrb[54].mxu1 }
 0x8a1   :  { %v3931_v12 = vmul.f32 0.5, %v3927_v43  ;;  %v3884_v7 = vpop.f32.mrb[55].mxu0  ;;  %v3925_v40 = vpop.f32.mrb[55].mxu1  ;;  %v3933_v49 = vmul.f32 0.5, %v3929_v60 }
 0x8a2   :  { %v3932_v47 = vmul.f32 0.5, %v3928_v5  ;;  %v12493_v7 = vld [vmem:[#allocation71_spill] sm:$0xff] }
 0x8a3   :  { %9057 = vtanh.f32 %v3931_v12 }
 0x8a4   :  { %9059 = vtanh.f32 %v3932_v47  ;;  %v12494_v47 = vld [vmem:[#allocation45_spill] sm:$0xff] }
 0x8a5   :  { %9061 = vtanh.f32 %v3930_v28  ;;  %v12492_v28 = vld [vmem:[#allocation31_spill] sm:$0xff] }
 0x8a6   :  { %9063 = vtanh.f32 %v3933_v49  ;;  %v12495_v49 = vld [vmem:[#allocation65_spill] sm:$0xff] }
 0x8ad   :  { %v9058_v8 = vpop.eup %9057 }
 0x8ae   :  { %v3937_v52 = vmul.f32 0.5, %v9058_v8  ;;  %v9060_v63 = vpop.eup %9059  ;;  %v12496_v8 = vsel %vm9766_vm1, %v12494_v47, %v12495_v49 }
 0x8af   :  { %v3938_v51 = vmul.f32 0.5, %v9060_v63  ;;  %v9062_v41 = vpop.eup %9061 }
 0x8b0   :  { %v3940_v13 = vadd.f32 0.5, %v3937_v52  ;;  %v9064_v43 = vpop.eup %9063 }
 0x8b1   :  { %v3941_v59 = vadd.f32 0.5, %v3938_v51  ;;  %v3939_v5 = vmul.f32 0.5, %v9064_v43  ;;  %v12497_v51 = vld [vmem:[#allocation46_spill] sm:$0xff] }
 0x8b2   :  { %v3945_v21 = vmul.f32 %v9062_v41, %v3940_v13  ;;  %v12498_v41 = vld [vmem:[#allocation66_spill] sm:$0xff] }
 0x8b3   :  { %v3944_v38 = vmul.f32 %v3941_v59, %v10524_v11  ;;  %v3942_v19 = vadd.f32 0.5, %v3939_v5  ;;  %v12499_v59 = vsel %vm9774_vm2, %v12497_v51, %v12498_v41 }
 0x8b5   :  { %v10588_v3 = vadd.f32 %v3945_v21, %v3944_v38  ;;  %v12501_v21 = vld [vmem:[#allocation67_spill] sm:$0xff] }
 0x8b7   :  { %9065 = vtanh.f32 %v10588_v3 }
 0x8c1   :  { %v9066_v54 = vpop.eup %9065 }
 0x8c2   :  { %v3948_v60 = vmul.f32 %v9066_v54, %v3942_v19 }
 0x8c4   :  { %v3954_v23 = vpack.c.bf16 %v3948_v60, %v3948_v60  ;;  %v10594_v4 = vsel %vm200_vm0, %v3948_v60, %v12492_v28  ;;  %v10599_v34 = vsel %vm200_vm0, %v12492_v28, %v3948_v60 }
 0x8c6   :  { %4180 = vmatmul.mubr.bf16.vlgmr.msra.gmra.mrb[56].mxu0 %v3954_v23  ;;  %4221 = vmatmul.mubr.bf16.vlgmr.msra.gmra.mrb[56].mxu1 %v3954_v23 }
 0x8c7   :  { %4450 = vmatpush1.bf16.msra.mxu0 %v10413_v48  ;;  %4491 = vmatpush1.bf16.msra.mxu1 %v10415_v45 }
 0x8c8   :  { %4451 = vmatprep.subr.bf16.mxu0 %v10421_v50  ;;  %4492 = vmatprep.subr.bf16.mxu1 %v10423_v27 }
 0x8c9   :  { %4481 = vmatprep.mubr.bf16.mxu0 %v12433_v16  ;;  %4522 = vmatprep.mubr.bf16.mxu1 %v12433_v16 }
 0x8cb   :  { %4452 = vmatpush1.bf16.msra.mxu0 %v10425_v9  ;;  %4493 = vmatpush1.bf16.msra.mxu1 %v10427_v18 }
 0x8cc   :  { %4453 = vmatprep.subr.bf16.mxu0 %v10433_v17  ;;  %4494 = vmatprep.subr.bf16.mxu1 %v10435_v55 }
 0x8cf   :  { %4454 = vmatpush1.bf16.msra.mxu0 %v10437_v39  ;;  %4495 = vmatpush1.bf16.msra.mxu1 %v10439_v25 }
 0x8d0   :  { %4455 = vmatprep.subr.bf16.mxu0 %v10445_v57  ;;  %4496 = vmatprep.subr.bf16.mxu1 %v10447_v58 }
 0x8d3   :  { %4456 = vmatpush1.bf16.msra.mxu0 %v10449_v61  ;;  %4497 = vmatpush1.bf16.msra.mxu1 %v10451_v62 }
 0x8d4   :  { %4457 = vmatprep.subr.bf16.mxu0 %v10457_v0  ;;  %4498 = vmatprep.subr.bf16.mxu1 %v10459_v1 }
 0x8d7   :  { %4458 = vmatpush1.bf16.msra.mxu0 %v10461_v44  ;;  %4499 = vmatpush1.bf16.msra.mxu1 %v10463_v6 }
 0x8d8   :  { %4459 = vmatprep.subr.bf16.mxu0 %v10471_v2  ;;  %4500 = vmatprep.subr.bf16.mxu1 %v10475_v36 }
 0x8db   :  { %4460 = vmatpush1.bf16.msra.mxu0 %v10469_v31  ;;  %4501 = vmatpush1.bf16.msra.mxu1 %v10473_v10 }
 0x8dc   :  { %4461 = vmatprep.subr.bf16.mxu0 %v10477_v24  ;;  %4502 = vmatprep.subr.bf16.mxu1 %v10480_v15 }
 0x8df   :  { %4462 = vmatpush1.bf16.msra.mxu0 %v10485_v20  ;;  %4503 = vmatpush1.bf16.msra.mxu1 %v10487_v35 }
 0x8e0   :  { %4463 = vmatprep.subr.bf16.mxu0 %v10491_v32  ;;  %4504 = vmatprep.subr.bf16.mxu1 %v10493_v33 }
 0x8e3   :  { %4464 = vmatpush1.bf16.msra.mxu0 %v10497_v30  ;;  %4505 = vmatpush1.bf16.msra.mxu1 %v10499_v29 }
 0x8e4   :  { %4751 = vmatprep.subr.bf16.mxu0 %v10409_v26  ;;  %4792 = vmatprep.subr.bf16.mxu1 %v10411_v37  ;;  %v12500_v37 = vld [vmem:[#allocation47_spill] sm:$0xff] }
 0x8e5   :  { %v12502_v38 = vsel %vm9778_vm3, %v12500_v37, %v12501_v21 }
 0x999   :  { %v4181_v11 = vpop.f32.mrb[56].mxu0  ;;  %v4222_v12 = vpop.f32.mrb[56].mxu1 }
 0x99a   :  { %v4229_v40 = vadd.f32 %v4181_v11, %v12493_v7  ;;  %v4231_v52 = vadd.f32 %v4222_v12, %v12496_v8  ;;  %v4183_v63 = vpop.f32.mrb[57].mxu0  ;;  %v4224_v13 = vpop.f32.mrb[57].mxu1 }
 0x99b   :  { %v4230_v26 = vadd.f32 %v4183_v63, %v12499_v59  ;;  %v4232_v43 = vadd.f32 %v4224_v13, %v12502_v38  ;;  %v4185_v5 = vpop.f32.mrb[58].mxu0  ;;  %v4226_v19 = vpop.f32.mrb[58].mxu1 }
 0x99c   :  { %v4233_v54 = vmul.f32 0.5, %v4229_v40  ;;  %v4186_v60 = vpop.f32.mrb[59].mxu0  ;;  %v4227_v23 = vpop.f32.mrb[59].mxu1  ;;  %v4235_v11 = vmul.f32 0.5, %v4231_v52 }
 0x99d   :  { %v4234_v28 = vmul.f32 0.5, %v4230_v26 }
 0x99e   :  { %9067 = vtanh.f32 %v4233_v54 }
 0x99f   :  { %9069 = vtanh.f32 %v4234_v28 }
 0x9a0   :  { %9071 = vtanh.f32 %v4232_v43  ;;  %v12503_v43 = vld [vmem:[#allocation27_spill] sm:$0xff] }
 0x9a1   :  { %9073 = vtanh.f32 %v4235_v11 }
 0x9a8   :  { %v9068_v12 = vpop.eup %9067 }
 0x9a9   :  { %v4239_v7 = vmul.f32 0.5, %v9068_v12  ;;  %v9070_v47 = vpop.eup %9069 }
 0x9aa   :  { %v4240_v8 = vmul.f32 0.5, %v9070_v47  ;;  %v9072_v63 = vpop.eup %9071 }
 0x9ab   :  { %v4242_v49 = vadd.f32 0.5, %v4239_v7  ;;  %v9074_v40 = vpop.eup %9073 }
 0x9ac   :  { %v4243_v51 = vadd.f32 0.5, %v4240_v8  ;;  %v4241_v26 = vmul.f32 0.5, %v9074_v40  ;;  %v8939_v40 = vld [vmem:[#allocation15] ss:$16 sps:$4 sm:$0xff]  }
 0x9ad   :  { %v4247_v41 = vmul.f32 %v9072_v63, %v4242_v49  ;;  %v12514_v63 = vld [vmem:[#allocation29_spill] sm:$0xff] }
 0x9ae   :  { %v4246_v13 = vmul.f32 %v4243_v51, %v10588_v3  ;;  %v4244_v37 = vadd.f32 0.5, %v4241_v26  ;;  %v8942_v26 = vld [vmem:[#allocation15 + $0x8] ss:$16 sps:$4 sm:$0xff]  }
 0x9b0   :  { %v10652_v59 = vadd.f32 %v4247_v41, %v4246_v13  ;;  %v8941_v13 = vld [vmem:[#allocation15 + $0x4] ss:$16 sps:$4 sm:$0xff]  }
 0x9b2   :  { %9075 = vtanh.f32 %v10652_v59 }
 0x9bc   :  { %v9076_v21 = vpop.eup %9075 }
 0x9bd   :  { %v4250_v52 = vmul.f32 %v9076_v21, %v4244_v37  ;;  %v8947_v37 = vld [vmem:[#allocation15 + $0x24] ss:$16 sps:$4 sm:$0xff]   ;;  %v8950_v21 = vld [vmem:[#allocation15 + $0x2c] ss:$16 sps:$4 sm:$0xff]  }
 0x9bf   :  { %v4256_v38 = vpack.c.bf16 %v4250_v52, %v4250_v52  ;;  %v10658_v5 = vsel %vm200_vm0, %v4250_v52, %v12503_v43  ;;  %v10663_v19 = vsel %vm200_vm0, %v12503_v43, %v4250_v52  ;;  %v8945_v52 = vld [vmem:[#allocation15 + $0x20] ss:$16 sps:$4 sm:$0xff]   ;;  %v8953_v43 = vld [vmem:[#allocation15 + $0x44] ss:$16 sps:$4 sm:$0xff]  }
 0x9c1   :  { %4482 = vmatmul.mubr.bf16.vlgmr.msra.gmra.mrb[60].mxu0 %v4256_v38  ;;  %4523 = vmatmul.mubr.bf16.vlgmr.msra.gmra.mrb[60].mxu1 %v4256_v38  ;;  %v8948_v38 = vld [vmem:[#allocation15 + $0x28] ss:$16 sps:$4 sm:$0xff]  }
 0x9c2   :  { %4752 = vmatpush1.bf16.msra.mxu0 %v10413_v48  ;;  %4793 = vmatpush1.bf16.msra.mxu1 %v10415_v45 }
 0x9c3   :  { %4753 = vmatprep.subr.bf16.mxu0 %v10421_v50  ;;  %4794 = vmatprep.subr.bf16.mxu1 %v10423_v27  ;;  %v12504_v50 = vld [vmem:[#allocation72_spill] sm:$0xff] }
 0x9c4   :  { %4783 = vmatprep.mubr.bf16.mxu0 %v12433_v16  ;;  %4824 = vmatprep.mubr.bf16.mxu1 %v12433_v16 }
 0x9c6   :  { %4754 = vmatpush1.bf16.msra.mxu0 %v10425_v9  ;;  %4795 = vmatpush1.bf16.msra.mxu1 %v10427_v18  ;;  %v12505_v9 = vld [vmem:[#allocation42_spill] sm:$0xff]  ;;  %v12506_v18 = vld [vmem:[#allocation68_spill] sm:$0xff] }
 0x9c7   :  { %4755 = vmatprep.subr.bf16.mxu0 %v10433_v17  ;;  %4796 = vmatprep.subr.bf16.mxu1 %v10435_v55  ;;  %v12507_v17 = vsel %vm9766_vm1, %v12505_v9, %v12506_v18  ;;  %v8962_v9 = vld [vmem:[#allocation15 + $0x6c] ss:$16 sps:$4 sm:$0xff]   ;;  %v8957_v18 = vld [vmem:[#allocation15 + $0x60] ss:$16 sps:$4 sm:$0xff]  }
 0x9ca   :  { %4756 = vmatpush1.bf16.msra.mxu0 %v10437_v39  ;;  %4797 = vmatpush1.bf16.msra.mxu1 %v10439_v25 }
 0x9cb   :  { %4757 = vmatprep.subr.bf16.mxu0 %v10445_v57  ;;  %4798 = vmatprep.subr.bf16.mxu1 %v10447_v58  ;;  %v12508_v57 = vld [vmem:[#allocation43_spill] sm:$0xff]  ;;  %v12509_v58 = vld [vmem:[#allocation69_spill] sm:$0xff] }
 0x9ce   :  { %4758 = vmatpush1.bf16.msra.mxu0 %v10449_v61  ;;  %4799 = vmatpush1.bf16.msra.mxu1 %v10451_v62  ;;  %v12510_v61 = vsel %vm9774_vm2, %v12508_v57, %v12509_v58  ;;  %v8966_v57 = vld [vmem:[#allocation15 + $0x88] ss:$16 sps:$4 sm:$0xff]   ;;  %v8969_v58 = vld [vmem:[#allocation15 + $0xa0] ss:$16 sps:$4 sm:$0xff]  }
 0x9cf   :  { %4759 = vmatprep.subr.bf16.mxu0 %v10457_v0  ;;  %4800 = vmatprep.subr.bf16.mxu1 %v10459_v1  ;;  %v12511_v0 = vld [vmem:[#allocation44_spill] sm:$0xff]  ;;  %v12512_v1 = vld [vmem:[#allocation70_spill] sm:$0xff] }
 0x9d2   :  { %4760 = vmatpush1.bf16.msra.mxu0 %v10461_v44  ;;  %4801 = vmatpush1.bf16.msra.mxu1 %v10463_v6  ;;  %v12513_v44 = vsel %vm9778_vm3, %v12511_v0, %v12512_v1  ;;  %v8974_v0 = vld [vmem:[#allocation15 + $0xac] ss:$16 sps:$4 sm:$0xff]   ;;  %v8977_v1 = vld [vmem:[#allocation15 + $0xc4] ss:$16 sps:$4 sm:$0xff]  }
 0x9d3   :  { %4761 = vmatprep.subr.bf16.mxu0 %v10471_v2  ;;  %4802 = vmatprep.subr.bf16.mxu1 %v10475_v36 }
 0x9d6   :  { %4762 = vmatpush1.bf16.msra.mxu0 %v10469_v31  ;;  %4803 = vmatpush1.bf16.msra.mxu1 %v10473_v10 }
 0x9d7   :  { %4763 = vmatprep.subr.bf16.mxu0 %v10477_v24  ;;  %4804 = vmatprep.subr.bf16.mxu1 %v10480_v15 }
 0x9da   :  { %4764 = vmatpush1.bf16.msra.mxu0 %v10485_v20  ;;  %4805 = vmatpush1.bf16.msra.mxu1 %v10487_v35 }
 0x9db   :  { %4765 = vmatprep.subr.bf16.mxu0 %v10491_v32  ;;  %4806 = vmatprep.subr.bf16.mxu1 %v10493_v33 }
 0x9de   :  { %4766 = vmatpush1.bf16.msra.mxu0 %v10497_v30  ;;  %4807 = vmatpush1.bf16.msra.mxu1 %v10499_v29 }
 0x9df   :  { %5053 = vmatprep.subr.bf16.mxu0 %v8941_v13 }
 0xa94   :  { %v4483_v48 = vpop.f32.mrb[60].mxu0  ;;  %v4524_v45 = vpop.f32.mrb[60].mxu1 }
 0xa95   :  { %v4531_v27 = vadd.f32 %v4483_v48, %v12504_v50  ;;  %v4533_v55 = vadd.f32 %v4524_v45, %v12507_v17  ;;  %v4485_v39 = vpop.f32.mrb[61].mxu0  ;;  %v4526_v25 = vpop.f32.mrb[61].mxu1  ;;  %v8956_v48 = vld [vmem:[#allocation15 + $0x4c] ss:$16 sps:$4 sm:$0xff]   ;;  %v8951_v45 = vld [vmem:[#allocation15 + $0x40] ss:$16 sps:$4 sm:$0xff]  }
 0xa96   :  { %v4532_v62 = vadd.f32 %v4485_v39, %v12510_v61  ;;  %v4534_v6 = vadd.f32 %v4526_v25, %v12513_v44  ;;  %v4487_v31 = vpop.f32.mrb[62].mxu0  ;;  %v4528_v2 = vpop.f32.mrb[62].mxu1  ;;  %v8954_v50 = vld [vmem:[#allocation15 + $0x48] ss:$16 sps:$4 sm:$0xff]   ;;  %v8968_v39 = vld [vmem:[#allocation15 + $0x8c] ss:$16 sps:$4 sm:$0xff]  }
 0xa97   :  { %v4535_v10 = vmul.f32 0.5, %v4531_v27  ;;  %v4488_v36 = vpop.f32.mrb[63].mxu0  ;;  %v4529_v24 = vpop.f32.mrb[63].mxu1  ;;  %v4537_v20 = vmul.f32 0.5, %v4533_v55  ;;  %v8959_v27 = vld [vmem:[#allocation15 + $0x64] ss:$16 sps:$4 sm:$0xff]  }
 0xa98   :  { %v4536_v15 = vmul.f32 0.5, %v4532_v62  ;;  %v8960_v17 = vld [vmem:[#allocation15 + $0x68] ss:$16 sps:$4 sm:$0xff]   ;;  %v8965_v55 = vld [vmem:[#allocation15 + $0x84] ss:$16 sps:$4 sm:$0xff]  }
 0xa99   :  { %9077 = vtanh.f32 %v4535_v10  ;;  %v8963_v25 = vld [vmem:[#allocation15 + $0x80] ss:$16 sps:$4 sm:$0xff]   ;;  %v8971_v61 = vld [vmem:[#allocation15 + $0xa4] ss:$16 sps:$4 sm:$0xff]   ;;  %v8972_v62 = vld [vmem:[#allocation15 + $0xa8] ss:$16 sps:$4 sm:$0xff]  }
 0xa9a   :  { %9079 = vtanh.f32 %v4536_v15  ;;  %v8980_v44 = vld [vmem:[#allocation15 + $0xcc] ss:$16 sps:$4 sm:$0xff]   ;;  %v8978_v31 = vld [vmem:[#allocation15 + $0xc8] ss:$16 sps:$4 sm:$0xff]   ;;  %v8983_v2 = vld [vmem:[#allocation15 + $0xe4] ss:$16 sps:$4 sm:$0xff]  }
 0xa9b   :  { %9081 = vtanh.f32 %v4534_v6  ;;  %v8975_v6 = vld [vmem:[#allocation15 + $0xc0] ss:$16 sps:$4 sm:$0xff]   ;;  %v8986_v10 = vld [vmem:[#allocation15 + $0xec] ss:$16 sps:$4 sm:$0xff]   ;;  %v8984_v24 = vld [vmem:[#allocation15 + $0xe8] ss:$16 sps:$4 sm:$0xff]  }
 0xa9c   :  { %9083 = vtanh.f32 %v4537_v20  ;;  %v8981_v36 = vld [vmem:[#allocation15 + $0xe0] ss:$16 sps:$4 sm:$0xff]  }
 0xaa3   :  { %v9078_v35 = vpop.eup %9077 }
 0xaa4   :  { %v4541_v32 = vmul.f32 0.5, %v9078_v35  ;;  %v9080_v33 = vpop.eup %9079  ;;  %v12515_v35 = vld [vmem:[#allocation82_spill] sm:$0xff] }
 0xaa5   :  { %v4542_v29 = vmul.f32 0.5, %v9080_v33  ;;  %v9082_v3 = vpop.eup %9081  ;;  %v12516_v33 = vld [vmem:[#allocation39_spill] sm:$0xff] }
 0xaa6   :  { %v4544_v30 = vadd.f32 0.5, %v4541_v32  ;;  %v9084_v11 = vpop.eup %9083 }
 0xaa7   :  { %v4545_v54 = vadd.f32 0.5, %v4542_v29  ;;  %v4543_v12 = vmul.f32 0.5, %v9084_v11  ;;  %v12520_v11 = vld [vmem:[#allocation77_spill] sm:$0xff] }
 0xaa8   :  { %v4549_v60 = vmul.f32 %v9082_v3, %v4544_v30  ;;  %v12517_v30 = vld [vmem:[#allocation74_spill] sm:$0xff] }
 0xaa9   :  { %v4548_v23 = vmul.f32 %v4545_v54, %v10652_v59  ;;  %v4546_v7 = vadd.f32 0.5, %v4543_v12  ;;  %v8944_v59 = vld [vmem:[#allocation15 + $0xc] ss:$16 sps:$4 sm:$0xff]   ;;  %v12518_v29 = vsel %vm9766_vm1, %v12516_v33, %v12517_v30 }
 0xaaa   :  { %5094 = vmatprep.subr.bf16.mxu1 %v8944_v59  ;;  %v12531_v33 = vld [vmem:[#allocation80_spill] sm:$0xff] }
 0xaab   :  { %v10714_v28 = vadd.f32 %v4549_v60, %v4548_v23  ;;  %v12519_v23 = vld [vmem:[#allocation40_spill] sm:$0xff] }
 0xaac   :  { %v12521_v12 = vsel %vm9774_vm2, %v12519_v23, %v12520_v11 }
 0xaad   :  { %9085 = vtanh.f32 %v10714_v28 }
 0xab7   :  { %v9086_v47 = vpop.eup %9085 }
 0xab8   :  { %v4552_v49 = vmul.f32 %v9086_v47, %v4546_v7  ;;  %v12522_v47 = vld [vmem:[#allocation41_spill] sm:$0xff] }
 0xaba   :  { %v4558_v8 = vpack.c.bf16 %v4552_v49, %v4552_v49  ;;  %v10720_v51 = vsel %vm200_vm0, %v4552_v49, %v12514_v63  ;;  %v10725_v41 = vsel %vm200_vm0, %v12514_v63, %v4552_v49  ;;  %v12523_v49 = vld [vmem:[#allocation78_spill] sm:$0xff] }
 0xabc   :  { %4784 = vmatmul.mubr.bf16.vlgmr.msra.gmra.mrb[64].mxu0 %v4558_v8  ;;  %4825 = vmatmul.mubr.bf16.vlgmr.msra.gmra.mrb[64].mxu1 %v4558_v8  ;;  %v12524_v8 = vsel %vm9778_vm3, %v12522_v47, %v12523_v49 }
 0xabd   :  { %5085 = vmatprep.mubr.bf16.mxu0 %v12433_v16  ;;  %5126 = vmatprep.mubr.bf16.mxu1 %v12433_v16 }
 0xabe   :  { %5054 = vmatpush1.bf16.msra.mxu0 %v8939_v40  ;;  %5095 = vmatpush1.bf16.msra.mxu1 %v8942_v26 }
 0xabf   :  { %5055 = vmatprep.subr.bf16.mxu0 %v8947_v37  ;;  %5096 = vmatprep.subr.bf16.mxu1 %v8950_v21 }
 0xac2   :  { %5056 = vmatpush1.bf16.msra.mxu0 %v8945_v52  ;;  %5097 = vmatpush1.bf16.msra.mxu1 %v8948_v38 }
 0xac3   :  { %5057 = vmatprep.subr.bf16.mxu0 %v8953_v43  ;;  %5098 = vmatprep.subr.bf16.mxu1 %v8956_v48 }
 0xac6   :  { %5058 = vmatpush1.bf16.msra.mxu0 %v8951_v45  ;;  %5099 = vmatpush1.bf16.msra.mxu1 %v8954_v50 }
 0xac7   :  { %5059 = vmatprep.subr.bf16.mxu0 %v8959_v27  ;;  %5100 = vmatprep.subr.bf16.mxu1 %v8962_v9 }
 0xaca   :  { %5060 = vmatpush1.bf16.msra.mxu0 %v8957_v18  ;;  %5101 = vmatpush1.bf16.msra.mxu1 %v8960_v17 }
 0xacb   :  { %5061 = vmatprep.subr.bf16.mxu0 %v8965_v55  ;;  %5102 = vmatprep.subr.bf16.mxu1 %v8968_v39 }
 0xace   :  { %5062 = vmatpush1.bf16.msra.mxu0 %v8963_v25  ;;  %5103 = vmatpush1.bf16.msra.mxu1 %v8966_v57 }
 0xacf   :  { %5063 = vmatprep.subr.bf16.mxu0 %v8971_v61  ;;  %5104 = vmatprep.subr.bf16.mxu1 %v8974_v0  ;;  %v12525_v0 = vld [vmem:[#allocation26_spill] sm:$0xff] }
 0xad2   :  { %5064 = vmatpush1.bf16.msra.mxu0 %v8969_v58  ;;  %5105 = vmatpush1.bf16.msra.mxu1 %v8972_v62 }
 0xad3   :  { %5065 = vmatprep.subr.bf16.mxu0 %v8977_v1  ;;  %5106 = vmatprep.subr.bf16.mxu1 %v8980_v44 }
 0xad6   :  { %5066 = vmatpush1.bf16.msra.mxu0 %v8975_v6  ;;  %5107 = vmatpush1.bf16.msra.mxu1 %v8978_v31  ;;  %v12526_v31 = vld [vmem:[#allocation83_spill] sm:$0xff] }
 0xad7   :  { %5067 = vmatprep.subr.bf16.mxu0 %v8983_v2  ;;  %5108 = vmatprep.subr.bf16.mxu1 %v8986_v10  ;;  %v12527_v10 = vld [vmem:[#allocation73_spill] sm:$0xff] }
 0xada   :  { %5068 = vmatpush1.bf16.msra.mxu0 %v8981_v36  ;;  %5109 = vmatpush1.bf16.msra.mxu1 %v8984_v24  ;;  %v12528_v36 = vld [vmem:[#allocation79_spill] sm:$0xff] }
 0xadb   :  { %v12529_v24 = vsel %vm9766_vm1, %v12527_v10, %v12528_v36 }
 0xb8f   :  { %v4785_v15 = vpop.f32.mrb[64].mxu0  ;;  %v4826_v20 = vpop.f32.mrb[64].mxu1 }
 0xb90   :  { %v4833_v32 = vadd.f32 %v4785_v15, %v12515_v35  ;;  %v4835_v3 = vadd.f32 %v4826_v20, %v12518_v29  ;;  %v4787_v54 = vpop.f32.mrb[65].mxu0  ;;  %v4828_v60 = vpop.f32.mrb[65].mxu1 }
 0xb91   :  { %v4834_v7 = vadd.f32 %v4787_v54, %v12521_v12  ;;  %v4836_v63 = vadd.f32 %v4828_v60, %v12524_v8  ;;  %v4789_v13 = vpop.f32.mrb[66].mxu0  ;;  %v4830_v59 = vpop.f32.mrb[66].mxu1  ;;  %v12534_v54 = vld [vmem:[#allocation81_spill] sm:$0xff] }
 0xb92   :  { %v4837_v40 = vmul.f32 0.5, %v4833_v32  ;;  %v4790_v26 = vpop.f32.mrb[67].mxu0  ;;  %v4831_v37 = vpop.f32.mrb[67].mxu1  ;;  %v4839_v52 = vmul.f32 0.5, %v4835_v3  ;;  %v12530_v32 = vld [vmem:[#allocation75_spill] sm:$0xff]  ;;  %v12533_v3 = vld [vmem:[#allocation76_spill] sm:$0xff] }
 0xb93   :  { %v4838_v21 = vmul.f32 0.5, %v4834_v7  ;;  %v12532_v30 = vsel %vm9774_vm2, %v12530_v32, %v12531_v33  ;;  %v12535_v60 = vsel %vm9778_vm3, %v12533_v3, %v12534_v54 }
 0xb94   :  { %9087 = vtanh.f32 %v4837_v40 }
 0xb95   :  { %9089 = vtanh.f32 %v4838_v21 }
 0xb96   :  { %9091 = vtanh.f32 %v4836_v63 }
 0xb97   :  { %9093 = vtanh.f32 %v4839_v52 }
 0xb9e   :  { %v9088_v38 = vpop.eup %9087 }
 0xb9f   :  { %v4843_v43 = vmul.f32 0.5, %v9088_v38  ;;  %v9090_v48 = vpop.eup %9089 }
 0xba0   :  { %v4844_v50 = vmul.f32 0.5, %v9090_v48  ;;  %v9092_v27 = vpop.eup %9091 }
 0xba1   :  { %v4846_v45 = vadd.f32 0.5, %v4843_v43  ;;  %v9094_v39 = vpop.eup %9093 }
 0xba2   :  { %v4847_v9 = vadd.f32 0.5, %v4844_v50  ;;  %v4845_v25 = vmul.f32 0.5, %v9094_v39 }
 0xba3   :  { %v4851_v18 = vmul.f32 %v9092_v27, %v4846_v45 }
 0xba4   :  { %v4850_v17 = vmul.f32 %v4847_v9, %v10714_v28  ;;  %v4848_v57 = vadd.f32 0.5, %v4845_v25 }
 0xba6   :  { %v4852_v55 = vadd.f32 %v4851_v18, %v4850_v17  ;;  %v12536_v17 = vld [vmem:[#allocation84_spill] sm:$0xff] }
 0xba8   :  { %9095 = vtanh.f32 %v4852_v55 }
 0xbb2   :  { %v9096_v58 = vpop.eup %9095 }
 0xbb3   :  { %v4854_v61 = vmul.f32 %v9096_v58, %v4848_v57 }
 0xbb5   :  { %v4860_v62 = vpack.c.bf16 %v4854_v61, %v4854_v61  ;;  %v10749_v1 = vsel %vm200_vm0, %v4854_v61, %v12525_v0  ;;  %v10754_v44 = vsel %vm200_vm0, %v12525_v0, %v4854_v61 }
 0xbb7   :  { %5086 = vmatmul.mubr.bf16.vlgmr.msra.gmra.mrb[68].mxu0 %v4860_v62  ;;  %5127 = vmatmul.mubr.bf16.vlgmr.msra.gmra.mrb[68].mxu1 %v4860_v62 }
 0xc8a   :  { %v5087_v28 = vpop.f32.mrb[68].mxu0  ;;  %v5128_v6 = vpop.f32.mrb[68].mxu1 }
 0xc8b   :  { %v5135_v2 = vadd.f32 %v5087_v28, %v12526_v31  ;;  %v5137_v15 = vadd.f32 %v5128_v6, %v12529_v24  ;;  %v5089_v20 = vpop.f32.mrb[69].mxu0  ;;  %v5130_v35 = vpop.f32.mrb[69].mxu1 }
 0xc8c   :  { %v5136_v29 = vadd.f32 %v5089_v20, %v12532_v30  ;;  %v5138_v23 = vadd.f32 %v5130_v35, %v12535_v60  ;;  %v5091_v11 = vpop.f32.mrb[70].mxu0  ;;  %v5132_v12 = vpop.f32.mrb[70].mxu1 }
 0xc8d   :  { %v5139_v7 = vmul.f32 0.5, %v5135_v2  ;;  %v5092_v47 = vpop.f32.mrb[71].mxu0  ;;  %v5133_v49 = vpop.f32.mrb[71].mxu1  ;;  %v5141_v63 = vmul.f32 0.5, %v5137_v15 }
 0xc8e   :  { %v5140_v8 = vmul.f32 0.5, %v5136_v29 }
 0xc8f   :  { %9097 = vtanh.f32 %v5139_v7 }
 0xc90   :  { %9099 = vtanh.f32 %v5140_v8 }
 0xc91   :  { %9101 = vtanh.f32 %v5138_v23 }
 0xc92   :  { %9103 = vtanh.f32 %v5141_v63 }
 0xc99   :  { %v9098_v13 = vpop.eup %9097 }
 0xc9a   :  { %v5145_v59 = vmul.f32 0.5, %v9098_v13  ;;  %v9100_v40 = vpop.eup %9099 }
 0xc9b   :  { %v5146_v37 = vmul.f32 0.5, %v9100_v40  ;;  %v9102_v21 = vpop.eup %9101 }
 0xc9c   :  { %v5148_v26 = vadd.f32 0.5, %v5145_v59  ;;  %v9104_v45 = vpop.eup %9103 }
 0xc9d   :  { %v5149_v52 = vadd.f32 0.5, %v5146_v37  ;;  %v5147_v50 = vmul.f32 0.5, %v9104_v45 }
 0xc9e   :  { %v5153_v38 = vmul.f32 %v9102_v21, %v5148_v26 }
 0xc9f   :  { %v5152_v43 = vmul.f32 %v5149_v52, %v4852_v55  ;;  %v5150_v27 = vadd.f32 0.5, %v5147_v50 }
 0xca1   :  { %v5154_v48 = vadd.f32 %v5153_v38, %v5152_v43 }
 0xca3   :  { %9105 = vtanh.f32 %v5154_v48 }
 0xcad   :  { %v9106_v9 = vpop.eup %9105 }
 0xcae   :  { %v5156_v18 = vmul.f32 %v9106_v9, %v5150_v27 }
 0xcb0   :  { %v10775_v39 = vsel %vm200_vm0, %v5156_v18, %v12536_v17  ;;  %v10780_v25 = vsel %vm200_vm0, %v12536_v17, %v5156_v18 }
 0xcb1   :  { %9385 = dma.done.wait [#allocation9], 4096 }
 0xcb2   :  { %9386 = vsyncadd [#allocation9], 4294963200 }
 0xcb3   :  { %9387 = dma.done.wait [#allocation9 + $0x1], 4096 }
 0xcb4   :  { %9388 = vsyncadd [#allocation9 + $0x1], 4294963200  ;;  %5316 = vmatprep.mubr.bf16.mxu0 %v12433_v16  ;;  %5409 = vmatprep.mubr.bf16.mxu1 %v12433_v16  ;;  %v5231_v55 = vld [vmem:[#allocation7 + $0x8] sm:$0xff]  ;;  %v5233_v57 = vld [vmem:[#allocation7 + $0x18] sm:$0xff]  ;;  %v5224_v26 = vpack.c.bf16 %v10749_v1, %v10775_v39  ;;  %v5225_v48 = vpack.c.bf16 %v10658_v5, %v10720_v51  ;;  %v5226_v39 = vpack.c.bf16 %v10530_v56, %v10594_v4  ;;  %vm9411_vm4 = vmmov 0   ;;  %s9412_s23 = smov [#allocation16]  }
 0xcb5   :  { %v5230_v58 = vld [vmem:[#allocation7] sm:$0xff]  ;;  %5284 = vmatprep.subr.bf16.mxu0 %v5231_v55  ;;  %5377 = vmatprep.subr.bf16.mxu1 %v5233_v57  ;;  %v5232_v61 = vld [vmem:[#allocation7 + $0x10] sm:$0xff]  ;;  %v5235_v62 = vld [vmem:[#allocation7 + $0x28] sm:$0xff]  ;;  %s7893_s24 = sshll.u32 %s9412_s23, 4  ;;  %vm7885_vm5 = vcmask 48128   ;;  %s7894_s24 = int_to_ptr.vmem [resolvable:$true] %s7893_s24 }
 0xcb6   :  { %v5237_v0 = vld [vmem:[#allocation7 + $0x38] sm:$0xff]  ;;  %5285 = vmatpush1.bf16.msra.mxu0 %v5230_v58  ;;  %5378 = vmatpush1.bf16.msra.mxu1 %v5232_v61  ;;  %v5234_v28 = vld [vmem:[#allocation7 + $0x20] sm:$0xff]  ;;  %v5236_v6 = vld [vmem:[#allocation7 + $0x30] sm:$0xff]  ;;  %s9359_s25 = scalar_lea.vmem %s7894_s24, 128  ;;  %p9364_p11 = scmp.lt.s32.totalorder %s7894_s24, %s7894_s24 }
 0xcb7   :  { %5286 = vmatprep.subr.bf16.mxu0 %v5235_v62  ;;  %5379 = vmatprep.subr.bf16.mxu1 %v5237_v0  ;;  %v5239_v31 = vld [vmem:[#allocation7 + $0x48] sm:$0xff]  ;;  %v5241_v2 = vld [vmem:[#allocation7 + $0x58] sm:$0xff]  ;;  %v5238_v10 = vld [vmem:[#allocation7 + $0x40] sm:$0xff]  ;;  %v5227_v62 = vpack.c.bf16 %v10599_v34, %v10535_v42  ;;  %p9360_p10 = scmp.ne.s32.totalorder %s7894_s24, %s9359_s25  ;;  %p9365_p12 = scmp.lt.s32.totalorder %s9359_s25, %s9359_s25 }
 0xcb8   :  { %v5240_v36 = vld [vmem:[#allocation7 + $0x50] sm:$0xff]  ;;  %v5243_v24 = vld [vmem:[#allocation7 + $0x68] sm:$0xff]  ;;  %v5245_v15 = vld [vmem:[#allocation7 + $0x78] sm:$0xff] }
 0xcb9   :  { %v5242_v20 = vld [vmem:[#allocation7 + $0x60] sm:$0xff]  ;;  %v5244_v35 = vld [vmem:[#allocation7 + $0x70] sm:$0xff]  ;;  %v5247_v32 = vld [vmem:[#allocation7 + $0x88] sm:$0xff]  ;;  %p9366_p13 = por %p9365_p12, %p9364_p11 }
 0xcba   :  { %5287 = vmatpush1.bf16.msra.mxu0 %v5234_v28  ;;  %5380 = vmatpush1.bf16.msra.mxu1 %v5236_v6  ;;  %v5249_v33 = vld [vmem:[#allocation7 + $0x98] sm:$0xff]  ;;  %v5246_v30 = vld [vmem:[#allocation7 + $0x80] sm:$0xff]  ;;  %v5248_v29 = vld [vmem:[#allocation7 + $0x90] sm:$0xff] }
 0xcbb   :  { %5288 = vmatprep.subr.bf16.mxu0 %v5239_v31  ;;  %5381 = vmatprep.subr.bf16.mxu1 %v5241_v2  ;;  %v5251_v3 = vld [vmem:[#allocation7 + $0xa8] sm:$0xff]  ;;  %v5253_v54 = vld [vmem:[#allocation7 + $0xb8] sm:$0xff]  ;;  %v5250_v60 = vld [vmem:[#allocation7 + $0xa0] sm:$0xff]  ;;  %p9367_p0 = pnand %p9366_p13, %p9360_p10 }
 0xcbc   :  { %v5252_v23 = vld [vmem:[#allocation7 + $0xb0] sm:$0xff]  ;;  %v5255_v11 = vld [vmem:[#allocation7 + $0xc8] sm:$0xff]  ;;  %v5257_v12 = vld [vmem:[#allocation7 + $0xd8] sm:$0xff] }
 0xcbd   :  { %v5254_v7 = vld [vmem:[#allocation7 + $0xc0] sm:$0xff]  ;;  %v5256_v47 = vld [vmem:[#allocation7 + $0xd0] sm:$0xff]  ;;  %v5259_v49 = vld [vmem:[#allocation7 + $0xe8] sm:$0xff] }
 0xcbe   :  { %5289 = vmatpush1.bf16.msra.mxu0 %v5238_v10  ;;  %5382 = vmatpush1.bf16.msra.mxu1 %v5240_v36  ;;  %v5261_v8 = vld [vmem:[#allocation7 + $0xf8] sm:$0xff]  ;;  %v5258_v63 = vld [vmem:[#allocation7 + $0xe0] sm:$0xff]  ;;  %v5260_v13 = vld [vmem:[#allocation7 + $0xf0] sm:$0xff]  ;;  %v5228_v36 = vpack.c.bf16 %v10725_v41, %v10663_v19  ;;  %v5229_v19 = vpack.c.bf16 %v10780_v25, %v10754_v44 }
 0xcbf   :  { %5290 = vmatprep.subr.bf16.mxu0 %v5243_v24  ;;  %5383 = vmatprep.subr.bf16.mxu1 %v5245_v15  ;;  %v10784_v59 = vld [vmem:[#allocation8 + $0x8] sm:$0xff]  ;;  %v10786_v40 = vld [vmem:[#allocation8 + $0x18] sm:$0xff]  ;;  %v10790_v37 = vld [vmem:[#allocation8] sm:$0xff] }
 0xcc0   :  { %12537 = vst [vmem:[#allocation28_spill] sm:$0xff] %v10784_v59  ;;  %12538 = vst [vmem:[#allocation32_spill] sm:$0xff] %v10786_v40  ;;  %v10794_v21 = vld [vmem:[#allocation8 + $0x28] sm:$0xff]  ;;  %v10796_v52 = vld [vmem:[#allocation8 + $0x10] sm:$0xff] }
 0xcc1   :  { %v10800_v38 = vld [vmem:[#allocation8 + $0x38] sm:$0xff]  ;;  %v10804_v1 = vld [vmem:[#allocation8 + $0x20] sm:$0xff]  ;;  %v10807_v43 = vld [vmem:[#allocation8 + $0x48] sm:$0xff] }
 0xcc2   :  { %5291 = vmatpush1.bf16.msra.mxu0 %v5242_v20  ;;  %5384 = vmatpush1.bf16.msra.mxu1 %v5244_v35  ;;  %v10812_v45 = vld [vmem:[#allocation8 + $0x30] sm:$0xff]  ;;  %v10816_v50 = vld [vmem:[#allocation8 + $0x40] sm:$0xff]  ;;  %v10819_v27 = vld [vmem:[#allocation8 + $0x68] sm:$0xff] }
 0xcc3   :  { %5292 = vmatprep.subr.bf16.mxu0 %v5247_v32  ;;  %5385 = vmatprep.subr.bf16.mxu1 %v5249_v33  ;;  %v10821_v9 = vld [vmem:[#allocation8 + $0x58] sm:$0xff]  ;;  %v10825_v5 = vld [vmem:[#allocation8 + $0x50] sm:$0xff]  ;;  %v10829_v51 = vld [vmem:[#allocation8 + $0x60] sm:$0xff] }
 0xcc4   :  { %v10831_v18 = vld [vmem:[#allocation8 + $0x78] sm:$0xff]  ;;  %v10834_v17 = vld [vmem:[#allocation8 + $0x88] sm:$0xff]  ;;  %v10842_v55 = vld [vmem:[#allocation8 + $0x80] sm:$0xff] }
 0xcc5   :  { %v10844_v57 = vld [vmem:[#allocation8 + $0x70] sm:$0xff]  ;;  %v10846_v58 = vld [vmem:[#allocation8 + $0xa8] sm:$0xff]  ;;  %v10848_v61 = vld [vmem:[#allocation8 + $0x98] sm:$0xff] }
 0xcc6   :  { %5293 = vmatpush1.bf16.msra.mxu0 %v5246_v30  ;;  %5386 = vmatpush1.bf16.msra.mxu1 %v5248_v29  ;;  %12539 = vst [vmem:[#allocation30_spill] sm:$0xff] %v10846_v58  ;;  %v10856_v56 = vld [vmem:[#allocation8 + $0xa0] sm:$0xff]  ;;  %v10858_v4 = vld [vmem:[#allocation8 + $0x90] sm:$0xff]  ;;  %v10862_v0 = vld [vmem:[#allocation8 + $0xc8] sm:$0xff] }
 0xcc7   :  { %5294 = vmatprep.subr.bf16.mxu0 %v5251_v3  ;;  %5387 = vmatprep.subr.bf16.mxu1 %v5253_v54  ;;  %12540 = vst [vmem:[#allocation34_spill] sm:$0xff] %v10856_v56  ;;  %12541 = vst [vmem:[#allocation33_spill] sm:$0xff] %v10858_v4  ;;  %v10864_v28 = vld [vmem:[#allocation8 + $0xb8] sm:$0xff]  ;;  %v10870_v6 = vld [vmem:[#allocation8 + $0xc0] sm:$0xff] }
 0xcc8   :  { %12542 = vst [vmem:[#allocation36_spill] sm:$0xff] %v10862_v0  ;;  %12543 = vst [vmem:[#allocation35_spill] sm:$0xff] %v10864_v28  ;;  %v10872_v31 = vld [vmem:[#allocation8 + $0xb0] sm:$0xff]  ;;  %v10874_v2 = vld [vmem:[#allocation8 + $0xd8] sm:$0xff] }
 0xcc9   :  { %12544 = vst [vmem:[#allocation37_spill] sm:$0xff] %v10870_v6  ;;  %12545 = vst [vmem:[#allocation62_spill] sm:$0xff] %v10872_v31  ;;  %v10876_v42 = vld [vmem:[#allocation8 + $0xe8] sm:$0xff]  ;;  %v10883_v34 = vld [vmem:[#allocation8 + $0xd0] sm:$0xff] }
 0xcca   :  { %5295 = vmatpush1.bf16.msra.mxu0 %v5250_v60  ;;  %5388 = vmatpush1.bf16.msra.mxu1 %v5252_v23  ;;  %12546 = vst [vmem:[#allocation58_spill] sm:$0xff] %v10874_v2  ;;  %12547 = vst [vmem:[#allocation49_spill] sm:$0xff] %v10876_v42  ;;  %v10886_v10 = vld [vmem:[#allocation8 + $0xe0] sm:$0xff]  ;;  %v10890_v24 = vld [vmem:[#allocation8 + $0xf8] sm:$0xff] }
 0xccb   :  { %5296 = vmatprep.subr.bf16.mxu0 %v5255_v11  ;;  %5389 = vmatprep.subr.bf16.mxu1 %v5257_v12  ;;  %12548 = vst [vmem:[#allocation60_spill] sm:$0xff] %v10883_v34  ;;  %12549 = vst [vmem:[#allocation50_spill] sm:$0xff] %v10886_v10  ;;  %v10895_v15 = vld [vmem:[#allocation8 + $0xf0] sm:$0xff]  ;;  %v5262_v41 = vld [vmem:[%s12187_s6] sm:$0xf] }
 0xccc   :  { %12550 = vst [vmem:[#allocation59_spill] sm:$0xff] %v10890_v24  ;;  %12551 = vst [vmem:[#allocation55_spill] sm:$0xff] %v10895_v15  ;;  %v12552_v44 = vld [vmem:[#allocation38_spill] sm:$0xff] }
 0xccd   :  { %v12553_v25 = vsub.s32 2, %v12552_v44  ;;  %v12554_v33 = vsub.s32 3, %v12552_v44  ;;  %v12555_v29 = vsub.s32 0, %v12552_v44  ;;  %v12556_v23 = vsub.s32 1, %v12552_v44 }
 0xcce   :  { %5297 = vmatpush1.bf16.msra.mxu0 %v5254_v7  ;;  %5390 = vmatpush1.bf16.msra.mxu1 %v5256_v47 }
 0xccf   :  { %5298 = vmatprep.subr.bf16.mxu0 %v5259_v49  ;;  %5391 = vmatprep.subr.bf16.mxu1 %v5261_v8  ;;  %v10947_v20 = vrot.slane %v5262_v41, %v12553_v25  ;;  %v10955_v30 = vrot.slane %v5262_v41, %v12554_v33  ;;  %v10959_v3 = vrot.slane %v5262_v41, %v12555_v29 }
 0xcd0   :  { %v10967_v11 = vrot.slane %v5262_v41, %v12556_v23 }
 0xcd2   :  { %5299 = vmatpush1.bf16.msra.mxu0 %v5258_v63  ;;  %5392 = vmatpush1.bf16.msra.mxu1 %v5260_v13 }
 0xcd3   :  { %5746 = vmatprep.subr.bf16.mxu0 %v10784_v59  ;;  %5787 = vmatprep.subr.bf16.mxu1 %v10786_v40 }
 0xcd5   :  { %5317 = vmatmul.mubr.bf16.vlgmr.msra.gmra.mrb[72].mxu0 %v5224_v26  ;;  %5410 = vmatmul.mubr.bf16.vlgmr.msra.gmra.mrb[72].mxu1 %v5224_v26 }
 0xcd6   :  { %5747 = vmatpush1.bf16.msra.mxu0 %v10790_v37  ;;  %5326 = vmatprep.mubr.bf16.mxu0 %v12433_v16 }
 0xcd7   :  { %5748 = vmatprep.subr.bf16.mxu0 %v10794_v21  ;;  %5419 = vmatprep.mubr.bf16.mxu1 %v12433_v16 }
 0xcd8   :  { %5788 = vmatpush1.bf16.msra.mxu1 %v10796_v52 }
 0xcd9   :  { %5789 = vmatprep.subr.bf16.mxu1 %v10800_v38 }
 0xcda   :  { %5749 = vmatpush1.bf16.msra.mxu0 %v10804_v1 }
 0xcdb   :  { %5750 = vmatprep.subr.bf16.mxu0 %v10807_v43 }
 0xcdc   :  { %5790 = vmatpush1.bf16.msra.mxu1 %v10812_v45 }
 0xcdd   :  { %5327 = vmatmul.mubr.bf16.gmra.mrb[76].mxu0 %v5225_v48  ;;  %5420 = vmatmul.mubr.bf16.gmra.mrb[76].mxu1 %v5225_v48 }
 0xcde   :  { %5751 = vmatpush1.bf16.msra.mxu0 %v10816_v50  ;;  %5336 = vmatprep.mubr.bf16.mxu0 %v12433_v16 }
 0xcdf   :  { %5429 = vmatprep.mubr.bf16.mxu1 %v12433_v16  ;;  %5752 = vmatprep.subr.bf16.mxu0 %v10819_v27 }
 0xce0   :  { %5791 = vmatprep.subr.bf16.mxu1 %v10821_v9 }
 0xce1   :  { %5792 = vmatpush1.bf16.msra.mxu1 %v10825_v5 }
 0xce2   :  { %5753 = vmatpush1.bf16.msra.mxu0 %v10829_v51  ;;  %5793 = vmatprep.subr.bf16.mxu1 %v10831_v18 }
 0xce3   :  { %5754 = vmatprep.subr.bf16.mxu0 %v10834_v17 }
 0xce5   :  { %5337 = vmatmul.mubr.bf16.gmra.mrb[80].mxu0 %v5226_v39  ;;  %5430 = vmatmul.mubr.bf16.gmra.mrb[80].mxu1 %v5226_v39 }
 0xce6   :  { %5346 = vmatprep.mubr.bf16.mxu0 %v12433_v16  ;;  %5439 = vmatprep.mubr.bf16.mxu1 %v12433_v16 }
 0xce7   :  { %5755 = vmatpush1.bf16.msra.mxu0 %v10842_v55  ;;  %5794 = vmatpush1.bf16.msra.mxu1 %v10844_v57 }
 0xce8   :  { %5756 = vmatprep.subr.bf16.mxu0 %v10846_v58  ;;  %5795 = vmatprep.subr.bf16.mxu1 %v10848_v61 }
 0xceb   :  { %5757 = vmatpush1.bf16.msra.mxu0 %v10856_v56  ;;  %5796 = vmatpush1.bf16.msra.mxu1 %v10858_v4 }
 0xcec   :  { %5758 = vmatprep.subr.bf16.mxu0 %v10862_v0  ;;  %5797 = vmatprep.subr.bf16.mxu1 %v10864_v28 }
 0xced   :  { %5347 = vmatmul.mubr.bf16.gmra.mrb[84].mxu0 %v5227_v62  ;;  %5440 = vmatmul.mubr.bf16.gmra.mrb[84].mxu1 %v5227_v62 }
 0xcee   :  { %5356 = vmatprep.mubr.bf16.mxu0 %v12433_v16  ;;  %5449 = vmatprep.mubr.bf16.mxu1 %v12433_v16 }
 0xcef   :  { %5759 = vmatpush1.bf16.msra.mxu0 %v10870_v6  ;;  %5798 = vmatpush1.bf16.msra.mxu1 %v10872_v31 }
 0xcf0   :  { %5799 = vmatprep.subr.bf16.mxu1 %v10874_v2  ;;  %5760 = vmatprep.subr.bf16.mxu0 %v10876_v42 }
 0xcf3   :  { %5800 = vmatpush1.bf16.msra.mxu1 %v10883_v34  ;;  %5761 = vmatpush1.bf16.msra.mxu0 %v10886_v10 }
 0xcf4   :  { %5801 = vmatprep.subr.bf16.mxu1 %v10890_v24  ;;  %5888 = vmatprep.subr.bf16.mxu0 %v10784_v59 }
 0xcf5   :  { %5357 = vmatmul.mubr.bf16.gmra.mrb[88].mxu0 %v5228_v36  ;;  %5450 = vmatmul.mubr.bf16.gmra.mrb[88].mxu1 %v5228_v36 }
 0xcf6   :  { %5366 = vmatprep.mubr.bf16.mxu0 %v12433_v16  ;;  %5459 = vmatprep.mubr.bf16.mxu1 %v12433_v16 }
 0xcf7   :  { %5802 = vmatpush1.bf16.msra.mxu1 %v10895_v15 }
 0xcf8   :  { %5929 = vmatprep.subr.bf16.mxu1 %v10786_v40 }
 0xcfd   :  { %5367 = vmatmul.mubr.bf16.gmra.mrb[92].mxu0 %v5229_v19  ;;  %5460 = vmatmul.mubr.bf16.gmra.mrb[92].mxu1 %v5229_v19 }
 0xcfe   :  { %5778 = vmatprep.mubr.bf16.mxu0 %v12433_v16  ;;  %5819 = vmatprep.mubr.bf16.mxu1 %v12433_v16 }
 0xd05   :  { %5779 = vmatmul.mubr.bf16.vlgmr.msra.gmra.mrb[96].mxu0 %v12433_v16  ;;  %5820 = vmatmul.mubr.bf16.vlgmr.msra.gmra.mrb[96].mxu1 %v12433_v16 }
 0xd06   :  { %5889 = vmatpush1.bf16.msra.mxu0 %v10790_v37  ;;  %5930 = vmatpush1.bf16.msra.mxu1 %v10796_v52 }
 0xd07   :  { %5890 = vmatprep.subr.bf16.mxu0 %v10794_v21  ;;  %5931 = vmatprep.subr.bf16.mxu1 %v10800_v38 }
 0xd08   :  { %5920 = vmatprep.mubr.bf16.mxu0 %v12433_v16  ;;  %5961 = vmatprep.mubr.bf16.mxu1 %v12433_v16 }
 0xd0a   :  { %5891 = vmatpush1.bf16.msra.mxu0 %v10804_v1  ;;  %5932 = vmatpush1.bf16.msra.mxu1 %v10812_v45 }
 0xd0b   :  { %5892 = vmatprep.subr.bf16.mxu0 %v10807_v43  ;;  %5933 = vmatprep.subr.bf16.mxu1 %v10821_v9 }
 0xd0e   :  { %5893 = vmatpush1.bf16.msra.mxu0 %v10816_v50  ;;  %5934 = vmatpush1.bf16.msra.mxu1 %v10825_v5 }
 0xd0f   :  { %5894 = vmatprep.subr.bf16.mxu0 %v10819_v27  ;;  %5935 = vmatprep.subr.bf16.mxu1 %v10831_v18 }
 0xd12   :  { %5895 = vmatpush1.bf16.msra.mxu0 %v10829_v51  ;;  %5936 = vmatpush1.bf16.msra.mxu1 %v10844_v57 }
 0xd13   :  { %5896 = vmatprep.subr.bf16.mxu0 %v10834_v17  ;;  %5937 = vmatprep.subr.bf16.mxu1 %v10848_v61 }
 0xd16   :  { %5897 = vmatpush1.bf16.msra.mxu0 %v10842_v55  ;;  %5938 = vmatpush1.bf16.msra.mxu1 %v10858_v4 }
 0xd17   :  { %5898 = vmatprep.subr.bf16.mxu0 %v10846_v58  ;;  %5939 = vmatprep.subr.bf16.mxu1 %v10864_v28 }
 0xd1a   :  { %5899 = vmatpush1.bf16.msra.mxu0 %v10856_v56  ;;  %5940 = vmatpush1.bf16.msra.mxu1 %v10872_v31 }
 0xd1b   :  { %5900 = vmatprep.subr.bf16.mxu0 %v10862_v0  ;;  %5941 = vmatprep.subr.bf16.mxu1 %v10874_v2 }
 0xd1e   :  { %5901 = vmatpush1.bf16.msra.mxu0 %v10870_v6  ;;  %5942 = vmatpush1.bf16.msra.mxu1 %v10883_v34 }
 0xd1f   :  { %5902 = vmatprep.subr.bf16.mxu0 %v10876_v42  ;;  %5943 = vmatprep.subr.bf16.mxu1 %v10890_v24 }
 0xd22   :  { %5903 = vmatpush1.bf16.msra.mxu0 %v10886_v10  ;;  %5944 = vmatpush1.bf16.msra.mxu1 %v10895_v15 }
 0xd23   :  { %6030 = vmatprep.subr.bf16.mxu0 %v10784_v59  ;;  %6071 = vmatprep.subr.bf16.mxu1 %v10786_v40 }
 0xda8   :  { %v10949_v35 = vpop.f32.mrb[72].mxu0  ;;  %v10951_v32 = vpop.f32.mrb[72].mxu1 }
 0xda9   :  { %v10961_v54 = vpop.f32.mrb[73].mxu0  ;;  %v10963_v60 = vpop.f32.mrb[73].mxu1 }
 0xdaa   :  { %v5322_v12 = vpop.f32.mrb[74].mxu0  ;;  %v5415_v7 = vpop.f32.mrb[74].mxu1 }
 0xdab   :  { %v10970_v47 = vadd.f32 %v5322_v12, %v10959_v3  ;;  %v5324_v49 = vpop.f32.mrb[75].mxu0  ;;  %v10973_v8 = vadd.f32 %v5415_v7, %v10947_v20  ;;  %v5417_v63 = vpop.f32.mrb[75].mxu1 }
 0xdac   :  { %v10976_v13 = vadd.f32 %v5324_v49, %v10967_v11  ;;  %v10979_v26 = vadd.f32 %v5417_v63, %v10955_v30 }
 0xdad   :  { %12557 = vst [vmem:[#allocation52_spill] sm:$0xff] %v10973_v8 }
 0xdae   :  { %12558 = vst [vmem:[#allocation56_spill] sm:$0xff] %v10976_v13  ;;  %12559 = vst [vmem:[#allocation53_spill] sm:$0xff] %v10979_v26 }
 0xdb0   :  { %v5328_v48 = vpop.f32.mrb[76].mxu0  ;;  %v5421_v39 = vpop.f32.mrb[76].mxu1 }
 0xdb1   :  { %v10982_v62 = vadd.f32 %v5328_v48, %v10959_v3  ;;  %v5330_v36 = vpop.f32.mrb[77].mxu0  ;;  %v10985_v19 = vadd.f32 %v5421_v39, %v10947_v20  ;;  %v5423_v41 = vpop.f32.mrb[77].mxu1 }
 0xdb2   :  { %v10988_v44 = vadd.f32 %v5330_v36, %v10967_v11  ;;  %v5332_v25 = vpop.f32.mrb[78].mxu0  ;;  %v10991_v33 = vadd.f32 %v5423_v41, %v10955_v30  ;;  %v5425_v29 = vpop.f32.mrb[78].mxu1 }
 0xdb3   :  { %12560 = vst [vmem:[#allocation57_spill] sm:$0xff] %v10985_v19  ;;  %v10994_v23 = vadd.f32 %v5332_v25, %v10959_v3  ;;  %v5334_v12 = vpop.f32.mrb[79].mxu0  ;;  %v10997_v7 = vadd.f32 %v5425_v29, %v10947_v20  ;;  %v5427_v49 = vpop.f32.mrb[79].mxu1 }
 0xdb4   :  { %12561 = vst [vmem:[#allocation54_spill] sm:$0xff] %v10988_v44  ;;  %12562 = vst [vmem:[#allocation63_spill] sm:$0xff] %v10991_v33  ;;  %v11000_v63 = vadd.f32 %v5334_v12, %v10967_v11  ;;  %v11003_v48 = vadd.f32 %v5427_v49, %v10955_v30 }
 0xdb5   :  { %12563 = vst [vmem:[#allocation64_spill] sm:$0xff] %v10997_v7 }
 0xdb6   :  { %12564 = vst [vmem:[#allocation51_spill] sm:$0xff] %v11000_v63  ;;  %12565 = vst [vmem:[#allocation61_spill] sm:$0xff] %v11003_v48 }
 0xdb8   :  { %v5338_v39 = vpop.f32.mrb[80].mxu0  ;;  %v5431_v36 = vpop.f32.mrb[80].mxu1 }
 0xdb9   :  { %v5339_v41 = vadd.f32 %v5338_v39, %v10959_v3  ;;  %v5340_v40 = vpop.f32.mrb[81].mxu0  ;;  %v11007_v59 = vadd.f32 %v5431_v36, %v10947_v20  ;;  %v5433_v25 = vpop.f32.mrb[81].mxu1 }
 0xdba   :  { %v11010_v15 = vadd.f32 %v5340_v40, %v10967_v11  ;;  %v5342_v29 = vpop.f32.mrb[82].mxu0  ;;  %v11013_v10 = vadd.f32 %v5433_v25, %v10955_v30  ;;  %v5435_v12 = vpop.f32.mrb[82].mxu1 }
 0xdbb   :  { %12566 = vst [vmem:[#allocation31_spill] sm:$0xff] %v11007_v59  ;;  %v5343_v49 = vadd.f32 %v5342_v29, %v10959_v3  ;;  %v5344_v24 = vpop.f32.mrb[83].mxu0  ;;  %v11017_v42 = vadd.f32 %v5435_v12, %v10947_v20  ;;  %v5437_v39 = vpop.f32.mrb[83].mxu1 }
 0xdbc   :  { %12567 = vst [vmem:[#allocation71_spill] sm:$0xff] %v11010_v15  ;;  %12568 = vst [vmem:[#allocation45_spill] sm:$0xff] %v11013_v10  ;;  %v11020_v34 = vadd.f32 %v5344_v24, %v10967_v11  ;;  %v11023_v36 = vadd.f32 %v5437_v39, %v10955_v30  ;;  %v11209_v10 = vadd.f32 %v10961_v54, %v10967_v11 }
 0xdbd   :  { %12569 = vst [vmem:[#allocation65_spill] sm:$0xff] %v11017_v42 }
 0xdbe   :  { %12570 = vst [vmem:[#allocation46_spill] sm:$0xff] %v11020_v34  ;;  %12571 = vst [vmem:[#allocation66_spill] sm:$0xff] %v11023_v36 }
 0xdbf   :  { %12593 = vst [vmem:[#allocation79_spill] sm:$0xff] %v11209_v10 }
 0xdc0   :  { %v5348_v40 = vpop.f32.mrb[84].mxu0  ;;  %v5441_v6 = vpop.f32.mrb[84].mxu1 }
 0xdc1   :  { %v5349_v2 = vadd.f32 %v5348_v40, %v10959_v3  ;;  %v11027_v25 = vadd.f32 %v5441_v6, %v10947_v20  ;;  %v5350_v0 = vpop.f32.mrb[85].mxu0  ;;  %v5443_v29 = vpop.f32.mrb[85].mxu1 }
 0xdc2   :  { %v11030_v31 = vadd.f32 %v5350_v0, %v10967_v11  ;;  %v11033_v12 = vadd.f32 %v5443_v29, %v10955_v30  ;;  %v5352_v24 = vpop.f32.mrb[86].mxu0  ;;  %v5445_v56 = vpop.f32.mrb[86].mxu1 }
 0xdc3   :  { %12572 = vst [vmem:[#allocation47_spill] sm:$0xff] %v11027_v25  ;;  %v5353_v39 = vadd.f32 %v5352_v24, %v10959_v3  ;;  %v11037_v28 = vadd.f32 %v5445_v56, %v10947_v20  ;;  %v5354_v58 = vpop.f32.mrb[87].mxu0  ;;  %v5447_v40 = vpop.f32.mrb[87].mxu1  ;;  %v11041_v6 = vsel %vm200_vm0, %v5349_v2, %v5343_v49 }
 0xdc4   :  { %12573 = vst [vmem:[#allocation67_spill] sm:$0xff] %v11030_v31  ;;  %12574 = vst [vmem:[#allocation27_spill] sm:$0xff] %v11033_v12  ;;  %v11048_v29 = vadd.f32 %v5354_v58, %v10967_v11  ;;  %v11051_v4 = vadd.f32 %v5447_v40, %v10955_v30  ;;  %v11071_v40 = vsel %vm200_vm0, %v5343_v49, %v5349_v2 }
 0xdc5   :  { %12575 = vst [vmem:[#allocation72_spill] sm:$0xff] %v11037_v28  ;;  %12576 = vst [vmem:[#allocation42_spill] sm:$0xff] %v11041_v6  ;;  %v11063_v6 = vsel %vm200_vm0, %v5353_v39, %v5339_v41  ;;  %v11095_v56 = vsel %vm200_vm0, %v5339_v41, %v5353_v39 }
 0xdc6   :  { %12577 = vst [vmem:[#allocation68_spill] sm:$0xff] %v11048_v29  ;;  %12578 = vst [vmem:[#allocation43_spill] sm:$0xff] %v11051_v4 }
 0xdc7   :  { %12579 = vst [vmem:[#allocation69_spill] sm:$0xff] %v11063_v6  ;;  %12580 = vst [vmem:[#allocation44_spill] sm:$0xff] %v11071_v40 }
 0xdc8   :  { %12581 = vst [vmem:[#allocation70_spill] sm:$0xff] %v11095_v56  ;;  %v5358_v49 = vpop.f32.mrb[88].mxu0  ;;  %v5451_v58 = vpop.f32.mrb[88].mxu1 }
 0xdc9   :  { %v5359_v41 = vadd.f32 %v5358_v49, %v10959_v3  ;;  %v11111_v39 = vadd.f32 %v5451_v58, %v10947_v20  ;;  %v5360_v56 = vpop.f32.mrb[89].mxu0  ;;  %v5453_v40 = vpop.f32.mrb[89].mxu1 }
 0xdca   :  { %v11114_v24 = vadd.f32 %v5360_v56, %v10967_v11  ;;  %v11117_v36 = vadd.f32 %v5453_v40, %v10955_v30  ;;  %v5362_v0 = vpop.f32.mrb[90].mxu0  ;;  %v5455_v12 = vpop.f32.mrb[90].mxu1 }
 0xdcb   :  { %12582 = vst [vmem:[#allocation29_spill] sm:$0xff] %v11111_v39  ;;  %v5363_v34 = vadd.f32 %v5362_v0, %v10959_v3  ;;  %v11121_v2 = vadd.f32 %v5455_v12, %v10947_v20  ;;  %v5364_v31 = vpop.f32.mrb[91].mxu0  ;;  %v5457_v49 = vpop.f32.mrb[91].mxu1  ;;  %v11126_v58 = vsel %vm200_vm0, %v5359_v41, %v10994_v23 }
 0xdcc   :  { %12583 = vst [vmem:[#allocation82_spill] sm:$0xff] %v11114_v24  ;;  %12584 = vst [vmem:[#allocation39_spill] sm:$0xff] %v11117_v36  ;;  %v11133_v40 = vadd.f32 %v5364_v31, %v10967_v11  ;;  %v11136_v0 = vadd.f32 %v5457_v49, %v10955_v30  ;;  %v11158_v49 = vsel %vm200_vm0, %v10994_v23, %v5359_v41 }
 0xdcd   :  { %12585 = vst [vmem:[#allocation74_spill] sm:$0xff] %v11121_v2  ;;  %12586 = vst [vmem:[#allocation40_spill] sm:$0xff] %v11126_v58  ;;  %v11149_v56 = vsel %vm200_vm0, %v5363_v34, %v10982_v62  ;;  %v11183_v42 = vsel %vm200_vm0, %v10982_v62, %v5363_v34  ;;  %v5319_v34 = vadd.f32 %v10949_v35, %v10959_v3 }
 0xdce   :  { %12587 = vst [vmem:[#allocation77_spill] sm:$0xff] %v11133_v40  ;;  %12588 = vst [vmem:[#allocation41_spill] sm:$0xff] %v11136_v0  ;;  %v11201_v62 = vadd.f32 %v10951_v32, %v10947_v20  ;;  %v11213_v41 = vadd.f32 %v10963_v60, %v10955_v30 }
 0xdcf   :  { %12589 = vst [vmem:[#allocation78_spill] sm:$0xff] %v11158_v49  ;;  %12590 = vst [vmem:[#allocation26_spill] sm:$0xff] %v11183_v42 }
 0xdd0   :  { %v5368_v12 = vpop.f32.mrb[92].mxu0  ;;  %v5461_v49 = vpop.f32.mrb[92].mxu1  ;;  %12591 = vst [vmem:[#allocation83_spill] sm:$0xff] %v11201_v62  ;;  %12594 = vst [vmem:[#allocation75_spill] sm:$0xff] %v11213_v41 }
 0xdd1   :  { %v5369_v31 = vadd.f32 %v5368_v12, %v10959_v3  ;;  %v11205_v42 = vadd.f32 %v5461_v49, %v10947_v20  ;;  %v5370_v23 = vpop.f32.mrb[93].mxu0  ;;  %v5463_v25 = vpop.f32.mrb[93].mxu1 }
 0xdd2   :  { %v11216_v35 = vadd.f32 %v5370_v23, %v10967_v11  ;;  %v11219_v32 = vadd.f32 %v5463_v25, %v10955_v30  ;;  %v5372_v12 = vpop.f32.mrb[94].mxu0  ;;  %v5465_v4 = vpop.f32.mrb[94].mxu1 }
 0xdd3   :  { %12592 = vst [vmem:[#allocation73_spill] sm:$0xff] %v11205_v42  ;;  %v5373_v49 = vadd.f32 %v5372_v12, %v10959_v3  ;;  %v11223_v15 = vadd.f32 %v5465_v4, %v10947_v20  ;;  %v5374_v29 = vpop.f32.mrb[95].mxu0  ;;  %v5467_v54 = vpop.f32.mrb[95].mxu1  ;;  %v11228_v60 = vsel %vm200_vm0, %v5369_v31, %v10970_v47 }
 0xdd4   :  { %12595 = vst [vmem:[#allocation80_spill] sm:$0xff] %v11216_v35  ;;  %12596 = vst [vmem:[#allocation76_spill] sm:$0xff] %v11219_v32  ;;  %v11235_v23 = vadd.f32 %v5374_v29, %v10967_v11  ;;  %v11238_v3 = vadd.f32 %v5467_v54, %v10955_v30  ;;  %v11257_v30 = vsel %vm200_vm0, %v10970_v47, %v5369_v31 }
 0xdd5   :  { %12597 = vst [vmem:[#allocation81_spill] sm:$0xff] %v11223_v15  ;;  %v5526_v12 = vsel %vm200_vm0, %v5373_v49, %v5319_v34  ;;  %v5528_v11 = vsel %vm9766_vm1, %v11223_v15, %v11201_v62  ;;  %12600 = vst [vmem:[#allocation85_spill] sm:$0xff] %v11257_v30  ;;  %v11281_v29 = vsel %vm200_vm0, %v5319_v34, %v5373_v49 }
 0xdd6   :  { %12598 = vst [vmem:[#allocation84_spill] sm:$0xff] %v11235_v23  ;;  %12599 = vst [vmem:[#allocation38_spill] sm:$0xff] %v11238_v3  ;;  %v5527_v54 = vsel %vm9774_vm2, %v11235_v23, %v11209_v10  ;;  %v5529_v20 = vsel %vm9778_vm3, %v11238_v3, %v11213_v41  ;;  %v12619_v10 = vsel %vm9774_vm2, %v11216_v35, %v10976_v13 }
 0xdd7   :  { %12601 = vst [vmem:[#allocation86_spill] sm:$0xff] %v11281_v29 }
 0xdd8   :  { %v5780_v31 = vpop.f32.mrb[96].mxu0  ;;  %v5821_v30 = vpop.f32.mrb[96].mxu1 }
 0xdd9   :  { %v5828_v53 = vadd.f32 %v5780_v31, %v5526_v12  ;;  %v5830_v34 = vadd.f32 %v5821_v30, %v5528_v11  ;;  %v5782_v49 = vpop.f32.mrb[97].mxu0  ;;  %v5823_v29 = vpop.f32.mrb[97].mxu1  ;;  %v12611_v31 = vld [vmem:[#allocation60_spill] sm:$0xff] }
 0xdda   :  { %v5829_v59 = vadd.f32 %v5782_v49, %v5527_v54  ;;  %v5831_v28 = vadd.f32 %v5823_v29, %v5529_v20  ;;  %v5784_v6 = vpop.f32.mrb[98].mxu0  ;;  %v5825_v4 = vpop.f32.mrb[98].mxu1  ;;  %v12609_v29 = vld [vmem:[#allocation58_spill] sm:$0xff]  ;;  %v12613_v49 = vld [vmem:[#allocation59_spill] sm:$0xff] }
 0xddb   :  { %v5832_v15 = vmul.f32 0.5, %v5828_v53  ;;  %v5785_v62 = vpop.f32.mrb[99].mxu0  ;;  %v5826_v48 = vpop.f32.mrb[99].mxu1  ;;  %v5834_v25 = vmul.f32 0.5, %v5830_v34  ;;  %v12608_v4 = vld [vmem:[#allocation36_spill] sm:$0xff]  ;;  %v12612_v34 = vld [vmem:[#allocation49_spill] sm:$0xff] }
 0xddc   :  { %v5833_v36 = vmul.f32 0.5, %v5829_v59  ;;  %v12604_v62 = vld [vmem:[#allocation30_spill] sm:$0xff] }
 0xddd   :  { %9123 = vtanh.f32 %v5832_v15 }
 0xdde   :  { %9125 = vtanh.f32 %v5833_v36 }
 0xddf   :  { %9127 = vtanh.f32 %v5831_v28 }
 0xde0   :  { %9129 = vtanh.f32 %v5834_v25  ;;  %v12605_v25 = vld [vmem:[#allocation35_spill] sm:$0xff] }
 0xde7   :  { %v9124_v23 = vpop.eup %9123 }
 0xde8   :  { %v5838_v47 = vmul.f32 0.5, %v9124_v23  ;;  %v9126_v3 = vpop.eup %9125  ;;  %v12606_v23 = vld [vmem:[#allocation34_spill] sm:$0xff] }
 0xde9   :  { %v5839_v12 = vmul.f32 0.5, %v9126_v3  ;;  %v9128_v11 = vpop.eup %9127  ;;  %v12607_v3 = vld [vmem:[#allocation62_spill] sm:$0xff] }
 0xdea   :  { %v5841_v41 = vadd.f32 0.5, %v5838_v47  ;;  %v9130_v53 = vpop.eup %9129  ;;  %v12610_v47 = vld [vmem:[#allocation37_spill] sm:$0xff] }
 0xdeb   :  { %v5842_v30 = vadd.f32 0.5, %v5839_v12  ;;  %v5840_v59 = vmul.f32 0.5, %v9130_v53  ;;  %v12614_v12 = vld [vmem:[#allocation50_spill] sm:$0xff] }
 0xdec   :  { %v5846_v54 = vmul.f32 %v9128_v11, %v5841_v41  ;;  %v12603_v41 = vld [vmem:[#allocation33_spill] sm:$0xff]  ;;  %v12615_v11 = vld [vmem:[#allocation55_spill] sm:$0xff] }
 0xded   :  { %v5845_v20 = vmul.f32 0.0, %v5842_v30  ;;  %v5843_v15 = vadd.f32 0.5, %v5840_v59  ;;  %v12616_v30 = vld [vmem:[#allocation28_spill] sm:$0xff] }
 0xdef   :  { %v11295_v6 = vadd.f32 %v5846_v54, %v5845_v20  ;;  %v12617_v54 = vld [vmem:[#allocation32_spill] sm:$0xff] }
 0xdf1   :  { %9131 = vtanh.f32 %v11295_v6 }
 0xdfb   :  { %v9132_v48 = vpop.eup %9131 }
 0xdfc   :  { %v11298_v28 = vmul.f32 %v9132_v48, %v5843_v15  ;;  %v12618_v15 = vsel %vm9766_vm1, %v11205_v42, %v10973_v8 }
 0xdfe   :  { %12602 = vst [vmem:[#allocation87_spill] sm:$0xff] %v11298_v28  ;;  %v5855_v36 = vpack.c.bf16 %v11298_v28, %v11298_v28 }
 0xe00   :  { %5921 = vmatmul.mubr.bf16.vlgmr.msra.gmra.mrb[100].mxu0 %v5855_v36  ;;  %5962 = vmatmul.mubr.bf16.vlgmr.msra.gmra.mrb[100].mxu1 %v5855_v36 }
 0xe01   :  { %6031 = vmatpush1.bf16.msra.mxu0 %v10790_v37  ;;  %6072 = vmatpush1.bf16.msra.mxu1 %v10796_v52 }
 0xe02   :  { %6032 = vmatprep.subr.bf16.mxu0 %v10794_v21  ;;  %6073 = vmatprep.subr.bf16.mxu1 %v10800_v38 }
 0xe03   :  { %6062 = vmatprep.mubr.bf16.mxu0 %v12433_v16  ;;  %6103 = vmatprep.mubr.bf16.mxu1 %v12433_v16 }
 0xe05   :  { %6033 = vmatpush1.bf16.msra.mxu0 %v10804_v1  ;;  %6074 = vmatpush1.bf16.msra.mxu1 %v10812_v45 }
 0xe06   :  { %6034 = vmatprep.subr.bf16.mxu0 %v10807_v43  ;;  %6075 = vmatprep.subr.bf16.mxu1 %v10821_v9 }
 0xe09   :  { %6035 = vmatpush1.bf16.msra.mxu0 %v10816_v50  ;;  %6076 = vmatpush1.bf16.msra.mxu1 %v10825_v5 }
 0xe0a   :  { %6036 = vmatprep.subr.bf16.mxu0 %v10819_v27  ;;  %6077 = vmatprep.subr.bf16.mxu1 %v10831_v18 }
 0xe0d   :  { %6037 = vmatpush1.bf16.msra.mxu0 %v10829_v51  ;;  %6078 = vmatpush1.bf16.msra.mxu1 %v10844_v57 }
 0xe0e   :  { %6038 = vmatprep.subr.bf16.mxu0 %v10834_v17  ;;  %6079 = vmatprep.subr.bf16.mxu1 %v10848_v61 }
 0xe11   :  { %6039 = vmatpush1.bf16.msra.mxu0 %v10842_v55  ;;  %6080 = vmatpush1.bf16.msra.mxu1 %v12603_v41 }
 0xe12   :  { %6040 = vmatprep.subr.bf16.mxu0 %v12604_v62  ;;  %6081 = vmatprep.subr.bf16.mxu1 %v12605_v25 }
 0xe15   :  { %6041 = vmatpush1.bf16.msra.mxu0 %v12606_v23  ;;  %6082 = vmatpush1.bf16.msra.mxu1 %v12607_v3 }
 0xe16   :  { %6042 = vmatprep.subr.bf16.mxu0 %v12608_v4  ;;  %6083 = vmatprep.subr.bf16.mxu1 %v12609_v29 }
 0xe19   :  { %6043 = vmatpush1.bf16.msra.mxu0 %v12610_v47  ;;  %6084 = vmatpush1.bf16.msra.mxu1 %v12611_v31 }
 0xe1a   :  { %6044 = vmatprep.subr.bf16.mxu0 %v12612_v34  ;;  %6085 = vmatprep.subr.bf16.mxu1 %v12613_v49 }
 0xe1d   :  { %6045 = vmatpush1.bf16.msra.mxu0 %v12614_v12  ;;  %6086 = vmatpush1.bf16.msra.mxu1 %v12615_v11 }
 0xe1e   :  { %6172 = vmatprep.subr.bf16.mxu0 %v12616_v30  ;;  %6213 = vmatprep.subr.bf16.mxu1 %v12617_v54  ;;  %v12620_v54 = vsel %vm9778_vm3, %v11219_v32, %v10979_v26  ;;  %v12644_v26 = vld [vmem:[#allocation43_spill] sm:$0xff] }
 0xed3   :  { %v5922_v20 = vpop.f32.mrb[100].mxu0  ;;  %v5963_v53 = vpop.f32.mrb[100].mxu1 }
 0xed4   :  { %v5970_v59 = vadd.f32 %v5922_v20, %v11228_v60  ;;  %v5972_v48 = vadd.f32 %v5963_v53, %v12618_v15  ;;  %v5924_v36 = vpop.f32.mrb[101].mxu0  ;;  %v5965_v28 = vpop.f32.mrb[101].mxu1 }
 0xed5   :  { %v5971_v30 = vadd.f32 %v5924_v36, %v12619_v10  ;;  %v5973_v60 = vadd.f32 %v5965_v28, %v12620_v54  ;;  %v5926_v20 = vpop.f32.mrb[102].mxu0  ;;  %v5967_v63 = vpop.f32.mrb[102].mxu1 }
 0xed6   :  { %v5974_v24 = vmul.f32 0.5, %v5970_v59  ;;  %v5927_v7 = vpop.f32.mrb[103].mxu0  ;;  %v5968_v42 = vpop.f32.mrb[103].mxu1  ;;  %v5976_v15 = vmul.f32 0.5, %v5972_v48 }
 0xed7   :  { %v5975_v53 = vmul.f32 0.5, %v5971_v30 }
 0xed8   :  { %9133 = vtanh.f32 %v5974_v24 }
 0xed9   :  { %9135 = vtanh.f32 %v5975_v53  ;;  %v11418_v53 = vld [vmem:[#allocation8 + $0x8] sm:$0xff] }
 0xeda   :  { %9137 = vtanh.f32 %v5973_v60 }
 0xedb   :  { %9139 = vtanh.f32 %v5976_v15  ;;  %v11420_v15 = vld [vmem:[#allocation8 + $0x18] sm:$0xff] }
 0xee2   :  { %v9134_v8 = vpop.eup %9133 }
 0xee3   :  { %v5980_v39 = vmul.f32 0.5, %v9134_v8  ;;  %v9136_v35 = vpop.eup %9135 }
 0xee4   :  { %v5981_v36 = vmul.f32 0.5, %v9136_v35  ;;  %v9138_v13 = vpop.eup %9137 }
 0xee5   :  { %v5983_v10 = vadd.f32 0.5, %v5980_v39  ;;  %v9140_v42 = vpop.eup %9139 }
 0xee6   :  { %v5984_v58 = vadd.f32 0.5, %v5981_v36  ;;  %v5982_v7 = vmul.f32 0.5, %v9140_v42  ;;  %v11426_v36 = vld [vmem:[#allocation8 + $0x10] sm:$0xff]  ;;  %v11436_v42 = vld [vmem:[#allocation8 + $0x20] sm:$0xff] }
 0xee7   :  { %v5988_v32 = vmul.f32 %v9138_v13, %v5983_v10  ;;  %v11424_v10 = vld [vmem:[#allocation8] sm:$0xff] }
 0xee8   :  { %v5987_v28 = vmul.f32 %v5984_v58, %v11295_v6  ;;  %v5985_v24 = vadd.f32 0.5, %v5982_v7  ;;  %v11438_v7 = vld [vmem:[#allocation8 + $0x30] sm:$0xff] }
 0xeea   :  { %v11353_v63 = vadd.f32 %v5988_v32, %v5987_v28  ;;  %v11430_v28 = vld [vmem:[#allocation8 + $0x28] sm:$0xff] }
 0xeec   :  { %9141 = vtanh.f32 %v11353_v63 }
 0xef6   :  { %v9142_v59 = vpop.eup %9141 }
 0xef7   :  { %v11356_v48 = vmul.f32 %v9142_v59, %v5985_v24  ;;  %v11442_v24 = vld [vmem:[#allocation8 + $0x48] sm:$0xff]  ;;  %v11444_v59 = vld [vmem:[#allocation8 + $0x58] sm:$0xff] }
 0xef9   :  { %12621 = vst [vmem:[#allocation33_spill] sm:$0xff] %v11356_v48  ;;  %v5997_v8 = vpack.c.bf16 %v11356_v48, %v11356_v48 }
 0xefb   :  { %6063 = vmatmul.mubr.bf16.vlgmr.msra.gmra.mrb[104].mxu0 %v5997_v8  ;;  %6104 = vmatmul.mubr.bf16.vlgmr.msra.gmra.mrb[104].mxu1 %v5997_v8  ;;  %v11448_v8 = vld [vmem:[#allocation8 + $0x40] sm:$0xff] }
 0xefc   :  { %6173 = vmatpush1.bf16.msra.mxu0 %v10790_v37  ;;  %6214 = vmatpush1.bf16.msra.mxu1 %v10796_v52 }
 0xefd   :  { %6174 = vmatprep.subr.bf16.mxu0 %v10794_v21  ;;  %6215 = vmatprep.subr.bf16.mxu1 %v10800_v38  ;;  %v12622_v38 = vsel %vm9766_vm1, %v11121_v2, %v10985_v19 }
 0xefe   :  { %6204 = vmatprep.mubr.bf16.mxu0 %v12433_v16  ;;  %6245 = vmatprep.mubr.bf16.mxu1 %v12433_v16 }
 0xf00   :  { %6175 = vmatpush1.bf16.msra.mxu0 %v10804_v1  ;;  %6216 = vmatpush1.bf16.msra.mxu1 %v10812_v45 }
 0xf01   :  { %6176 = vmatprep.subr.bf16.mxu0 %v10807_v43  ;;  %6217 = vmatprep.subr.bf16.mxu1 %v10821_v9  ;;  %v12624_v9 = vsel %vm9778_vm3, %v11136_v0, %v10991_v33  ;;  %v12645_v0 = vld [vmem:[#allocation45_spill] sm:$0xff] }
 0xf02   :  { %v12646_v33 = vsel %vm9778_vm3, %v12644_v26, %v12645_v0 }
 0xf04   :  { %6177 = vmatpush1.bf16.msra.mxu0 %v10816_v50  ;;  %6218 = vmatpush1.bf16.msra.mxu1 %v10825_v5  ;;  %v12623_v50 = vsel %vm9774_vm2, %v11133_v40, %v10988_v44 }
 0xf05   :  { %6178 = vmatprep.subr.bf16.mxu0 %v10819_v27  ;;  %6219 = vmatprep.subr.bf16.mxu1 %v10831_v18 }
 0xf08   :  { %6179 = vmatpush1.bf16.msra.mxu0 %v10829_v51  ;;  %6220 = vmatpush1.bf16.msra.mxu1 %v10844_v57 }
 0xf09   :  { %6180 = vmatprep.subr.bf16.mxu0 %v10834_v17  ;;  %6221 = vmatprep.subr.bf16.mxu1 %v10848_v61 }
 0xf0c   :  { %6181 = vmatpush1.bf16.msra.mxu0 %v10842_v55  ;;  %6222 = vmatpush1.bf16.msra.mxu1 %v12603_v41 }
 0xf0d   :  { %6182 = vmatprep.subr.bf16.mxu0 %v12604_v62  ;;  %6223 = vmatprep.subr.bf16.mxu1 %v12605_v25 }
 0xf10   :  { %6183 = vmatpush1.bf16.msra.mxu0 %v12606_v23  ;;  %6224 = vmatpush1.bf16.msra.mxu1 %v12607_v3 }
 0xf11   :  { %6184 = vmatprep.subr.bf16.mxu0 %v12608_v4  ;;  %6225 = vmatprep.subr.bf16.mxu1 %v12609_v29 }
 0xf14   :  { %6185 = vmatpush1.bf16.msra.mxu0 %v12610_v47  ;;  %6226 = vmatpush1.bf16.msra.mxu1 %v12611_v31 }
 0xf15   :  { %6186 = vmatprep.subr.bf16.mxu0 %v12612_v34  ;;  %6227 = vmatprep.subr.bf16.mxu1 %v12613_v49 }
 0xf18   :  { %6187 = vmatpush1.bf16.msra.mxu0 %v12614_v12  ;;  %6228 = vmatpush1.bf16.msra.mxu1 %v12615_v11 }
 0xf19   :  { %6314 = vmatprep.subr.bf16.mxu0 %v11418_v53  ;;  %6355 = vmatprep.subr.bf16.mxu1 %v11420_v15 }
 0xfce   :  { %v6064_v37 = vpop.f32.mrb[104].mxu0  ;;  %v6105_v21 = vpop.f32.mrb[104].mxu1 }
 0xfcf   :  { %v6112_v52 = vadd.f32 %v6064_v37, %v11149_v56  ;;  %v6114_v1 = vadd.f32 %v6105_v21, %v12622_v38  ;;  %v6066_v43 = vpop.f32.mrb[105].mxu0  ;;  %v6107_v45 = vpop.f32.mrb[105].mxu1  ;;  %v11450_v37 = vld [vmem:[#allocation8 + $0x50] sm:$0xff]  ;;  %v11454_v21 = vld [vmem:[#allocation8 + $0x68] sm:$0xff]  ;;  %v11460_v38 = vld [vmem:[#allocation8 + $0x60] sm:$0xff] }
 0xfd0   :  { %v6113_v27 = vadd.f32 %v6066_v43, %v12623_v50  ;;  %v6115_v5 = vadd.f32 %v6107_v45, %v12624_v9  ;;  %v6068_v51 = vpop.f32.mrb[106].mxu0  ;;  %v6109_v18 = vpop.f32.mrb[106].mxu1  ;;  %v11466_v43 = vld [vmem:[#allocation8 + $0x88] sm:$0xff]  ;;  %v11468_v45 = vld [vmem:[#allocation8 + $0x98] sm:$0xff]  ;;  %v11472_v50 = vld [vmem:[#allocation8 + $0x80] sm:$0xff] }
 0xfd1   :  { %v6116_v17 = vmul.f32 0.5, %v6112_v52  ;;  %v6069_v55 = vpop.f32.mrb[107].mxu0  ;;  %v6110_v57 = vpop.f32.mrb[107].mxu1  ;;  %v6118_v13 = vmul.f32 0.5, %v6114_v1  ;;  %v11456_v52 = vld [vmem:[#allocation8 + $0x78] sm:$0xff]  ;;  %v11462_v1 = vld [vmem:[#allocation8 + $0x70] sm:$0xff] }
 0xfd2   :  { %v6117_v61 = vmul.f32 0.5, %v6113_v27  ;;  %v11474_v27 = vld [vmem:[#allocation8 + $0x90] sm:$0xff]  ;;  %v11478_v9 = vld [vmem:[#allocation8 + $0xa8] sm:$0xff]  ;;  %v11490_v18 = vld [vmem:[#allocation8 + $0xc0] sm:$0xff] }
 0xfd3   :  { %9143 = vtanh.f32 %v6116_v17  ;;  %v11484_v51 = vld [vmem:[#allocation8 + $0xc8] sm:$0xff] }
 0xfd4   :  { %9145 = vtanh.f32 %v6117_v61  ;;  %v12626_v17 = vld [vmem:[#allocation40_spill] sm:$0xff] }
 0xfd5   :  { %9147 = vtanh.f32 %v6115_v5  ;;  %v11482_v5 = vld [vmem:[#allocation8 + $0xa0] sm:$0xff] }
 0xfd6   :  { %9149 = vtanh.f32 %v6118_v13 }
 0xfdd   :  { %v9144_v39 = vpop.eup %9143 }
 0xfde   :  { %v6122_v58 = vmul.f32 0.5, %v9144_v39  ;;  %v9146_v56 = vpop.eup %9145  ;;  %v12630_v39 = vld [vmem:[#allocation82_spill] sm:$0xff] }
 0xfdf   :  { %v6123_v32 = vmul.f32 0.5, %v9146_v56  ;;  %v9148_v6 = vpop.eup %9147 }
 0xfe0   :  { %v6125_v35 = vadd.f32 0.5, %v6122_v58  ;;  %v9150_v47 = vpop.eup %9149 }
 0xfe1   :  { %v6126_v41 = vadd.f32 0.5, %v6123_v32  ;;  %v6124_v12 = vmul.f32 0.5, %v9150_v47  ;;  %v12634_v32 = vld [vmem:[#allocation61_spill] sm:$0xff] }
 0xfe2   :  { %v6130_v62 = vmul.f32 %v9148_v6, %v6125_v35  ;;  %v12633_v35 = vld [vmem:[#allocation39_spill] sm:$0xff] }
 0xfe3   :  { %v6129_v23 = vmul.f32 %v6126_v41, %v11353_v63  ;;  %v6127_v30 = vadd.f32 0.5, %v6124_v12  ;;  %v11432_v63 = vld [vmem:[#allocation8 + $0x38] sm:$0xff]  ;;  %v12635_v6 = vsel %vm9778_vm3, %v12633_v35, %v12634_v32 }
 0xfe5   :  { %v11409_v4 = vadd.f32 %v6130_v62, %v6129_v23 }
 0xfe7   :  { %9151 = vtanh.f32 %v11409_v4 }
 0xff1   :  { %v9152_v54 = vpop.eup %9151 }
 0xff2   :  { %v11412_v60 = vmul.f32 %v9152_v54, %v6127_v30 }
 0xff4   :  { %12625 = vst [vmem:[#allocation30_spill] sm:$0xff] %v11412_v60  ;;  %v6139_v20 = vpack.c.bf16 %v11412_v60, %v11412_v60 }
 0xff6   :  { %6205 = vmatmul.mubr.bf16.vlgmr.msra.gmra.mrb[108].mxu0 %v6139_v20  ;;  %6246 = vmatmul.mubr.bf16.vlgmr.msra.gmra.mrb[108].mxu1 %v6139_v20 }
 0xff7   :  { %6346 = vmatprep.mubr.bf16.mxu0 %v12433_v16  ;;  %6387 = vmatprep.mubr.bf16.mxu1 %v12433_v16 }
 0xff8   :  { %6315 = vmatpush1.bf16.msra.mxu0 %v11424_v10  ;;  %6356 = vmatpush1.bf16.msra.mxu1 %v11426_v36 }
 0xff9   :  { %6316 = vmatprep.subr.bf16.mxu0 %v11430_v28  ;;  %6357 = vmatprep.subr.bf16.mxu1 %v11432_v63 }
 0xffc   :  { %6317 = vmatpush1.bf16.msra.mxu0 %v11436_v42  ;;  %6358 = vmatpush1.bf16.msra.mxu1 %v11438_v7 }
 0xffd   :  { %6318 = vmatprep.subr.bf16.mxu0 %v11442_v24  ;;  %6359 = vmatprep.subr.bf16.mxu1 %v11444_v59 }
0x1000   :  { %6319 = vmatpush1.bf16.msra.mxu0 %v11448_v8  ;;  %6360 = vmatpush1.bf16.msra.mxu1 %v11450_v37 }
0x1001   :  { %6320 = vmatprep.subr.bf16.mxu0 %v11454_v21  ;;  %6361 = vmatprep.subr.bf16.mxu1 %v11456_v52 }
0x1004   :  { %6321 = vmatpush1.bf16.msra.mxu0 %v11460_v38  ;;  %6362 = vmatpush1.bf16.msra.mxu1 %v11462_v1 }
0x1005   :  { %6322 = vmatprep.subr.bf16.mxu0 %v11466_v43  ;;  %6363 = vmatprep.subr.bf16.mxu1 %v11468_v45 }
0x1008   :  { %6323 = vmatpush1.bf16.msra.mxu0 %v11472_v50  ;;  %6364 = vmatpush1.bf16.msra.mxu1 %v11474_v27 }
0x1009   :  { %6324 = vmatprep.subr.bf16.mxu0 %v11478_v9  ;;  %6365 = vmatprep.subr.bf16.mxu1 %v12605_v25  ;;  %v11496_v25 = vld [vmem:[#allocation8 + $0xe0] sm:$0xff] }
0x100c   :  { %6325 = vmatpush1.bf16.msra.mxu0 %v11482_v5  ;;  %6366 = vmatpush1.bf16.msra.mxu1 %v12607_v3 }
0x100d   :  { %6326 = vmatprep.subr.bf16.mxu0 %v11484_v51  ;;  %6367 = vmatprep.subr.bf16.mxu1 %v12609_v29 }
0x1010   :  { %6327 = vmatpush1.bf16.msra.mxu0 %v11490_v18  ;;  %6368 = vmatpush1.bf16.msra.mxu1 %v12611_v31  ;;  %v12627_v31 = vld [vmem:[#allocation29_spill] sm:$0xff] }
0x1011   :  { %6328 = vmatprep.subr.bf16.mxu0 %v12612_v34  ;;  %6369 = vmatprep.subr.bf16.mxu1 %v12613_v49  ;;  %v12628_v34 = vld [vmem:[#allocation64_spill] sm:$0xff] }
0x1012   :  { %v12629_v57 = vsel %vm9766_vm1, %v12627_v31, %v12628_v34 }
0x1014   :  { %6329 = vmatpush1.bf16.msra.mxu0 %v11496_v25  ;;  %6370 = vmatpush1.bf16.msra.mxu1 %v12615_v11  ;;  %v12631_v11 = vld [vmem:[#allocation51_spill] sm:$0xff] }
0x1015   :  { %6456 = vmatprep.subr.bf16.mxu0 %v11418_v53  ;;  %6497 = vmatprep.subr.bf16.mxu1 %v11420_v15  ;;  %v12632_v58 = vsel %vm9774_vm2, %v12630_v39, %v12631_v11 }
0x10c9   :  { %v6206_v3 = vpop.f32.mrb[108].mxu0  ;;  %v6247_v29 = vpop.f32.mrb[108].mxu1 }
0x10ca   :  { %v6254_v55 = vadd.f32 %v6206_v3, %v12626_v17  ;;  %v6256_v49 = vadd.f32 %v6247_v29, %v12629_v57  ;;  %v6208_v61 = vpop.f32.mrb[109].mxu0  ;;  %v6249_v13 = vpop.f32.mrb[109].mxu1 }
0x10cb   :  { %v6255_v56 = vadd.f32 %v6208_v61, %v12632_v58  ;;  %v6257_v41 = vadd.f32 %v6249_v13, %v12635_v6  ;;  %v6210_v62 = vpop.f32.mrb[110].mxu0  ;;  %v6251_v23 = vpop.f32.mrb[110].mxu1 }
0x10cc   :  { %v6258_v47 = vmul.f32 0.5, %v6254_v55  ;;  %v6211_v12 = vpop.f32.mrb[111].mxu0  ;;  %v6252_v30 = vpop.f32.mrb[111].mxu1  ;;  %v6260_v20 = vmul.f32 0.5, %v6256_v49 }
0x10cd   :  { %v6259_v54 = vmul.f32 0.5, %v6255_v56  ;;  %v11562_v12 = vld [vmem:[#allocation8 + $0xd0] sm:$0xff]  ;;  %v11565_v30 = vld [vmem:[#allocation8 + $0xf8] sm:$0xff] }
0x10ce   :  { %9153 = vtanh.f32 %v6258_v47  ;;  %v11557_v47 = vld [vmem:[#allocation8 + $0xe8] sm:$0xff] }
0x10cf   :  { %9155 = vtanh.f32 %v6259_v54  ;;  %v11570_v54 = vld [vmem:[#allocation8 + $0xf0] sm:$0xff] }
0x10d0   :  { %9157 = vtanh.f32 %v6257_v41 }
0x10d1   :  { %9159 = vtanh.f32 %v6260_v20 }
0x10d8   :  { %v9154_v3 = vpop.eup %9153 }
0x10d9   :  { %v6264_v29 = vmul.f32 0.5, %v9154_v3  ;;  %v9156_v17 = vpop.eup %9155 }
0x10da   :  { %v6265_v61 = vmul.f32 0.5, %v9156_v17  ;;  %v9158_v58 = vpop.eup %9157 }
0x10db   :  { %v6267_v57 = vadd.f32 0.5, %v6264_v29  ;;  %v9160_v55 = vpop.eup %9159  ;;  %v12637_v29 = vld [vmem:[#allocation69_spill] sm:$0xff] }
0x10dc   :  { %v6268_v48 = vadd.f32 0.5, %v6265_v61  ;;  %v6266_v56 = vmul.f32 0.5, %v9160_v55  ;;  %v12639_v61 = vld [vmem:[#allocation31_spill] sm:$0xff] }
0x10dd   :  { %v6272_v60 = vmul.f32 %v9158_v58, %v6267_v57  ;;  %v12638_v57 = vld [vmem:[#allocation72_spill] sm:$0xff] }
0x10de   :  { %v6271_v13 = vmul.f32 %v6268_v48, %v11409_v4  ;;  %v6269_v62 = vadd.f32 0.5, %v6266_v56  ;;  %v11550_v48 = vld [vmem:[#allocation8 + $0xb8] sm:$0xff]  ;;  %v11552_v4 = vld [vmem:[#allocation8 + $0xb0] sm:$0xff]  ;;  %v12640_v58 = vsel %vm9766_vm1, %v12638_v57, %v12639_v61 }
0x10e0   :  { %v11519_v6 = vadd.f32 %v6272_v60, %v6271_v13  ;;  %v11554_v60 = vld [vmem:[#allocation8 + $0xd8] sm:$0xff] }
0x10e2   :  { %9161 = vtanh.f32 %v11519_v6 }
0x10ec   :  { %v9162_v41 = vpop.eup %9161 }
0x10ed   :  { %v11522_v49 = vmul.f32 %v9162_v41, %v6269_v62  ;;  %v12641_v62 = vld [vmem:[#allocation68_spill] sm:$0xff]  ;;  %v12642_v41 = vld [vmem:[#allocation71_spill] sm:$0xff] }
0x10ef   :  { %12636 = vst [vmem:[#allocation35_spill] sm:$0xff] %v11522_v49  ;;  %v6281_v23 = vpack.c.bf16 %v11522_v49, %v11522_v49 }
0x10f1   :  { %6347 = vmatmul.mubr.bf16.vlgmr.msra.gmra.mrb[112].mxu0 %v6281_v23  ;;  %6388 = vmatmul.mubr.bf16.vlgmr.msra.gmra.mrb[112].mxu1 %v6281_v23  ;;  %v12643_v23 = vsel %vm9774_vm2, %v12641_v62, %v12642_v41 }
0x10f2   :  { %6457 = vmatpush1.bf16.msra.mxu0 %v11424_v10  ;;  %6498 = vmatpush1.bf16.msra.mxu1 %v11426_v36 }
0x10f3   :  { %6458 = vmatprep.subr.bf16.mxu0 %v11430_v28  ;;  %6499 = vmatprep.subr.bf16.mxu1 %v11432_v63 }
0x10f4   :  { %6488 = vmatprep.mubr.bf16.mxu0 %v12433_v16  ;;  %6529 = vmatprep.mubr.bf16.mxu1 %v12433_v16 }
0x10f6   :  { %6459 = vmatpush1.bf16.msra.mxu0 %v11436_v42  ;;  %6500 = vmatpush1.bf16.msra.mxu1 %v11438_v7 }
0x10f7   :  { %6460 = vmatprep.subr.bf16.mxu0 %v11442_v24  ;;  %6501 = vmatprep.subr.bf16.mxu1 %v11444_v59 }
0x10fa   :  { %6461 = vmatpush1.bf16.msra.mxu0 %v11448_v8  ;;  %6502 = vmatpush1.bf16.msra.mxu1 %v11450_v37 }
0x10fb   :  { %6462 = vmatprep.subr.bf16.mxu0 %v11454_v21  ;;  %6503 = vmatprep.subr.bf16.mxu1 %v11456_v52 }
0x10fe   :  { %6463 = vmatpush1.bf16.msra.mxu0 %v11460_v38  ;;  %6504 = vmatpush1.bf16.msra.mxu1 %v11462_v1 }
0x10ff   :  { %6464 = vmatprep.subr.bf16.mxu0 %v11466_v43  ;;  %6505 = vmatprep.subr.bf16.mxu1 %v11468_v45 }
0x1102   :  { %6465 = vmatpush1.bf16.msra.mxu0 %v11472_v50  ;;  %6506 = vmatpush1.bf16.msra.mxu1 %v11474_v27 }
0x1103   :  { %6466 = vmatprep.subr.bf16.mxu0 %v11478_v9  ;;  %6507 = vmatprep.subr.bf16.mxu1 %v11550_v48 }
0x1106   :  { %6467 = vmatpush1.bf16.msra.mxu0 %v11482_v5  ;;  %6508 = vmatpush1.bf16.msra.mxu1 %v11552_v4 }
0x1107   :  { %6468 = vmatprep.subr.bf16.mxu0 %v11484_v51  ;;  %6509 = vmatprep.subr.bf16.mxu1 %v11554_v60 }
0x110a   :  { %6469 = vmatpush1.bf16.msra.mxu0 %v11490_v18  ;;  %6510 = vmatpush1.bf16.msra.mxu1 %v11562_v12 }
0x110b   :  { %6470 = vmatprep.subr.bf16.mxu0 %v11557_v47  ;;  %6511 = vmatprep.subr.bf16.mxu1 %v11565_v30 }
0x110e   :  { %6471 = vmatpush1.bf16.msra.mxu0 %v11496_v25  ;;  %6512 = vmatpush1.bf16.msra.mxu1 %v11570_v54 }
0x110f   :  { %6598 = vmatprep.subr.bf16.mxu0 %v11418_v53  ;;  %6639 = vmatprep.subr.bf16.mxu1 %v11420_v15 }
0x11c4   :  { %v6348_v20 = vpop.f32.mrb[112].mxu0  ;;  %v6389_v3 = vpop.f32.mrb[112].mxu1 }
0x11c5   :  { %v6396_v17 = vadd.f32 %v6348_v20, %v12637_v29  ;;  %v6398_v13 = vadd.f32 %v6389_v3, %v12640_v58  ;;  %v6350_v55 = vpop.f32.mrb[113].mxu0  ;;  %v6391_v56 = vpop.f32.mrb[113].mxu1 }
0x11c6   :  { %v6397_v49 = vadd.f32 %v6350_v55, %v12643_v23  ;;  %v6399_v20 = vadd.f32 %v6391_v56, %v12646_v33  ;;  %v6352_v29 = vpop.f32.mrb[114].mxu0  ;;  %v6393_v40 = vpop.f32.mrb[114].mxu1 }
0x11c7   :  { %v6400_v44 = vmul.f32 0.5, %v6396_v17  ;;  %v6353_v2 = vpop.f32.mrb[115].mxu0  ;;  %v6394_v19 = vpop.f32.mrb[115].mxu1  ;;  %v6402_v58 = vmul.f32 0.5, %v6398_v13 }
0x11c8   :  { %v6401_v3 = vmul.f32 0.5, %v6397_v49 }
0x11c9   :  { %9163 = vtanh.f32 %v6400_v44 }
0x11ca   :  { %9165 = vtanh.f32 %v6401_v3  ;;  %v12652_v3 = vld [vmem:[#allocation67_spill] sm:$0xff] }
0x11cb   :  { %9167 = vtanh.f32 %v6399_v20 }
0x11cc   :  { %9169 = vtanh.f32 %v6402_v58  ;;  %v12653_v58 = vld [vmem:[#allocation46_spill] sm:$0xff] }
0x11d3   :  { %v9164_v35 = vpop.eup %9163 }
0x11d4   :  { %v6406_v32 = vmul.f32 0.5, %v9164_v35  ;;  %v9166_v39 = vpop.eup %9165 }
0x11d5   :  { %v6407_v23 = vmul.f32 0.5, %v9166_v39  ;;  %v9168_v11 = vpop.eup %9167  ;;  %v12648_v39 = vld [vmem:[#allocation42_spill] sm:$0xff] }
0x11d6   :  { %v6409_v55 = vadd.f32 0.5, %v6406_v32  ;;  %v9170_v19 = vpop.eup %9169  ;;  %v12649_v32 = vld [vmem:[#allocation47_spill] sm:$0xff] }
0x11d7   :  { %v6410_v31 = vadd.f32 0.5, %v6407_v23  ;;  %v6408_v44 = vmul.f32 0.5, %v9170_v19  ;;  %v12656_v19 = vld [vmem:[#allocation66_spill] sm:$0xff] }
0x11d8   :  { %v6414_v34 = vmul.f32 %v9168_v11, %v6409_v55  ;;  %v12654_v55 = vsel %vm9774_vm2, %v12652_v3, %v12653_v58 }
0x11d9   :  { %v6413_v33 = vmul.f32 %v6410_v31, %v11519_v6  ;;  %v6411_v2 = vadd.f32 0.5, %v6408_v44  ;;  %v12650_v6 = vld [vmem:[#allocation65_spill] sm:$0xff] }
0x11da   :  { %v12651_v13 = vsel %vm9766_vm1, %v12649_v32, %v12650_v6 }
0x11db   :  { %v11591_v40 = vadd.f32 %v6414_v34, %v6413_v33  ;;  %v12655_v33 = vld [vmem:[#allocation27_spill] sm:$0xff] }
0x11dc   :  { %v12657_v44 = vsel %vm9778_vm3, %v12655_v33, %v12656_v19 }
0x11dd   :  { %9171 = vtanh.f32 %v11591_v40 }
0x11e7   :  { %v9172_v49 = vpop.eup %9171 }
0x11e8   :  { %v11594_v17 = vmul.f32 %v9172_v49, %v6411_v2 }
0x11ea   :  { %12647 = vst [vmem:[#allocation34_spill] sm:$0xff] %v11594_v17  ;;  %v6423_v35 = vpack.c.bf16 %v11594_v17, %v11594_v17 }
0x11ec   :  { %6489 = vmatmul.mubr.bf16.vlgmr.msra.gmra.mrb[116].mxu0 %v6423_v35  ;;  %6530 = vmatmul.mubr.bf16.vlgmr.msra.gmra.mrb[116].mxu1 %v6423_v35 }
0x11ed   :  { %6599 = vmatpush1.bf16.msra.mxu0 %v11424_v10  ;;  %6640 = vmatpush1.bf16.msra.mxu1 %v11426_v36 }
0x11ee   :  { %6600 = vmatprep.subr.bf16.mxu0 %v11430_v28  ;;  %6641 = vmatprep.subr.bf16.mxu1 %v11432_v63 }
0x11ef   :  { %6630 = vmatprep.mubr.bf16.mxu0 %v12433_v16  ;;  %6671 = vmatprep.mubr.bf16.mxu1 %v12433_v16 }
0x11f1   :  { %6601 = vmatpush1.bf16.msra.mxu0 %v11436_v42  ;;  %6642 = vmatpush1.bf16.msra.mxu1 %v11438_v7 }
0x11f2   :  { %6602 = vmatprep.subr.bf16.mxu0 %v11442_v24  ;;  %6643 = vmatprep.subr.bf16.mxu1 %v11444_v59 }
0x11f5   :  { %6603 = vmatpush1.bf16.msra.mxu0 %v11448_v8  ;;  %6644 = vmatpush1.bf16.msra.mxu1 %v11450_v37 }
0x11f6   :  { %6604 = vmatprep.subr.bf16.mxu0 %v11454_v21  ;;  %6645 = vmatprep.subr.bf16.mxu1 %v11456_v52 }
0x11f9   :  { %6605 = vmatpush1.bf16.msra.mxu0 %v11460_v38  ;;  %6646 = vmatpush1.bf16.msra.mxu1 %v11462_v1 }
0x11fa   :  { %6606 = vmatprep.subr.bf16.mxu0 %v11466_v43  ;;  %6647 = vmatprep.subr.bf16.mxu1 %v11468_v45 }
0x11fd   :  { %6607 = vmatpush1.bf16.msra.mxu0 %v11472_v50  ;;  %6648 = vmatpush1.bf16.msra.mxu1 %v11474_v27 }
0x11fe   :  { %6608 = vmatprep.subr.bf16.mxu0 %v11478_v9  ;;  %6649 = vmatprep.subr.bf16.mxu1 %v11550_v48 }
0x1201   :  { %6609 = vmatpush1.bf16.msra.mxu0 %v11482_v5  ;;  %6650 = vmatpush1.bf16.msra.mxu1 %v11552_v4 }
0x1202   :  { %6610 = vmatprep.subr.bf16.mxu0 %v11484_v51  ;;  %6651 = vmatprep.subr.bf16.mxu1 %v11554_v60 }
0x1205   :  { %6611 = vmatpush1.bf16.msra.mxu0 %v11490_v18  ;;  %6652 = vmatpush1.bf16.msra.mxu1 %v11562_v12 }
0x1206   :  { %6612 = vmatprep.subr.bf16.mxu0 %v11557_v47  ;;  %6653 = vmatprep.subr.bf16.mxu1 %v11565_v30 }
0x1209   :  { %6613 = vmatpush1.bf16.msra.mxu0 %v11496_v25  ;;  %6654 = vmatpush1.bf16.msra.mxu1 %v11570_v54 }
0x120a   :  { %6740 = vmatprep.subr.bf16.mxu0 %v11418_v53  ;;  %6781 = vmatprep.subr.bf16.mxu1 %v11420_v15 }
0x12bf   :  { %v6490_v31 = vpop.f32.mrb[116].mxu0  ;;  %v6531_v34 = vpop.f32.mrb[116].mxu1 }
0x12c0   :  { %v6538_v11 = vadd.f32 %v6490_v31, %v12648_v39  ;;  %v6540_v56 = vadd.f32 %v6531_v34, %v12651_v13  ;;  %v6492_v20 = vpop.f32.mrb[117].mxu0  ;;  %v6533_v29 = vpop.f32.mrb[117].mxu1 }
0x12c1   :  { %v6539_v23 = vadd.f32 %v6492_v20, %v12654_v55  ;;  %v6541_v2 = vadd.f32 %v6533_v29, %v12657_v44  ;;  %v6494_v49 = vpop.f32.mrb[118].mxu0  ;;  %v6535_v35 = vpop.f32.mrb[118].mxu1 }
0x12c2   :  { %v6542_v31 = vmul.f32 0.5, %v6538_v11  ;;  %v6495_v39 = vpop.f32.mrb[119].mxu0  ;;  %v6536_v17 = vpop.f32.mrb[119].mxu1  ;;  %v6544_v13 = vmul.f32 0.5, %v6540_v56 }
0x12c3   :  { %v6543_v34 = vmul.f32 0.5, %v6539_v23 }
0x12c4   :  { %9173 = vtanh.f32 %v6542_v31  ;;  %v12660_v31 = vsel %vm9774_vm2, %v12653_v58, %v12652_v3 }
0x12c5   :  { %9175 = vtanh.f32 %v6543_v34 }
0x12c6   :  { %9177 = vtanh.f32 %v6541_v2 }
0x12c7   :  { %9179 = vtanh.f32 %v6544_v13 }
0x12ce   :  { %v9174_v26 = vpop.eup %9173 }
0x12cf   :  { %v6548_v0 = vmul.f32 0.5, %v9174_v26  ;;  %v9176_v62 = vpop.eup %9175 }
0x12d0   :  { %v6549_v55 = vmul.f32 0.5, %v9176_v62  ;;  %v9178_v41 = vpop.eup %9177 }
0x12d1   :  { %v6551_v20 = vadd.f32 0.5, %v6548_v0  ;;  %v9180_v17 = vpop.eup %9179 }
0x12d2   :  { %v6552_v57 = vadd.f32 0.5, %v6549_v55  ;;  %v6550_v11 = vmul.f32 0.5, %v9180_v17 }
0x12d3   :  { %v6556_v61 = vmul.f32 %v9178_v41, %v6551_v20  ;;  %v12659_v41 = vsel %vm9766_vm1, %v12650_v6, %v12649_v32 }
0x12d4   :  { %v6555_v29 = vmul.f32 %v6552_v57, %v11591_v40  ;;  %v6553_v23 = vadd.f32 0.5, %v6550_v11 }
0x12d6   :  { %v11649_v44 = vadd.f32 %v6556_v61, %v6555_v29  ;;  %v12658_v61 = vld [vmem:[#allocation44_spill] sm:$0xff] }
0x12d8   :  { %9181 = vtanh.f32 %v11649_v44 }
0x12e2   :  { %v9182_v2 = vpop.eup %9181 }
0x12e3   :  { %v11652_v56 = vmul.f32 %v9182_v2, %v6553_v23 }
0x12e5   :  { %v6565_v26 = vpack.c.bf16 %v11652_v56, %v11652_v56 }
0x12e7   :  { %6631 = vmatmul.mubr.bf16.vlgmr.msra.gmra.mrb[120].mxu0 %v6565_v26  ;;  %6672 = vmatmul.mubr.bf16.vlgmr.msra.gmra.mrb[120].mxu1 %v6565_v26 }
0x12e8   :  { %6741 = vmatpush1.bf16.msra.mxu0 %v11424_v10  ;;  %6782 = vmatpush1.bf16.msra.mxu1 %v11426_v36 }
0x12e9   :  { %6742 = vmatprep.subr.bf16.mxu0 %v11430_v28  ;;  %6783 = vmatprep.subr.bf16.mxu1 %v11432_v63 }
0x12ea   :  { %6772 = vmatprep.mubr.bf16.mxu0 %v12433_v16  ;;  %6813 = vmatprep.mubr.bf16.mxu1 %v12433_v16 }
0x12ec   :  { %6743 = vmatpush1.bf16.msra.mxu0 %v11436_v42  ;;  %6784 = vmatpush1.bf16.msra.mxu1 %v11438_v7 }
0x12ed   :  { %6744 = vmatprep.subr.bf16.mxu0 %v11442_v24  ;;  %6785 = vmatprep.subr.bf16.mxu1 %v11444_v59 }
0x12f0   :  { %6745 = vmatpush1.bf16.msra.mxu0 %v11448_v8  ;;  %6786 = vmatpush1.bf16.msra.mxu1 %v11450_v37 }
0x12f1   :  { %6746 = vmatprep.subr.bf16.mxu0 %v11454_v21  ;;  %6787 = vmatprep.subr.bf16.mxu1 %v11456_v52 }
0x12f4   :  { %6747 = vmatpush1.bf16.msra.mxu0 %v11460_v38  ;;  %6788 = vmatpush1.bf16.msra.mxu1 %v11462_v1 }
0x12f5   :  { %6748 = vmatprep.subr.bf16.mxu0 %v11466_v43  ;;  %6789 = vmatprep.subr.bf16.mxu1 %v11468_v45 }
0x12f8   :  { %6749 = vmatpush1.bf16.msra.mxu0 %v11472_v50  ;;  %6790 = vmatpush1.bf16.msra.mxu1 %v11474_v27 }
0x12f9   :  { %6750 = vmatprep.subr.bf16.mxu0 %v11478_v9  ;;  %6791 = vmatprep.subr.bf16.mxu1 %v11550_v48 }
0x12fc   :  { %6751 = vmatpush1.bf16.msra.mxu0 %v11482_v5  ;;  %6792 = vmatpush1.bf16.msra.mxu1 %v11552_v4 }
0x12fd   :  { %6752 = vmatprep.subr.bf16.mxu0 %v11484_v51  ;;  %6793 = vmatprep.subr.bf16.mxu1 %v11554_v60 }
0x1300   :  { %6753 = vmatpush1.bf16.msra.mxu0 %v11490_v18  ;;  %6794 = vmatpush1.bf16.msra.mxu1 %v11562_v12 }
0x1301   :  { %6754 = vmatprep.subr.bf16.mxu0 %v11557_v47  ;;  %6795 = vmatprep.subr.bf16.mxu1 %v11565_v30 }
0x1304   :  { %6755 = vmatpush1.bf16.msra.mxu0 %v11496_v25  ;;  %6796 = vmatpush1.bf16.msra.mxu1 %v11570_v54 }
0x1305   :  { %6882 = vmatprep.subr.bf16.mxu0 %v11418_v53  ;;  %6923 = vmatprep.subr.bf16.mxu1 %v11420_v15  ;;  %v12661_v15 = vsel %vm9778_vm3, %v12656_v19, %v12655_v33 }
0x13ba   :  { %v6632_v0 = vpop.f32.mrb[120].mxu0  ;;  %v6673_v57 = vpop.f32.mrb[120].mxu1 }
0x13bb   :  { %v6680_v62 = vadd.f32 %v6632_v0, %v12658_v61  ;;  %v6682_v40 = vadd.f32 %v6673_v57, %v12659_v41  ;;  %v6634_v49 = vpop.f32.mrb[121].mxu0  ;;  %v6675_v35 = vpop.f32.mrb[121].mxu1 }
0x13bc   :  { %v6681_v53 = vadd.f32 %v6634_v49, %v12660_v31  ;;  %v6683_v39 = vadd.f32 %v6675_v35, %v12661_v15  ;;  %v6636_v34 = vpop.f32.mrb[122].mxu0  ;;  %v6677_v13 = vpop.f32.mrb[122].mxu1 }
0x13bd   :  { %v6684_v20 = vmul.f32 0.5, %v6680_v62  ;;  %v6637_v55 = vpop.f32.mrb[123].mxu0  ;;  %v6678_v32 = vpop.f32.mrb[123].mxu1  ;;  %v6686_v29 = vmul.f32 0.5, %v6682_v40 }
0x13be   :  { %v6685_v6 = vmul.f32 0.5, %v6681_v53 }
0x13bf   :  { %9183 = vtanh.f32 %v6684_v20 }
0x13c0   :  { %9185 = vtanh.f32 %v6685_v6 }
0x13c1   :  { %9187 = vtanh.f32 %v6683_v39 }
0x13c2   :  { %9189 = vtanh.f32 %v6686_v29 }
0x13c9   :  { %v9184_v17 = vpop.eup %9183 }
0x13ca   :  { %v6690_v11 = vmul.f32 0.5, %v9184_v17  ;;  %v9186_v3 = vpop.eup %9185 }
0x13cb   :  { %v6691_v23 = vmul.f32 0.5, %v9186_v3  ;;  %v9188_v2 = vpop.eup %9187 }
0x13cc   :  { %v6693_v58 = vadd.f32 0.5, %v6690_v11  ;;  %v9190_v57 = vpop.eup %9189 }
0x13cd   :  { %v6694_v26 = vadd.f32 0.5, %v6691_v23  ;;  %v6692_v61 = vmul.f32 0.5, %v9190_v57  ;;  %v11786_v57 = vld [vmem:[#allocation8 + $0x38] sm:$0xff] }
0x13ce   :  { %v6698_v33 = vmul.f32 %v9188_v2, %v6693_v58  ;;  %v11772_v2 = vld [vmem:[#allocation8 + $0x8] sm:$0xff] }
0x13cf   :  { %v6697_v19 = vmul.f32 %v6694_v26, %v11649_v44  ;;  %v6695_v62 = vadd.f32 0.5, %v6692_v61  ;;  %v11774_v26 = vld [vmem:[#allocation8 + $0x18] sm:$0xff]  ;;  %v11790_v61 = vld [vmem:[#allocation8 + $0x20] sm:$0xff] }
0x13d1   :  { %v11707_v0 = vadd.f32 %v6698_v33, %v6697_v19  ;;  %v11778_v33 = vld [vmem:[#allocation8] sm:$0xff]  ;;  %v11780_v19 = vld [vmem:[#allocation8 + $0x10] sm:$0xff] }
0x13d3   :  { %9191 = vtanh.f32 %v11707_v0 }
0x13dd   :  { %v9192_v41 = vpop.eup %9191 }
0x13de   :  { %v11710_v40 = vmul.f32 %v9192_v41, %v6695_v62  ;;  %v11792_v62 = vld [vmem:[#allocation8 + $0x30] sm:$0xff]  ;;  %v11796_v41 = vld [vmem:[#allocation8 + $0x48] sm:$0xff] }
0x13e0   :  { %v6707_v49 = vpack.c.bf16 %v11710_v40, %v11710_v40 }
0x13e2   :  { %6773 = vmatmul.mubr.bf16.vlgmr.msra.gmra.mrb[124].mxu0 %v6707_v49  ;;  %6814 = vmatmul.mubr.bf16.vlgmr.msra.gmra.mrb[124].mxu1 %v6707_v49  ;;  %v11798_v49 = vld [vmem:[#allocation8 + $0x58] sm:$0xff] }
0x13e3   :  { %6883 = vmatpush1.bf16.msra.mxu0 %v11424_v10  ;;  %6924 = vmatpush1.bf16.msra.mxu1 %v11426_v36 }
0x13e4   :  { %6884 = vmatprep.subr.bf16.mxu0 %v11430_v28  ;;  %6925 = vmatprep.subr.bf16.mxu1 %v11432_v63  ;;  %v12662_v28 = vld [vmem:[#allocation70_spill] sm:$0xff] }
0x13e5   :  { %6914 = vmatprep.mubr.bf16.mxu0 %v12433_v16  ;;  %6955 = vmatprep.mubr.bf16.mxu1 %v12433_v16 }
0x13e7   :  { %6885 = vmatpush1.bf16.msra.mxu0 %v11436_v42  ;;  %6926 = vmatpush1.bf16.msra.mxu1 %v11438_v7  ;;  %v12663_v42 = vld [vmem:[#allocation31_spill] sm:$0xff]  ;;  %v12664_v7 = vld [vmem:[#allocation72_spill] sm:$0xff] }
0x13e8   :  { %6886 = vmatprep.subr.bf16.mxu0 %v11442_v24  ;;  %6927 = vmatprep.subr.bf16.mxu1 %v11444_v59  ;;  %v12665_v24 = vsel %vm9766_vm1, %v12663_v42, %v12664_v7  ;;  %v11814_v42 = vld [vmem:[#allocation8 + $0x60] sm:$0xff]  ;;  %v11816_v7 = vld [vmem:[#allocation8 + $0x70] sm:$0xff] }
0x13eb   :  { %6887 = vmatpush1.bf16.msra.mxu0 %v11448_v8  ;;  %6928 = vmatpush1.bf16.msra.mxu1 %v11450_v37 }
0x13ec   :  { %6888 = vmatprep.subr.bf16.mxu0 %v11454_v21  ;;  %6929 = vmatprep.subr.bf16.mxu1 %v11456_v52  ;;  %v12666_v21 = vld [vmem:[#allocation71_spill] sm:$0xff]  ;;  %v12667_v52 = vld [vmem:[#allocation68_spill] sm:$0xff] }
0x13ef   :  { %6889 = vmatpush1.bf16.msra.mxu0 %v11460_v38  ;;  %6930 = vmatpush1.bf16.msra.mxu1 %v11462_v1  ;;  %v12668_v38 = vsel %vm9774_vm2, %v12666_v21, %v12667_v52  ;;  %v11832_v21 = vld [vmem:[#allocation8 + $0xa8] sm:$0xff]  ;;  %v11836_v52 = vld [vmem:[#allocation8 + $0xa0] sm:$0xff] }
0x13f0   :  { %6890 = vmatprep.subr.bf16.mxu0 %v11466_v43  ;;  %6931 = vmatprep.subr.bf16.mxu1 %v11468_v45  ;;  %v12669_v43 = vld [vmem:[#allocation45_spill] sm:$0xff]  ;;  %v12670_v45 = vld [vmem:[#allocation43_spill] sm:$0xff] }
0x13f3   :  { %6891 = vmatpush1.bf16.msra.mxu0 %v11472_v50  ;;  %6932 = vmatpush1.bf16.msra.mxu1 %v11474_v27  ;;  %v12671_v50 = vsel %vm9778_vm3, %v12669_v43, %v12670_v45  ;;  %v12672_v43 = vld [vmem:[#allocation78_spill] sm:$0xff] }
0x13f4   :  { %6892 = vmatprep.subr.bf16.mxu0 %v11478_v9  ;;  %6933 = vmatprep.subr.bf16.mxu1 %v11550_v48 }
0x13f7   :  { %6893 = vmatpush1.bf16.msra.mxu0 %v11482_v5  ;;  %6934 = vmatpush1.bf16.msra.mxu1 %v11552_v4 }
0x13f8   :  { %6894 = vmatprep.subr.bf16.mxu0 %v11484_v51  ;;  %6935 = vmatprep.subr.bf16.mxu1 %v11554_v60 }
0x13fb   :  { %6895 = vmatpush1.bf16.msra.mxu0 %v11490_v18  ;;  %6936 = vmatpush1.bf16.msra.mxu1 %v11562_v12 }
0x13fc   :  { %6896 = vmatprep.subr.bf16.mxu0 %v11557_v47  ;;  %6937 = vmatprep.subr.bf16.mxu1 %v11565_v30 }
0x13ff   :  { %6897 = vmatpush1.bf16.msra.mxu0 %v11496_v25  ;;  %6938 = vmatpush1.bf16.msra.mxu1 %v11570_v54 }
0x1400   :  { %7024 = vmatprep.subr.bf16.mxu0 %v11772_v2  ;;  %7065 = vmatprep.subr.bf16.mxu1 %v11774_v26 }
0x14b5   :  { %v6774_v10 = vpop.f32.mrb[124].mxu0  ;;  %v6815_v36 = vpop.f32.mrb[124].mxu1 }
0x14b6   :  { %v6822_v63 = vadd.f32 %v6774_v10, %v12662_v28  ;;  %v6824_v59 = vadd.f32 %v6815_v36, %v12665_v24  ;;  %v6776_v8 = vpop.f32.mrb[125].mxu0  ;;  %v6817_v37 = vpop.f32.mrb[125].mxu1  ;;  %v11802_v10 = vld [vmem:[#allocation8 + $0x40] sm:$0xff]  ;;  %v11804_v36 = vld [vmem:[#allocation8 + $0x50] sm:$0xff]  ;;  %v11808_v28 = vld [vmem:[#allocation8 + $0x68] sm:$0xff] }
0x14b7   :  { %v6823_v1 = vadd.f32 %v6776_v8, %v12668_v38  ;;  %v6825_v27 = vadd.f32 %v6817_v37, %v12671_v50  ;;  %v6778_v9 = vpop.f32.mrb[126].mxu0  ;;  %v6819_v5 = vpop.f32.mrb[126].mxu1  ;;  %v11820_v24 = vld [vmem:[#allocation8 + $0x88] sm:$0xff]  ;;  %v11826_v8 = vld [vmem:[#allocation8 + $0x80] sm:$0xff]  ;;  %v11828_v37 = vld [vmem:[#allocation8 + $0x90] sm:$0xff] }
0x14b8   :  { %v6826_v51 = vmul.f32 0.5, %v6822_v63  ;;  %v6779_v18 = vpop.f32.mrb[127].mxu0  ;;  %v6820_v25 = vpop.f32.mrb[127].mxu1  ;;  %v6828_v35 = vmul.f32 0.5, %v6824_v59  ;;  %v11810_v63 = vld [vmem:[#allocation8 + $0x78] sm:$0xff]  ;;  %v11838_v38 = vld [vmem:[#allocation8 + $0xc8] sm:$0xff] }
0x14b9   :  { %v6827_v44 = vmul.f32 0.5, %v6823_v1  ;;  %v11822_v59 = vld [vmem:[#allocation8 + $0x98] sm:$0xff]  ;;  %v11844_v1 = vld [vmem:[#allocation8 + $0xc0] sm:$0xff]  ;;  %v12679_v25 = vld [vmem:[#allocation61_spill] sm:$0xff] }
0x14ba   :  { %9193 = vtanh.f32 %v6826_v51  ;;  %v12676_v5 = vld [vmem:[#allocation51_spill] sm:$0xff] }
0x14bb   :  { %9195 = vtanh.f32 %v6827_v44  ;;  %v12680_v44 = vld [vmem:[#allocation39_spill] sm:$0xff] }
0x14bc   :  { %9197 = vtanh.f32 %v6825_v27 }
0x14bd   :  { %9199 = vtanh.f32 %v6828_v35  ;;  %v12681_v35 = vsel %vm9778_vm3, %v12679_v25, %v12680_v44  ;;  %v11919_v25 = vld [vmem:[#allocation8 + $0xf8] sm:$0xff]  ;;  %v11924_v44 = vld [vmem:[#allocation8 + $0xf0] sm:$0xff] }
0x14c4   :  { %v9194_v31 = vpop.eup %9193 }
0x14c5   :  { %v6832_v53 = vmul.f32 0.5, %v9194_v31  ;;  %v9196_v15 = vpop.eup %9195 }
0x14c6   :  { %v6833_v34 = vmul.f32 0.5, %v9196_v15  ;;  %v9198_v13 = vpop.eup %9197 }
0x14c7   :  { %v6835_v39 = vadd.f32 0.5, %v6832_v53  ;;  %v9200_v29 = vpop.eup %9199 }
0x14c8   :  { %v6836_v20 = vadd.f32 0.5, %v6833_v34  ;;  %v6834_v17 = vmul.f32 0.5, %v9200_v29 }
0x14c9   :  { %v6840_v55 = vmul.f32 %v9198_v13, %v6835_v39 }
0x14ca   :  { %v6839_v32 = vmul.f32 %v6836_v20, %v11707_v0  ;;  %v6837_v11 = vadd.f32 0.5, %v6834_v17  ;;  %v11784_v0 = vld [vmem:[#allocation8 + $0x28] sm:$0xff] }
0x14cc   :  { %v11763_v6 = vadd.f32 %v6840_v55, %v6839_v32 }
0x14ce   :  { %9201 = vtanh.f32 %v11763_v6 }
0x14d8   :  { %v9202_v3 = vpop.eup %9201 }
0x14d9   :  { %v11766_v58 = vmul.f32 %v9202_v3, %v6837_v11 }
0x14db   :  { %v6849_v23 = vpack.c.bf16 %v11766_v58, %v11766_v58 }
0x14dd   :  { %6915 = vmatmul.mubr.bf16.vlgmr.msra.gmra.mrb[128].mxu0 %v6849_v23  ;;  %6956 = vmatmul.mubr.bf16.vlgmr.msra.gmra.mrb[128].mxu1 %v6849_v23 }
0x14de   :  { %7056 = vmatprep.mubr.bf16.mxu0 %v12433_v16  ;;  %7097 = vmatprep.mubr.bf16.mxu1 %v12433_v16 }
0x14df   :  { %7025 = vmatpush1.bf16.msra.mxu0 %v11778_v33  ;;  %7066 = vmatpush1.bf16.msra.mxu1 %v11780_v19 }
0x14e0   :  { %7026 = vmatprep.subr.bf16.mxu0 %v11784_v0  ;;  %7067 = vmatprep.subr.bf16.mxu1 %v11786_v57 }
0x14e3   :  { %7027 = vmatpush1.bf16.msra.mxu0 %v11790_v61  ;;  %7068 = vmatpush1.bf16.msra.mxu1 %v11792_v62 }
0x14e4   :  { %7028 = vmatprep.subr.bf16.mxu0 %v11796_v41  ;;  %7069 = vmatprep.subr.bf16.mxu1 %v11798_v49 }
0x14e7   :  { %7029 = vmatpush1.bf16.msra.mxu0 %v11802_v10  ;;  %7070 = vmatpush1.bf16.msra.mxu1 %v11804_v36 }
0x14e8   :  { %7030 = vmatprep.subr.bf16.mxu0 %v11808_v28  ;;  %7071 = vmatprep.subr.bf16.mxu1 %v11810_v63 }
0x14eb   :  { %7031 = vmatpush1.bf16.msra.mxu0 %v11814_v42  ;;  %7072 = vmatpush1.bf16.msra.mxu1 %v11816_v7 }
0x14ec   :  { %7032 = vmatprep.subr.bf16.mxu0 %v11820_v24  ;;  %7073 = vmatprep.subr.bf16.mxu1 %v11822_v59 }
0x14ef   :  { %7033 = vmatpush1.bf16.msra.mxu0 %v11826_v8  ;;  %7074 = vmatpush1.bf16.msra.mxu1 %v11828_v37 }
0x14f0   :  { %7034 = vmatprep.subr.bf16.mxu0 %v11832_v21  ;;  %7075 = vmatprep.subr.bf16.mxu1 %v11550_v48  ;;  %v11850_v48 = vld [vmem:[#allocation8 + $0xe0] sm:$0xff] }
0x14f3   :  { %7035 = vmatpush1.bf16.msra.mxu0 %v11836_v52  ;;  %7076 = vmatpush1.bf16.msra.mxu1 %v11552_v4 }
0x14f4   :  { %7036 = vmatprep.subr.bf16.mxu0 %v11838_v38  ;;  %7077 = vmatprep.subr.bf16.mxu1 %v11554_v60 }
0x14f7   :  { %7037 = vmatpush1.bf16.msra.mxu0 %v11844_v1  ;;  %7078 = vmatpush1.bf16.msra.mxu1 %v11562_v12  ;;  %v12673_v12 = vld [vmem:[#allocation64_spill] sm:$0xff] }
0x14f8   :  { %7038 = vmatprep.subr.bf16.mxu0 %v11557_v47  ;;  %7079 = vmatprep.subr.bf16.mxu1 %v11565_v30  ;;  %v12674_v47 = vld [vmem:[#allocation29_spill] sm:$0xff] }
0x14f9   :  { %v12675_v50 = vsel %vm9766_vm1, %v12673_v12, %v12674_v47 }
0x14fb   :  { %7039 = vmatpush1.bf16.msra.mxu0 %v11850_v48  ;;  %7080 = vmatpush1.bf16.msra.mxu1 %v11570_v54  ;;  %v12677_v54 = vld [vmem:[#allocation82_spill] sm:$0xff] }
0x14fc   :  { %7166 = vmatprep.subr.bf16.mxu0 %v11772_v2  ;;  %7207 = vmatprep.subr.bf16.mxu1 %v11774_v26  ;;  %v12678_v51 = vsel %vm9774_vm2, %v12676_v5, %v12677_v54  ;;  %v11906_v5 = vld [vmem:[#allocation8 + $0xb0] sm:$0xff]  ;;  %v11908_v54 = vld [vmem:[#allocation8 + $0xd8] sm:$0xff] }
0x15b0   :  { %v6916_v4 = vpop.f32.mrb[128].mxu0  ;;  %v6957_v60 = vpop.f32.mrb[128].mxu1 }
0x15b1   :  { %v6964_v45 = vadd.f32 %v6916_v4, %v12672_v43  ;;  %v6966_v30 = vadd.f32 %v6957_v60, %v12675_v50  ;;  %v6918_v27 = vpop.f32.mrb[129].mxu0  ;;  %v6959_v9 = vpop.f32.mrb[129].mxu1 }
0x15b2   :  { %v6965_v18 = vadd.f32 %v6918_v27, %v12678_v51  ;;  %v6967_v31 = vadd.f32 %v6959_v9, %v12681_v35  ;;  %v6920_v53 = vpop.f32.mrb[130].mxu0  ;;  %v6961_v15 = vpop.f32.mrb[130].mxu1  ;;  %v11911_v51 = vld [vmem:[#allocation8 + $0xe8] sm:$0xff] }
0x15b3   :  { %v6968_v39 = vmul.f32 0.5, %v6964_v45  ;;  %v6921_v34 = vpop.f32.mrb[131].mxu0  ;;  %v6962_v13 = vpop.f32.mrb[131].mxu1  ;;  %v6970_v55 = vmul.f32 0.5, %v6966_v30  ;;  %v12682_v53 = vld [vmem:[#allocation26_spill] sm:$0xff] }
0x15b4   :  { %v6969_v20 = vmul.f32 0.5, %v6965_v18  ;;  %v11916_v18 = vld [vmem:[#allocation8 + $0xd0] sm:$0xff]  ;;  %v12684_v34 = vld [vmem:[#allocation74_spill] sm:$0xff] }
0x15b5   :  { %9203 = vtanh.f32 %v6968_v39  ;;  %v12683_v39 = vld [vmem:[#allocation57_spill] sm:$0xff] }
0x15b6   :  { %9205 = vtanh.f32 %v6969_v20  ;;  %v12685_v13 = vsel %vm9766_vm1, %v12683_v39, %v12684_v34 }
0x15b7   :  { %9207 = vtanh.f32 %v6967_v31 }
0x15b8   :  { %9209 = vtanh.f32 %v6970_v55 }
0x15bf   :  { %v9204_v32 = vpop.eup %9203 }
0x15c0   :  { %v6974_v29 = vmul.f32 0.5, %v9204_v32  ;;  %v9206_v17 = vpop.eup %9205  ;;  %v12686_v32 = vld [vmem:[#allocation54_spill] sm:$0xff] }
0x15c1   :  { %v6975_v3 = vmul.f32 0.5, %v9206_v17  ;;  %v9208_v23 = vpop.eup %9207 }
0x15c2   :  { %v6977_v11 = vadd.f32 0.5, %v6974_v29  ;;  %v9210_v45 = vpop.eup %9209  ;;  %v12687_v29 = vld [vmem:[#allocation77_spill] sm:$0xff] }
0x15c3   :  { %v6978_v4 = vadd.f32 0.5, %v6975_v3  ;;  %v6976_v47 = vmul.f32 0.5, %v9210_v45  ;;  %v12688_v17 = vsel %vm9774_vm2, %v12686_v32, %v12687_v29  ;;  %v12690_v3 = vld [vmem:[#allocation41_spill] sm:$0xff] }
0x15c4   :  { %v6982_v60 = vmul.f32 %v9208_v23, %v6977_v11 }
0x15c5   :  { %v6981_v43 = vmul.f32 %v6978_v4, %v11763_v6  ;;  %v6979_v50 = vadd.f32 0.5, %v6976_v47  ;;  %v11904_v6 = vld [vmem:[#allocation8 + $0xb8] sm:$0xff] }
0x15c7   :  { %v11873_v12 = vadd.f32 %v6982_v60, %v6981_v43 }
0x15c9   :  { %9211 = vtanh.f32 %v11873_v12 }
0x15d3   :  { %v9212_v27 = vpop.eup %9211 }
0x15d4   :  { %v11876_v30 = vmul.f32 %v9212_v27, %v6979_v50 }
0x15d6   :  { %v6991_v9 = vpack.c.bf16 %v11876_v30, %v11876_v30 }
0x15d8   :  { %7057 = vmatmul.mubr.bf16.vlgmr.msra.gmra.mrb[132].mxu0 %v6991_v9  ;;  %7098 = vmatmul.mubr.bf16.vlgmr.msra.gmra.mrb[132].mxu1 %v6991_v9 }
0x15d9   :  { %7167 = vmatpush1.bf16.msra.mxu0 %v11778_v33  ;;  %7208 = vmatpush1.bf16.msra.mxu1 %v11780_v19 }
0x15da   :  { %7168 = vmatprep.subr.bf16.mxu0 %v11784_v0  ;;  %7209 = vmatprep.subr.bf16.mxu1 %v11786_v57 }
0x15db   :  { %7198 = vmatprep.mubr.bf16.mxu0 %v12433_v16  ;;  %7239 = vmatprep.mubr.bf16.mxu1 %v12433_v16 }
0x15dd   :  { %7169 = vmatpush1.bf16.msra.mxu0 %v11790_v61  ;;  %7210 = vmatpush1.bf16.msra.mxu1 %v11792_v62 }
0x15de   :  { %7170 = vmatprep.subr.bf16.mxu0 %v11796_v41  ;;  %7211 = vmatprep.subr.bf16.mxu1 %v11798_v49 }
0x15e1   :  { %7171 = vmatpush1.bf16.msra.mxu0 %v11802_v10  ;;  %7212 = vmatpush1.bf16.msra.mxu1 %v11804_v36 }
0x15e2   :  { %7172 = vmatprep.subr.bf16.mxu0 %v11808_v28  ;;  %7213 = vmatprep.subr.bf16.mxu1 %v11810_v63 }
0x15e5   :  { %7173 = vmatpush1.bf16.msra.mxu0 %v11814_v42  ;;  %7214 = vmatpush1.bf16.msra.mxu1 %v11816_v7 }
0x15e6   :  { %7174 = vmatprep.subr.bf16.mxu0 %v11820_v24  ;;  %7215 = vmatprep.subr.bf16.mxu1 %v11822_v59 }
0x15e9   :  { %7175 = vmatpush1.bf16.msra.mxu0 %v11826_v8  ;;  %7216 = vmatpush1.bf16.msra.mxu1 %v11828_v37 }
0x15ea   :  { %7176 = vmatprep.subr.bf16.mxu0 %v11832_v21  ;;  %7217 = vmatprep.subr.bf16.mxu1 %v11904_v6 }
0x15ed   :  { %7177 = vmatpush1.bf16.msra.mxu0 %v11836_v52  ;;  %7218 = vmatpush1.bf16.msra.mxu1 %v11906_v5 }
0x15ee   :  { %7178 = vmatprep.subr.bf16.mxu0 %v11838_v38  ;;  %7219 = vmatprep.subr.bf16.mxu1 %v11908_v54 }
0x15f1   :  { %7179 = vmatpush1.bf16.msra.mxu0 %v11844_v1  ;;  %7220 = vmatpush1.bf16.msra.mxu1 %v11916_v18 }
0x15f2   :  { %7180 = vmatprep.subr.bf16.mxu0 %v11911_v51  ;;  %7221 = vmatprep.subr.bf16.mxu1 %v11919_v25 }
0x15f5   :  { %7181 = vmatpush1.bf16.msra.mxu0 %v11850_v48  ;;  %7222 = vmatpush1.bf16.msra.mxu1 %v11924_v44 }
0x15f6   :  { %7308 = vmatprep.subr.bf16.mxu0 %v11772_v2  ;;  %7349 = vmatprep.subr.bf16.mxu1 %v11774_v26  ;;  %v12689_v26 = vld [vmem:[#allocation63_spill] sm:$0xff] }
0x15f7   :  { %v12691_v23 = vsel %vm9778_vm3, %v12689_v26, %v12690_v3 }
0x16ab   :  { %v7058_v35 = vpop.f32.mrb[132].mxu0  ;;  %v7099_v31 = vpop.f32.mrb[132].mxu1 }
0x16ac   :  { %v7106_v15 = vadd.f32 %v7058_v35, %v12682_v53  ;;  %v7108_v2 = vadd.f32 %v7099_v31, %v12685_v13  ;;  %v7060_v20 = vpop.f32.mrb[133].mxu0  ;;  %v7101_v55 = vpop.f32.mrb[133].mxu1 }
0x16ad   :  { %v7107_v11 = vadd.f32 %v7060_v20, %v12688_v17  ;;  %v7109_v4 = vadd.f32 %v7101_v55, %v12691_v23  ;;  %v7062_v60 = vpop.f32.mrb[134].mxu0  ;;  %v7103_v43 = vpop.f32.mrb[134].mxu1 }
0x16ae   :  { %v7110_v45 = vmul.f32 0.5, %v7106_v15  ;;  %v7063_v47 = vpop.f32.mrb[135].mxu0  ;;  %v7104_v50 = vpop.f32.mrb[135].mxu1  ;;  %v7112_v9 = vmul.f32 0.5, %v7108_v2 }
0x16af   :  { %v7111_v27 = vmul.f32 0.5, %v7107_v11 }
0x16b0   :  { %9213 = vtanh.f32 %v7110_v45 }
0x16b1   :  { %9215 = vtanh.f32 %v7111_v27 }
0x16b2   :  { %9217 = vtanh.f32 %v7109_v4 }
0x16b3   :  { %9219 = vtanh.f32 %v7112_v9 }
0x16ba   :  { %v9214_v35 = vpop.eup %9213 }
0x16bb   :  { %v7116_v31 = vmul.f32 0.5, %v9214_v35  ;;  %v9216_v53 = vpop.eup %9215  ;;  %v9107_v35 = vld [vmem:[%s12188_s7] sm:$0xff]  }
0x16bc   :  { %v7117_v34 = vmul.f32 0.5, %v9216_v53  ;;  %v9218_v13 = vpop.eup %9217  ;;  %v9109_v53 = vld [vmem:[%s12188_s7 + $0x10] sm:$0xff]  }
0x16bd   :  { %v7119_v39 = vadd.f32 0.5, %v7116_v31  ;;  %v9220_v15 = vpop.eup %9219  ;;  %v9108_v31 = vld [vmem:[%s12188_s7 + $0x8] sm:$0xff]  }
0x16be   :  { %v7120_v20 = vadd.f32 0.5, %v7117_v34  ;;  %v7118_v17 = vmul.f32 0.5, %v9220_v15  ;;  %v9111_v34 = vld [vmem:[%s12188_s7 + $0x20] sm:$0xff]   ;;  %v12702_v15 = vld [vmem:[#allocation86_spill] sm:$0xff] }
0x16bf   :  { %v7124_v32 = vmul.f32 %v9218_v13, %v7119_v39  ;;  %v9110_v39 = vld [vmem:[%s12188_s7 + $0x18] sm:$0xff]   ;;  %v9112_v13 = vld [vmem:[%s12188_s7 + $0x28] sm:$0xff]  }
0x16c0   :  { %v7123_v55 = vmul.f32 %v7120_v20, %v11873_v12  ;;  %v7121_v11 = vadd.f32 0.5, %v7118_v17  ;;  %v9113_v20 = vld [vmem:[%s12188_s7 + $0x30] sm:$0xff]  }
0x16c2   :  { %v11945_v29 = vadd.f32 %v7124_v32, %v7123_v55  ;;  %v9114_v32 = vld [vmem:[%s12188_s7 + $0x38] sm:$0xff]  }
0x16c4   :  { %9221 = vtanh.f32 %v11945_v29 }
0x16ce   :  { %v9222_v26 = vpop.eup %9221 }
0x16cf   :  { %v11948_v2 = vmul.f32 %v9222_v26, %v7121_v11  ;;  %v12703_v11 = vld [vmem:[#allocation83_spill] sm:$0xff]  ;;  %v12704_v26 = vld [vmem:[#allocation81_spill] sm:$0xff] }
0x16d1   :  { %v7133_v3 = vpack.c.bf16 %v11948_v2, %v11948_v2 }
0x16d3   :  { %7199 = vmatmul.mubr.bf16.vlgmr.msra.gmra.mrb[136].mxu0 %v7133_v3  ;;  %7240 = vmatmul.mubr.bf16.vlgmr.msra.gmra.mrb[136].mxu1 %v7133_v3  ;;  %v12705_v3 = vsel %vm9766_vm1, %v12703_v11, %v12704_v26 }
0x16d4   :  { %7309 = vmatpush1.bf16.msra.mxu0 %v11778_v33  ;;  %7350 = vmatpush1.bf16.msra.mxu1 %v11780_v19  ;;  %v12692_v19 = vld [vmem:[#allocation85_spill] sm:$0xff] }
0x16d5   :  { %7310 = vmatprep.subr.bf16.mxu0 %v11784_v0  ;;  %7351 = vmatprep.subr.bf16.mxu1 %v11786_v57  ;;  %v12693_v57 = vld [vmem:[#allocation52_spill] sm:$0xff] }
0x16d6   :  { %7340 = vmatprep.mubr.bf16.mxu0 %v12433_v16  ;;  %7381 = vmatprep.mubr.bf16.mxu1 %v12433_v16 }
0x16d8   :  { %7311 = vmatpush1.bf16.msra.mxu0 %v11790_v61  ;;  %7352 = vmatpush1.bf16.msra.mxu1 %v11792_v62  ;;  %v12694_v61 = vld [vmem:[#allocation73_spill] sm:$0xff] }
0x16d9   :  { %7312 = vmatprep.subr.bf16.mxu0 %v11796_v41  ;;  %7353 = vmatprep.subr.bf16.mxu1 %v11798_v49  ;;  %v12695_v62 = vsel %vm9766_vm1, %v12693_v57, %v12694_v61  ;;  %v12707_v57 = vld [vmem:[#allocation84_spill] sm:$0xff] }
0x16dc   :  { %7313 = vmatpush1.bf16.msra.mxu0 %v11802_v10  ;;  %7354 = vmatpush1.bf16.msra.mxu1 %v11804_v36  ;;  %v12696_v36 = vld [vmem:[#allocation56_spill] sm:$0xff] }
0x16dd   :  { %7314 = vmatprep.subr.bf16.mxu0 %v11808_v28  ;;  %7355 = vmatprep.subr.bf16.mxu1 %v11810_v63  ;;  %v12697_v28 = vld [vmem:[#allocation80_spill] sm:$0xff] }
0x16de   :  { %v12698_v63 = vsel %vm9774_vm2, %v12696_v36, %v12697_v28 }
0x16e0   :  { %7315 = vmatpush1.bf16.msra.mxu0 %v11814_v42  ;;  %7356 = vmatpush1.bf16.msra.mxu1 %v11816_v7  ;;  %v12699_v7 = vld [vmem:[#allocation53_spill] sm:$0xff] }
0x16e1   :  { %7316 = vmatprep.subr.bf16.mxu0 %v11820_v24  ;;  %7357 = vmatprep.subr.bf16.mxu1 %v11822_v59  ;;  %v12700_v24 = vld [vmem:[#allocation76_spill] sm:$0xff] }
0x16e2   :  { %v12701_v59 = vsel %vm9778_vm3, %v12699_v7, %v12700_v24 }
0x16e4   :  { %7317 = vmatpush1.bf16.msra.mxu0 %v11826_v8  ;;  %7358 = vmatpush1.bf16.msra.mxu1 %v11828_v37 }
0x16e5   :  { %7318 = vmatprep.subr.bf16.mxu0 %v11832_v21  ;;  %7359 = vmatprep.subr.bf16.mxu1 %v11904_v6 }
0x16e8   :  { %7319 = vmatpush1.bf16.msra.mxu0 %v11836_v52  ;;  %7360 = vmatpush1.bf16.msra.mxu1 %v11906_v5 }
0x16e9   :  { %7320 = vmatprep.subr.bf16.mxu0 %v11838_v38  ;;  %7361 = vmatprep.subr.bf16.mxu1 %v11908_v54 }
0x16ec   :  { %7321 = vmatpush1.bf16.msra.mxu0 %v11844_v1  ;;  %7362 = vmatpush1.bf16.msra.mxu1 %v11916_v18 }
0x16ed   :  { %7322 = vmatprep.subr.bf16.mxu0 %v11911_v51  ;;  %7363 = vmatprep.subr.bf16.mxu1 %v11919_v25 }
0x16f0   :  { %7323 = vmatpush1.bf16.msra.mxu0 %v11850_v48  ;;  %7364 = vmatpush1.bf16.msra.mxu1 %v11924_v44 }
0x16f1   :  { %8461 = vmatprep.subr.bf16.mxu0 %v9107_v35 }
0x17a6   :  { %v7200_v16 = vpop.f32.mrb[136].mxu0  ;;  %v7241_v33 = vpop.f32.mrb[136].mxu1 }
0x17a7   :  { %v7248_v0 = vadd.f32 %v7200_v16, %v12692_v19  ;;  %v7250_v41 = vadd.f32 %v7241_v33, %v12695_v62  ;;  %v7202_v49 = vpop.f32.mrb[137].mxu0  ;;  %v7243_v10 = vpop.f32.mrb[137].mxu1 }
0x17a8   :  { %v7249_v42 = vadd.f32 %v7202_v49, %v12698_v63  ;;  %v7251_v8 = vadd.f32 %v7243_v10, %v12701_v59  ;;  %v7204_v37 = vpop.f32.mrb[138].mxu0  ;;  %v7245_v21 = vpop.f32.mrb[138].mxu1  ;;  %v12710_v49 = vld [vmem:[#allocation38_spill] sm:$0xff] }
0x17a9   :  { %v7252_v52 = vmul.f32 0.5, %v7248_v0  ;;  %v7205_v38 = vpop.f32.mrb[139].mxu0  ;;  %v7246_v1 = vpop.f32.mrb[139].mxu1  ;;  %v7254_v12 = vmul.f32 0.5, %v7250_v41  ;;  %v12706_v0 = vld [vmem:[#allocation79_spill] sm:$0xff] }
0x17aa   :  { %v7253_v48 = vmul.f32 0.5, %v7249_v42  ;;  %v12708_v61 = vsel %vm9774_vm2, %v12706_v0, %v12707_v57  ;;  %v12709_v41 = vld [vmem:[#allocation75_spill] sm:$0xff] }
0x17ab   :  { %9223 = vtanh.f32 %v7252_v52  ;;  %v12711_v10 = vsel %vm9778_vm3, %v12709_v41, %v12710_v49 }
0x17ac   :  { %9225 = vtanh.f32 %v7253_v48 }
0x17ad   :  { %9227 = vtanh.f32 %v7251_v8 }
0x17ae   :  { %9229 = vtanh.f32 %v7254_v12 }
0x17b5   :  { %v9224_v6 = vpop.eup %9223 }
0x17b6   :  { %v7258_v5 = vmul.f32 0.5, %v9224_v6  ;;  %v9226_v54 = vpop.eup %9225 }
0x17b7   :  { %v7259_v18 = vmul.f32 0.5, %v9226_v54  ;;  %v9228_v25 = vpop.eup %9227 }
0x17b8   :  { %v7261_v51 = vadd.f32 0.5, %v7258_v5  ;;  %v9230_v43 = vpop.eup %9229 }
0x17b9   :  { %v7262_v44 = vadd.f32 0.5, %v7259_v18  ;;  %v7260_v45 = vmul.f32 0.5, %v9230_v43 }
0x17ba   :  { %v7266_v23 = vmul.f32 %v9228_v25, %v7261_v51  ;;  %v12712_v25 = vld [vmem:[#allocation30_spill] sm:$0xff] }
0x17bb   :  { %v7265_v4 = vmul.f32 %v7262_v44, %v11945_v29  ;;  %v7263_v47 = vadd.f32 0.5, %v7260_v45  ;;  %v12715_v45 = vld [vmem:[#allocation33_spill] sm:$0xff]  ;;  %v9118_v44 = vld [vmem:[%s12190_s9 + $0x18] sm:$0xff]  }
0x17bd   :  { %v7267_v60 = vadd.f32 %v7266_v23, %v7265_v4  ;;  %v12049_v23 = vsel %vm200_vm0, %v11948_v2, %v12712_v25  ;;  %v12714_v4 = vld [vmem:[#allocation87_spill] sm:$0xff] }
0x17bf   :  { %9231 = vtanh.f32 %v7267_v60 }
0x17c9   :  { %v9232_v50 = vpop.eup %9231 }
0x17ca   :  { %v12001_v27 = vmul.f32 %v9232_v50, %v7263_v47  ;;  %v12716_v47 = vld [vmem:[#allocation34_spill] sm:$0xff] }
0x17cb   :  { %v12066_v50 = vsel %vm200_vm0, %v11766_v58, %v12716_v47 }
0x17cc   :  { %v7275_v9 = vpack.c.bf16 %v12001_v27, %v12001_v27 }
0x17ce   :  { %7341 = vmatmul.mubr.bf16.vlgmr.msra.gmra.mrb[140].mxu0 %v7275_v9  ;;  %7382 = vmatmul.mubr.bf16.vlgmr.msra.gmra.mrb[140].mxu1 %v7275_v9 }
0x17cf   :  { %8462 = vmatpush3.bf16.msra.mxu0 %v9107_v35  ;;  %v12717_v35 = vld [vmem:[#allocation35_spill] sm:$0xff] }
0x17d0   :  { %8463 = vmatprep.subr.bf16.mxu0 %v9108_v31 }
0x17d3   :  { %8464 = vmatpush3.bf16.msra.mxu0 %v9108_v31  ;;  %v12074_v31 = vsel %vm200_vm0, %v11876_v30, %v12717_v35 }
0x17d4   :  { %8465 = vmatprep.subr.bf16.mxu0 %v9109_v53 }
0x17d7   :  { %8466 = vmatpush3.bf16.msra.mxu0 %v9109_v53  ;;  %v7474_v53 = vpack.c.bf16 %v12074_v31, %v12049_v23 }
0x17d8   :  { %8467 = vmatprep.subr.bf16.mxu0 %v9110_v39 }
0x17db   :  { %8468 = vmatpush3.bf16.msra.mxu0 %v9110_v39  ;;  %v12082_v39 = vsel %vm200_vm0, %v11710_v40, %v11652_v56 }
0x17dc   :  { %8469 = vmatprep.subr.bf16.mxu0 %v9111_v34 }
0x17df   :  { %8470 = vmatpush3.bf16.msra.mxu0 %v9111_v34  ;;  %v7475_v34 = vpack.c.bf16 %v12082_v39, %v12066_v50 }
0x17e0   :  { %8471 = vmatprep.subr.bf16.mxu0 %v9112_v13 }
0x17e3   :  { %8472 = vmatpush3.bf16.msra.mxu0 %v9112_v13  ;;  %v12090_v13 = vsel %vm200_vm0, %v12716_v47, %v11766_v58  ;;  %v12110_v58 = vsel %vm200_vm0, %v12717_v35, %v11876_v30  ;;  %v9121_v47 = vld [vmem:[%s12190_s9 + $0x30] sm:$0xff]  }
0x17e4   :  { %8473 = vmatprep.subr.bf16.mxu0 %v9113_v20 }
0x17e7   :  { %8474 = vmatpush3.bf16.msra.mxu0 %v9113_v20  ;;  %v12096_v20 = vsel %vm200_vm0, %v12712_v25, %v11948_v2  ;;  %v9117_v25 = vld [vmem:[%s12190_s9 + $0x10] sm:$0xff]  }
0x17e8   :  { %8475 = vmatprep.subr.bf16.mxu0 %v9114_v32 }
0x17eb   :  { %8476 = vmatpush3.bf16.msra.mxu0 %v9114_v32  ;;  %v12102_v32 = vsel %vm200_vm0, %v11652_v56, %v11710_v40  ;;  %v12123_v56 = vsel %vm200_vm0, %v12715_v45, %v12001_v27 }
0x18a1   :  { %v7342_v55 = vpop.f32.mrb[140].mxu0  ;;  %v7383_v29 = vpop.f32.mrb[140].mxu1 }
0x18a2   :  { %v7390_v17 = vadd.f32 %v7342_v55, %v12702_v15  ;;  %v7392_v16 = vadd.f32 %v7383_v29, %v12705_v3  ;;  %v7344_v33 = vpop.f32.mrb[141].mxu0  ;;  %v7385_v19 = vpop.f32.mrb[141].mxu1  ;;  %v7476_v55 = vpack.c.bf16 %v12090_v13, %v12102_v32  ;;  %v7477_v29 = vpack.c.bf16 %v12096_v20, %v12110_v58 }
0x18a3   :  { %v7391_v62 = vadd.f32 %v7344_v33, %v12708_v61  ;;  %v7393_v36 = vadd.f32 %v7385_v19, %v12711_v10  ;;  %v7346_v28 = vpop.f32.mrb[142].mxu0  ;;  %v7387_v46 = vpop.f32.mrb[142].mxu1 }
0x18a4   :  { %v7394_v63 = vmul.f32 0.5, %v7390_v17  ;;  %v7347_v42 = vpop.f32.mrb[143].mxu0  ;;  %v7388_v7 = vpop.f32.mrb[143].mxu1  ;;  %v7396_v14 = vmul.f32 0.5, %v7392_v16 }
0x18a5   :  { %v7395_v24 = vmul.f32 0.5, %v7391_v62 }
0x18a6   :  { %9233 = vtanh.f32 %v7394_v63 }
0x18a7   :  { %9235 = vtanh.f32 %v7395_v24 }
0x18a8   :  { %9237 = vtanh.f32 %v7393_v36 }
0x18a9   :  { %9239 = vtanh.f32 %v7396_v14 }
0x18b0   :  { %v9234_v59 = vpop.eup %9233 }
0x18b1   :  { %v7400_v8 = vmul.f32 0.5, %v9234_v59  ;;  %v9236_v37 = vpop.eup %9235 }
0x18b2   :  { %v7401_v22 = vmul.f32 0.5, %v9236_v37  ;;  %v9238_v52 = vpop.eup %9237 }
0x18b3   :  { %v7403_v21 = vadd.f32 0.5, %v7400_v8  ;;  %v9240_v6 = vpop.eup %9239 }
0x18b4   :  { %v7404_v38 = vadd.f32 0.5, %v7401_v22  ;;  %v7402_v5 = vmul.f32 0.5, %v9240_v6 }
0x18b5   :  { %v7408_v1 = vmul.f32 %v9238_v52, %v7403_v21 }
0x18b6   :  { %v7407_v48 = vmul.f32 %v7404_v38, %v7267_v60  ;;  %v7405_v54 = vadd.f32 0.5, %v7402_v5  ;;  %v12060_v60 = vsel %vm200_vm0, %v12001_v27, %v12715_v45  ;;  %v8426_v27 = vld [vmem:[%s12189_s8] ss:$0 sm:$0xff]  ;;  %v9120_v45 = vld [vmem:[%s12190_s9 + $0x28] sm:$0xff]  }
0x18b8   :  { %v7409_v12 = vadd.f32 %v7408_v1, %v7407_v48 }
0x18ba   :  { %9241 = vtanh.f32 %v7409_v12 }
0x18c4   :  { %v9242_v51 = vpop.eup %9241 }
0x18c5   :  { %v7411_v18 = vmul.f32 %v9242_v51, %v7405_v54  ;;  %v9115_v54 = vld [vmem:[%s12190_s9] sm:$0xff]   ;;  %v9410_v51 = vmov 0.0  }
0x18c6   :  { %8489 = vmatprep.subr.bf16.mxu1 %v9410_v51  ;;  %8505 = vmatprep.mubr.msk.bf16.mxu1 %vm9411_vm4, %v9410_v51 }
0x18c7   :  { %v12054_v43 = vsel %vm200_vm0, %v7411_v18, %v12714_v4  ;;  %v12117_v2 = vsel %vm200_vm0, %v12714_v4, %v7411_v18  ;;  %8490 = vmatpush3.bf16.msra.mxu1 %v9115_v54  ;;  %v9116_v18 = vld [vmem:[%s12190_s9 + $0x8] sm:$0xff]   ;;  %v9119_v4 = vld [vmem:[%s12190_s9 + $0x20] sm:$0xff]  }
0x18c8   :  { %v7473_v9 = vpack.c.bf16 %v12060_v60, %v12054_v43  ;;  %v7478_v40 = vpack.c.bf16 %v12117_v2, %v12123_v56  ;;  %8491 = vmatprep.subr.bf16.mxu1 %v9410_v51 }
0x18ca   :  { %8477 = vmatprep.mubr.bf16.mxu0 %v7473_v9  ;;  %v9122_v9 = vld [vmem:[%s12190_s9 + $0x38] sm:$0xff]  }
0x18cb   :  { %8478 = vmatmul.mubr.bf16.vlgmr.msra.gmra.mrb[144].mxu0 %v7474_v53  ;;  %8492 = vmatpush3.bf16.msra.mxu1 %v9116_v18 }
0x18cc   :  { %8481 = vmatprep.mubr.bf16.mxu0 %v7475_v34  ;;  %8493 = vmatprep.subr.bf16.mxu1 %v9410_v51 }
0x18cf   :  { %8494 = vmatpush3.bf16.msra.mxu1 %v9117_v25 }
0x18d0   :  { %8495 = vmatprep.subr.bf16.mxu1 %v9410_v51 }
0x18d3   :  { %8482 = vmatmul.mubr.bf16.gmra.mrb[148].mxu0 %v7476_v55  ;;  %8496 = vmatpush3.bf16.msra.mxu1 %v9118_v44 }
0x18d4   :  { %8485 = vmatprep.mubr.bf16.mxu0 %v7477_v29  ;;  %8497 = vmatprep.subr.bf16.mxu1 %v9410_v51 }
0x18d7   :  { %8498 = vmatpush3.bf16.msra.mxu1 %v9119_v4 }
0x18d8   :  { %8499 = vmatprep.subr.bf16.mxu1 %v9410_v51 }
0x18db   :  { %8486 = vmatmul.mubr.bf16.gmra.mrb[152].mxu0 %v7478_v40  ;;  %8500 = vmatpush3.bf16.msra.mxu1 %v9120_v45 }
0x18dc   :  { %8501 = vmatprep.subr.bf16.mxu1 %v9410_v51 }
0x18df   :  { %8502 = vmatpush3.bf16.msra.mxu1 %v9121_v47 }
0x18e0   :  { %8503 = vmatprep.subr.bf16.mxu1 %v9410_v51 }
0x18e3   :  { %8504 = vmatpush3.bf16.msra.mxu1 %v9122_v9 }
0x199e   :  { %v8479_v30 = vpop.f32.mrb[144].mxu0 }
0x199f   :  { %9243 = vtanh.f32 %v8479_v30  ;;  %v7577_v15 = vpop.f32.mrb[145].mxu0 }
0x19a0   :  { %9245 = vtanh.f32 %v7577_v15  ;;  %v8480_v17 = vpop.f32.mrb[146].mxu0 }
0x19a1   :  { %9247 = vtanh.f32 %v8480_v17  ;;  %v7580_v11 = vpop.f32.mrb[147].mxu0 }
0x19a2   :  { %9249 = vtanh.f32 %v7580_v11 }
0x19a6   :  { %v8483_v26 = vpop.f32.mrb[148].mxu0 }
0x19a7   :  { %9251 = vtanh.f32 %v8483_v26  ;;  %v7593_v3 = vpop.f32.mrb[149].mxu0 }
0x19a8   :  { %v8484_v16 = vpop.f32.mrb[150].mxu0 }
0x19a9   :  { %v9244_v33 = vpop.eup %9243  ;;  %9253 = vtanh.f32 %v8484_v16  ;;  %v7596_v19 = vpop.f32.mrb[151].mxu0 }
0x19aa   :  { %v9246_v0 = vpop.eup %9245  ;;  %9255 = vtanh.f32 %v7593_v3  ;;  %v7645_v57 = vmul.f32 %v9244_v33, %v8426_v27 }
0x19ab   :  { %v9248_v61 = vpop.eup %9247  ;;  %9257 = vtanh.f32 %v7596_v19  ;;  %v7643_v62 = vmul.f32 %v9246_v0, %v8426_v27 }
0x19ac   :  { %v9250_v41 = vpop.eup %9249  ;;  %7659 = vadd.xlane.f32.xlu1 %v7645_v57  ;;  %v7646_v10 = vmul.f32 %v9248_v61, %v8426_v27 }
0x19ad   :  { %7655 = vadd.xlane.f32.xlu0 %v7643_v62  ;;  %v7644_v28 = vmul.f32 %v9250_v41, %v8426_v27 }
0x19ae   :  { %v8487_v49 = vpop.f32.mrb[152].mxu0 }
0x19af   :  { %v7609_v36 = vpop.f32.mrb[153].mxu0 }
0x19b0   :  { %9259 = vtanh.f32 %v7609_v36  ;;  %7661 = vadd.xlane.f32.xlu1 %v7646_v10  ;;  %v8488_v46 = vpop.f32.mrb[154].mxu0 }
0x19b1   :  { %v9252_v63 = vpop.eup %9251  ;;  %9261 = vtanh.f32 %v8487_v49  ;;  %7657 = vadd.xlane.f32.xlu0 %v7644_v28  ;;  %v7612_v42 = vpop.f32.mrb[155].mxu0 }
0x19b2   :  { %9263 = vtanh.f32 %v7612_v42  ;;  %v7649_v7 = vmul.f32 %v9252_v63, %v8426_v27 }
0x19b3   :  { %v9254_v24 = vpop.eup %9253  ;;  %9265 = vtanh.f32 %v8488_v46 }
0x19b4   :  { %v9256_v14 = vpop.eup %9255  ;;  %v7650_v59 = vmul.f32 %v9254_v24, %v8426_v27 }
0x19b5   :  { %v9258_v8 = vpop.eup %9257  ;;  %7667 = vadd.xlane.f32.xlu0 %v7649_v7  ;;  %v7647_v37 = vmul.f32 %v9256_v14, %v8426_v27 }
0x19b6   :  { %7669 = vadd.xlane.f32.xlu1 %v7650_v59  ;;  %v7648_v21 = vmul.f32 %v9258_v8, %v8426_v27 }
0x19b9   :  { %7663 = vadd.xlane.f32.xlu0 %v7647_v37 }
0x19ba   :  { %v9260_v22 = vpop.eup %9259  ;;  %7665 = vadd.xlane.f32.xlu1 %v7648_v21 }
0x19bb   :  { %v9262_v52 = vpop.eup %9261  ;;  %v7651_v38 = vmul.f32 %v9260_v22, %v8426_v27 }
0x19bc   :  { %v9264_v1 = vpop.eup %9263  ;;  %v7653_v6 = vmul.f32 %v9262_v52, %v8426_v27 }
0x19bd   :  { %7671 = vadd.xlane.f32.xlu0 %v7651_v38  ;;  %v7652_v48 = vmul.f32 %v9264_v1, %v8426_v27  ;;  %v9266_v12 = vpop.eup %9265 }
0x19be   :  { %v7654_v5 = vmul.f32 %v9266_v12, %v8426_v27 }
0x19bf   :  { %7673 = vadd.xlane.f32.xlu1 %v7652_v48 }
0x19c1   :  { %7675 = vadd.xlane.f32.xlu0 %v7653_v6 }
0x19c3   :  { %7677 = vadd.xlane.f32.xlu1 %v7654_v5 }
0x1a39   :  { %v7660_v35 = vpop.xlane.xlu1 %7659 }
0x1a3a   :  { %v7656_v53 = vpop.xlane.xlu0 %7655 }
0x1a3d   :  { %v7662_v55 = vpop.xlane.xlu1 %7661 }
0x1a3e   :  { %v7658_v34 = vpop.xlane.xlu0 %7657 }
0x1a42   :  { %v7668_v29 = vpop.xlane.xlu0 %7667 }
0x1a43   :  { %v7670_v40 = vpop.xlane.xlu1 %7669  ;;  %v7681_v27 = vmax.f32 %v7660_v35, %v7668_v29 }
0x1a44   :  { %v7682_v16 = vmax.f32 %v7662_v55, %v7670_v40 }
0x1a46   :  { %v7664_v30 = vpop.xlane.xlu0 %7663 }
0x1a47   :  { %v7666_v15 = vpop.xlane.xlu1 %7665  ;;  %v7679_v33 = vmax.f32 %v7656_v53, %v7664_v30 }
0x1a48   :  { %v7680_v26 = vmax.f32 %v7658_v34, %v7666_v15 }
0x1a4a   :  { %v7672_v17 = vpop.xlane.xlu0 %7671 }
0x1a4b   :  { %v7683_v57 = vmax.f32 %v7679_v33, %v7672_v17 }
0x1a4c   :  { %v7674_v11 = vpop.xlane.xlu1 %7673 }
0x1a4d   :  { %v7684_v19 = vmax.f32 %v7680_v26, %v7674_v11 }
0x1a4e   :  { %v7676_v3 = vpop.xlane.xlu0 %7675 }
0x1a4f   :  { %v7685_v61 = vmax.f32 %v7681_v27, %v7676_v3  ;;  %v7687_v41 = vmax.f32 %v7683_v57, %v7684_v19 }
0x1a50   :  { %v7678_v0 = vpop.xlane.xlu1 %7677 }
0x1a51   :  { %v7686_v62 = vmax.f32 %v7682_v16, %v7678_v0 }
0x1a53   :  { %v7688_v49 = vmax.f32 %v7685_v61, %v7686_v62 }
0x1a55   :  { %v7689_v10 = vmax.f32 %v7687_v41, %v7688_v49 }
0x1a57   :  { %v7690_v36 = vsub.f32 %v7656_v53, %v7689_v10  ;;  %v7691_v28 = vsub.f32 %v7658_v34, %v7689_v10  ;;  %v7692_v46 = vsub.f32 %v7660_v35, %v7689_v10  ;;  %v7693_v63 = vsub.f32 %v7662_v55, %v7689_v10 }
0x1a58   :  { %v7694_v24 = vsub.f32 %v7664_v30, %v7689_v10  ;;  %v7695_v59 = vsub.f32 %v7666_v15, %v7689_v10  ;;  %v7696_v37 = vsub.f32 %v7668_v29, %v7689_v10  ;;  %v7697_v22 = vsub.f32 %v7670_v40, %v7689_v10 }
0x1a59   :  { %v7702_v42 = vmul.f32 1.442695, %v7690_v36  ;;  %v7704_v7 = vmul.f32 1.442695, %v7691_v28  ;;  %v7706_v14 = vmul.f32 1.442695, %v7692_v46  ;;  %v7698_v38 = vsub.f32 %v7672_v17, %v7689_v10 }
0x1a5a   :  { %v7708_v8 = vmul.f32 1.442695, %v7693_v63  ;;  %v7710_v21 = vmul.f32 1.442695, %v7694_v24  ;;  %v7712_v52 = vmul.f32 1.442695, %v7695_v59  ;;  %v7699_v48 = vsub.f32 %v7674_v11, %v7689_v10 }
0x1a5b   :  { %9267 = vpow2.f32 %v7702_v42  ;;  %v7714_v1 = vmul.f32 1.442695, %v7696_v37  ;;  %v7716_v12 = vmul.f32 1.442695, %v7697_v22  ;;  %v7700_v54 = vsub.f32 %v7676_v3, %v7689_v10 }
0x1a5c   :  { %9269 = vpow2.f32 %v7704_v7  ;;  %v7718_v51 = vmul.f32 1.442695, %v7698_v38  ;;  %v7701_v44 = vsub.f32 %v7678_v0, %v7689_v10  ;;  %v7720_v4 = vmul.f32 1.442695, %v7699_v48 }
0x1a5d   :  { %9271 = vpow2.f32 %v7706_v14  ;;  %v7722_v9 = vmul.f32 1.442695, %v7700_v54 }
0x1a5e   :  { %9273 = vpow2.f32 %v7708_v8  ;;  %v7724_v34 = vmul.f32 1.442695, %v7701_v44 }
0x1a5f   :  { %9275 = vpow2.f32 %v7710_v21 }
0x1a60   :  { %9277 = vpow2.f32 %v7712_v52 }
0x1a61   :  { %9279 = vpow2.f32 %v7714_v1 }
0x1a62   :  { %9281 = vpow2.f32 %v7716_v12 }
0x1a63   :  { %9283 = vpow2.f32 %v7718_v51 }
0x1a64   :  { %9285 = vpow2.f32 %v7720_v4 }
0x1a65   :  { %v9268_v6 = vpop.eup %9267  ;;  %9287 = vpow2.f32 %v7722_v9 }
0x1a66   :  { %v9270_v5 = vpop.eup %9269  ;;  %9289 = vpow2.f32 %v7724_v34 }
0x1a67   :  { %v7726_v18 = vadd.f32 %v9270_v5, %v9268_v6  ;;  %v9272_v25 = vpop.eup %9271 }
0x1a68   :  { %v9274_v47 = vpop.eup %9273 }
0x1a69   :  { %v7727_v45 = vadd.f32 %v9272_v25, %v7726_v18  ;;  %v9276_v53 = vpop.eup %9275 }
0x1a6a   :  { %v9278_v29 = vpop.eup %9277 }
0x1a6b   :  { %v7728_v35 = vadd.f32 %v9274_v47, %v7727_v45  ;;  %v9280_v30 = vpop.eup %9279 }
0x1a6c   :  { %v9282_v17 = vpop.eup %9281 }
0x1a6d   :  { %v7729_v55 = vadd.f32 %v9276_v53, %v7728_v35  ;;  %v9284_v26 = vpop.eup %9283 }
0x1a6e   :  { %v9286_v27 = vpop.eup %9285 }
0x1a6f   :  { %v7730_v40 = vadd.f32 %v9278_v29, %v7729_v55  ;;  %v9288_v33 = vpop.eup %9287 }
0x1a70   :  { %v9290_v0 = vpop.eup %9289 }
0x1a71   :  { %v7731_v15 = vadd.f32 %v9280_v30, %v7730_v40 }
0x1a73   :  { %v7732_v11 = vadd.f32 %v9282_v17, %v7731_v15 }
0x1a75   :  { %v7733_v3 = vadd.f32 %v9284_v26, %v7732_v11 }
0x1a77   :  { %v7734_v16 = vadd.f32 %v9286_v27, %v7733_v3 }
0x1a79   :  { %v7735_v19 = vadd.f32 %v9288_v33, %v7734_v16 }
0x1a7b   :  { %v7736_v57 = vadd.f32 %v9290_v0, %v7735_v19 }
0x1a7d   :  { %9291 = vrcp.f32 %v7736_v57 }
0x1a87   :  { %v9292_v61 = vpop.eup %9291 }
0x1a88   :  { %v7738_v62 = vmul.f32 %v9292_v61, %v9268_v6  ;;  %v7739_v41 = vmul.f32 %v9292_v61, %v9270_v5  ;;  %v7740_v49 = vmul.f32 %v9292_v61, %v9272_v25  ;;  %v7741_v28 = vmul.f32 %v9292_v61, %v9274_v47 }
0x1a89   :  { %v7742_v46 = vmul.f32 %v9292_v61, %v9276_v53  ;;  %v7743_v7 = vmul.f32 %v9292_v61, %v9278_v29  ;;  %v7744_v59 = vmul.f32 %v9292_v61, %v9280_v30  ;;  %v7745_v21 = vmul.f32 %v9292_v61, %v9282_v17 }
0x1a8a   :  { %v7750_v10 = vmul.f32 %v7738_v62, %v12054_v43  ;;  %v7751_v36 = vmul.f32 %v7739_v41, %v12060_v60  ;;  %v7752_v63 = vmul.f32 %v7740_v49, %v12049_v23  ;;  %v7753_v24 = vmul.f32 %v7741_v28, %v12074_v31 }
0x1a8b   :  { %v7754_v8 = vmul.f32 %v7742_v46, %v12066_v50  ;;  %v7755_v22 = vmul.f32 %v7743_v7, %v12082_v39  ;;  %v7746_v43 = vmul.f32 %v9292_v61, %v9284_v26  ;;  %v7756_v60 = vmul.f32 %v7744_v59, %v12102_v32 }
0x1a8c   :  { %v7762_v42 = vadd.f32 %v7751_v36, %v7750_v10  ;;  %v7747_v1 = vmul.f32 %v9292_v61, %v9286_v27  ;;  %v7757_v23 = vmul.f32 %v7745_v21, %v12090_v13  ;;  %v7748_v12 = vmul.f32 %v9292_v61, %v9288_v33  ;;  %v8427_v13 = vld [vmem:[%s12191_s10] ss:$0 sm:$0xff] }
0x1a8d   :  { %v7758_v31 = vmul.f32 %v7746_v43, %v12110_v58  ;;  %v7749_v5 = vmul.f32 %v9292_v61, %v9290_v0 }
0x1a8e   :  { %v7763_v14 = vadd.f32 %v7762_v42, %v7752_v63  ;;  %v7759_v50 = vmul.f32 %v7747_v1, %v12096_v20  ;;  %v7760_v51 = vmul.f32 %v7748_v12, %v12123_v56 }
0x1a8f   :  { %v7761_v18 = vmul.f32 %v7749_v5, %v12117_v2 }
0x1a90   :  { %v7764_v37 = vadd.f32 %v7763_v14, %v7753_v24 }
0x1a92   :  { %v7765_v52 = vadd.f32 %v7764_v37, %v7754_v8 }
0x1a94   :  { %v7766_v38 = vadd.f32 %v7765_v52, %v7755_v22 }
0x1a96   :  { %v7767_v48 = vadd.f32 %v7766_v38, %v7756_v60 }
0x1a98   :  { %v7768_v6 = vadd.f32 %v7767_v48, %v7757_v23 }
0x1a9a   :  { %v7769_v54 = vadd.f32 %v7768_v6, %v7758_v31 }
0x1a9c   :  { %v7770_v39 = vadd.f32 %v7769_v54, %v7759_v50 }
0x1a9e   :  { %v7771_v25 = vadd.f32 %v7770_v39, %v7760_v51 }
0x1aa0   :  { %v7772_v32 = vadd.f32 %v7771_v25, %v7761_v18 }
0x1aa2   :  { %v7773_v44 = vpack.c.bf16 %v7772_v32, %v7772_v32 }
0x1aa4   :  { %8506 = vmatmul.mubr.bf16.vlgmr.msra.gmra.mrb[144].mxu1 %v7773_v44 }
0x1b77   :  { %v7879_v58 = vpop.f32.mrb[144].mxu1 }
0x1b78   :  { %v7880_v4 = vadd.f32 %v8427_v13, %v7879_v58  ;;  %v8507_v20 = vpop.f32.mrb[145].mxu1 }
0x1b79   :  { %v7882_v45 = vpop.f32.mrb[146].mxu1 }
0x1b7a   :  { %v8508_v56 = vpop.f32.mrb[147].mxu1  ;;  %7886 = vst.msk [vmem:[#allocation16] sm:$0xff] %vm7885_vm5, %v7880_v4 }
0x1b7b   :  { %9370 = shalt.err (!%p9367_p0)
}
0x1b7c   :  { %s9371_s10 = scalar_lea.hbm %s12192_s11, 128 }
0x1b7d   :  { %p9372_p1 = scmp.ne.s32.totalorder %s12192_s11, %s9371_s10  ;;  %p9375_p2 = scmp.lt.u32.totalorder %s9371_s10, %s12192_s11 }
0x1b7f   :  { %p9377_p3 = pnand %p9375_p2, %p9372_p1 }
0x1b81   :  { %9380 = shalt.err (!%p9377_p3)
}
0x1b82   :  { %7896 = dma.vmem_to_hbm [thread:$0]  %s7894_s24, 128, %s12192_s11, [#allocation12]  }
0x1b83   :  { %9389 = dma.done.wait [#allocation12], 128  }
0x1b84   :  { %9390 = vsyncadd [#allocation12], 4294967168 }
0x1b85   :  { %7900 = vsyncpa [#allocation11], 1 }
0x1b86   :  { %7901 = vsyncpa [#allocation14], 1 }
0x1b87   :  { %7902 = vsyncpa [#allocation12], 1 }
0x1b88   :  { %7903 = vsyncmov [#allocation9] }
0x1b8b   :  { %s7904_s8 = vpop.sfrf %7903 }
0x1b8c   :  { %p8436_p4 = scmp.ne.s32.totalorder %s7904_s8, 0 }
0x1b8e   :  { %7908 = shalt.err (%p8436_p4)  }
0x1b8f   :  { %7910 = vsyncmov [#allocation9 + $0x1] }
0x1b92   :  { %s7911_s15 = vpop.sfrf %7910 }
0x1b93   :  { %p8437_p5 = scmp.ne.s32.totalorder %s7911_s15, 0 }
0x1b95   :  { %7915 = shalt.err (%p8437_p5)  }

</bundles_post_ra>
